<compile_context>
chip_gen: v6e
topology: v6e:2x2x1
jax: 0.10.0
libtpu: 0.0.40
codegen_flags: <defaults>
</compile_context>

<pallas_src>
import functools

import jax
import jax.numpy as jnp
from jax.experimental import pallas as pl
from jax.experimental.pallas import tpu as pltpu

_VMEM_LIMIT_CACHE = None


def _vmem_limit_bytes():
    """~3/4 of physical VMEM (96 MiB on v5e/v6e, 48 MiB on v7x); safe fallback."""
    global _VMEM_LIMIT_CACHE
    if _VMEM_LIMIT_CACHE is None:
        try:
            cap = int(pltpu.get_tpu_info().vmem_capacity_bytes)
        except Exception:  # older jax / query unavailable -> conservative default
            cap = 64 * 1024 * 1024
        _VMEM_LIMIT_CACHE = int(min(cap * 3 // 4, 100 * 1024 * 1024))
    return _VMEM_LIMIT_CACHE


def _round_up(x, m):
    return (x + m - 1) // m * m


def _cdiv(a, b):
    return (a + b - 1) // b


def _dot(a, b):
    # Cast the activation to the weight dtype (bf16 on v6e/v7x), accumulate in f32.
    return jnp.dot(a.astype(b.dtype), b, preferred_element_type=jnp.float32)


def _layernorm(x, g, b, eps=1e-5):
    mu = jnp.mean(x, axis=-1, keepdims=True)
    var = jnp.mean((x - mu) ** 2, axis=-1, keepdims=True)
    return (x - mu) * jax.lax.rsqrt(var + eps) * g + b


# -----------------------------------------------------------------------------
# Kernel 1: fused hk/hv MLPs + edge-weight net ('r') + v * e_w        (edge tiles)
#   first layer = split-by-row-group matmuls on edge_feat | r | h[dst] | h[src]
#   (no [E, kv_in] concat slab), output = lane-dense [e_tile, 2*D] (k | v*ew).
# -----------------------------------------------------------------------------
def kv_ew_kernel(ef_ref, r_ref, hi_ref, hj_ref,
                 w1e_ref, w1r_ref, w1i_ref, w1j_ref, b1_ref,
                 gk_ref, bk_ref, gv_ref, bv_ref,
                 w2k_ref, b2k_ref, w2v_ref, b2v_ref,
                 eww_ref, ewb_ref, kv_ref, *, hidden):
    h1 = (_dot(ef_ref[...], w1e_ref[...]) + _dot(r_ref[...], w1r_ref[...])
          + _dot(hi_ref[...], w1i_ref[...]) + _dot(hj_ref[...], w1j_ref[...])
          + b1_ref[...])                                        # (et, 2*hidden) f32
    hk = jnp.maximum(_layernorm(h1[:, :hidden], gk_ref[...], bk_ref[...]), 0.0)
    hv = jnp.maximum(_layernorm(h1[:, hidden:], gv_ref[...], bv_ref[...]), 0.0)
    k = _dot(hk, w2k_ref[...]) + b2k_ref[...]                   # (et, D)
    v = _dot(hv, w2v_ref[...]) + b2v_ref[...]                   # (et, D)
    # ew_net ('r'): sigmoid(r @ w + b) as a lane reduce (avoids a width-1 matmul)
    ew = jax.nn.sigmoid(
        jnp.sum(r_ref[...].astype(jnp.float32) * eww_ref[...], axis=-1,
                keepdims=True) + ewb_ref[...])
    kv_ref[...] = jnp.concatenate([k, v * ew], axis=-1).astype(kv_ref.dtype)


def kv_ew_forward(ef, r, hi, hj, p, *, e_tile):
    e_pad = ef.shape[0]
    hidden = p["gk"].shape[1]
    d = p["w2k"].shape[1]
    cd = p["w2k"].dtype
    weights = [p["w1e"], p["w1r"], p["w1i"], p["w1j"], p["b1"],
               p["gk"], p["bk"], p["gv"], p["bv"],
               p["w2k"], p["b2k"], p["w2v"], p["b2v"], p["eww"], p["ewb"]]
    # TODO(synk): on v7x, mark these constant weight blocks pipeline_mode=pl.Buffered(1)
    # to halve their VMEM footprint at real model dims.
    full = lambda a: pl.BlockSpec(a.shape, lambda i: (0, 0))
    edge = lambda a: pl.BlockSpec((e_tile, a.shape[1]), lambda i: (i, 0))
    return pl.pallas_call(
        functools.partial(kv_ew_kernel, hidden=hidden),
        out_shape=jax.ShapeDtypeStruct((e_pad, 2 * d), cd),
        grid=(e_pad // e_tile,),
        in_specs=[edge(ef), edge(r), edge(hi), edge(hj)] + [full(w) for w in weights],
        out_specs=pl.BlockSpec((e_tile, 2 * d), lambda i: (i, 0)),
        compiler_params=pltpu.CompilerParams(
            dimension_semantics=("parallel",),
            vmem_limit_bytes=_vmem_limit_bytes()),
    )(ef, r, hi, hj, *weights)


# -----------------------------------------------------------------------------
# Kernel 2: fused hq MLP + online scatter-softmax attention + output MLP + residual
#   grid = (node tiles [parallel], edge tiles [arbitrary, data-dependent via CSR]).
# -----------------------------------------------------------------------------
def attn_out_kernel(ts_ref, tc_ref, dst_ref, kv_ref, h_ref,
                    qw1_ref, qb1_ref, qg_ref, qbe_ref, qw2_ref, qb2_ref,
                    ow1a_ref, ow1b_ref, ob1_ref, og_ref, obe_ref, ow2_ref, ob2_ref,
                    o_ref, q_sc, m_sc, l_sc, acc_sc, *, n_heads):
    ni = pl.program_id(0)
    ei = pl.program_id(1)
    n_tile, d = q_sc.shape
    e_tile = kv_ref.shape[0]
    dh = d // n_heads
    neg = jnp.float32(-1e30)  # finite sentinel: exp(neg - neg) = 1 but masked to 0

    @pl.when(ei == 0)
    def _init():
        # fused hq MLP for this node tile (1/sqrt(d_head) pre-folded into w2/b2)
        h1 = _dot(h_ref[...], qw1_ref[...]) + qb1_ref[...]
        hn = jnp.maximum(_layernorm(h1, qg_ref[...], qbe_ref[...]), 0.0)
        q_sc[...] = _dot(hn, qw2_ref[...]) + qb2_ref[...]
        m_sc[...] = jnp.full_like(m_sc, neg)
        l_sc[...] = jnp.zeros_like(l_sc)
        acc_sc[...] = jnp.zeros_like(acc_sc)

    # online scatter-softmax over this node tile's own edge tiles only
    @pl.when(ei < tc_ref[ni])
    def _update():
        node_ids = (jax.lax.broadcasted_iota(jnp.int32, (n_tile, e_tile), 0)
                    + ni * n_tile)
        mask_b = node_ids == dst_ref[...]                     # (n_tile, e_tile)
        mask_f = mask_b.astype(jnp.float32)

        kv = kv_ref[...]
        q = q_sc[...]
        m_old = m_sc[...]
        l_old = l_sc[...]
        acc_old = acc_sc[...]

        m_parts, l_parts, acc_parts = [], [], []
        for hd in range(n_heads):                             # H small, unrolled
            qh = q[:, hd * dh:(hd + 1) * dh]
            kh = kv[:, hd * dh:(hd + 1) * dh]
            vh = kv[:, d + hd * dh:d + (hd + 1) * dh]
            # per-head logits on the MXU: (n_tile, dh) @ (dh, e_tile)
            logits = jax.lax.dot_general(
                qh.astype(kh.dtype), kh,
                dimension_numbers=(((1,), (1,)), ((), ())),
                preferred_element_type=jnp.float32)           # (n_tile, e_tile)
            # only the owning row of each edge column matters -> per-column scalar
            col_logit = jnp.sum(jnp.where(mask_b, logits, 0.0), axis=0,
                                keepdims=True)                # (1, e_tile)
            lm = jnp.where(mask_b, col_logit, neg)
            tmax = jnp.max(lm, axis=1, keepdims=True)         # (n_tile, 1)
            m_o = m_old[:, hd:hd + 1]
            m_n = jnp.maximum(m_o, tmax)
            corr = jnp.exp(m_o - m_n)                         # (n_tile, 1) exp
            # owner's running max per column, then a single (1, e_tile) exp
            m_sel = jnp.sum(mask_f * m_n, axis=0, keepdims=True)
            p_col = jnp.exp(col_logit - m_sel)                # <= 1 on member cols
            p = jnp.where(mask_b, p_col, 0.0)                 # (n_tile, e_tile), VPU
            l_parts.append(corr * l_old[:, hd:hd + 1]
                           + jnp.sum(p, axis=1, keepdims=True))
            acc_parts.append(corr * acc_old[:, hd * dh:(hd + 1) * dh] + _dot(p, vh))
            m_parts.append(m_n)
        # single full-width scratch writes (no per-head narrow stores)
        m_sc[...] = jnp.concatenate(m_parts, axis=1)
        l_sc[...] = jnp.concatenate(l_parts, axis=1)
        acc_sc[...] = jnp.concatenate(acc_parts, axis=1)

    @pl.when(ei == pl.num_programs(1) - 1)
    def _finalize():
        l = l_sc[...]
        l_safe = jnp.where(l > 0.0, l, 1.0)                   # nodes without edges
        inv = pl.reciprocal(l_safe, approx=True)              # EUP slot
        inv = inv * (2.0 - l_safe * inv)                      # one Newton step
        sel = (jax.lax.broadcasted_iota(jnp.int32, (n_heads, d), 1) // dh
               == jax.lax.broadcasted_iota(jnp.int32, (n_heads, d), 0)
               ).astype(jnp.float32)
        agg = acc_sc[...] * jnp.dot(inv, sel, preferred_element_type=jnp.float32)
        # fused output MLP on concat([agg, h]) (split-w1 matmuls) + residual add
        h = h_ref[...]
        h1 = _dot(agg, ow1a_ref[...]) + _dot(h, ow1b_ref[...]) + ob1_ref[...]
        hn = jnp.maximum(_layernorm(h1, og_ref[...], obe_ref[...]), 0.0)
        o_ref[...] = (_dot(hn, ow2_ref[...]) + ob2_ref[...] + h).astype(o_ref.dtype)


def attn_out_forward(tile_start, tile_count, dst2d, kv, h_nodes, hq_p, out_p,
                     *, n_heads, n_tile, e_tile, max_tiles):
    n_pad, d_in = h_nodes.shape
    e_pad, two_d = kv.shape
    d = two_d // 2
    d_out = out_p["w2"].shape[1]
    num_n_tiles = n_pad // n_tile

    hq_w = [hq_p["w1"], hq_p["b1"], hq_p["gamma"], hq_p["beta"],
            hq_p["w2"], hq_p["b2"]]
    out_w = [out_p["w1a"], out_p["w1b"], out_p["b1"], out_p["gamma"],
             out_p["beta"], out_p["w2"], out_p["b2"]]

    def edge_tile(ni, ei, ts, tc):
        # Clamp: steps past this node tile's last edge tile re-use the same block
        # (no new DMA) and are compute-skipped by @pl.when(ei < tc[ni]) in the kernel.
        return ts[ni] + jnp.minimum(ei, jnp.maximum(tc[ni] - 1, 0))

    full = lambda a: pl.BlockSpec(a.shape, lambda ni, ei, ts, tc: (0, 0))

    grid_spec = pltpu.PrefetchScalarGridSpec(
        num_scalar_prefetch=2,
        grid=(num_n_tiles, max_tiles),
        in_specs=[
            pl.BlockSpec((1, e_tile),
                         lambda ni, ei, ts, tc: (0, edge_tile(ni, ei, ts, tc))),
            pl.BlockSpec((e_tile, two_d),
                         lambda ni, ei, ts, tc: (edge_tile(ni, ei, ts, tc), 0)),
            pl.BlockSpec((n_tile, d_in), lambda ni, ei, ts, tc: (ni, 0)),
        ] + [full(w) for w in hq_w] + [full(w) for w in out_w],
        out_specs=pl.BlockSpec((n_tile, d_out), lambda ni, ei, ts, tc: (ni, 0)),
        scratch_shapes=[
            pltpu.VMEM((n_tile, d), jnp.float32),        # q for this node tile
            pltpu.VMEM((n_tile, n_heads), jnp.float32),  # running max
            pltpu.VMEM((n_tile, n_heads), jnp.float32),  # running denom
            pltpu.VMEM((n_tile, d), jnp.float32),        # running weighted sum
        ],
    )
    return pl.pallas_call(
        functools.partial(attn_out_kernel, n_heads=n_heads),
        out_shape=jax.ShapeDtypeStruct((n_pad, d_out), jnp.float32),
        grid_spec=grid_spec,
        compiler_params=pltpu.CompilerParams(
            dimension_semantics=("parallel", "arbitrary"),
            vmem_limit_bytes=_vmem_limit_bytes()),
    )(tile_start, tile_count, dst2d, kv, h_nodes, *hq_w, *out_w)


# -----------------------------------------------------------------------------
# Parameter preparation: fusion / splitting / scale folding / dtype casting
# -----------------------------------------------------------------------------
def prepare_params(raw, n_heads, input_dim, edge_feat_dim, r_feat_dim,
                   compute_dtype=jnp.bfloat16):
    """compute_dtype: matmul-operand dtype (bf16 recommended on v6e/v7x).
    Biases / LayerNorm params / softmax statistics stay f32."""
    cd = compute_dtype
    d_out = raw["hq"]["w2"].shape[1]
    dh = d_out // n_heads
    scale = 1.0 / jnp.sqrt(jnp.float32(dh))

    hq = {
        "w1": raw["hq"]["w1"].astype(cd),
        "b1": raw["hq"]["b1"],
        "gamma": raw["hq"]["gamma"], "beta": raw["hq"]["beta"],
        "w2": (raw["hq"]["w2"] * scale).astype(cd),   # fold 1/sqrt(d_head)
        "b2": raw["hq"]["b2"] * scale,
    }
    # split hk/hv first-layer weights by input row group (edge_feat | r | h_dst | h_src)
    e0 = edge_feat_dim
    e1 = e0 + r_feat_dim
    e2 = e1 + input_dim
    cat = lambda a, b: jnp.concatenate([a, b], axis=1)
    kv = {
        "w1e": cat(raw["hk"]["w1"][:e0], raw["hv"]["w1"][:e0]).astype(cd),
        "w1r": cat(raw["hk"]["w1"][e0:e1], raw["hv"]["w1"][e0:e1]).astype(cd),
        "w1i": cat(raw["hk"]["w1"][e1:e2], raw["hv"]["w1"][e1:e2]).astype(cd),
        "w1j": cat(raw["hk"]["w1"][e2:], raw["hv"]["w1"][e2:]).astype(cd),
        "b1": cat(raw["hk"]["b1"], raw["hv"]["b1"]),
        "gk": raw["hk"]["gamma"], "bk": raw["hk"]["beta"],
        "gv": raw["hv"]["gamma"], "bv": raw["hv"]["beta"],
        "w2k": raw["hk"]["w2"].astype(cd), "b2k": raw["hk"]["b2"],
        "w2v": raw["hv"]["w2"].astype(cd), "b2v": raw["hv"]["b2"],
        "eww": raw["ew_w"].reshape(1, -1),            # (1, r_feat_dim) lane-reduce row
        "ewb": raw["ew_b"],
    }
    out = {
        "w1a": raw["out"]["w1"][:d_out].astype(cd),   # rows acting on agg
        "w1b": raw["out"]["w1"][d_out:].astype(cd),   # rows acting on h
        "b1": raw["out"]["b1"],
        "gamma": raw["out"]["gamma"], "beta": raw["out"]["beta"],
        "w2": raw["out"]["w2"].astype(cd), "b2": raw["out"]["b2"],
    }
    return {"hq": hq, "kv": kv, "out": out}


# -----------------------------------------------------------------------------
# Full BaseX2HAttLayer forward (ew_net_type='r', norm=True, act='relu', out_fc=True)
# -----------------------------------------------------------------------------
def base_x2h_att_forward(h, r_feat, edge_feat, edge_index, params, n_heads,
                         *, n_tile=None, e_tile=None):
    """Runs eagerly: the second grid extent (max edge tiles per node tile) is
    data-dependent.  In production, jit everything with that extent (or its
    worst-case bound ceil(E/e_tile)+1) passed as a static argument."""
    n, d_in = h.shape
    e = r_feat.shape[0]
    d = params["hq"]["w2"].shape[1]
    assert d % n_heads == 0

    # tile sizes: keep >=2 node tiles where possible (v7x shares the parallel axis
    # across 2 TensorCores), cap per review guidance.
    if n_tile is None:
        n_tile = int(min(128, max(8, _round_up(_cdiv(n, 2), 8))))
    if e_tile is None:
        e_tile = int(min(512, max(128, _round_up(max(e, 1), 128))))

    src = edge_index[0].astype(jnp.int32)
    dst = edge_index[1].astype(jnp.int32)
    n_pad = _round_up(n, n_tile)
    e_pad = _round_up(max(e, 1), e_tile)
    num_n_tiles = n_pad // n_tile
    num_e_tiles = e_pad // e_tile

    # sort edges by destination so each node tile's edges are contiguous (CSR)
    order = jnp.argsort(dst)
    dst_s, src_s = dst[order], src[order]
    r_s, ef_s = r_feat[order], edge_feat[order]

    pad_e = e_pad - e
    if pad_e:
        dst_sp = jnp.concatenate([dst_s, jnp.full((pad_e,), n_pad, jnp.int32)])
        src_sp = jnp.concatenate([src_s, jnp.zeros((pad_e,), jnp.int32)])
    else:
        dst_sp, src_sp = dst_s, src_s
    r_sp = jnp.pad(r_s, ((0, pad_e), (0, 0)))
    ef_sp = jnp.pad(ef_s, ((0, pad_e), (0, 0)))
    h_p = jnp.pad(h, ((0, n_pad - n), (0, 0)))

    # CSR-style per-node-tile edge-tile ranges (scalar-prefetched into SMEM)
    bounds = jnp.arange(num_n_tiles + 1, dtype=jnp.int32) * n_tile
    cuts = jnp.searchsorted(dst_sp, bounds, side="left").astype(jnp.int32)
    lo, hi_ = cuts[:-1], cuts[1:]
    t_lo = lo // e_tile
    t_hi = jnp.where(hi_ > lo, (hi_ - 1) // e_tile + 1, t_lo)
    tile_count = (t_hi - t_lo).astype(jnp.int32)
    tile_start = jnp.minimum(t_lo, num_e_tiles - 1).astype(jnp.int32)
    max_tiles = max(int(jnp.max(tile_count)), 1)

    cd = params["kv"]["w2k"].dtype
    # TODO(synk): fuse these endpoint gathers into the kv kernel (scalar-prefetch the
    # src/dst ids + in-kernel DMA gather) to drop the two [E, D] HBM slabs.
    hi_nodes = jnp.take(h_p, jnp.minimum(dst_sp, n_pad - 1), axis=0).astype(cd)
    hj_nodes = jnp.take(h_p, src_sp, axis=0).astype(cd)

    kv = kv_ew_forward(ef_sp.astype(cd), r_sp.astype(cd), hi_nodes, hj_nodes,
                       params["kv"], e_tile=e_tile)              # [E_pad, 2*D]
    out = attn_out_forward(tile_start, tile_count, dst_sp.reshape(1, -1), kv, h_p,
                           params["hq"], params["out"], n_heads=n_heads,
                           n_tile=n_tile, e_tile=e_tile, max_tiles=max_tiles)
    return out[:n]


# -----------------------------------------------------------------------------
# Pure-JAX reference (mirrors the PyTorch module)
# -----------------------------------------------------------------------------
def _mlp_ref(x, p):
    h1 = x @ p["w1"] + p["b1"][0]
    mu = h1.mean(-1, keepdims=True)
    var = ((h1 - mu) ** 2).mean(-1, keepdims=True)
    h1 = (h1 - mu) / jnp.sqrt(var + 1e-5) * p["gamma"][0] + p["beta"][0]
    h1 = jnp.maximum(h1, 0.0)
    return h1 @ p["w2"] + p["b2"][0]


def ref_forward(h, r_feat, edge_feat, edge_index, params, n_heads):
    src, dst = edge_index[0], edge_index[1]
    n = h.shape[0]
    e = src.shape[0]
    kv_input = jnp.concatenate([edge_feat, r_feat, h[dst], h[src]], -1)
    k = _mlp_ref(kv_input, params["hk"])
    v = _mlp_ref(kv_input, params["hv"])
    e_w = jax.nn.sigmoid(r_feat @ params["ew_w"] + params["ew_b"][0])
    v = v * e_w
    q = _mlp_ref(h, params["hq"])
    d = q.shape[1]
    dh = d // n_heads
    logits = ((q[dst] * k).reshape(e, n_heads, dh).sum(-1)) / jnp.sqrt(
        jnp.float32(dh))
    node_max = jax.ops.segment_max(logits, dst, num_segments=n)
    ex = jnp.exp(logits - node_max[dst])
    denom = jax.ops.segment_sum(ex, dst, num_segments=n)
    alpha = ex / denom[dst]
    msg = (alpha[:, :, None] * v.reshape(e, n_heads, dh)).reshape(e, d)
    agg = jax.ops.segment_sum(msg, dst, num_segments=n)
    out = _mlp_ref(jnp.concatenate([agg, h], -1), params["out"])
    return out + h


# -----------------------------------------------------------------------------
# Deterministic parameter init (shapes follow the module's __init__)
# -----------------------------------------------------------------------------
def init_mlp(key, in_dim, hidden, out_dim):
    k1, k2, k3, k4 = jax.random.split(key, 4)
    return {
        "w1": jax.random.normal(k1, (in_dim, hidden), jnp.float32) / jnp.sqrt(in_dim),
        "b1": 0.01 * jax.random.normal(k2, (1, hidden), jnp.float32),
        "gamma": jnp.ones((1, hidden), jnp.float32),
        "beta": jnp.zeros((1, hidden), jnp.float32),
        "w2": jax.random.normal(k3, (hidden, out_dim), jnp.float32) / jnp.sqrt(hidden),
        "b2": 0.01 * jax.random.normal(k4, (1, out_dim), jnp.float32),
    }


if __name__ == "__main__":
    # small, module-consistent shapes; enough edges to exercise multiple edge tiles,
    # cross-node-tile straddling tiles, the CSR clamp/skip path and an empty node.
    N, E = 20, 1200
    input_dim = hidden_dim = output_dim = 32
    n_heads = 4
    edge_feat_dim = 4
    r_feat_dim = 16
    kv_input_dim = input_dim * 2 + edge_feat_dim + r_feat_dim

    key = jax.random.PRNGKey(0)
    keys = jax.random.split(key, 12)

    raw = {
        "hk": init_mlp(keys[0], kv_input_dim, hidden_dim, output_dim),
        "hv": init_mlp(keys[1], kv_input_dim, hidden_dim, output_dim),
        "hq": init_mlp(keys[2], input_dim, hidden_dim, output_dim),
        "out": init_mlp(keys[3], 2 * hidden_dim, hidden_dim, hidden_dim),
        "ew_w": jax.random.normal(keys[4], (r_feat_dim, 1), jnp.float32)
                / jnp.sqrt(r_feat_dim),
        "ew_b": 0.01 * jax.random.normal(keys[5], (1, 1), jnp.float32),
    }

    h = jax.random.normal(keys[6], (N, input_dim), jnp.float32)
    r_feat = jax.random.normal(keys[7], (E, r_feat_dim), jnp.float32)
    edge_feat = jax.random.normal(keys[8], (E, edge_feat_dim), jnp.float32)
    src = jax.random.randint(keys[9], (E,), 0, N, dtype=jnp.int32)
    # skewed destinations -> per-node-tile edge-tile counts differ
    dst = jnp.clip((jnp.abs(jax.random.normal(keys[10], (E,))) * 8.0)
                   .astype(jnp.int32), 0, N - 1)
    dst = jnp.where(dst == N - 1, 0, dst)      # node N-1 gets no incoming edges
    edge_index = jnp.stack([src, dst], axis=0)

    ref = ref_forward(h, r_feat, edge_feat, edge_index, raw, n_heads)

    # f32 path: tight numerical check.  bf16 path (recommended on v6e/v7x): loose
    # structural check (bf16 matmul operands, f32 accumulation / softmax stats).
    for cd, atol, rtol in [(jnp.float32, 2e-3, 2e-3), (jnp.bfloat16, 2.5e-1, 5e-2)]:
        params = prepare_params(raw, n_heads, input_dim, edge_feat_dim, r_feat_dim,
                                compute_dtype=cd)
        out = base_x2h_att_forward(h, r_feat, edge_feat, edge_index, params, n_heads)
        out = jax.block_until_ready(out)
        assert out.shape == (N, hidden_dim)
        max_err = float(jnp.max(jnp.abs(out - ref)))
        assert jnp.allclose(out, ref, atol=atol, rtol=rtol), (str(cd), max_err)

    print("KERNEL_OK")
</pallas_src>

<mosaic_0001>
module attributes {stable_mosaic.version = 11 : i64} {
  func.func @kv_ew_kernel(%arg0: i32, %arg1: memref<512x4xf32, #tpu.memory_space<vmem>>, %arg2: memref<512x16xf32, #tpu.memory_space<vmem>>, %arg3: memref<512x32xf32, #tpu.memory_space<vmem>>, %arg4: memref<512x32xf32, #tpu.memory_space<vmem>>, %arg5: memref<4x64xf32, #tpu.memory_space<vmem>>, %arg6: memref<16x64xf32, #tpu.memory_space<vmem>>, %arg7: memref<32x64xf32, #tpu.memory_space<vmem>>, %arg8: memref<32x64xf32, #tpu.memory_space<vmem>>, %arg9: memref<1x64xf32, #tpu.memory_space<vmem>>, %arg10: memref<1x32xf32, #tpu.memory_space<vmem>>, %arg11: memref<1x32xf32, #tpu.memory_space<vmem>>, %arg12: memref<1x32xf32, #tpu.memory_space<vmem>>, %arg13: memref<1x32xf32, #tpu.memory_space<vmem>>, %arg14: memref<32x32xf32, #tpu.memory_space<vmem>>, %arg15: memref<1x32xf32, #tpu.memory_space<vmem>>, %arg16: memref<32x32xf32, #tpu.memory_space<vmem>>, %arg17: memref<1x32xf32, #tpu.memory_space<vmem>>, %arg18: memref<1x16xf32, #tpu.memory_space<vmem>>, %arg19: memref<1x1xf32, #tpu.memory_space<vmem>>, %arg20: memref<512x64xf32, #tpu.memory_space<vmem>>) attributes {dimension_semantics = [#tpu.dimension_semantics<parallel>], iteration_bounds = array<i64: 3>, scalar_prefetch = 0 : i64, scratch_operands = 0 : i64, tpu.core_type = #tpu.core_type<tc>, window_params = [{transform_indices = @transform_0, window_bounds = array<i64: 512, 4>}, {transform_indices = @transform_1, window_bounds = array<i64: 512, 16>}, {transform_indices = @transform_2, window_bounds = array<i64: 512, 32>}, {transform_indices = @transform_3, window_bounds = array<i64: 512, 32>}, {pipeline_mode = #tpu.pipeline_mode<synchronous>, transform_indices = @transform_4, window_bounds = array<i64: 4, 64>}, {pipeline_mode = #tpu.pipeline_mode<synchronous>, transform_indices = @transform_5, window_bounds = array<i64: 16, 64>}, {pipeline_mode = #tpu.pipeline_mode<synchronous>, transform_indices = @transform_6, window_bounds = array<i64: 32, 64>}, {pipeline_mode = #tpu.pipeline_mode<synchronous>, transform_indices = @transform_7, window_bounds = array<i64: 32, 64>}, {pipeline_mode = #tpu.pipeline_mode<synchronous>, transform_indices = @transform_8, window_bounds = array<i64: 1, 64>}, {pipeline_mode = #tpu.pipeline_mode<synchronous>, transform_indices = @transform_9, window_bounds = array<i64: 1, 32>}, {pipeline_mode = #tpu.pipeline_mode<synchronous>, transform_indices = @transform_10, window_bounds = array<i64: 1, 32>}, {pipeline_mode = #tpu.pipeline_mode<synchronous>, transform_indices = @transform_11, window_bounds = array<i64: 1, 32>}, {pipeline_mode = #tpu.pipeline_mode<synchronous>, transform_indices = @transform_12, window_bounds = array<i64: 1, 32>}, {pipeline_mode = #tpu.pipeline_mode<synchronous>, transform_indices = @transform_13, window_bounds = array<i64: 32, 32>}, {pipeline_mode = #tpu.pipeline_mode<synchronous>, transform_indices = @transform_14, window_bounds = array<i64: 1, 32>}, {pipeline_mode = #tpu.pipeline_mode<synchronous>, transform_indices = @transform_15, window_bounds = array<i64: 32, 32>}, {pipeline_mode = #tpu.pipeline_mode<synchronous>, transform_indices = @transform_16, window_bounds = array<i64: 1, 32>}, {pipeline_mode = #tpu.pipeline_mode<synchronous>, transform_indices = @transform_17, window_bounds = array<i64: 1, 16>}, {pipeline_mode = #tpu.pipeline_mode<synchronous>, transform_indices = @transform_18, window_bounds = array<i64: 1, 1>}, {transform_indices = @transform_19, window_bounds = array<i64: 512, 64>}]} {
    %c0 = arith.constant 0 : index
    %c0_0 = arith.constant 0 : index
    %0 = vector.load %arg1[%c0, %c0_0] : memref<512x4xf32, #tpu.memory_space<vmem>>, vector<512x4xf32>
    %c0_1 = arith.constant 0 : index
    %c0_2 = arith.constant 0 : index
    %1 = vector.load %arg5[%c0_1, %c0_2] : memref<4x64xf32, #tpu.memory_space<vmem>>, vector<4x64xf32>
    %cst = arith.constant dense<0.000000e+00> : vector<512x64xf32>
    %2 = tpu.matmul %0, %1, %cst {dimension_numbers = #tpu.dot_dimension_numbers<[1], [0], [0], [1], [0, 0, 1, 1], [], []>} : vector<512x4xf32>, vector<4x64xf32>, vector<512x64xf32> -> vector<512x64xf32>
    %c0_3 = arith.constant 0 : index
    %c0_4 = arith.constant 0 : index
    %3 = vector.load %arg2[%c0_3, %c0_4] : memref<512x16xf32, #tpu.memory_space<vmem>>, vector<512x16xf32>
    %c0_5 = arith.constant 0 : index
    %c0_6 = arith.constant 0 : index
    %4 = vector.load %arg6[%c0_5, %c0_6] : memref<16x64xf32, #tpu.memory_space<vmem>>, vector<16x64xf32>
    %cst_7 = arith.constant dense<0.000000e+00> : vector<512x64xf32>
    %5 = tpu.matmul %3, %4, %cst_7 {dimension_numbers = #tpu.dot_dimension_numbers<[1], [0], [0], [1], [0, 0, 1, 1], [], []>} : vector<512x16xf32>, vector<16x64xf32>, vector<512x64xf32> -> vector<512x64xf32>
    %6 = arith.addf %2, %5 : vector<512x64xf32>
    %c0_8 = arith.constant 0 : index
    %c0_9 = arith.constant 0 : index
    %7 = vector.load %arg3[%c0_8, %c0_9] : memref<512x32xf32, #tpu.memory_space<vmem>>, vector<512x32xf32>
    %c0_10 = arith.constant 0 : index
    %c0_11 = arith.constant 0 : index
    %8 = vector.load %arg7[%c0_10, %c0_11] : memref<32x64xf32, #tpu.memory_space<vmem>>, vector<32x64xf32>
    %cst_12 = arith.constant dense<0.000000e+00> : vector<512x64xf32>
    %9 = tpu.matmul %7, %8, %cst_12 {dimension_numbers = #tpu.dot_dimension_numbers<[1], [0], [0], [1], [0, 0, 1, 1], [], []>} : vector<512x32xf32>, vector<32x64xf32>, vector<512x64xf32> -> vector<512x64xf32>
    %10 = arith.addf %6, %9 : vector<512x64xf32>
    %c0_13 = arith.constant 0 : index
    %c0_14 = arith.constant 0 : index
    %11 = vector.load %arg4[%c0_13, %c0_14] : memref<512x32xf32, #tpu.memory_space<vmem>>, vector<512x32xf32>
    %c0_15 = arith.constant 0 : index
    %c0_16 = arith.constant 0 : index
    %12 = vector.load %arg8[%c0_15, %c0_16] : memref<32x64xf32, #tpu.memory_space<vmem>>, vector<32x64xf32>
    %cst_17 = arith.constant dense<0.000000e+00> : vector<512x64xf32>
    %13 = tpu.matmul %11, %12, %cst_17 {dimension_numbers = #tpu.dot_dimension_numbers<[1], [0], [0], [1], [0, 0, 1, 1], [], []>} : vector<512x32xf32>, vector<32x64xf32>, vector<512x64xf32> -> vector<512x64xf32>
    %14 = arith.addf %10, %13 : vector<512x64xf32>
    %c0_18 = arith.constant 0 : index
    %c0_19 = arith.constant 0 : index
    %15 = vector.load %arg9[%c0_18, %c0_19] : memref<1x64xf32, #tpu.memory_space<vmem>>, vector<1x64xf32>
    %16 = vector.broadcast %15 : vector<1x64xf32> to vector<512x64xf32>
    %17 = arith.addf %14, %16 : vector<512x64xf32>
    %18 = vector.extract_strided_slice %17 {offsets = [0, 0], sizes = [512, 32], strides = [1, 1]} : vector<512x64xf32> to vector<512x32xf32>
    %c0_20 = arith.constant 0 : index
    %c0_21 = arith.constant 0 : index
    %19 = vector.load %arg10[%c0_20, %c0_21] : memref<1x32xf32, #tpu.memory_space<vmem>>, vector<1x32xf32>
    %c0_22 = arith.constant 0 : index
    %c0_23 = arith.constant 0 : index
    %20 = vector.load %arg11[%c0_22, %c0_23] : memref<1x32xf32, #tpu.memory_space<vmem>>, vector<1x32xf32>
    %cst_24 = arith.constant dense<0.000000e+00> : vector<512xf32>
    %21 = vector.multi_reduction <add>, %18, %cst_24 [1] : vector<512x32xf32> to vector<512xf32>
    %22 = vector.shape_cast %21 : vector<512xf32> to vector<512x1xf32>
    %cst_25 = arith.constant 3.200000e+01 : f32
    %23 = vector.broadcast %cst_25 : f32 to vector<512x1xf32>
    %24 = arith.divf %22, %23 : vector<512x1xf32>
    %25 = vector.broadcast %24 : vector<512x1xf32> to vector<512x32xf32>
    %26 = arith.subf %18, %25 : vector<512x32xf32>
    %27 = arith.mulf %26, %26 : vector<512x32xf32>
    %cst_26 = arith.constant dense<0.000000e+00> : vector<512xf32>
    %28 = vector.multi_reduction <add>, %27, %cst_26 [1] : vector<512x32xf32> to vector<512xf32>
    %29 = vector.shape_cast %28 : vector<512xf32> to vector<512x1xf32>
    %cst_27 = arith.constant 3.200000e+01 : f32
    %30 = vector.broadcast %cst_27 : f32 to vector<512x1xf32>
    %31 = arith.divf %29, %30 : vector<512x1xf32>
    %32 = vector.broadcast %24 : vector<512x1xf32> to vector<512x32xf32>
    %33 = arith.subf %18, %32 : vector<512x32xf32>
    %cst_28 = arith.constant 9.99999974E-6 : f32
    %34 = vector.broadcast %cst_28 : f32 to vector<512x1xf32>
    %35 = arith.addf %31, %34 : vector<512x1xf32>
    %36 = math.rsqrt %35 : vector<512x1xf32>
    %37 = vector.broadcast %36 : vector<512x1xf32> to vector<512x32xf32>
    %38 = arith.mulf %33, %37 : vector<512x32xf32>
    %39 = vector.broadcast %19 : vector<1x32xf32> to vector<512x32xf32>
    %40 = arith.mulf %38, %39 : vector<512x32xf32>
    %41 = vector.broadcast %20 : vector<1x32xf32> to vector<512x32xf32>
    %42 = arith.addf %40, %41 : vector<512x32xf32>
    %cst_29 = arith.constant 0.000000e+00 : f32
    %43 = vector.broadcast %cst_29 : f32 to vector<512x32xf32>
    %44 = arith.maximumf %42, %43 : vector<512x32xf32>
    %45 = vector.extract_strided_slice %17 {offsets = [0, 32], sizes = [512, 32], strides = [1, 1]} : vector<512x64xf32> to vector<512x32xf32>
    %c0_30 = arith.constant 0 : index
    %c0_31 = arith.constant 0 : index
    %46 = vector.load %arg12[%c0_30, %c0_31] : memref<1x32xf32, #tpu.memory_space<vmem>>, vector<1x32xf32>
    %c0_32 = arith.constant 0 : index
    %c0_33 = arith.constant 0 : index
    %47 = vector.load %arg13[%c0_32, %c0_33] : memref<1x32xf32, #tpu.memory_space<vmem>>, vector<1x32xf32>
    %cst_34 = arith.constant dense<0.000000e+00> : vector<512xf32>
    %48 = vector.multi_reduction <add>, %45, %cst_34 [1] : vector<512x32xf32> to vector<512xf32>
    %49 = vector.shape_cast %48 : vector<512xf32> to vector<512x1xf32>
    %cst_35 = arith.constant 3.200000e+01 : f32
    %50 = vector.broadcast %cst_35 : f32 to vector<512x1xf32>
    %51 = arith.divf %49, %50 : vector<512x1xf32>
    %52 = vector.broadcast %51 : vector<512x1xf32> to vector<512x32xf32>
    %53 = arith.subf %45, %52 : vector<512x32xf32>
    %54 = arith.mulf %53, %53 : vector<512x32xf32>
    %cst_36 = arith.constant dense<0.000000e+00> : vector<512xf32>
    %55 = vector.multi_reduction <add>, %54, %cst_36 [1] : vector<512x32xf32> to vector<512xf32>
    %56 = vector.shape_cast %55 : vector<512xf32> to vector<512x1xf32>
    %cst_37 = arith.constant 3.200000e+01 : f32
    %57 = vector.broadcast %cst_37 : f32 to vector<512x1xf32>
    %58 = arith.divf %56, %57 : vector<512x1xf32>
    %59 = vector.broadcast %51 : vector<512x1xf32> to vector<512x32xf32>
    %60 = arith.subf %45, %59 : vector<512x32xf32>
    %cst_38 = arith.constant 9.99999974E-6 : f32
    %61 = vector.broadcast %cst_38 : f32 to vector<512x1xf32>
    %62 = arith.addf %58, %61 : vector<512x1xf32>
    %63 = math.rsqrt %62 : vector<512x1xf32>
    %64 = vector.broadcast %63 : vector<512x1xf32> to vector<512x32xf32>
    %65 = arith.mulf %60, %64 : vector<512x32xf32>
    %66 = vector.broadcast %46 : vector<1x32xf32> to vector<512x32xf32>
    %67 = arith.mulf %65, %66 : vector<512x32xf32>
    %68 = vector.broadcast %47 : vector<1x32xf32> to vector<512x32xf32>
    %69 = arith.addf %67, %68 : vector<512x32xf32>
    %cst_39 = arith.constant 0.000000e+00 : f32
    %70 = vector.broadcast %cst_39 : f32 to vector<512x32xf32>
    %71 = arith.maximumf %69, %70 : vector<512x32xf32>
    %c0_40 = arith.constant 0 : index
    %c0_41 = arith.constant 0 : index
    %72 = vector.load %arg14[%c0_40, %c0_41] : memref<32x32xf32, #tpu.memory_space<vmem>>, vector<32x32xf32>
    %cst_42 = arith.constant dense<0.000000e+00> : vector<512x32xf32>
    %73 = tpu.matmul %44, %72, %cst_42 {dimension_numbers = #tpu.dot_dimension_numbers<[1], [0], [0], [1], [0, 0, 1, 1], [], []>} : vector<512x32xf32>, vector<32x32xf32>, vector<512x32xf32> -> vector<512x32xf32>
    %c0_43 = arith.constant 0 : index
    %c0_44 = arith.constant 0 : index
    %74 = vector.load %arg15[%c0_43, %c0_44] : memref<1x32xf32, #tpu.memory_space<vmem>>, vector<1x32xf32>
    %75 = vector.broadcast %74 : vector<1x32xf32> to vector<512x32xf32>
    %76 = arith.addf %73, %75 : vector<512x32xf32>
    %c0_45 = arith.constant 0 : index
    %c0_46 = arith.constant 0 : index
    %77 = vector.load %arg16[%c0_45, %c0_46] : memref<32x32xf32, #tpu.memory_space<vmem>>, vector<32x32xf32>
    %cst_47 = arith.constant dense<0.000000e+00> : vector<512x32xf32>
    %78 = tpu.matmul %71, %77, %cst_47 {dimension_numbers = #tpu.dot_dimension_numbers<[1], [0], [0], [1], [0, 0, 1, 1], [], []>} : vector<512x32xf32>, vector<32x32xf32>, vector<512x32xf32> -> vector<512x32xf32>
    %c0_48 = arith.constant 0 : index
    %c0_49 = arith.constant 0 : index
    %79 = vector.load %arg17[%c0_48, %c0_49] : memref<1x32xf32, #tpu.memory_space<vmem>>, vector<1x32xf32>
    %80 = vector.broadcast %79 : vector<1x32xf32> to vector<512x32xf32>
    %81 = arith.addf %78, %80 : vector<512x32xf32>
    %c0_50 = arith.constant 0 : index
    %c0_51 = arith.constant 0 : index
    %82 = vector.load %arg2[%c0_50, %c0_51] : memref<512x16xf32, #tpu.memory_space<vmem>>, vector<512x16xf32>
    %c0_52 = arith.constant 0 : index
    %c0_53 = arith.constant 0 : index
    %83 = vector.load %arg18[%c0_52, %c0_53] : memref<1x16xf32, #tpu.memory_space<vmem>>, vector<1x16xf32>
    %84 = vector.broadcast %83 : vector<1x16xf32> to vector<512x16xf32>
    %85 = arith.mulf %82, %84 : vector<512x16xf32>
    %cst_54 = arith.constant dense<0.000000e+00> : vector<512xf32>
    %86 = vector.multi_reduction <add>, %85, %cst_54 [1] : vector<512x16xf32> to vector<512xf32>
    %87 = vector.shape_cast %86 : vector<512xf32> to vector<512x1xf32>
    %c0_55 = arith.constant 0 : index
    %c0_56 = arith.constant 0 : index
    %88 = vector.load %arg19[%c0_55, %c0_56] : memref<1x1xf32, #tpu.memory_space<vmem>>, vector<1x1xf32>
    %89 = vector.broadcast %88 : vector<1x1xf32> to vector<512x1xf32>
    %90 = arith.addf %87, %89 : vector<512x1xf32>
    %91 = arith.negf %90 : vector<512x1xf32>
    %92 = math.exp %91 : vector<512x1xf32>
    %cst_57 = arith.constant 1.000000e+00 : f32
    %93 = vector.broadcast %cst_57 : f32 to vector<512x1xf32>
    %94 = arith.addf %93, %92 : vector<512x1xf32>
    %95 = arith.divf %93, %94 : vector<512x1xf32>
    %96 = vector.broadcast %95 : vector<512x1xf32> to vector<512x32xf32>
    %97 = arith.mulf %81, %96 : vector<512x32xf32>
    %98 = tpu.concatenate %76, %97 in 1 : vector<512x32xf32>, vector<512x32xf32> -> vector<512x64xf32>
    %c0_58 = arith.constant 0 : index
    %c0_59 = arith.constant 0 : index
    %99 = vector.load %arg20[%c0_58, %c0_59] : memref<512x64xf32, #tpu.memory_space<vmem>>, vector<512x64xf32>
    tpu.vector_store %arg20[%c0_58, %c0_59], %98 {strides = array<i32>} : memref<512x64xf32, #tpu.memory_space<vmem>>, vector<512x64xf32>,
    return
  }
  func.func @transform_0(%arg0: i32) -> (i32, i32) {
    %c0_i32 = arith.constant 0 : i32
    %c0_i32_0 = arith.constant 0 : i32
    return %arg0, %c0_i32 : i32, i32
  }
  func.func @transform_1(%arg0: i32) -> (i32, i32) {
    %c0_i32 = arith.constant 0 : i32
    %c0_i32_0 = arith.constant 0 : i32
    return %arg0, %c0_i32 : i32, i32
  }
  func.func @transform_2(%arg0: i32) -> (i32, i32) {
    %c0_i32 = arith.constant 0 : i32
    %c0_i32_0 = arith.constant 0 : i32
    return %arg0, %c0_i32 : i32, i32
  }
  func.func @transform_3(%arg0: i32) -> (i32, i32) {
    %c0_i32 = arith.constant 0 : i32
    %c0_i32_0 = arith.constant 0 : i32
    return %arg0, %c0_i32 : i32, i32
  }
  func.func @transform_4(%arg0: i32) -> (i32, i32) {
    %c0_i32 = arith.constant 0 : i32
    %c0_i32_0 = arith.constant 0 : i32
    %c0_i32_1 = arith.constant 0 : i32
    return %c0_i32, %c0_i32_0 : i32, i32
  }
  func.func @transform_5(%arg0: i32) -> (i32, i32) {
    %c0_i32 = arith.constant 0 : i32
    %c0_i32_0 = arith.constant 0 : i32
    %c0_i32_1 = arith.constant 0 : i32
    return %c0_i32, %c0_i32_0 : i32, i32
  }
  func.func @transform_6(%arg0: i32) -> (i32, i32) {
    %c0_i32 = arith.constant 0 : i32
    %c0_i32_0 = arith.constant 0 : i32
    %c0_i32_1 = arith.constant 0 : i32
    return %c0_i32, %c0_i32_0 : i32, i32
  }
  func.func @transform_7(%arg0: i32) -> (i32, i32) {
    %c0_i32 = arith.constant 0 : i32
    %c0_i32_0 = arith.constant 0 : i32
    %c0_i32_1 = arith.constant 0 : i32
    return %c0_i32, %c0_i32_0 : i32, i32
  }
  func.func @transform_8(%arg0: i32) -> (i32, i32) {
    %c0_i32 = arith.constant 0 : i32
    %c0_i32_0 = arith.constant 0 : i32
    %c0_i32_1 = arith.constant 0 : i32
    return %c0_i32, %c0_i32_0 : i32, i32
  }
  func.func @transform_9(%arg0: i32) -> (i32, i32) {
    %c0_i32 = arith.constant 0 : i32
    %c0_i32_0 = arith.constant 0 : i32
    %c0_i32_1 = arith.constant 0 : i32
    return %c0_i32, %c0_i32_0 : i32, i32
  }
  func.func @transform_10(%arg0: i32) -> (i32, i32) {
    %c0_i32 = arith.constant 0 : i32
    %c0_i32_0 = arith.constant 0 : i32
    %c0_i32_1 = arith.constant 0 : i32
    return %c0_i32, %c0_i32_0 : i32, i32
  }
  func.func @transform_11(%arg0: i32) -> (i32, i32) {
    %c0_i32 = arith.constant 0 : i32
    %c0_i32_0 = arith.constant 0 : i32
    %c0_i32_1 = arith.constant 0 : i32
    return %c0_i32, %c0_i32_0 : i32, i32
  }
  func.func @transform_12(%arg0: i32) -> (i32, i32) {
    %c0_i32 = arith.constant 0 : i32
    %c0_i32_0 = arith.constant 0 : i32
    %c0_i32_1 = arith.constant 0 : i32
    return %c0_i32, %c0_i32_0 : i32, i32
  }
  func.func @transform_13(%arg0: i32) -> (i32, i32) {
    %c0_i32 = arith.constant 0 : i32
    %c0_i32_0 = arith.constant 0 : i32
    %c0_i32_1 = arith.constant 0 : i32
    return %c0_i32, %c0_i32_0 : i32, i32
  }
  func.func @transform_14(%arg0: i32) -> (i32, i32) {
    %c0_i32 = arith.constant 0 : i32
    %c0_i32_0 = arith.constant 0 : i32
    %c0_i32_1 = arith.constant 0 : i32
    return %c0_i32, %c0_i32_0 : i32, i32
  }
  func.func @transform_15(%arg0: i32) -> (i32, i32) {
    %c0_i32 = arith.constant 0 : i32
    %c0_i32_0 = arith.constant 0 : i32
    %c0_i32_1 = arith.constant 0 : i32
    return %c0_i32, %c0_i32_0 : i32, i32
  }
  func.func @transform_16(%arg0: i32) -> (i32, i32) {
    %c0_i32 = arith.constant 0 : i32
    %c0_i32_0 = arith.constant 0 : i32
    %c0_i32_1 = arith.constant 0 : i32
    return %c0_i32, %c0_i32_0 : i32, i32
  }
  func.func @transform_17(%arg0: i32) -> (i32, i32) {
    %c0_i32 = arith.constant 0 : i32
    %c0_i32_0 = arith.constant 0 : i32
    %c0_i32_1 = arith.constant 0 : i32
    return %c0_i32, %c0_i32_0 : i32, i32
  }
  func.func @transform_18(%arg0: i32) -> (i32, i32) {
    %c0_i32 = arith.constant 0 : i32
    %c0_i32_0 = arith.constant 0 : i32
    %c0_i32_1 = arith.constant 0 : i32
    return %c0_i32, %c0_i32_0 : i32, i32
  }
  func.func @transform_19(%arg0: i32) -> (i32, i32) {
    %c0_i32 = arith.constant 0 : i32
    %c0_i32_0 = arith.constant 0 : i32
    return %arg0, %c0_i32 : i32, i32
  }
}

</mosaic_0001>

<bundles_post_ra>
// kernel: tpu_custom_call.1
= control target key start
LH: loop header
LB: loop body
LE: loop exit
PB: predicated region body
PF: predicated region fallthrough
CT: control target
= control target key end

     0   :  { %s11132_s20 = smov 0   ;;  %s15745_s0 = inlined_call_operand.vmem [shape: f32[1536,4], index: 0, kind: input, shape index: {}]   ;;  %s15746_s1 = inlined_call_operand.vmem [shape: f32[1536,16], index: 1, kind: input, shape index: {}]   ;;  %s15747_s2 = inlined_call_operand.vmem [shape: f32[1536,32], index: 2, kind: input, shape index: {}]   ;;  %s15748_s3 = inlined_call_operand.vmem [shape: f32[1536,32], index: 3, kind: input, shape index: {}]   ;;  %s15749_s4 = inlined_call_operand.vmem [shape: f32[4,64], index: 4, kind: input, shape index: {}]   ;;  %s15750_s5 = inlined_call_operand.vmem [shape: f32[16,64], index: 5, kind: input, shape index: {}]   ;;  %s15751_s6 = inlined_call_operand.vmem [shape: f32[32,64], index: 6, kind: input, shape index: {}]   ;;  %s15752_s7 = inlined_call_operand.vmem [shape: f32[32,64], index: 7, kind: input, shape index: {}]   ;;  %s15753_s8 = inlined_call_operand.vmem [shape: f32[1,64], index: 8, kind: input, shape index: {}]   ;;  %s15754_s9 = inlined_call_operand.vmem [shape: f32[1,32], index: 9, kind: input, shape index: {}]   ;;  %s15755_s10 = inlined_call_operand.vmem [shape: f32[1,32], index: 10, kind: input, shape index: {}]   ;;  %s15756_s11 = inlined_call_operand.vmem [shape: f32[1,32], index: 11, kind: input, shape index: {}]   ;;  %s15757_s12 = inlined_call_operand.vmem [shape: f32[1,32], index: 12, kind: input, shape index: {}]   ;;  %s15758_s13 = inlined_call_operand.vmem [shape: f32[32,32], index: 13, kind: input, shape index: {}]   ;;  %s15759_s14 = inlined_call_operand.vmem [shape: f32[1,32], index: 14, kind: input, shape index: {}]   ;;  %s15760_s15 = inlined_call_operand.vmem [shape: f32[32,32], index: 15, kind: input, shape index: {}]   ;;  %s15761_s16 = inlined_call_operand.vmem [shape: f32[1,32], index: 16, kind: input, shape index: {}]   ;;  %s15762_s17 = inlined_call_operand.vmem [shape: f32[1,16], index: 17, kind: input, shape index: {}]   ;;  %s15763_s18 = inlined_call_operand.<no memory space> [shape: f32[1,1], index: 18, kind: input, shape index: {}]   ;;  %s15764_s19 = inlined_call_operand.vmem [shape: f32[1536,64], index: 19, kind: output, shape index: {}]  }
   0x1   :  { %15956 = sst [smem:[#allocation120_spill]] %s15745_s0  ;;  %v24_v0 = vstv %s15763_s18 }
   0x2   :  { %15957 = sst [smem:[#allocation121_spill]] %s15746_s1  ;;  %25 = vst [vmem:[#allocation2] sm:$0x1] %v24_v0 }
   0x3   :  { %15958 = sst [smem:[#allocation122_spill]] %s15747_s2 }
   0x4   :  { %15959 = sst [smem:[#allocation123_spill]] %s15748_s3 }
   0x5 LB: > { %s8931_s21 = sadd.s32 4294967295, %s11024_s20   ;;  %p8935_p0 = scmp.ge.s32.totalorder %s11024_s20, 1  ;;  %s11024_s20 = sphi %s11132_s20, %s31_s20  }
   0x6   : > { %p573_p1 = scmp.lt.s32.totalorder %s11024_s20, 4 }
   0x8   : > { %p574_p2 = pnand %p8935_p0, %p573_p1 }
   0xa   : > { %577 = sbr.rel (%p574_p2) target bundleno = 3596 (0xe0c), region = 96 }
   0xf   : > { %v804_v1 = vld [vmem:[%s15750_s5 + $0x8] sm:$0xff]  ;;  %v738_v2 = vld [vmem:[%s15749_s4] sm:$0xf]  ;;  %vm1576_vm0 = vcmask 1043456   ;;  %s8936_s25 = sshll.u32 %s8931_s21, 6  ;;  %v2032_v4 = vld [vmem:[%s15751_s6 + $0x18] sm:$0xff] }
  0x10   : > { %v803_v3 = vld [vmem:[%s15750_s5] sm:$0xff]  ;;  %9809 = vmatprep.subr.mxu0 %v804_v1  ;;  %9909 = vmatprep.subr.msk.mxu1 %vm1576_vm0, %v738_v2  ;;  %p645_p3 = scmp.lt.s32.totalorder %s8936_s25, 191  ;;  %v2742_v5 = vld [vmem:[%s15752_s7 + $0x18] sm:$0xff]  ;;  %vm805_vm1 = vcmask 130048   ;;  %vm1383_vm2 = vcmask 31744   ;;  %s15960_s21 = sld [smem:[#allocation121_spill]] }
  0x11   : > { %9810 = vmatpush3.msra.mxu0 %v804_v1  ;;  %9910 = vmatpush3.msk.msra.mxu1 %vm1576_vm0, %v738_v2  ;;  %s15961_s2 = sld [smem:[#allocation120_spill]]  ;;  %v2031_v12 = vld [vmem:[%s15751_s6 + $0x10] sm:$0xff]  ;;  %v2030_v18 = vld [vmem:[%s15751_s6 + $0x8] sm:$0xff]  ;;  %v2029_v24 = vld [vmem:[%s15751_s6] sm:$0xff]  ;;  %vm2033_vm3 = vcmask 261120   ;;  %s11026_s22 = smov 96  }
  0x12   : > { %9811 = vmatprep.subr.mxu0 %v803_v3  ;;  %s16566_s25 = smov (!%p645_p3, %s8936_s25), 191  ;;  %10007 = vmatprep.subr.mxu1 %v2032_v4  ;;  %v2741_v13 = vld [vmem:[%s15752_s7 + $0x10] sm:$0xff]  ;;  %v2740_v19 = vld [vmem:[%s15752_s7 + $0x8] sm:$0xff]  ;;  %v2739_v25 = vld [vmem:[%s15752_s7] sm:$0xff]  ;;  %s15962_s3 = sld [smem:[#allocation122_spill]]  ;;  %vm8774_vm4 = vcmask 523264  }
  0x13   : > { %9812 = vmatpush3.msra.mxu0 %v803_v3  ;;  %s11155_s29 = sshll.u32 %s16566_s25, 3  ;;  %s15963_s0 = sld [smem:[#allocation123_spill]] }
  0x14   : > { %10111 = vmatprep.subr.mxu0 %v2742_v5  ;;  %s11027_s18 = smov 32   ;;  %s15372_s27 = scalar_lea.vmem %s15764_s19, %s11155_s29 }
  0x16   : > { %s11161_s1 = scalar_lea.vmem %s15960_s21, %s11155_s29 }
  0x17   : > { %s11167_s23 = scalar_lea.vmem %s15961_s2, %s11155_s29  ;;  %v739_v6 = vld [vmem:[%s11161_s1] sm:$0xff]  ;;  %v740_v8 = vld [vmem:[%s11161_s1 + $0x8] sm:$0xff]  ;;  %v741_v10 = vld [vmem:[%s11161_s1 + $0x10] sm:$0xff] }
  0x18   : > { %v674_v7 = vld [vmem:[%s11167_s23] sm:$0xff]  ;;  %9813 = vmatprep.mubr.msk.f32.mxu0 %vm805_vm1, %v739_v6  ;;  %v675_v9 = vld [vmem:[%s11167_s23 + $0x8] sm:$0xff]  ;;  %v676_v11 = vld [vmem:[%s11167_s23 + $0x10] sm:$0xff]  ;;  %s11439_s26 = scalar_lea.vmem %s15962_s3, %s11155_s29 }
  0x19   : > { %9911 = vmatprep.mubr.msk.f32.mxu1 %vm1383_vm2, %v674_v7  ;;  %9814 = vmatmul.mubr.msk.f32.vlgmr.msra.gmra.mxu0 %vm805_vm1, %v740_v8  ;;  %v742_v14 = vld [vmem:[%s11161_s1 + $0x18] sm:$0xff]  ;;  %v743_v16 = vld [vmem:[%s11161_s1 + $0x20] sm:$0xff]  ;;  %v744_v20 = vld [vmem:[%s11161_s1 + $0x28] sm:$0xff]  ;;  %s11445_s30 = scalar_lea.vmem %s15963_s0, %s11155_s29 }
  0x1a   : > { %9912 = vmatmul.mubr.msk.f32.vlgmr.msra.gmra.mxu1 %vm1383_vm2, %v675_v9  ;;  %10112 = vmatpush3.msra.mxu0 %v2742_v5  ;;  %v677_v15 = vld [vmem:[%s11167_s23 + $0x18] sm:$0xff]  ;;  %v678_v17 = vld [vmem:[%s11167_s23 + $0x20] sm:$0xff]  ;;  %v679_v21 = vld [vmem:[%s11167_s23 + $0x28] sm:$0xff] }
  0x1b   : > { %10008 = vmatpush3.msra.mxu1 %v2032_v4  ;;  %9816 = vmatprep.mubr.msk.f32.mxu0 %vm805_vm1, %v741_v10  ;;  %v745_v22 = vld [vmem:[%s11161_s1 + $0x30] sm:$0xff]  ;;  %v746_v26 = vld [vmem:[%s11161_s1 + $0x38] sm:$0xff]  ;;  %v747_v28 = vld [vmem:[%s11161_s1 + $0x40] sm:$0xff] }
  0x1c   : > { %9914 = vmatprep.mubr.msk.f32.mxu1 %vm1383_vm2, %v676_v11  ;;  %10009 = vmatprep.subr.mxu1 %v2031_v12  ;;  %v680_v23 = vld [vmem:[%s11167_s23 + $0x30] sm:$0xff]  ;;  %v681_v27 = vld [vmem:[%s11167_s23 + $0x38] sm:$0xff]  ;;  %v682_v29 = vld [vmem:[%s11167_s23 + $0x40] sm:$0xff] }
  0x1d   : > { %10113 = vmatprep.subr.mxu0 %v2741_v13  ;;  %9817 = vmatmul.mubr.msk.f32.gmra.mxu0 %vm805_vm1, %v742_v14  ;;  %v748_v30 = vld [vmem:[%s11161_s1 + $0x48] sm:$0xff]  ;;  %v749_v32 = vld [vmem:[%s11161_s1 + $0x50] sm:$0xff]  ;;  %v750_v34 = vld [vmem:[%s11161_s1 + $0x58] sm:$0xff] }
  0x1e   : > { %9915 = vmatmul.mubr.msk.f32.gmra.mxu1 %vm1383_vm2, %v677_v15  ;;  %9819 = vmatprep.mubr.msk.f32.mxu0 %vm805_vm1, %v743_v16  ;;  %v683_v31 = vld [vmem:[%s11167_s23 + $0x48] sm:$0xff]  ;;  %v684_v33 = vld [vmem:[%s11167_s23 + $0x50] sm:$0xff]  ;;  %v685_v35 = vld [vmem:[%s11167_s23 + $0x58] sm:$0xff] }
  0x1f   : > { %9917 = vmatprep.mubr.msk.f32.mxu1 %vm1383_vm2, %v678_v17  ;;  %10010 = vmatpush3.msra.mxu1 %v2031_v12  ;;  %v751_v36 = vld [vmem:[%s11161_s1 + $0x60] sm:$0xff]  ;;  %v752_v38 = vld [vmem:[%s11161_s1 + $0x68] sm:$0xff]  ;;  %v753_v40 = vld [vmem:[%s11161_s1 + $0x70] sm:$0xff] }
  0x20   : > { %10114 = vmatpush3.msra.mxu0 %v2741_v13  ;;  %10011 = vmatprep.subr.mxu1 %v2030_v18  ;;  %v686_v37 = vld [vmem:[%s11167_s23 + $0x60] sm:$0xff]  ;;  %v687_v39 = vld [vmem:[%s11167_s23 + $0x68] sm:$0xff]  ;;  %v688_v41 = vld [vmem:[%s11167_s23 + $0x70] sm:$0xff] }
  0x21   : > { %10115 = vmatprep.subr.mxu0 %v2740_v19  ;;  %9820 = vmatmul.mubr.msk.f32.gmra.mxu0 %vm805_vm1, %v744_v20  ;;  %v754_v42 = vld [vmem:[%s11161_s1 + $0x78] sm:$0xff]  ;;  %v755_v44 = vld [vmem:[%s11161_s1 + $0x80] sm:$0xff]  ;;  %v756_v46 = vld [vmem:[%s11161_s1 + $0x88] sm:$0xff] }
  0x22   : > { %9918 = vmatmul.mubr.msk.f32.gmra.mxu1 %vm1383_vm2, %v679_v21  ;;  %9822 = vmatprep.mubr.msk.f32.mxu0 %vm805_vm1, %v745_v22  ;;  %v689_v43 = vld [vmem:[%s11167_s23 + $0x78] sm:$0xff]  ;;  %v690_v45 = vld [vmem:[%s11167_s23 + $0x80] sm:$0xff]  ;;  %v691_v47 = vld [vmem:[%s11167_s23 + $0x88] sm:$0xff] }
  0x23   : > { %9920 = vmatprep.mubr.msk.f32.mxu1 %vm1383_vm2, %v680_v23  ;;  %10012 = vmatpush3.msra.mxu1 %v2030_v18  ;;  %v757_v48 = vld [vmem:[%s11161_s1 + $0x90] sm:$0xff]  ;;  %v758_v50 = vld [vmem:[%s11161_s1 + $0x98] sm:$0xff]  ;;  %v759_v52 = vld [vmem:[%s11161_s1 + $0xa0] sm:$0xff] }
  0x24   : > { %10116 = vmatpush3.msra.mxu0 %v2740_v19  ;;  %10013 = vmatprep.subr.mxu1 %v2029_v24  ;;  %v692_v49 = vld [vmem:[%s11167_s23 + $0x90] sm:$0xff]  ;;  %v693_v51 = vld [vmem:[%s11167_s23 + $0x98] sm:$0xff]  ;;  %v694_v53 = vld [vmem:[%s11167_s23 + $0xa0] sm:$0xff] }
  0x25   : > { %10117 = vmatprep.subr.mxu0 %v2739_v25  ;;  %9823 = vmatmul.mubr.msk.f32.gmra.mxu0 %vm805_vm1, %v746_v26  ;;  %v760_v54 = vld [vmem:[%s11161_s1 + $0xa8] sm:$0xff]  ;;  %v761_v56 = vld [vmem:[%s11161_s1 + $0xb0] sm:$0xff]  ;;  %v762_v58 = vld [vmem:[%s11161_s1 + $0xb8] sm:$0xff] }
  0x26   : > { %9921 = vmatmul.mubr.msk.f32.gmra.mxu1 %vm1383_vm2, %v681_v27  ;;  %9825 = vmatprep.mubr.msk.f32.mxu0 %vm805_vm1, %v747_v28  ;;  %v695_v55 = vld [vmem:[%s11167_s23 + $0xa8] sm:$0xff]  ;;  %v696_v57 = vld [vmem:[%s11167_s23 + $0xb0] sm:$0xff]  ;;  %v697_v59 = vld [vmem:[%s11167_s23 + $0xb8] sm:$0xff] }
  0x27   : > { %9923 = vmatprep.mubr.msk.f32.mxu1 %vm1383_vm2, %v682_v29  ;;  %10014 = vmatpush3.msra.mxu1 %v2029_v24  ;;  %v763_v60 = vld [vmem:[%s11161_s1 + $0xc0] sm:$0xff]  ;;  %v764_v62 = vld [vmem:[%s11161_s1 + $0xc8] sm:$0xff]  ;;  %v765_v0 = vld [vmem:[%s11161_s1 + $0xd0] sm:$0xff] }
  0x28   : > { %10118 = vmatpush3.msra.mxu0 %v2739_v25  ;;  %v698_v61 = vld [vmem:[%s11167_s23 + $0xc0] sm:$0xff]  ;;  %v699_v63 = vld [vmem:[%s11167_s23 + $0xc8] sm:$0xff]  ;;  %v700_v1 = vld [vmem:[%s11167_s23 + $0xd0] sm:$0xff] }
  0x29   : > { %9826 = vmatmul.mubr.msk.f32.gmra.mxu0 %vm805_vm1, %v748_v30  ;;  %v766_v2 = vld [vmem:[%s11161_s1 + $0xd8] sm:$0xff]  ;;  %v767_v4 = vld [vmem:[%s11161_s1 + $0xe0] sm:$0xff]  ;;  %v768_v6 = vld [vmem:[%s11161_s1 + $0xe8] sm:$0xff] }
  0x2a   : > { %9924 = vmatmul.mubr.msk.f32.gmra.mxu1 %vm1383_vm2, %v683_v31  ;;  %9828 = vmatprep.mubr.msk.f32.mxu0 %vm805_vm1, %v749_v32  ;;  %v701_v3 = vld [vmem:[%s11167_s23 + $0xd8] sm:$0xff]  ;;  %v702_v5 = vld [vmem:[%s11167_s23 + $0xe0] sm:$0xff]  ;;  %v703_v7 = vld [vmem:[%s11167_s23 + $0xe8] sm:$0xff] }
  0x2b   : > { %9926 = vmatprep.mubr.msk.f32.mxu1 %vm1383_vm2, %v684_v33  ;;  %v769_v8 = vld [vmem:[%s11161_s1 + $0xf0] sm:$0xff]  ;;  %v770_v10 = vld [vmem:[%s11161_s1 + $0xf8] sm:$0xff]  ;;  %v771_v12 = vld [vmem:[%s11161_s1 + $0x100] sm:$0xff] }
  0x2c   : > { %v704_v9 = vld [vmem:[%s11167_s23 + $0xf0] sm:$0xff]  ;;  %v705_v11 = vld [vmem:[%s11167_s23 + $0xf8] sm:$0xff]  ;;  %v706_v13 = vld [vmem:[%s11167_s23 + $0x100] sm:$0xff] }
  0x2d   : > { %9829 = vmatmul.mubr.msk.f32.gmra.mxu0 %vm805_vm1, %v750_v34  ;;  %v772_v14 = vld [vmem:[%s11161_s1 + $0x108] sm:$0xff]  ;;  %v773_v16 = vld [vmem:[%s11161_s1 + $0x110] sm:$0xff]  ;;  %v774_v18 = vld [vmem:[%s11161_s1 + $0x118] sm:$0xff] }
  0x2e   : > { %9927 = vmatmul.mubr.msk.f32.gmra.mxu1 %vm1383_vm2, %v685_v35  ;;  %9831 = vmatprep.mubr.msk.f32.mxu0 %vm805_vm1, %v751_v36  ;;  %v707_v15 = vld [vmem:[%s11167_s23 + $0x108] sm:$0xff]  ;;  %v708_v17 = vld [vmem:[%s11167_s23 + $0x110] sm:$0xff]  ;;  %v709_v19 = vld [vmem:[%s11167_s23 + $0x118] sm:$0xff] }
  0x2f   : > { %9929 = vmatprep.mubr.msk.f32.mxu1 %vm1383_vm2, %v686_v37  ;;  %v775_v20 = vld [vmem:[%s11161_s1 + $0x120] sm:$0xff]  ;;  %v776_v22 = vld [vmem:[%s11161_s1 + $0x128] sm:$0xff]  ;;  %v777_v24 = vld [vmem:[%s11161_s1 + $0x130] sm:$0xff] }
  0x30   : > { %v710_v21 = vld [vmem:[%s11167_s23 + $0x120] sm:$0xff]  ;;  %v711_v23 = vld [vmem:[%s11167_s23 + $0x128] sm:$0xff]  ;;  %v712_v25 = vld [vmem:[%s11167_s23 + $0x130] sm:$0xff] }
  0x31   : > { %9832 = vmatmul.mubr.msk.f32.gmra.mxu0 %vm805_vm1, %v752_v38  ;;  %v778_v26 = vld [vmem:[%s11161_s1 + $0x138] sm:$0xff]  ;;  %v779_v28 = vld [vmem:[%s11161_s1 + $0x140] sm:$0xff]  ;;  %v780_v30 = vld [vmem:[%s11161_s1 + $0x148] sm:$0xff] }
  0x32   : > { %9930 = vmatmul.mubr.msk.f32.gmra.mxu1 %vm1383_vm2, %v687_v39  ;;  %9834 = vmatprep.mubr.msk.f32.mxu0 %vm805_vm1, %v753_v40  ;;  %v713_v27 = vld [vmem:[%s11167_s23 + $0x138] sm:$0xff]  ;;  %v714_v29 = vld [vmem:[%s11167_s23 + $0x140] sm:$0xff]  ;;  %v715_v31 = vld [vmem:[%s11167_s23 + $0x148] sm:$0xff] }
  0x33   : > { %9932 = vmatprep.mubr.msk.f32.mxu1 %vm1383_vm2, %v688_v41  ;;  %v781_v32 = vld [vmem:[%s11161_s1 + $0x150] sm:$0xff]  ;;  %v782_v34 = vld [vmem:[%s11161_s1 + $0x158] sm:$0xff]  ;;  %v783_v36 = vld [vmem:[%s11161_s1 + $0x160] sm:$0xff] }
  0x34   : > { %v716_v33 = vld [vmem:[%s11167_s23 + $0x150] sm:$0xff]  ;;  %v717_v35 = vld [vmem:[%s11167_s23 + $0x158] sm:$0xff]  ;;  %v718_v37 = vld [vmem:[%s11167_s23 + $0x160] sm:$0xff] }
  0x35   : > { %9835 = vmatmul.mubr.msk.f32.gmra.mxu0 %vm805_vm1, %v754_v42  ;;  %v784_v38 = vld [vmem:[%s11161_s1 + $0x168] sm:$0xff]  ;;  %v785_v40 = vld [vmem:[%s11161_s1 + $0x170] sm:$0xff]  ;;  %v786_v42 = vld [vmem:[%s11161_s1 + $0x178] sm:$0xff] }
  0x36   : > { %9933 = vmatmul.mubr.msk.f32.gmra.mxu1 %vm1383_vm2, %v689_v43  ;;  %9837 = vmatprep.mubr.msk.f32.mxu0 %vm805_vm1, %v755_v44  ;;  %v719_v39 = vld [vmem:[%s11167_s23 + $0x168] sm:$0xff]  ;;  %v720_v41 = vld [vmem:[%s11167_s23 + $0x170] sm:$0xff]  ;;  %v721_v43 = vld [vmem:[%s11167_s23 + $0x178] sm:$0xff] }
  0x37   : > { %9935 = vmatprep.mubr.msk.f32.mxu1 %vm1383_vm2, %v690_v45  ;;  %v787_v44 = vld [vmem:[%s11161_s1 + $0x180] sm:$0xff] }
  0x38   : > { %v722_v45 = vld [vmem:[%s11167_s23 + $0x180] sm:$0xff] }
  0x39   : > { %9838 = vmatmul.mubr.msk.f32.gmra.mxu0 %vm805_vm1, %v756_v46  ;;  %v788_v46 = vld [vmem:[%s11161_s1 + $0x188] sm:$0xff] }
  0x3a   : > { %9936 = vmatmul.mubr.msk.f32.gmra.mxu1 %vm1383_vm2, %v691_v47  ;;  %9840 = vmatprep.mubr.msk.f32.mxu0 %vm805_vm1, %v757_v48  ;;  %v723_v47 = vld [vmem:[%s11167_s23 + $0x188] sm:$0xff]  ;;  %v789_v48 = vld [vmem:[%s11161_s1 + $0x190] sm:$0xff] }
  0x3b   : > { %9938 = vmatprep.mubr.msk.f32.mxu1 %vm1383_vm2, %v692_v49  ;;  %v724_v49 = vld [vmem:[%s11167_s23 + $0x190] sm:$0xff] }
  0x3d   : > { %9841 = vmatmul.mubr.msk.f32.gmra.mxu0 %vm805_vm1, %v758_v50  ;;  %v790_v50 = vld [vmem:[%s11161_s1 + $0x198] sm:$0xff] }
  0x3e   : > { %9939 = vmatmul.mubr.msk.f32.gmra.mxu1 %vm1383_vm2, %v693_v51  ;;  %9843 = vmatprep.mubr.msk.f32.mxu0 %vm805_vm1, %v759_v52  ;;  %v725_v51 = vld [vmem:[%s11167_s23 + $0x198] sm:$0xff]  ;;  %v791_v52 = vld [vmem:[%s11161_s1 + $0x1a0] sm:$0xff] }
  0x3f   : > { %9941 = vmatprep.mubr.msk.f32.mxu1 %vm1383_vm2, %v694_v53  ;;  %v726_v53 = vld [vmem:[%s11167_s23 + $0x1a0] sm:$0xff] }
  0x41   : > { %9844 = vmatmul.mubr.msk.f32.gmra.mxu0 %vm805_vm1, %v760_v54  ;;  %v792_v54 = vld [vmem:[%s11161_s1 + $0x1a8] sm:$0xff] }
  0x42   : > { %9942 = vmatmul.mubr.msk.f32.gmra.mxu1 %vm1383_vm2, %v695_v55  ;;  %9846 = vmatprep.mubr.msk.f32.mxu0 %vm805_vm1, %v761_v56  ;;  %v727_v55 = vld [vmem:[%s11167_s23 + $0x1a8] sm:$0xff]  ;;  %v793_v56 = vld [vmem:[%s11161_s1 + $0x1b0] sm:$0xff] }
  0x43   : > { %9944 = vmatprep.mubr.msk.f32.mxu1 %vm1383_vm2, %v696_v57  ;;  %v728_v57 = vld [vmem:[%s11167_s23 + $0x1b0] sm:$0xff] }
  0x45   : > { %9847 = vmatmul.mubr.msk.f32.gmra.mxu0 %vm805_vm1, %v762_v58  ;;  %v794_v58 = vld [vmem:[%s11161_s1 + $0x1b8] sm:$0xff] }
  0x46   : > { %9945 = vmatmul.mubr.msk.f32.gmra.mxu1 %vm1383_vm2, %v697_v59  ;;  %9849 = vmatprep.mubr.msk.f32.mxu0 %vm805_vm1, %v763_v60  ;;  %v729_v59 = vld [vmem:[%s11167_s23 + $0x1b8] sm:$0xff]  ;;  %v795_v60 = vld [vmem:[%s11161_s1 + $0x1c0] sm:$0xff] }
  0x47   : > { %9947 = vmatprep.mubr.msk.f32.mxu1 %vm1383_vm2, %v698_v61  ;;  %v730_v61 = vld [vmem:[%s11167_s23 + $0x1c0] sm:$0xff] }
  0x49   : > { %9850 = vmatmul.mubr.msk.f32.gmra.mxu0 %vm805_vm1, %v764_v62  ;;  %v796_v62 = vld [vmem:[%s11161_s1 + $0x1c8] sm:$0xff] }
  0x4a   : > { %9948 = vmatmul.mubr.msk.f32.gmra.mxu1 %vm1383_vm2, %v699_v63  ;;  %9852 = vmatprep.mubr.msk.f32.mxu0 %vm805_vm1, %v765_v0  ;;  %v731_v63 = vld [vmem:[%s11167_s23 + $0x1c8] sm:$0xff]  ;;  %v797_v0 = vld [vmem:[%s11161_s1 + $0x1d0] sm:$0xff] }
  0x4b   : > { %9950 = vmatprep.mubr.msk.f32.mxu1 %vm1383_vm2, %v700_v1  ;;  %v732_v1 = vld [vmem:[%s11167_s23 + $0x1d0] sm:$0xff] }
  0x4d   : > { %9853 = vmatmul.mubr.msk.f32.gmra.mxu0 %vm805_vm1, %v766_v2  ;;  %v798_v2 = vld [vmem:[%s11161_s1 + $0x1d8] sm:$0xff] }
  0x4e   : > { %9951 = vmatmul.mubr.msk.f32.gmra.mxu1 %vm1383_vm2, %v701_v3  ;;  %9855 = vmatprep.mubr.msk.f32.mxu0 %vm805_vm1, %v767_v4  ;;  %v733_v3 = vld [vmem:[%s11167_s23 + $0x1d8] sm:$0xff]  ;;  %v799_v4 = vld [vmem:[%s11161_s1 + $0x1e0] sm:$0xff] }
  0x4f   : > { %9953 = vmatprep.mubr.msk.f32.mxu1 %vm1383_vm2, %v702_v5  ;;  %v734_v5 = vld [vmem:[%s11167_s23 + $0x1e0] sm:$0xff] }
  0x51   : > { %9856 = vmatmul.mubr.msk.f32.gmra.mxu0 %vm805_vm1, %v768_v6  ;;  %v800_v6 = vld [vmem:[%s11161_s1 + $0x1e8] sm:$0xff] }
  0x52   : > { %9954 = vmatmul.mubr.msk.f32.gmra.mxu1 %vm1383_vm2, %v703_v7  ;;  %9858 = vmatprep.mubr.msk.f32.mxu0 %vm805_vm1, %v769_v8  ;;  %v735_v7 = vld [vmem:[%s11167_s23 + $0x1e8] sm:$0xff]  ;;  %v801_v8 = vld [vmem:[%s11161_s1 + $0x1f0] sm:$0xff] }
  0x53   : > { %9956 = vmatprep.mubr.msk.f32.mxu1 %vm1383_vm2, %v704_v9  ;;  %v736_v9 = vld [vmem:[%s11167_s23 + $0x1f0] sm:$0xff] }
  0x55   : > { %9859 = vmatmul.mubr.msk.f32.gmra.mxu0 %vm805_vm1, %v770_v10  ;;  %v802_v10 = vld [vmem:[%s11161_s1 + $0x1f8] sm:$0xff] }
  0x56   : > { %9957 = vmatmul.mubr.msk.f32.gmra.mxu1 %vm1383_vm2, %v705_v11  ;;  %9861 = vmatprep.mubr.msk.f32.mxu0 %vm805_vm1, %v771_v12  ;;  %v737_v11 = vld [vmem:[%s11167_s23 + $0x1f8] sm:$0xff]  ;;  %v1965_v12 = vld [vmem:[%s11439_s26] sm:$0xff] }
  0x57   : > { %9959 = vmatprep.mubr.msk.f32.mxu1 %vm1383_vm2, %v706_v13  ;;  %v2675_v13 = vld [vmem:[%s11445_s30] sm:$0xff] }
  0x59   : > { %9862 = vmatmul.mubr.msk.f32.gmra.mxu0 %vm805_vm1, %v772_v14  ;;  %v1966_v14 = vld [vmem:[%s11439_s26 + $0x8] sm:$0xff] }
  0x5a   : > { %9960 = vmatmul.mubr.msk.f32.gmra.mxu1 %vm1383_vm2, %v707_v15  ;;  %9864 = vmatprep.mubr.msk.f32.mxu0 %vm805_vm1, %v773_v16  ;;  %v2676_v15 = vld [vmem:[%s11445_s30 + $0x8] sm:$0xff]  ;;  %v1967_v16 = vld [vmem:[%s11439_s26 + $0x10] sm:$0xff] }
  0x5b   : > { %9962 = vmatprep.mubr.msk.f32.mxu1 %vm1383_vm2, %v708_v17  ;;  %v2677_v17 = vld [vmem:[%s11445_s30 + $0x10] sm:$0xff] }
  0x5d   : > { %9865 = vmatmul.mubr.msk.f32.gmra.mxu0 %vm805_vm1, %v774_v18  ;;  %v1968_v18 = vld [vmem:[%s11439_s26 + $0x18] sm:$0xff] }
  0x5e   : > { %9963 = vmatmul.mubr.msk.f32.gmra.mxu1 %vm1383_vm2, %v709_v19  ;;  %9867 = vmatprep.mubr.msk.f32.mxu0 %vm805_vm1, %v775_v20  ;;  %v2678_v19 = vld [vmem:[%s11445_s30 + $0x18] sm:$0xff]  ;;  %v1969_v20 = vld [vmem:[%s11439_s26 + $0x20] sm:$0xff] }
  0x5f   : > { %9965 = vmatprep.mubr.msk.f32.mxu1 %vm1383_vm2, %v710_v21  ;;  %v2679_v21 = vld [vmem:[%s11445_s30 + $0x20] sm:$0xff] }
  0x61   : > { %9868 = vmatmul.mubr.msk.f32.gmra.mxu0 %vm805_vm1, %v776_v22  ;;  %v1970_v22 = vld [vmem:[%s11439_s26 + $0x28] sm:$0xff] }
  0x62   : > { %9966 = vmatmul.mubr.msk.f32.gmra.mxu1 %vm1383_vm2, %v711_v23  ;;  %9870 = vmatprep.mubr.msk.f32.mxu0 %vm805_vm1, %v777_v24  ;;  %v2680_v23 = vld [vmem:[%s11445_s30 + $0x28] sm:$0xff]  ;;  %v1971_v24 = vld [vmem:[%s11439_s26 + $0x30] sm:$0xff] }
  0x63   : > { %9968 = vmatprep.mubr.msk.f32.mxu1 %vm1383_vm2, %v712_v25  ;;  %v2681_v25 = vld [vmem:[%s11445_s30 + $0x30] sm:$0xff] }
  0x65   : > { %9871 = vmatmul.mubr.msk.f32.gmra.mxu0 %vm805_vm1, %v778_v26  ;;  %v1972_v26 = vld [vmem:[%s11439_s26 + $0x38] sm:$0xff] }
  0x66   : > { %9969 = vmatmul.mubr.msk.f32.gmra.mxu1 %vm1383_vm2, %v713_v27  ;;  %9873 = vmatprep.mubr.msk.f32.mxu0 %vm805_vm1, %v779_v28  ;;  %v2682_v27 = vld [vmem:[%s11445_s30 + $0x38] sm:$0xff]  ;;  %v1973_v28 = vld [vmem:[%s11439_s26 + $0x40] sm:$0xff] }
  0x67   : > { %9971 = vmatprep.mubr.msk.f32.mxu1 %vm1383_vm2, %v714_v29  ;;  %v2683_v29 = vld [vmem:[%s11445_s30 + $0x40] sm:$0xff] }
  0x69   : > { %9874 = vmatmul.mubr.msk.f32.gmra.mxu0 %vm805_vm1, %v780_v30  ;;  %v1974_v30 = vld [vmem:[%s11439_s26 + $0x48] sm:$0xff] }
  0x6a   : > { %9972 = vmatmul.mubr.msk.f32.gmra.mxu1 %vm1383_vm2, %v715_v31  ;;  %9876 = vmatprep.mubr.msk.f32.mxu0 %vm805_vm1, %v781_v32  ;;  %v2684_v31 = vld [vmem:[%s11445_s30 + $0x48] sm:$0xff]  ;;  %v1975_v32 = vld [vmem:[%s11439_s26 + $0x50] sm:$0xff] }
  0x6b   : > { %9974 = vmatprep.mubr.msk.f32.mxu1 %vm1383_vm2, %v716_v33  ;;  %v2685_v33 = vld [vmem:[%s11445_s30 + $0x50] sm:$0xff] }
  0x6d   : > { %9877 = vmatmul.mubr.msk.f32.gmra.mxu0 %vm805_vm1, %v782_v34  ;;  %v1976_v34 = vld [vmem:[%s11439_s26 + $0x58] sm:$0xff] }
  0x6e   : > { %9975 = vmatmul.mubr.msk.f32.gmra.mxu1 %vm1383_vm2, %v717_v35  ;;  %9879 = vmatprep.mubr.msk.f32.mxu0 %vm805_vm1, %v783_v36  ;;  %v2686_v35 = vld [vmem:[%s11445_s30 + $0x58] sm:$0xff]  ;;  %v1977_v36 = vld [vmem:[%s11439_s26 + $0x60] sm:$0xff] }
  0x6f   : > { %9977 = vmatprep.mubr.msk.f32.mxu1 %vm1383_vm2, %v718_v37  ;;  %v2687_v37 = vld [vmem:[%s11445_s30 + $0x60] sm:$0xff] }
  0x71   : > { %9880 = vmatmul.mubr.msk.f32.gmra.mxu0 %vm805_vm1, %v784_v38  ;;  %v1978_v38 = vld [vmem:[%s11439_s26 + $0x68] sm:$0xff] }
  0x72   : > { %9978 = vmatmul.mubr.msk.f32.gmra.mxu1 %vm1383_vm2, %v719_v39  ;;  %9882 = vmatprep.mubr.msk.f32.mxu0 %vm805_vm1, %v785_v40  ;;  %v2688_v39 = vld [vmem:[%s11445_s30 + $0x68] sm:$0xff]  ;;  %v1979_v40 = vld [vmem:[%s11439_s26 + $0x70] sm:$0xff] }
  0x73   : > { %9980 = vmatprep.mubr.msk.f32.mxu1 %vm1383_vm2, %v720_v41  ;;  %v2689_v41 = vld [vmem:[%s11445_s30 + $0x70] sm:$0xff] }
  0x75   : > { %9883 = vmatmul.mubr.msk.f32.gmra.mxu0 %vm805_vm1, %v786_v42  ;;  %v1980_v42 = vld [vmem:[%s11439_s26 + $0x78] sm:$0xff] }
  0x76   : > { %9981 = vmatmul.mubr.msk.f32.gmra.mxu1 %vm1383_vm2, %v721_v43  ;;  %9885 = vmatprep.mubr.msk.f32.mxu0 %vm805_vm1, %v787_v44  ;;  %v2690_v43 = vld [vmem:[%s11445_s30 + $0x78] sm:$0xff]  ;;  %v1981_v44 = vld [vmem:[%s11439_s26 + $0x80] sm:$0xff] }
  0x77   : > { %9983 = vmatprep.mubr.msk.f32.mxu1 %vm1383_vm2, %v722_v45  ;;  %v2691_v45 = vld [vmem:[%s11445_s30 + $0x80] sm:$0xff] }
  0x79   : > { %9886 = vmatmul.mubr.msk.f32.gmra.mxu0 %vm805_vm1, %v788_v46  ;;  %v1982_v46 = vld [vmem:[%s11439_s26 + $0x88] sm:$0xff] }
  0x7a   : > { %9984 = vmatmul.mubr.msk.f32.gmra.mxu1 %vm1383_vm2, %v723_v47  ;;  %9888 = vmatprep.mubr.msk.f32.mxu0 %vm805_vm1, %v789_v48  ;;  %v2692_v47 = vld [vmem:[%s11445_s30 + $0x88] sm:$0xff]  ;;  %v1983_v48 = vld [vmem:[%s11439_s26 + $0x90] sm:$0xff] }
  0x7b   : > { %9986 = vmatprep.mubr.msk.f32.mxu1 %vm1383_vm2, %v724_v49  ;;  %v2693_v49 = vld [vmem:[%s11445_s30 + $0x90] sm:$0xff] }
  0x7d   : > { %9889 = vmatmul.mubr.msk.f32.gmra.mxu0 %vm805_vm1, %v790_v50  ;;  %v1984_v50 = vld [vmem:[%s11439_s26 + $0x98] sm:$0xff] }
  0x7e   : > { %9987 = vmatmul.mubr.msk.f32.gmra.mxu1 %vm1383_vm2, %v725_v51  ;;  %9891 = vmatprep.mubr.msk.f32.mxu0 %vm805_vm1, %v791_v52  ;;  %v2694_v51 = vld [vmem:[%s11445_s30 + $0x98] sm:$0xff]  ;;  %v1985_v52 = vld [vmem:[%s11439_s26 + $0xa0] sm:$0xff] }
  0x7f   : > { %9989 = vmatprep.mubr.msk.f32.mxu1 %vm1383_vm2, %v726_v53  ;;  %v2695_v53 = vld [vmem:[%s11445_s30 + $0xa0] sm:$0xff] }
  0x81   : > { %9892 = vmatmul.mubr.msk.f32.gmra.mxu0 %vm805_vm1, %v792_v54  ;;  %v1986_v54 = vld [vmem:[%s11439_s26 + $0xa8] sm:$0xff] }
  0x82   : > { %9990 = vmatmul.mubr.msk.f32.gmra.mxu1 %vm1383_vm2, %v727_v55  ;;  %9894 = vmatprep.mubr.msk.f32.mxu0 %vm805_vm1, %v793_v56  ;;  %v2696_v55 = vld [vmem:[%s11445_s30 + $0xa8] sm:$0xff]  ;;  %v1987_v56 = vld [vmem:[%s11439_s26 + $0xb0] sm:$0xff] }
  0x83   : > { %9992 = vmatprep.mubr.msk.f32.mxu1 %vm1383_vm2, %v728_v57  ;;  %v2697_v57 = vld [vmem:[%s11445_s30 + $0xb0] sm:$0xff] }
  0x85   : > { %9895 = vmatmul.mubr.msk.f32.gmra.mxu0 %vm805_vm1, %v794_v58  ;;  %v1988_v58 = vld [vmem:[%s11439_s26 + $0xb8] sm:$0xff] }
  0x86   : > { %9993 = vmatmul.mubr.msk.f32.gmra.mxu1 %vm1383_vm2, %v729_v59  ;;  %9897 = vmatprep.mubr.msk.f32.mxu0 %vm805_vm1, %v795_v60  ;;  %v2698_v59 = vld [vmem:[%s11445_s30 + $0xb8] sm:$0xff]  ;;  %v1989_v60 = vld [vmem:[%s11439_s26 + $0xc0] sm:$0xff] }
  0x87   : > { %9995 = vmatprep.mubr.msk.f32.mxu1 %vm1383_vm2, %v730_v61  ;;  %v2699_v61 = vld [vmem:[%s11445_s30 + $0xc0] sm:$0xff] }
  0x89   : > { %9898 = vmatmul.mubr.msk.f32.gmra.mxu0 %vm805_vm1, %v796_v62  ;;  %v1990_v62 = vld [vmem:[%s11439_s26 + $0xc8] sm:$0xff] }
  0x8a   : > { %9996 = vmatmul.mubr.msk.f32.gmra.mxu1 %vm1383_vm2, %v731_v63  ;;  %9900 = vmatprep.mubr.msk.f32.mxu0 %vm805_vm1, %v797_v0  ;;  %v2700_v63 = vld [vmem:[%s11445_s30 + $0xc8] sm:$0xff]  ;;  %v1991_v0 = vld [vmem:[%s11439_s26 + $0xd0] sm:$0xff] }
  0x8b   : > { %9998 = vmatprep.mubr.msk.f32.mxu1 %vm1383_vm2, %v732_v1  ;;  %v2701_v1 = vld [vmem:[%s11445_s30 + $0xd0] sm:$0xff] }
  0x8d   : > { %9901 = vmatmul.mubr.msk.f32.gmra.mxu0 %vm805_vm1, %v798_v2  ;;  %v1992_v2 = vld [vmem:[%s11439_s26 + $0xd8] sm:$0xff] }
  0x8e   : > { %9999 = vmatmul.mubr.msk.f32.gmra.mxu1 %vm1383_vm2, %v733_v3  ;;  %9903 = vmatprep.mubr.msk.f32.mxu0 %vm805_vm1, %v799_v4  ;;  %v2702_v3 = vld [vmem:[%s11445_s30 + $0xd8] sm:$0xff]  ;;  %v1993_v4 = vld [vmem:[%s11439_s26 + $0xe0] sm:$0xff] }
  0x8f   : > { %10001 = vmatprep.mubr.msk.f32.mxu1 %vm1383_vm2, %v734_v5  ;;  %v2703_v5 = vld [vmem:[%s11445_s30 + $0xe0] sm:$0xff] }
  0x91   : > { %9904 = vmatmul.mubr.msk.f32.gmra.mxu0 %vm805_vm1, %v800_v6  ;;  %v1994_v6 = vld [vmem:[%s11439_s26 + $0xe8] sm:$0xff] }
  0x92   : > { %10002 = vmatmul.mubr.msk.f32.gmra.mxu1 %vm1383_vm2, %v735_v7  ;;  %9906 = vmatprep.mubr.msk.f32.mxu0 %vm805_vm1, %v801_v8  ;;  %v2704_v7 = vld [vmem:[%s11445_s30 + $0xe8] sm:$0xff]  ;;  %v1995_v8 = vld [vmem:[%s11439_s26 + $0xf0] sm:$0xff] }
  0x93   : > { %10004 = vmatprep.mubr.msk.f32.mxu1 %vm1383_vm2, %v736_v9  ;;  %v2705_v9 = vld [vmem:[%s11445_s30 + $0xf0] sm:$0xff] }
  0x95   : > { %9907 = vmatmul.mubr.msk.f32.gmra.mxu0 %vm805_vm1, %v802_v10  ;;  %v1996_v10 = vld [vmem:[%s11439_s26 + $0xf8] sm:$0xff] }
  0x96   : > { %10005 = vmatmul.mubr.msk.f32.gmra.mxu1 %vm1383_vm2, %v737_v11  ;;  %10119 = vmatprep.mubr.msk.f32.mxu0 %vm2033_vm3, %v2675_v13  ;;  %v2706_v11 = vld [vmem:[%s11445_s30 + $0xf8] sm:$0xff]  ;;  %v2707_v13 = vld [vmem:[%s11445_s30 + $0x100] sm:$0xff] }
  0x97   : > { %10015 = vmatprep.mubr.msk.f32.mxu1 %vm2033_vm3, %v1965_v12  ;;  %v1997_v12 = vld [vmem:[%s11439_s26 + $0x100] sm:$0xff] }
  0x99   : > { %10120 = vmatmul.mubr.msk.f32.vlgmr.msra.gmra.mxu0 %vm2033_vm3, %v2676_v15  ;;  %v2708_v15 = vld [vmem:[%s11445_s30 + $0x108] sm:$0xff] }
  0x9a   : > { %10016 = vmatmul.mubr.msk.f32.vlgmr.msra.gmra.mxu1 %vm2033_vm3, %v1966_v14  ;;  %10122 = vmatprep.mubr.msk.f32.mxu0 %vm2033_vm3, %v2677_v17  ;;  %v1998_v14 = vld [vmem:[%s11439_s26 + $0x108] sm:$0xff]  ;;  %v2709_v17 = vld [vmem:[%s11445_s30 + $0x110] sm:$0xff] }
  0x9b   : > { %10018 = vmatprep.mubr.msk.f32.mxu1 %vm2033_vm3, %v1967_v16  ;;  %v1999_v16 = vld [vmem:[%s11439_s26 + $0x110] sm:$0xff] }
  0x9d   : > { %10123 = vmatmul.mubr.msk.f32.gmra.mxu0 %vm2033_vm3, %v2678_v19 }
  0x9e   : > { %10019 = vmatmul.mubr.msk.f32.gmra.mxu1 %vm2033_vm3, %v1968_v18  ;;  %10125 = vmatprep.mubr.msk.f32.mxu0 %vm2033_vm3, %v2679_v21  ;;  %v2000_v21 = vld [vmem:[%s11439_s26 + $0x118] sm:$0xff] }
  0x9f   : > { %10021 = vmatprep.mubr.msk.f32.mxu1 %vm2033_vm3, %v1969_v20 }
  0xa1   : > { %10126 = vmatmul.mubr.msk.f32.gmra.mxu0 %vm2033_vm3, %v2680_v23 }
  0xa2   : > { %10022 = vmatmul.mubr.msk.f32.gmra.mxu1 %vm2033_vm3, %v1970_v22  ;;  %10128 = vmatprep.mubr.msk.f32.mxu0 %vm2033_vm3, %v2681_v25  ;;  %v2710_v22 = vld [vmem:[%s11445_s30 + $0x118] sm:$0xff]  ;;  %v2001_v25 = vld [vmem:[%s11439_s26 + $0x120] sm:$0xff] }
  0xa3   : > { %10024 = vmatprep.mubr.msk.f32.mxu1 %vm2033_vm3, %v1971_v24 }
  0xa5   : > { %10129 = vmatmul.mubr.msk.f32.gmra.mxu0 %vm2033_vm3, %v2682_v27 }
  0xa6   : > { %10025 = vmatmul.mubr.msk.f32.gmra.mxu1 %vm2033_vm3, %v1972_v26  ;;  %10131 = vmatprep.mubr.msk.f32.mxu0 %vm2033_vm3, %v2683_v29  ;;  %v2711_v26 = vld [vmem:[%s11445_s30 + $0x120] sm:$0xff] }
  0xa7   : > { %10027 = vmatprep.mubr.msk.f32.mxu1 %vm2033_vm3, %v1973_v28 }
  0xa9   : > { %10132 = vmatmul.mubr.msk.f32.gmra.mxu0 %vm2033_vm3, %v2684_v31  ;;  %v2002_v31 = vld [vmem:[%s11439_s26 + $0x128] sm:$0xff] }
  0xaa   : > { %10028 = vmatmul.mubr.msk.f32.gmra.mxu1 %vm2033_vm3, %v1974_v30  ;;  %10134 = vmatprep.mubr.msk.f32.mxu0 %vm2033_vm3, %v2685_v33 }
  0xab   : > { %10030 = vmatprep.mubr.msk.f32.mxu1 %vm2033_vm3, %v1975_v32  ;;  %v2712_v32 = vld [vmem:[%s11445_s30 + $0x128] sm:$0xff] }
  0xad   : > { %10135 = vmatmul.mubr.msk.f32.gmra.mxu0 %vm2033_vm3, %v2686_v35  ;;  %v2003_v35 = vld [vmem:[%s11439_s26 + $0x130] sm:$0xff] }
  0xae   : > { %10031 = vmatmul.mubr.msk.f32.gmra.mxu1 %vm2033_vm3, %v1976_v34  ;;  %10137 = vmatprep.mubr.msk.f32.mxu0 %vm2033_vm3, %v2687_v37 }
  0xaf   : > { %10033 = vmatprep.mubr.msk.f32.mxu1 %vm2033_vm3, %v1977_v36  ;;  %v2713_v36 = vld [vmem:[%s11445_s30 + $0x130] sm:$0xff] }
  0xb1   : > { %10138 = vmatmul.mubr.msk.f32.gmra.mxu0 %vm2033_vm3, %v2688_v39 }
  0xb2   : > { %10034 = vmatmul.mubr.msk.f32.gmra.mxu1 %vm2033_vm3, %v1978_v38  ;;  %10140 = vmatprep.mubr.msk.f32.mxu0 %vm2033_vm3, %v2689_v41  ;;  %v2004_v41 = vld [vmem:[%s11439_s26 + $0x138] sm:$0xff] }
  0xb3   : > { %10036 = vmatprep.mubr.msk.f32.mxu1 %vm2033_vm3, %v1979_v40 }
  0xb5   : > { %10141 = vmatmul.mubr.msk.f32.gmra.mxu0 %vm2033_vm3, %v2690_v43 }
  0xb6   : > { %10037 = vmatmul.mubr.msk.f32.gmra.mxu1 %vm2033_vm3, %v1980_v42  ;;  %10143 = vmatprep.mubr.msk.f32.mxu0 %vm2033_vm3, %v2691_v45  ;;  %v2714_v42 = vld [vmem:[%s11445_s30 + $0x138] sm:$0xff]  ;;  %v2005_v45 = vld [vmem:[%s11439_s26 + $0x140] sm:$0xff] }
  0xb7   : > { %10039 = vmatprep.mubr.msk.f32.mxu1 %vm2033_vm3, %v1981_v44 }
  0xb9   : > { %10144 = vmatmul.mubr.msk.f32.gmra.mxu0 %vm2033_vm3, %v2692_v47 }
  0xba   : > { %10040 = vmatmul.mubr.msk.f32.gmra.mxu1 %vm2033_vm3, %v1982_v46  ;;  %10146 = vmatprep.mubr.msk.f32.mxu0 %vm2033_vm3, %v2693_v49  ;;  %v2715_v46 = vld [vmem:[%s11445_s30 + $0x140] sm:$0xff] }
  0xbb   : > { %10042 = vmatprep.mubr.msk.f32.mxu1 %vm2033_vm3, %v1983_v48 }
  0xbd   : > { %10147 = vmatmul.mubr.msk.f32.gmra.mxu0 %vm2033_vm3, %v2694_v51  ;;  %v2006_v51 = vld [vmem:[%s11439_s26 + $0x148] sm:$0xff] }
  0xbe   : > { %10043 = vmatmul.mubr.msk.f32.gmra.mxu1 %vm2033_vm3, %v1984_v50  ;;  %10149 = vmatprep.mubr.msk.f32.mxu0 %vm2033_vm3, %v2695_v53 }
  0xbf   : > { %10045 = vmatprep.mubr.msk.f32.mxu1 %vm2033_vm3, %v1985_v52  ;;  %v2716_v52 = vld [vmem:[%s11445_s30 + $0x148] sm:$0xff] }
  0xc1   : > { %10150 = vmatmul.mubr.msk.f32.gmra.mxu0 %vm2033_vm3, %v2696_v55  ;;  %v2007_v55 = vld [vmem:[%s11439_s26 + $0x150] sm:$0xff] }
  0xc2   : > { %10046 = vmatmul.mubr.msk.f32.gmra.mxu1 %vm2033_vm3, %v1986_v54  ;;  %10152 = vmatprep.mubr.msk.f32.mxu0 %vm2033_vm3, %v2697_v57 }
  0xc3   : > { %10048 = vmatprep.mubr.msk.f32.mxu1 %vm2033_vm3, %v1987_v56  ;;  %v2717_v56 = vld [vmem:[%s11445_s30 + $0x150] sm:$0xff] }
  0xc5   : > { %10153 = vmatmul.mubr.msk.f32.gmra.mxu0 %vm2033_vm3, %v2698_v59 }
  0xc6   : > { %10049 = vmatmul.mubr.msk.f32.gmra.mxu1 %vm2033_vm3, %v1988_v58  ;;  %10155 = vmatprep.mubr.msk.f32.mxu0 %vm2033_vm3, %v2699_v61  ;;  %v2008_v61 = vld [vmem:[%s11439_s26 + $0x158] sm:$0xff] }
  0xc7   : > { %10051 = vmatprep.mubr.msk.f32.mxu1 %vm2033_vm3, %v1989_v60 }
  0xc9   : > { %10156 = vmatmul.mubr.msk.f32.gmra.mxu0 %vm2033_vm3, %v2700_v63 }
  0xca   : > { %10052 = vmatmul.mubr.msk.f32.gmra.mxu1 %vm2033_vm3, %v1990_v62  ;;  %10158 = vmatprep.mubr.msk.f32.mxu0 %vm2033_vm3, %v2701_v1  ;;  %v2718_v62 = vld [vmem:[%s11445_s30 + $0x158] sm:$0xff]  ;;  %v2009_v1 = vld [vmem:[%s11439_s26 + $0x160] sm:$0xff] }
  0xcb   : > { %10054 = vmatprep.mubr.msk.f32.mxu1 %vm2033_vm3, %v1991_v0 }
  0xcd   : > { %10159 = vmatmul.mubr.msk.f32.gmra.mxu0 %vm2033_vm3, %v2702_v3 }
  0xce   : > { %10055 = vmatmul.mubr.msk.f32.gmra.mxu1 %vm2033_vm3, %v1992_v2  ;;  %10161 = vmatprep.mubr.msk.f32.mxu0 %vm2033_vm3, %v2703_v5  ;;  %v2719_v2 = vld [vmem:[%s11445_s30 + $0x160] sm:$0xff] }
  0xcf   : > { %10057 = vmatprep.mubr.msk.f32.mxu1 %vm2033_vm3, %v1993_v4 }
  0xd1   : > { %10162 = vmatmul.mubr.msk.f32.gmra.mxu0 %vm2033_vm3, %v2704_v7  ;;  %v2010_v7 = vld [vmem:[%s11439_s26 + $0x168] sm:$0xff] }
  0xd2   : > { %10058 = vmatmul.mubr.msk.f32.gmra.mxu1 %vm2033_vm3, %v1994_v6  ;;  %10164 = vmatprep.mubr.msk.f32.mxu0 %vm2033_vm3, %v2705_v9 }
  0xd3   : > { %10060 = vmatprep.mubr.msk.f32.mxu1 %vm2033_vm3, %v1995_v8  ;;  %v2720_v8 = vld [vmem:[%s11445_s30 + $0x168] sm:$0xff] }
  0xd5   : > { %10165 = vmatmul.mubr.msk.f32.gmra.mxu0 %vm2033_vm3, %v2706_v11  ;;  %v2011_v11 = vld [vmem:[%s11439_s26 + $0x170] sm:$0xff] }
  0xd6   : > { %10061 = vmatmul.mubr.msk.f32.gmra.mxu1 %vm2033_vm3, %v1996_v10  ;;  %10167 = vmatprep.mubr.msk.f32.mxu0 %vm2033_vm3, %v2707_v13 }
  0xd7   : > { %10063 = vmatprep.mubr.msk.f32.mxu1 %vm2033_vm3, %v1997_v12  ;;  %v2721_v12 = vld [vmem:[%s11445_s30 + $0x170] sm:$0xff] }
  0xd9   : > { %v9815_v18 = vpop.f32.mrf.mxu0  ;;  %10168 = vmatmul.mubr.msk.f32.gmra.mxu0 %vm2033_vm3, %v2708_v15 }
  0xda   : > { %v9913_v19 = vpop.f32.mrf.mxu1  ;;  %10064 = vmatmul.mubr.msk.f32.gmra.mxu1 %vm2033_vm3, %v1998_v14  ;;  %10170 = vmatprep.mubr.msk.f32.mxu0 %vm2033_vm3, %v2709_v17  ;;  %v2012_v17 = vld [vmem:[%s11439_s26 + $0x178] sm:$0xff] }
  0xdb   : > { %v11593_v20 = vadd.f32 %v9913_v19, %v9815_v18  ;;  %10066 = vmatprep.mubr.msk.f32.mxu1 %vm2033_vm3, %v1999_v16  ;;  %v1064_v23 = vpop.f32.mrf.mxu0  ;;  %v2722_v18 = vld [vmem:[%s11445_s30 + $0x178] sm:$0xff] }
  0xdc   : > { %v1646_v24 = vpop.f32.mrf.mxu1 }
  0xdd   : > { %v11601_v27 = vadd.f32 %v1646_v24, %v1064_v23  ;;  %v9818_v28 = vpop.f32.mrf.mxu0  ;;  %10171 = vmatmul.mubr.msk.f32.gmra.mxu0 %vm2033_vm3, %v2710_v22  ;;  %v2013_v22 = vld [vmem:[%s11439_s26 + $0x180] sm:$0xff] }
  0xde   : > { %v9916_v29 = vpop.f32.mrf.mxu1  ;;  %10067 = vmatmul.mubr.msk.f32.gmra.mxu1 %vm2033_vm3, %v2000_v21  ;;  %10173 = vmatprep.mubr.msk.f32.mxu0 %vm2033_vm3, %v2711_v26  ;;  %v2723_v23 = vld [vmem:[%s11445_s30 + $0x180] sm:$0xff] }
  0xdf   : > { %v11605_v30 = vadd.f32 %v9916_v29, %v9818_v28  ;;  %10069 = vmatprep.mubr.msk.f32.mxu1 %vm2033_vm3, %v2001_v25  ;;  %v1074_v33 = vpop.f32.mrf.mxu0  ;;  %v2014_v29 = vld [vmem:[%s11439_s26 + $0x188] sm:$0xff] }
  0xe0   : > { %v1656_v34 = vpop.f32.mrf.mxu1 }
  0xe1   : > { %v11613_v37 = vadd.f32 %v1656_v34, %v1074_v33  ;;  %v9821_v38 = vpop.f32.mrf.mxu0  ;;  %10174 = vmatmul.mubr.msk.f32.gmra.mxu0 %vm2033_vm3, %v2712_v32  ;;  %v2015_v34 = vld [vmem:[%s11439_s26 + $0x190] sm:$0xff] }
  0xe2   : > { %v9919_v39 = vpop.f32.mrf.mxu1  ;;  %10070 = vmatmul.mubr.msk.f32.gmra.mxu1 %vm2033_vm3, %v2002_v31  ;;  %10176 = vmatprep.mubr.msk.f32.mxu0 %vm2033_vm3, %v2713_v36  ;;  %v2724_v31 = vld [vmem:[%s11445_s30 + $0x188] sm:$0xff] }
  0xe3   : > { %v11617_v40 = vadd.f32 %v9919_v39, %v9821_v38  ;;  %10072 = vmatprep.mubr.msk.f32.mxu1 %vm2033_vm3, %v2003_v35  ;;  %v1084_v43 = vpop.f32.mrf.mxu0  ;;  %v2725_v35 = vld [vmem:[%s11445_s30 + $0x190] sm:$0xff] }
  0xe4   : > { %v1666_v44 = vpop.f32.mrf.mxu1 }
  0xe5   : > { %v11625_v47 = vadd.f32 %v1666_v44, %v1084_v43  ;;  %v9824_v48 = vpop.f32.mrf.mxu0  ;;  %10177 = vmatmul.mubr.msk.f32.gmra.mxu0 %vm2033_vm3, %v2714_v42  ;;  %v2016_v42 = vld [vmem:[%s11439_s26 + $0x198] sm:$0xff] }
  0xe6   : > { %v9922_v49 = vpop.f32.mrf.mxu1  ;;  %10073 = vmatmul.mubr.msk.f32.gmra.mxu1 %vm2033_vm3, %v2004_v41  ;;  %10179 = vmatprep.mubr.msk.f32.mxu0 %vm2033_vm3, %v2715_v46  ;;  %v2726_v43 = vld [vmem:[%s11445_s30 + $0x198] sm:$0xff]  ;;  %v2017_v46 = vld [vmem:[%s11439_s26 + $0x1a0] sm:$0xff] }
  0xe7   : > { %v11629_v50 = vadd.f32 %v9922_v49, %v9824_v48  ;;  %10075 = vmatprep.mubr.msk.f32.mxu1 %vm2033_vm3, %v2005_v45  ;;  %v1094_v53 = vpop.f32.mrf.mxu0  ;;  %v2727_v48 = vld [vmem:[%s11445_s30 + $0x1a0] sm:$0xff] }
  0xe8   : > { %v1676_v54 = vpop.f32.mrf.mxu1 }
  0xe9   : > { %v11637_v57 = vadd.f32 %v1676_v54, %v1094_v53  ;;  %v9827_v58 = vpop.f32.mrf.mxu0  ;;  %10180 = vmatmul.mubr.msk.f32.gmra.mxu0 %vm2033_vm3, %v2716_v52  ;;  %v2018_v53 = vld [vmem:[%s11439_s26 + $0x1a8] sm:$0xff] }
  0xea   : > { %v9925_v59 = vpop.f32.mrf.mxu1  ;;  %10076 = vmatmul.mubr.msk.f32.gmra.mxu1 %vm2033_vm3, %v2006_v51  ;;  %10182 = vmatprep.mubr.msk.f32.mxu0 %vm2033_vm3, %v2717_v56  ;;  %v2728_v54 = vld [vmem:[%s11445_s30 + $0x1a8] sm:$0xff] }
  0xeb   : > { %v11641_v60 = vadd.f32 %v9925_v59, %v9827_v58  ;;  %10078 = vmatprep.mubr.msk.f32.mxu1 %vm2033_vm3, %v2007_v55  ;;  %v1104_v63 = vpop.f32.mrf.mxu0  ;;  %v2019_v58 = vld [vmem:[%s11439_s26 + $0x1b0] sm:$0xff] }
  0xec   : > { %v1686_v0 = vpop.f32.mrf.mxu1  ;;  %v2729_v59 = vld [vmem:[%s11445_s30 + $0x1b0] sm:$0xff] }
  0xed   : > { %v11649_v3 = vadd.f32 %v1686_v0, %v1104_v63  ;;  %v9830_v4 = vpop.f32.mrf.mxu0  ;;  %10183 = vmatmul.mubr.msk.f32.gmra.mxu0 %vm2033_vm3, %v2718_v62  ;;  %v2020_v0 = vld [vmem:[%s11439_s26 + $0x1b8] sm:$0xff] }
  0xee   : > { %v9928_v5 = vpop.f32.mrf.mxu1  ;;  %10079 = vmatmul.mubr.msk.f32.gmra.mxu1 %vm2033_vm3, %v2008_v61  ;;  %10185 = vmatprep.mubr.msk.f32.mxu0 %vm2033_vm3, %v2719_v2 }
  0xef   : > { %v11653_v6 = vadd.f32 %v9928_v5, %v9830_v4  ;;  %10081 = vmatprep.mubr.msk.f32.mxu1 %vm2033_vm3, %v2009_v1  ;;  %v1114_v9 = vpop.f32.mrf.mxu0  ;;  %v2730_v1 = vld [vmem:[%s11445_s30 + $0x1b8] sm:$0xff]  ;;  %v2021_v5 = vld [vmem:[%s11439_s26 + $0x1c0] sm:$0xff] }
  0xf0   : > { %v1696_v10 = vpop.f32.mrf.mxu1 }
  0xf1   : > { %v11661_v13 = vadd.f32 %v1696_v10, %v1114_v9  ;;  %v9833_v14 = vpop.f32.mrf.mxu0  ;;  %10186 = vmatmul.mubr.msk.f32.gmra.mxu0 %vm2033_vm3, %v2720_v8 }
  0xf2   : > { %v9931_v15 = vpop.f32.mrf.mxu1  ;;  %10082 = vmatmul.mubr.msk.f32.gmra.mxu1 %vm2033_vm3, %v2010_v7  ;;  %10188 = vmatprep.mubr.msk.f32.mxu0 %vm2033_vm3, %v2721_v12  ;;  %v2731_v7 = vld [vmem:[%s11445_s30 + $0x1c0] sm:$0xff]  ;;  %v2732_v12 = vld [vmem:[%s11445_s30 + $0x1c8] sm:$0xff] }
  0xf3   : > { %v11665_v16 = vadd.f32 %v9931_v15, %v9833_v14  ;;  %10084 = vmatprep.mubr.msk.f32.mxu1 %vm2033_vm3, %v2011_v11  ;;  %v1124_v19 = vpop.f32.mrf.mxu0  ;;  %v2022_v11 = vld [vmem:[%s11439_s26 + $0x1c8] sm:$0xff] }
  0xf4   : > { %v1706_v21 = vpop.f32.mrf.mxu1 }
  0xf5   : > { %v11673_v24 = vadd.f32 %v1706_v21, %v1124_v19  ;;  %v9836_v25 = vpop.f32.mrf.mxu0  ;;  %10189 = vmatmul.mubr.msk.f32.gmra.mxu0 %vm2033_vm3, %v2722_v18  ;;  %v2733_v18 = vld [vmem:[%s11445_s30 + $0x1d0] sm:$0xff] }
  0xf6   : > { %v9934_v26 = vpop.f32.mrf.mxu1  ;;  %10085 = vmatmul.mubr.msk.f32.gmra.mxu1 %vm2033_vm3, %v2012_v17  ;;  %10191 = vmatprep.mubr.msk.f32.mxu0 %vm2033_vm3, %v2723_v23  ;;  %v2023_v17 = vld [vmem:[%s11439_s26 + $0x1d0] sm:$0xff]  ;;  %v2024_v23 = vld [vmem:[%s11439_s26 + $0x1d8] sm:$0xff] }
  0xf7   : > { %v11677_v28 = vadd.f32 %v9934_v26, %v9836_v25  ;;  %10087 = vmatprep.mubr.msk.f32.mxu1 %vm2033_vm3, %v2013_v22  ;;  %v1134_v32 = vpop.f32.mrf.mxu0  ;;  %v2734_v25 = vld [vmem:[%s11445_s30 + $0x1d8] sm:$0xff] }
  0xf8   : > { %v1716_v33 = vpop.f32.mrf.mxu1 }
  0xf9   : > { %v11685_v36 = vadd.f32 %v1716_v33, %v1134_v32  ;;  %v9839_v38 = vpop.f32.mrf.mxu0  ;;  %10192 = vmatmul.mubr.msk.f32.gmra.mxu0 %vm2033_vm3, %v2724_v31  ;;  %v2025_v31 = vld [vmem:[%s11439_s26 + $0x1e0] sm:$0xff] }
  0xfa   : > { %v9937_v39 = vpop.f32.mrf.mxu1  ;;  %10088 = vmatmul.mubr.msk.f32.gmra.mxu1 %vm2033_vm3, %v2014_v29  ;;  %10194 = vmatprep.mubr.msk.f32.mxu0 %vm2033_vm3, %v2725_v35  ;;  %v2735_v32 = vld [vmem:[%s11445_s30 + $0x1e0] sm:$0xff] }
  0xfb   : > { %v11689_v41 = vadd.f32 %v9937_v39, %v9839_v38  ;;  %10090 = vmatprep.mubr.msk.f32.mxu1 %vm2033_vm3, %v2015_v34  ;;  %v11695_v44 = vpop.f32.mrf.mxu0  ;;  %v2026_v38 = vld [vmem:[%s11439_s26 + $0x1e8] sm:$0xff] }
  0xfc   : > { %v11697_v45 = vpop.f32.mrf.mxu1  ;;  %v2736_v39 = vld [vmem:[%s11445_s30 + $0x1e8] sm:$0xff] }
  0xfd   : > { %v9842_v49 = vpop.f32.mrf.mxu0  ;;  %10195 = vmatmul.mubr.msk.f32.gmra.mxu0 %vm2033_vm3, %v2726_v43 }
  0xfe   : > { %v9940_v51 = vpop.f32.mrf.mxu1  ;;  %10091 = vmatmul.mubr.msk.f32.gmra.mxu1 %vm2033_vm3, %v2016_v42  ;;  %10197 = vmatprep.mubr.msk.f32.mxu0 %vm2033_vm3, %v2727_v48  ;;  %v2737_v48 = vld [vmem:[%s11445_s30 + $0x1f0] sm:$0xff] }
  0xff   : > { %v11703_v52 = vadd.f32 %v9940_v51, %v9842_v49  ;;  %10093 = vmatprep.mubr.msk.f32.mxu1 %vm2033_vm3, %v2017_v46  ;;  %v11709_v55 = vpop.f32.mrf.mxu0  ;;  %v2027_v46 = vld [vmem:[%s11439_s26 + $0x1f0] sm:$0xff] }
 0x100   : > { %v11711_v56 = vpop.f32.mrf.mxu1 }
 0x101   : > { %v9845_v61 = vpop.f32.mrf.mxu0  ;;  %10198 = vmatmul.mubr.msk.f32.gmra.mxu0 %vm2033_vm3, %v2728_v54  ;;  %v2028_v54 = vld [vmem:[%s11439_s26 + $0x1f8] sm:$0xff] }
 0x102   : > { %v9943_v62 = vpop.f32.mrf.mxu1  ;;  %10094 = vmatmul.mubr.msk.f32.gmra.mxu1 %vm2033_vm3, %v2018_v53  ;;  %10200 = vmatprep.mubr.msk.f32.mxu0 %vm2033_vm3, %v2729_v59 }
 0x103   : > { %v11717_v63 = vadd.f32 %v9943_v62, %v9845_v61  ;;  %10096 = vmatprep.mubr.msk.f32.mxu1 %vm2033_vm3, %v2019_v58  ;;  %v11723_v2 = vpop.f32.mrf.mxu0  ;;  %v2738_v58 = vld [vmem:[%s11445_s30 + $0x1f8] sm:$0xff] }
 0x104   : > { %v11725_v4 = vpop.f32.mrf.mxu1 }
 0x105   : > { %v9848_v8 = vpop.f32.mrf.mxu0  ;;  %10201 = vmatmul.mubr.msk.f32.gmra.mxu0 %vm2033_vm3, %v2730_v1 }
 0x106   : > { %v9946_v9 = vpop.f32.mrf.mxu1  ;;  %10097 = vmatmul.mubr.msk.f32.gmra.mxu1 %vm2033_vm3, %v2020_v0  ;;  %10203 = vmatprep.mubr.msk.f32.mxu0 %vm2033_vm3, %v2731_v7 }
 0x107   : > { %v11731_v10 = vadd.f32 %v9946_v9, %v9848_v8  ;;  %10099 = vmatprep.mubr.msk.f32.mxu1 %vm2033_vm3, %v2021_v5  ;;  %v11737_v14 = vpop.f32.mrf.mxu0 }
 0x108   : > { %v11739_v15 = vpop.f32.mrf.mxu1 }
 0x109   : > { %v9851_v19 = vpop.f32.mrf.mxu0  ;;  %10204 = vmatmul.mubr.msk.f32.gmra.mxu0 %vm2033_vm3, %v2732_v12 }
 0x10a   : > { %v9949_v21 = vpop.f32.mrf.mxu1  ;;  %10100 = vmatmul.mubr.msk.f32.gmra.mxu1 %vm2033_vm3, %v2022_v11  ;;  %10206 = vmatprep.mubr.msk.f32.mxu0 %vm2033_vm3, %v2733_v18 }
 0x10b   : > { %v11745_v22 = vadd.f32 %v9949_v21, %v9851_v19  ;;  %10102 = vmatprep.mubr.msk.f32.mxu1 %vm2033_vm3, %v2023_v17  ;;  %v11751_v26 = vpop.f32.mrf.mxu0 }
 0x10c   : > { %v11753_v29 = vpop.f32.mrf.mxu1 }
 0x10d   : > { %v9854_v33 = vpop.f32.mrf.mxu0  ;;  %10207 = vmatmul.mubr.msk.f32.gmra.mxu0 %vm2033_vm3, %v2734_v25 }
 0x10e   : > { %v9952_v34 = vpop.f32.mrf.mxu1  ;;  %10103 = vmatmul.mubr.msk.f32.gmra.mxu1 %vm2033_vm3, %v2024_v23  ;;  %10209 = vmatprep.mubr.msk.f32.mxu0 %vm2033_vm3, %v2735_v32 }
 0x10f   : > { %v11759_v35 = vadd.f32 %v9952_v34, %v9854_v33  ;;  %10105 = vmatprep.mubr.msk.f32.mxu1 %vm2033_vm3, %v2025_v31  ;;  %v11765_v42 = vpop.f32.mrf.mxu0 }
 0x110   : > { %v11767_v43 = vpop.f32.mrf.mxu1 }
 0x111   : > { %v9857_v49 = vpop.f32.mrf.mxu0  ;;  %10210 = vmatmul.mubr.msk.f32.gmra.mxu0 %vm2033_vm3, %v2736_v39 }
 0x112   : > { %v9955_v51 = vpop.f32.mrf.mxu1  ;;  %10106 = vmatmul.mubr.msk.f32.gmra.mxu1 %vm2033_vm3, %v2026_v38  ;;  %10212 = vmatprep.mubr.msk.f32.mxu0 %vm2033_vm3, %v2737_v48 }
 0x113   : > { %v11773_v53 = vadd.f32 %v9955_v51, %v9857_v49  ;;  %10108 = vmatprep.mubr.msk.f32.mxu1 %vm2033_vm3, %v2027_v46  ;;  %v11779_v59 = vpop.f32.mrf.mxu0 }
 0x114   : > { %v11781_v61 = vpop.f32.mrf.mxu1 }
 0x115   : > { %v9860_v62 = vpop.f32.mrf.mxu0  ;;  %10213 = vmatmul.mubr.msk.f32.gmra.mxu0 %vm2033_vm3, %v2738_v58 }
 0x116   : > { %v9958_v0 = vpop.f32.mrf.mxu1  ;;  %10109 = vmatmul.mubr.msk.f32.gmra.mxu1 %vm2033_vm3, %v2028_v54 }
 0x117   : > { %v11785_v1 = vadd.f32 %v9958_v0, %v9860_v62  ;;  %v11787_v5 = vpop.f32.mrf.mxu0 }
 0x118   : > { %v11789_v7 = vpop.f32.mrf.mxu1 }
 0x119   : > { %v9863_v8 = vpop.f32.mrf.mxu0 }
 0x11a   : > { %v9961_v9 = vpop.f32.mrf.mxu1 }
 0x11b   : > { %v11791_v11 = vadd.f32 %v9961_v9, %v9863_v8  ;;  %v11793_v12 = vpop.f32.mrf.mxu0 }
 0x11c   : > { %v11795_v17 = vpop.f32.mrf.mxu1 }
 0x11d   : > { %v9866_v18 = vpop.f32.mrf.mxu0 }
 0x11e   : > { %v9964_v19 = vpop.f32.mrf.mxu1 }
 0x11f   : > { %v11797_v21 = vadd.f32 %v9964_v19, %v9866_v18  ;;  %v11799_v23 = vpop.f32.mrf.mxu0 }
 0x120   : > { %v11801_v25 = vpop.f32.mrf.mxu1 }
 0x121   : > { %v9869_v31 = vpop.f32.mrf.mxu0 }
 0x122   : > { %v9967_v32 = vpop.f32.mrf.mxu1 }
 0x123   : > { %v11803_v33 = vadd.f32 %v9967_v32, %v9869_v31  ;;  %v11805_v34 = vpop.f32.mrf.mxu0 }
 0x124   : > { %v11807_v38 = vpop.f32.mrf.mxu1 }
 0x125   : > { %v9872_v39 = vpop.f32.mrf.mxu0 }
 0x126   : > { %v9970_v46 = vpop.f32.mrf.mxu1 }
 0x127   : > { %v11809_v48 = vadd.f32 %v9970_v46, %v9872_v39  ;;  %v11811_v49 = vpop.f32.mrf.mxu0 }
 0x128   : > { %v11813_v51 = vpop.f32.mrf.mxu1 }
 0x129   : > { %15964 = vst [vmem:[#allocation3_spill] sm:$0xff] %v11809_v48  ;;  %15965 = vst [vmem:[#allocation4_spill] sm:$0xff] %v11813_v51  ;;  %v9875_v54 = vpop.f32.mrf.mxu0 }
 0x12a   : > { %v9973_v58 = vpop.f32.mrf.mxu1 }
 0x12b   : > { %v11815_v62 = vadd.f32 %v9973_v58, %v9875_v54  ;;  %v11817_v0 = vpop.f32.mrf.mxu0 }
 0x12c   : > { %15967 = vst [vmem:[#allocation6_spill] sm:$0xff] %v11817_v0  ;;  %v11819_v8 = vpop.f32.mrf.mxu1 }
 0x12d   : > { %15966 = vst [vmem:[#allocation5_spill] sm:$0xff] %v11815_v62  ;;  %15968 = vst [vmem:[#allocation7_spill] sm:$0xff] %v11819_v8  ;;  %v9878_v9 = vpop.f32.mrf.mxu0 }
 0x12e   : > { %v9976_v18 = vpop.f32.mrf.mxu1 }
 0x12f   : > { %v11821_v19 = vadd.f32 %v9976_v18, %v9878_v9  ;;  %v11823_v31 = vpop.f32.mrf.mxu0 }
 0x130   : > { %15970 = vst [vmem:[#allocation9_spill] sm:$0xff] %v11823_v31  ;;  %v11825_v32 = vpop.f32.mrf.mxu1 }
 0x131   : > { %15969 = vst [vmem:[#allocation8_spill] sm:$0xff] %v11821_v19  ;;  %15971 = vst [vmem:[#allocation10_spill] sm:$0xff] %v11825_v32  ;;  %v9881_v39 = vpop.f32.mrf.mxu0 }
 0x132   : > { %v9979_v46 = vpop.f32.mrf.mxu1 }
 0x133   : > { %v11827_v48 = vadd.f32 %v9979_v46, %v9881_v39  ;;  %v11829_v51 = vpop.f32.mrf.mxu0 }
 0x134   : > { %15973 = vst [vmem:[#allocation12_spill] sm:$0xff] %v11829_v51  ;;  %v11831_v54 = vpop.f32.mrf.mxu1 }
 0x135   : > { %15972 = vst [vmem:[#allocation11_spill] sm:$0xff] %v11827_v48  ;;  %15974 = vst [vmem:[#allocation13_spill] sm:$0xff] %v11831_v54  ;;  %v9884_v58 = vpop.f32.mrf.mxu0 }
 0x136   : > { %v9982_v62 = vpop.f32.mrf.mxu1 }
 0x137   : > { %v11833_v0 = vadd.f32 %v9982_v62, %v9884_v58  ;;  %v11835_v8 = vpop.f32.mrf.mxu0 }
 0x138   : > { %15976 = vst [vmem:[#allocation15_spill] sm:$0xff] %v11835_v8  ;;  %v11837_v9 = vpop.f32.mrf.mxu1 }
 0x139   : > { %15975 = vst [vmem:[#allocation14_spill] sm:$0xff] %v11833_v0  ;;  %15977 = vst [vmem:[#allocation16_spill] sm:$0xff] %v11837_v9  ;;  %v9887_v18 = vpop.f32.mrf.mxu0 }
 0x13a   : > { %v9985_v19 = vpop.f32.mrf.mxu1 }
 0x13b   : > { %v11839_v31 = vadd.f32 %v9985_v19, %v9887_v18  ;;  %v11841_v32 = vpop.f32.mrf.mxu0 }
 0x13c   : > { %15979 = vst [vmem:[#allocation18_spill] sm:$0xff] %v11841_v32  ;;  %v11843_v39 = vpop.f32.mrf.mxu1 }
 0x13d   : > { %15978 = vst [vmem:[#allocation17_spill] sm:$0xff] %v11839_v31  ;;  %15980 = vst [vmem:[#allocation19_spill] sm:$0xff] %v11843_v39  ;;  %v9890_v46 = vpop.f32.mrf.mxu0 }
 0x13e   : > { %v9988_v48 = vpop.f32.mrf.mxu1 }
 0x13f   : > { %v11845_v51 = vadd.f32 %v9988_v48, %v9890_v46  ;;  %v11847_v54 = vpop.f32.mrf.mxu0 }
 0x140   : > { %15982 = vst [vmem:[#allocation21_spill] sm:$0xff] %v11847_v54  ;;  %v11849_v62 = vpop.f32.mrf.mxu1 }
 0x141   : > { %15981 = vst [vmem:[#allocation20_spill] sm:$0xff] %v11845_v51  ;;  %15983 = vst [vmem:[#allocation22_spill] sm:$0xff] %v11849_v62  ;;  %v9893_v58 = vpop.f32.mrf.mxu0 }
 0x142   : > { %v9991_v0 = vpop.f32.mrf.mxu1 }
 0x143   : > { %v11851_v8 = vadd.f32 %v9991_v0, %v9893_v58  ;;  %v11853_v9 = vpop.f32.mrf.mxu0 }
 0x144   : > { %15985 = vst [vmem:[#allocation24_spill] sm:$0xff] %v11853_v9  ;;  %v11855_v19 = vpop.f32.mrf.mxu1 }
 0x145   : > { %15984 = vst [vmem:[#allocation23_spill] sm:$0xff] %v11851_v8  ;;  %15986 = vst [vmem:[#allocation25_spill] sm:$0xff] %v11855_v19  ;;  %v9896_v18 = vpop.f32.mrf.mxu0 }
 0x146   : > { %v9994_v31 = vpop.f32.mrf.mxu1 }
 0x147   : > { %v11857_v32 = vadd.f32 %v9994_v31, %v9896_v18  ;;  %v11859_v39 = vpop.f32.mrf.mxu0 }
 0x148   : > { %15988 = vst [vmem:[#allocation27_spill] sm:$0xff] %v11859_v39  ;;  %v11861_v48 = vpop.f32.mrf.mxu1 }
 0x149   : > { %15987 = vst [vmem:[#allocation26_spill] sm:$0xff] %v11857_v32  ;;  %15989 = vst [vmem:[#allocation28_spill] sm:$0xff] %v11861_v48  ;;  %v9899_v46 = vpop.f32.mrf.mxu0 }
 0x14a   : > { %v9997_v51 = vpop.f32.mrf.mxu1 }
 0x14b   : > { %v11863_v54 = vadd.f32 %v9997_v51, %v9899_v46  ;;  %v11865_v62 = vpop.f32.mrf.mxu0 }
 0x14c   : > { %15991 = vst [vmem:[#allocation30_spill] sm:$0xff] %v11865_v62  ;;  %v11867_v0 = vpop.f32.mrf.mxu1 }
 0x14d   : > { %15990 = vst [vmem:[#allocation29_spill] sm:$0xff] %v11863_v54  ;;  %15992 = vst [vmem:[#allocation31_spill] sm:$0xff] %v11867_v0  ;;  %v9902_v58 = vpop.f32.mrf.mxu0 }
 0x14e   : > { %v10000_v8 = vpop.f32.mrf.mxu1 }
 0x14f   : > { %v11869_v9 = vadd.f32 %v10000_v8, %v9902_v58  ;;  %v11871_v19 = vpop.f32.mrf.mxu0 }
 0x150   : > { %v11873_v31 = vpop.f32.mrf.mxu1 }
 0x151   : > { %15993 = vst [vmem:[#allocation32_spill] sm:$0xff] %v11869_v9  ;;  %15994 = vst [vmem:[#allocation33_spill] sm:$0xff] %v11873_v31  ;;  %v9905_v18 = vpop.f32.mrf.mxu0 }
 0x152   : > { %v10003_v32 = vpop.f32.mrf.mxu1 }
 0x153   : > { %v11875_v39 = vadd.f32 %v10003_v32, %v9905_v18  ;;  %v11877_v48 = vpop.f32.mrf.mxu0  ;;  %v11891_v32 = vld [vmem:[%s15753_s8] ss:$0 sm:$0xff] }
 0x154   : > { %15996 = vst [vmem:[#allocation35_spill] sm:$0xff] %v11877_v48  ;;  %v11879_v51 = vpop.f32.mrf.mxu1 }
 0x155   : > { %15995 = vst [vmem:[#allocation34_spill] sm:$0xff] %v11875_v39  ;;  %15997 = vst [vmem:[#allocation36_spill] sm:$0xff] %v11879_v51  ;;  %v9908_v46 = vpop.f32.mrf.mxu0 }
 0x156   : > { %v10006_v54 = vpop.f32.mrf.mxu1 }
 0x157   : > { %v11881_v62 = vadd.f32 %v10006_v54, %v9908_v46  ;;  %v11883_v0 = vpop.f32.mrf.mxu0 }
 0x158   : > { %v11885_v8 = vpop.f32.mrf.mxu1 }
 0x159   : > { %15998 = vst [vmem:[#allocation37_spill] sm:$0xff] %v11881_v62  ;;  %15999 = vst [vmem:[#allocation38_spill] sm:$0xff] %v11885_v8  ;;  %v10121_v9 = vpop.f32.mrf.mxu0 }
 0x15a   : > { %v10017_v58 = vpop.f32.mrf.mxu1 }
 0x15b   : > { %v2612_v31 = vadd.f32 %v10017_v58, %v11593_v20  ;;  %v3001_v39 = vpop.f32.mrf.mxu0 }
 0x15c   : > { %v2292_v18 = vpop.f32.mrf.mxu1 }
 0x15d   : > { %v3321_v51 = vadd.f32 %v10121_v9, %v2612_v31  ;;  %v10124_v62 = vpop.f32.mrf.mxu0  ;;  %v2611_v9 = vadd.f32 %v2292_v18, %v11601_v27 }
 0x15e   : > { %v10020_v48 = vpop.f32.mrf.mxu1 }
 0x15f   : > { %v11894_v54 = vadd.f32 %v11891_v32, %v3321_v51  ;;  %v2614_v46 = vadd.f32 %v10020_v48, %v11605_v30  ;;  %v3320_v31 = vadd.f32 %v3001_v39, %v2611_v9 }
 0x160   : > { %v2302_v48 = vpop.f32.mrf.mxu1 }
 0x161   : > { %16000 = vst [vmem:[#allocation39_spill] sm:$0xff] %v11894_v54  ;;  %v3323_v8 = vadd.f32 %v10124_v62, %v2614_v46  ;;  %4562 = vrot.lane.b32.xlu1 %v11894_v54, %s11026_s22  ;;  %v3460_v20 = vsel %vm2033_vm3, %v11894_v54, 0.0  ;;  %v11908_v30 = vadd.f32 %v11891_v32, %v3320_v31  ;;  %v2613_v51 = vadd.f32 %v2302_v48, %v11613_v37 }
 0x162   : > { %3461 = vadd.xlane.f32.xlu0 %v3460_v20  ;;  %v10023_v39 = vpop.f32.mrf.mxu1 }
 0x163   : > { %v11902_v58 = vadd.f32 %v11891_v32, %v3323_v8  ;;  %16002 = vst [vmem:[#allocation41_spill] sm:$0xff] %v11908_v30  ;;  %v3011_v8 = vpop.f32.mrf.mxu0  ;;  %v3457_v20 = vsel %vm2033_vm3, %v11908_v30, 0.0 }
 0x164   : > { %v3322_v46 = vadd.f32 %v3011_v8, %v2613_v51  ;;  %v2312_v18 = vpop.f32.mrf.mxu1  ;;  %v2616_v51 = vadd.f32 %v10023_v39, %v11617_v40 }
 0x165   : > { %16001 = vst [vmem:[#allocation40_spill] sm:$0xff] %v11902_v58  ;;  %4566 = vrot.lane.b32.xlu1 %v11902_v58, %s11026_s22  ;;  %v3466_v62 = vsel %vm2033_vm3, %v11902_v58, 0.0  ;;  %v10127_v9 = vpop.f32.mrf.mxu0  ;;  %v2615_v31 = vadd.f32 %v2312_v18, %v11625_v47 }
 0x166   : > { %v11918_v27 = vadd.f32 %v11891_v32, %v3322_v46  ;;  %v3325_v8 = vadd.f32 %v10127_v9, %v2616_v51 }
 0x168   : > { %16003 = vst [vmem:[#allocation42_spill] sm:$0xff] %v11918_v27  ;;  %v3463_v48 = vsel %vm2033_vm3, %v11918_v27, 0.0  ;;  %v11934_v47 = vadd.f32 %v11891_v32, %v3325_v8 }
 0x16a   : > { %16005 = vst [vmem:[#allocation44_spill] sm:$0xff] %v11934_v47  ;;  %v3472_v39 = vsel %vm2033_vm3, %v11934_v47, 0.0 }
 0x178   : > { %4560 = vrot.lane.b32.xlu0 %v11908_v30, %s11026_s22 }
 0x189   : > { %3467 = vadd.xlane.f32.xlu1 %v3466_v62  ;;  %v3021_v62 = vpop.f32.mrf.mxu0 }
 0x18a   : > { %v3324_v58 = vadd.f32 %v3021_v62, %v2615_v31 }
 0x18b   : > { %v10130_v18 = vpop.f32.mrf.mxu0 }
 0x18c   : > { %v11924_v37 = vadd.f32 %v11891_v32, %v3324_v58  ;;  %v10026_v58 = vpop.f32.mrf.mxu1 }
 0x18d   : > { %v3031_v62 = vpop.f32.mrf.mxu0  ;;  %v2618_v9 = vadd.f32 %v10026_v58, %v11629_v50 }
 0x18e   : > { %16004 = vst [vmem:[#allocation43_spill] sm:$0xff] %v11924_v37  ;;  %v3469_v46 = vsel %vm2033_vm3, %v11924_v37, 0.0 }
 0x18f   : > { %v3327_v51 = vadd.f32 %v10130_v18, %v2618_v9 }
 0x197   : > { %3458 = vadd.xlane.f32.xlu0 %v3457_v20  ;;  %v2322_v20 = vpop.f32.mrf.mxu1 }
 0x198   : > { %v2617_v31 = vadd.f32 %v2322_v20, %v11637_v57  ;;  %v11950_v57 = vadd.f32 %v11891_v32, %v3327_v51 }
 0x19a   : > { %4564 = vrot.lane.b32.xlu1 %v11918_v27, %s11026_s22  ;;  %16007 = vst [vmem:[#allocation46_spill] sm:$0xff] %v11950_v57  ;;  %v3478_v58 = vsel %vm2033_vm3, %v11950_v57, 0.0 }
 0x1ad   : > { %4568 = vrot.lane.b32.xlu0 %v11924_v37, %s11026_s22 }
 0x1be   : > { %3464 = vadd.xlane.f32.xlu1 %v3463_v48  ;;  %v3326_v48 = vadd.f32 %v3031_v62, %v2617_v31  ;;  %v10133_v31 = vpop.f32.mrf.mxu0 }
 0x1c0   : > { %v11940_v40 = vadd.f32 %v11891_v32, %v3326_v48  ;;  %v3041_v48 = vpop.f32.mrf.mxu0 }
 0x1c2   : > { %16006 = vst [vmem:[#allocation45_spill] sm:$0xff] %v11940_v40  ;;  %v3475_v8 = vsel %vm2033_vm3, %v11940_v40, 0.0 }
 0x1cc   : > { %3470 = vadd.xlane.f32.xlu0 %v3469_v46  ;;  %v10029_v46 = vpop.f32.mrf.mxu1 }
 0x1cd   : > { %v2620_v18 = vadd.f32 %v10029_v46, %v11641_v60 }
 0x1ce   : > { %v2332_v20 = vpop.f32.mrf.mxu1 }
 0x1cf   : > { %4570 = vrot.lane.b32.xlu1 %v11934_v47, %s11026_s22  ;;  %v2619_v62 = vadd.f32 %v2332_v20, %v11649_v3  ;;  %v3329_v9 = vadd.f32 %v10133_v31, %v2620_v18 }
 0x1d1   : > { %v11966_v3 = vadd.f32 %v11891_v32, %v3329_v9 }
 0x1d3   : > { %16009 = vst [vmem:[#allocation48_spill] sm:$0xff] %v11966_v3  ;;  %v3484_v46 = vsel %vm2033_vm3, %v11966_v3, 0.0 }
 0x1e2   : > { %4572 = vrot.lane.b32.xlu0 %v11940_v40, %s11026_s22 }
 0x1f3   : > { %3473 = vadd.xlane.f32.xlu1 %v3472_v39  ;;  %v3328_v39 = vadd.f32 %v3041_v48, %v2619_v62  ;;  %v10136_v62 = vpop.f32.mrf.mxu0 }
 0x1f5   : > { %v11956_v50 = vadd.f32 %v11891_v32, %v3328_v39  ;;  %v3051_v39 = vpop.f32.mrf.mxu0 }
 0x1f7   : > { %16008 = vst [vmem:[#allocation47_spill] sm:$0xff] %v11956_v50  ;;  %v3481_v51 = vsel %vm2033_vm3, %v11956_v50, 0.0 }
 0x201   : > { %3476 = vadd.xlane.f32.xlu0 %v3475_v8  ;;  %v10032_v8 = vpop.f32.mrf.mxu1 }
 0x202   : > { %v2622_v31 = vadd.f32 %v10032_v8, %v11653_v6 }
 0x203   : > { %v2342_v20 = vpop.f32.mrf.mxu1 }
 0x204   : > { %4574 = vrot.lane.b32.xlu1 %v11950_v57, %s11026_s22  ;;  %v2621_v48 = vadd.f32 %v2342_v20, %v11661_v13  ;;  %v3331_v18 = vadd.f32 %v10136_v62, %v2622_v31 }
 0x206   : > { %v11982_v13 = vadd.f32 %v11891_v32, %v3331_v18 }
 0x208   : > { %16011 = vst [vmem:[#allocation50_spill] sm:$0xff] %v11982_v13  ;;  %v3490_v8 = vsel %vm2033_vm3, %v11982_v13, 0.0 }
 0x217   : > { %4576 = vrot.lane.b32.xlu0 %v11956_v50, %s11026_s22 }
 0x228   : > { %3479 = vadd.xlane.f32.xlu1 %v3478_v58  ;;  %v3330_v58 = vadd.f32 %v3051_v39, %v2621_v48  ;;  %v10139_v48 = vpop.f32.mrf.mxu0 }
 0x22a   : > { %v11972_v60 = vadd.f32 %v11891_v32, %v3330_v58  ;;  %v3061_v58 = vpop.f32.mrf.mxu0 }
 0x22c   : > { %16010 = vst [vmem:[#allocation49_spill] sm:$0xff] %v11972_v60  ;;  %v3487_v9 = vsel %vm2033_vm3, %v11972_v60, 0.0 }
 0x236   : > { %3482 = vadd.xlane.f32.xlu0 %v3481_v51  ;;  %v10035_v51 = vpop.f32.mrf.mxu1 }
 0x237   : > { %v2624_v62 = vadd.f32 %v10035_v51, %v11665_v16 }
 0x238   : > { %v2352_v20 = vpop.f32.mrf.mxu1 }
 0x239   : > { %4578 = vrot.lane.b32.xlu1 %v11966_v3, %s11026_s22  ;;  %v2623_v39 = vadd.f32 %v2352_v20, %v11673_v24  ;;  %v3333_v31 = vadd.f32 %v10139_v48, %v2624_v62 }
 0x23b   : > { %v11998_v24 = vadd.f32 %v11891_v32, %v3333_v31 }
 0x23d   : > { %16013 = vst [vmem:[#allocation52_spill] sm:$0xff] %v11998_v24  ;;  %v3496_v51 = vsel %vm2033_vm3, %v11998_v24, 0.0 }
 0x24c   : > { %4580 = vrot.lane.b32.xlu0 %v11972_v60, %s11026_s22 }
 0x25d   : > { %3485 = vadd.xlane.f32.xlu1 %v3484_v46  ;;  %v3332_v46 = vadd.f32 %v3061_v58, %v2623_v39  ;;  %v10142_v39 = vpop.f32.mrf.mxu0 }
 0x25f   : > { %v11988_v6 = vadd.f32 %v11891_v32, %v3332_v46  ;;  %v3071_v46 = vpop.f32.mrf.mxu0 }
 0x261   : > { %16012 = vst [vmem:[#allocation51_spill] sm:$0xff] %v11988_v6  ;;  %v3493_v18 = vsel %vm2033_vm3, %v11988_v6, 0.0 }
 0x26b   : > { %3488 = vadd.xlane.f32.xlu0 %v3487_v9  ;;  %v10038_v9 = vpop.f32.mrf.mxu1 }
 0x26c   : > { %v2626_v48 = vadd.f32 %v10038_v9, %v11677_v28 }
 0x26d   : > { %v2362_v20 = vpop.f32.mrf.mxu1 }
 0x26e   : > { %4582 = vrot.lane.b32.xlu1 %v11982_v13, %s11026_s22  ;;  %v2625_v58 = vadd.f32 %v2362_v20, %v11685_v36  ;;  %v3335_v62 = vadd.f32 %v10142_v39, %v2626_v48 }
 0x270   : > { %v12014_v36 = vadd.f32 %v11891_v32, %v3335_v62 }
 0x272   : > { %16015 = vst [vmem:[#allocation54_spill] sm:$0xff] %v12014_v36  ;;  %v3502_v39 = vsel %vm2033_vm3, %v12014_v36, 0.0 }
 0x281   : > { %4584 = vrot.lane.b32.xlu0 %v11988_v6, %s11026_s22 }
 0x292   : > { %3491 = vadd.xlane.f32.xlu1 %v3490_v8  ;;  %v3334_v8 = vadd.f32 %v3071_v46, %v2625_v58  ;;  %v10145_v58 = vpop.f32.mrf.mxu0  ;;  %v1727_v46 = vadd.f32 %v11697_v45, %v11695_v44 }
 0x294   : > { %v12004_v16 = vadd.f32 %v11891_v32, %v3334_v8 }
 0x296   : > { %16014 = vst [vmem:[#allocation53_spill] sm:$0xff] %v12004_v16  ;;  %v3499_v31 = vsel %vm2033_vm3, %v12004_v16, 0.0 }
 0x2a0   : > { %3494 = vadd.xlane.f32.xlu0 %v3493_v18  ;;  %v10041_v18 = vpop.f32.mrf.mxu1 }
 0x2a1   : > { %v2628_v48 = vadd.f32 %v10041_v18, %v11689_v41 }
 0x2a2   : > { %v2372_v20 = vpop.f32.mrf.mxu1 }
 0x2a3   : > { %4586 = vrot.lane.b32.xlu1 %v11998_v24, %s11026_s22  ;;  %v2627_v8 = vadd.f32 %v2372_v20, %v1727_v46  ;;  %v3337_v62 = vadd.f32 %v10145_v58, %v2628_v48 }
 0x2a4   : > { %v10044_v45 = vpop.f32.mrf.mxu1 }
 0x2a5   : > { %v12031_v44 = vadd.f32 %v11891_v32, %v3337_v62 }
 0x2a6   : > { %v2382_v20 = vpop.f32.mrf.mxu1 }
 0x2a7   : > { %16017 = vst [vmem:[#allocation56_spill] sm:$0xff] %v12031_v44  ;;  %v3508_v58 = vsel %vm2033_vm3, %v12031_v44, 0.0 }
 0x2b6   : > { %4588 = vrot.lane.b32.xlu0 %v12004_v16, %s11026_s22 }
 0x2c7   : > { %3497 = vadd.xlane.f32.xlu1 %v3496_v51  ;;  %v3081_v51 = vpop.f32.mrf.mxu0 }
 0x2c8   : > { %v3336_v28 = vadd.f32 %v3081_v51, %v2627_v8  ;;  %v1737_v8 = vadd.f32 %v11711_v56, %v11709_v55  ;;  %v10047_v56 = vpop.f32.mrf.mxu1 }
 0x2c9   : > { %v10148_v46 = vpop.f32.mrf.mxu0 }
 0x2ca   : > { %v12021_v9 = vadd.f32 %v11891_v32, %v3336_v28  ;;  %v2629_v51 = vadd.f32 %v2382_v20, %v1737_v8  ;;  %v1747_v8 = vadd.f32 %v11725_v4, %v11723_v2 }
 0x2cb   : > { %v3091_v28 = vpop.f32.mrf.mxu0 }
 0x2cc   : > { %16016 = vst [vmem:[#allocation55_spill] sm:$0xff] %v12021_v9  ;;  %v3338_v41 = vadd.f32 %v3091_v28, %v2629_v51 }
 0x2cd   : > { %v10151_v20 = vpop.f32.mrf.mxu0 }
 0x2ce   : > { %v12038_v18 = vadd.f32 %v11891_v32, %v3338_v41  ;;  %v2632_v41 = vadd.f32 %v10047_v56, %v11717_v63 }
 0x2cf   : > { %v3101_v28 = vpop.f32.mrf.mxu0 }
 0x2d0   : > { %16018 = vst [vmem:[#allocation57_spill] sm:$0xff] %v12038_v18  ;;  %v3511_v62 = vsel %vm2033_vm3, %v12038_v18, 0.0 }
 0x2d5   : > { %3500 = vadd.xlane.f32.xlu0 %v3499_v31  ;;  %v3505_v31 = vsel %vm2033_vm3, %v12021_v9, 0.0 }
 0x2d8   : > { %4590 = vrot.lane.b32.xlu1 %v12014_v36, %s11026_s22 }
 0x2eb   : > { %4592 = vrot.lane.b32.xlu0 %v12021_v9, %s11026_s22 }
 0x2fc   : > { %3503 = vadd.xlane.f32.xlu1 %v3502_v39  ;;  %v2630_v39 = vadd.f32 %v10044_v45, %v11703_v52 }
 0x2fe   : > { %v3339_v48 = vadd.f32 %v10148_v46, %v2630_v39 }
 0x300   : > { %v12048_v55 = vadd.f32 %v11891_v32, %v3339_v48 }
 0x302   : > { %16019 = vst [vmem:[#allocation58_spill] sm:$0xff] %v12048_v55  ;;  %v3514_v46 = vsel %vm2033_vm3, %v12048_v55, 0.0 }
 0x30a   : > { %3506 = vadd.xlane.f32.xlu0 %v3505_v31  ;;  %v2392_v31 = vpop.f32.mrf.mxu1 }
 0x30b   : > { %v2631_v51 = vadd.f32 %v2392_v31, %v1747_v8  ;;  %v1757_v31 = vadd.f32 %v11739_v15, %v11737_v14 }
 0x30c   : > { %v10050_v4 = vpop.f32.mrf.mxu1 }
 0x30d   : > { %4594 = vrot.lane.b32.xlu1 %v12031_v44, %s11026_s22  ;;  %v3340_v52 = vadd.f32 %v3101_v28, %v2631_v51  ;;  %v2634_v28 = vadd.f32 %v10050_v4, %v11731_v10 }
 0x30e   : > { %v2402_v48 = vpop.f32.mrf.mxu1 }
 0x30f   : > { %v12055_v45 = vadd.f32 %v11891_v32, %v3340_v52  ;;  %v2633_v8 = vadd.f32 %v2402_v48, %v1757_v31 }
 0x310   : > { %v10053_v15 = vpop.f32.mrf.mxu1 }
 0x311   : > { %16020 = vst [vmem:[#allocation59_spill] sm:$0xff] %v12055_v45  ;;  %v3517_v39 = vsel %vm2033_vm3, %v12055_v45, 0.0 }
 0x320   : > { %4596 = vrot.lane.b32.xlu0 %v12038_v18, %s11026_s22 }
 0x331   : > { %3509 = vadd.xlane.f32.xlu1 %v3508_v58  ;;  %v3341_v58 = vadd.f32 %v10151_v20, %v2632_v41  ;;  %v2412_v41 = vpop.f32.mrf.mxu1 }
 0x333   : > { %v12065_v2 = vadd.f32 %v11891_v32, %v3341_v58 }
 0x335   : > { %16021 = vst [vmem:[#allocation60_spill] sm:$0xff] %v12065_v2  ;;  %v3520_v20 = vsel %vm2033_vm3, %v12065_v2, 0.0 }
 0x33f   : > { %3512 = vadd.xlane.f32.xlu0 %v3511_v62  ;;  %v10154_v62 = vpop.f32.mrf.mxu0 }
 0x340   : > { %v3343_v52 = vadd.f32 %v10154_v62, %v2634_v28 }
 0x341   : > { %v3111_v51 = vpop.f32.mrf.mxu0 }
 0x342   : > { %4598 = vrot.lane.b32.xlu1 %v12048_v55, %s11026_s22  ;;  %v3342_v63 = vadd.f32 %v3111_v51, %v2633_v8  ;;  %v12082_v14 = vadd.f32 %v11891_v32, %v3343_v52  ;;  %v2636_v8 = vadd.f32 %v10053_v15, %v11745_v22  ;;  %v1777_v52 = vadd.f32 %v11767_v43, %v11765_v42 }
 0x343   : > { %v10157_v58 = vpop.f32.mrf.mxu0 }
 0x344   : > { %v12072_v56 = vadd.f32 %v11891_v32, %v3342_v63  ;;  %16023 = vst [vmem:[#allocation62_spill] sm:$0xff] %v12082_v14  ;;  %v3526_v62 = vsel %vm2033_vm3, %v12082_v14, 0.0  ;;  %v3345_v51 = vadd.f32 %v10157_v58, %v2636_v8  ;;  %v1787_v8 = vadd.f32 %v11781_v61, %v11779_v59 }
 0x345   : > { %v3121_v31 = vpop.f32.mrf.mxu0 }
 0x346   : > { %16022 = vst [vmem:[#allocation61_spill] sm:$0xff] %v12072_v56 }
 0x347   : > { %v10160_v28 = vpop.f32.mrf.mxu0 }
 0x355   : > { %4600 = vrot.lane.b32.xlu0 %v12055_v45, %s11026_s22 }
 0x366   : > { %3515 = vadd.xlane.f32.xlu1 %v3514_v46  ;;  %v3523_v46 = vsel %vm2033_vm3, %v12072_v56, 0.0 }
 0x374   : > { %3518 = vadd.xlane.f32.xlu0 %v3517_v39  ;;  %v1767_v39 = vadd.f32 %v11753_v29, %v11751_v26  ;;  %v12099_v26 = vadd.f32 %v11891_v32, %v3345_v51  ;;  %v10056_v29 = vpop.f32.mrf.mxu1 }
 0x376   : > { %v2635_v48 = vadd.f32 %v2412_v41, %v1767_v39  ;;  %16025 = vst [vmem:[#allocation64_spill] sm:$0xff] %v12099_v26  ;;  %v3131_v41 = vpop.f32.mrf.mxu0  ;;  %v3532_v58 = vsel %vm2033_vm3, %v12099_v26, 0.0  ;;  %v2638_v39 = vadd.f32 %v10056_v29, %v11759_v35 }
 0x377   : > { %4602 = vrot.lane.b32.xlu1 %v12065_v2, %s11026_s22  ;;  %v16093_v2 = vld [vmem:[#allocation36_spill] sm:$0xff] }
 0x378   : > { %v3344_v10 = vadd.f32 %v3121_v31, %v2635_v48  ;;  %v3347_v48 = vadd.f32 %v10160_v28, %v2638_v39 }
 0x37a   : > { %v12089_v4 = vadd.f32 %v11891_v32, %v3344_v10  ;;  %v12116_v42 = vadd.f32 %v11891_v32, %v3347_v48 }
 0x37c   : > { %16024 = vst [vmem:[#allocation63_spill] sm:$0xff] %v12089_v4  ;;  %v3529_v63 = vsel %vm2033_vm3, %v12089_v4, 0.0  ;;  %16027 = vst [vmem:[#allocation66_spill] sm:$0xff] %v12116_v42 }
 0x38a   : > { %4604 = vrot.lane.b32.xlu0 %v12072_v56, %s11026_s22 }
 0x39b   : > { %3521 = vadd.xlane.f32.xlu1 %v3520_v20  ;;  %v2422_v20 = vpop.f32.mrf.mxu1 }
 0x39d   : > { %v10059_v43 = vpop.f32.mrf.mxu1 }
 0x39e   : > { %v2640_v28 = vadd.f32 %v10059_v43, %v11773_v53 }
 0x39f   : > { %v2432_v10 = vpop.f32.mrf.mxu1 }
 0x3a0   : > { %v2639_v51 = vadd.f32 %v2432_v10, %v1787_v8 }
 0x3a1   : > { %v10062_v61 = vpop.f32.mrf.mxu1 }
 0x3a2   : > { %v2642_v10 = vadd.f32 %v10062_v61, %v11785_v1 }
 0x3a9   : > { %3524 = vadd.xlane.f32.xlu0 %v3523_v46  ;;  %v2637_v46 = vadd.f32 %v2422_v20, %v1777_v52  ;;  %v3538_v20 = vsel %vm2033_vm3, %v12116_v42, 0.0 }
 0x3ab   : > { %v3346_v22 = vadd.f32 %v3131_v41, %v2637_v46  ;;  %v2442_v41 = vpop.f32.mrf.mxu1 }
 0x3ac   : > { %4606 = vrot.lane.b32.xlu1 %v12082_v14, %s11026_s22 }
 0x3ad   : > { %v12106_v15 = vadd.f32 %v11891_v32, %v3346_v22 }
 0x3af   : > { %16026 = vst [vmem:[#allocation65_spill] sm:$0xff] %v12106_v15  ;;  %v3535_v31 = vsel %vm2033_vm3, %v12106_v15, 0.0 }
 0x3bf   : > { %4608 = vrot.lane.b32.xlu0 %v12089_v4, %s11026_s22 }
 0x3d0   : > { %3527 = vadd.xlane.f32.xlu1 %v3526_v62  ;;  %v10163_v62 = vpop.f32.mrf.mxu0 }
 0x3d1   : > { %v3349_v52 = vadd.f32 %v10163_v62, %v2640_v28 }
 0x3d3   : > { %v12133_v59 = vadd.f32 %v11891_v32, %v3349_v52 }
 0x3d5   : > { %16029 = vst [vmem:[#allocation68_spill] sm:$0xff] %v12133_v59  ;;  %v3544_v43 = vsel %vm2033_vm3, %v12133_v59, 0.0 }
 0x3de   : > { %3530 = vadd.xlane.f32.xlu0 %v3529_v63  ;;  %v3141_v63 = vpop.f32.mrf.mxu0 }
 0x3df   : > { %v3348_v35 = vadd.f32 %v3141_v63, %v2639_v51 }
 0x3e0   : > { %v10166_v22 = vpop.f32.mrf.mxu0 }
 0x3e1   : > { %4610 = vrot.lane.b32.xlu1 %v12099_v26, %s11026_s22  ;;  %v12123_v29 = vadd.f32 %v11891_v32, %v3348_v35  ;;  %v3351_v62 = vadd.f32 %v10166_v22, %v2642_v10  ;;  %v1807_v35 = vadd.f32 %v11795_v17, %v11793_v12 }
 0x3e2   : > { %v3151_v48 = vpop.f32.mrf.mxu0 }
 0x3e3   : > { %16028 = vst [vmem:[#allocation67_spill] sm:$0xff] %v12123_v29  ;;  %v3541_v46 = vsel %vm2033_vm3, %v12123_v29, 0.0 }
 0x3e4   : > { %v10169_v63 = vpop.f32.mrf.mxu0 }
 0x3e6   : > { %v3161_v28 = vpop.f32.mrf.mxu0 }
 0x3f4   : > { %4612 = vrot.lane.b32.xlu0 %v12106_v15, %s11026_s22 }
 0x405   : > { %3533 = vadd.xlane.f32.xlu1 %v3532_v58  ;;  %v1797_v58 = vadd.f32 %v11789_v7, %v11787_v5  ;;  %v12150_v5 = vadd.f32 %v11891_v32, %v3351_v62  ;;  %v10065_v7 = vpop.f32.mrf.mxu1 }
 0x406   : > { %v2644_v61 = vadd.f32 %v10065_v7, %v11791_v11 }
 0x407   : > { %v2641_v39 = vadd.f32 %v2442_v41, %v1797_v58  ;;  %16031 = vst [vmem:[#allocation70_spill] sm:$0xff] %v12150_v5  ;;  %v2452_v51 = vpop.f32.mrf.mxu1 }
 0x408   : > { %v3353_v41 = vadd.f32 %v10169_v63, %v2644_v61 }
 0x409   : > { %v3350_v53 = vadd.f32 %v3151_v48, %v2641_v39  ;;  %v10068_v17 = vpop.f32.mrf.mxu1  ;;  %v10172_v39 = vpop.f32.mrf.mxu0  ;;  %v1817_v48 = vadd.f32 %v11801_v25, %v11799_v23 }
 0x40a   : > { %v12167_v12 = vadd.f32 %v11891_v32, %v3353_v41 }
 0x40b   : > { %v2462_v58 = vpop.f32.mrf.mxu1 }
 0x40c   : > { %16033 = vst [vmem:[#allocation72_spill] sm:$0xff] %v12167_v12  ;;  %v3556_v62 = vsel %vm2033_vm3, %v12167_v12, 0.0 }
 0x40d   : > { %v10071_v25 = vpop.f32.mrf.mxu1 }
 0x40e   : > { %v2648_v41 = vadd.f32 %v10071_v25, %v11803_v33 }
 0x40f   : > { %v2472_v63 = vpop.f32.mrf.mxu1 }
 0x413   : > { %3536 = vadd.xlane.f32.xlu0 %v3535_v31  ;;  %v12140_v31 = vadd.f32 %v11891_v32, %v3350_v53  ;;  %v2645_v53 = vadd.f32 %v2462_v58, %v1817_v48  ;;  %v16038_v48 = vld [vmem:[#allocation4_spill] sm:$0xff] }
 0x415   : > { %16030 = vst [vmem:[#allocation69_spill] sm:$0xff] %v12140_v31  ;;  %v3547_v8 = vsel %vm2033_vm3, %v12140_v31, 0.0 }
 0x416   : > { %4614 = vrot.lane.b32.xlu1 %v12116_v42, %s11026_s22 }
 0x429   : > { %4616 = vrot.lane.b32.xlu0 %v12123_v29, %s11026_s22  ;;  %v16092_v29 = vld [vmem:[#allocation35_spill] sm:$0xff] }
 0x42a   : > { %v1947_v15 = vadd.f32 %v16093_v2, %v16092_v29 }
 0x43a   : > { %3539 = vadd.xlane.f32.xlu1 %v3538_v20  ;;  %v2643_v20 = vadd.f32 %v2452_v51, %v1807_v35 }
 0x43c   : > { %v3352_v1 = vadd.f32 %v3161_v28, %v2643_v20  ;;  %v1827_v20 = vadd.f32 %v11807_v38, %v11805_v34  ;;  %v10074_v38 = vpop.f32.mrf.mxu1 }
 0x43e   : > { %v12157_v52 = vadd.f32 %v11891_v32, %v3352_v1  ;;  %v2647_v28 = vadd.f32 %v2472_v63, %v1827_v20  ;;  %v2482_v58 = vpop.f32.mrf.mxu1 }
 0x440   : > { %16032 = vst [vmem:[#allocation71_spill] sm:$0xff] %v12157_v52  ;;  %v3553_v22 = vsel %vm2033_vm3, %v12157_v52, 0.0 }
 0x448   : > { %3542 = vadd.xlane.f32.xlu0 %v3541_v46  ;;  %v3550_v46 = vsel %vm2033_vm3, %v12150_v5, 0.0 }
 0x44b   : > { %4618 = vrot.lane.b32.xlu1 %v12133_v59, %s11026_s22 }
 0x45e   : > { %4620 = vrot.lane.b32.xlu0 %v12140_v31, %s11026_s22 }
 0x46f   : > { %3545 = vadd.xlane.f32.xlu1 %v3544_v43  ;;  %v3171_v43 = vpop.f32.mrf.mxu0 }
 0x470   : > { %v3354_v11 = vadd.f32 %v3171_v43, %v2645_v53  ;;  %v1837_v53 = vadd.f32 %v16038_v48, %v11811_v49 }
 0x471   : > { %v10175_v35 = vpop.f32.mrf.mxu0 }
 0x472   : > { %v12174_v10 = vadd.f32 %v11891_v32, %v3354_v11  ;;  %v2649_v43 = vadd.f32 %v2482_v58, %v1837_v53 }
 0x473   : > { %v3181_v1 = vpop.f32.mrf.mxu0 }
 0x474   : > { %16034 = vst [vmem:[#allocation73_spill] sm:$0xff] %v12174_v10  ;;  %v3559_v51 = vsel %vm2033_vm3, %v12174_v10, 0.0 }
 0x47d   : > { %3548 = vadd.xlane.f32.xlu0 %v3547_v8  ;;  %v2646_v8 = vadd.f32 %v10068_v17, %v11797_v21  ;;  %v3356_v21 = vadd.f32 %v3181_v1, %v2647_v28  ;;  %v16042_v1 = vld [vmem:[#allocation6_spill] sm:$0xff] }
 0x47f   : > { %v3355_v7 = vadd.f32 %v10172_v39, %v2646_v8  ;;  %v10178_v39 = vpop.f32.mrf.mxu0 }
 0x480   : > { %4622 = vrot.lane.b32.xlu1 %v12150_v5, %s11026_s22  ;;  %v16085_v5 = vld [vmem:[#allocation29_spill] sm:$0xff] }
 0x481   : > { %v12184_v23 = vadd.f32 %v11891_v32, %v3355_v7  ;;  %v3191_v11 = vpop.f32.mrf.mxu0  ;;  %v16040_v7 = vld [vmem:[#allocation3_spill] sm:$0xff] }
 0x482   : > { %v3358_v33 = vadd.f32 %v3191_v11, %v2649_v43 }
 0x483   : > { %16035 = vst [vmem:[#allocation74_spill] sm:$0xff] %v12184_v23  ;;  %v3562_v61 = vsel %vm2033_vm3, %v12184_v23, 0.0  ;;  %v10181_v28 = vpop.f32.mrf.mxu0 }
 0x493   : > { %4624 = vrot.lane.b32.xlu0 %v12157_v52, %s11026_s22 }
 0x4a4   : > { %3551 = vadd.xlane.f32.xlu1 %v3550_v46  ;;  %v12191_v46 = vadd.f32 %v11891_v32, %v3356_v21  ;;  %v16043_v21 = vld [vmem:[#allocation7_spill] sm:$0xff] }
 0x4a6   : > { %16036 = vst [vmem:[#allocation75_spill] sm:$0xff] %v12191_v46  ;;  %v3565_v17 = vsel %vm2033_vm3, %v12191_v46, 0.0 }
 0x4b2   : > { %3554 = vadd.xlane.f32.xlu0 %v3553_v22  ;;  %v3357_v22 = vadd.f32 %v10175_v35, %v2648_v41  ;;  %v10077_v35 = vpop.f32.mrf.mxu1 }
 0x4b4   : > { %v12201_v34 = vadd.f32 %v11891_v32, %v3357_v22  ;;  %v2492_v20 = vpop.f32.mrf.mxu1  ;;  %v3201_v22 = vpop.f32.mrf.mxu0 }
 0x4b5   : > { %4626 = vrot.lane.b32.xlu1 %v12167_v12, %s11026_s22 }
 0x4b6   : > { %16037 = vst [vmem:[#allocation76_spill] sm:$0xff] %v12201_v34  ;;  %v3568_v8 = vsel %vm2033_vm3, %v12201_v34, 0.0 }
 0x4c8   : > { %4628 = vrot.lane.b32.xlu0 %v12174_v10, %s11026_s22 }
 0x4d9   : > { %3557 = vadd.xlane.f32.xlu1 %v3556_v62  ;;  %v12208_v62 = vadd.f32 %v11891_v32, %v3358_v33  ;;  %v10080_v33 = vpop.f32.mrf.mxu1 }
 0x4db   : > { %16039 = vst [vmem:[#allocation4_spill] sm:$0xff] %v12208_v62  ;;  %v3571_v63 = vsel %vm2033_vm3, %v12208_v62, 0.0 }
 0x4e7   : > { %3560 = vadd.xlane.f32.xlu0 %v3559_v51  ;;  %v2650_v51 = vadd.f32 %v10074_v38, %v16040_v7  ;;  %v10184_v7 = vpop.f32.mrf.mxu0 }
 0x4e9   : > { %v3359_v25 = vadd.f32 %v10178_v39, %v2650_v51  ;;  %v16045_v39 = vld [vmem:[#allocation5_spill] sm:$0xff] }
 0x4ea   : > { %4630 = vrot.lane.b32.xlu1 %v12184_v23, %s11026_s22  ;;  %v2652_v48 = vadd.f32 %v10077_v35, %v16045_v39  ;;  %v16047_v51 = vld [vmem:[#allocation9_spill] sm:$0xff]  ;;  %v16080_v23 = vld [vmem:[#allocation26_spill] sm:$0xff] }
 0x4eb   : > { %v12218_v49 = vadd.f32 %v11891_v32, %v3359_v25  ;;  %v16048_v25 = vld [vmem:[#allocation10_spill] sm:$0xff] }
 0x4ec   : > { %v3361_v53 = vadd.f32 %v10181_v28, %v2652_v48 }
 0x4ed   : > { %16041 = vst [vmem:[#allocation3_spill] sm:$0xff] %v12218_v49  ;;  %v3574_v58 = vsel %vm2033_vm3, %v12218_v49, 0.0 }
 0x4ee   : > { %v12235_v11 = vadd.f32 %v11891_v32, %v3361_v53 }
 0x4f0   : > { %16046 = vst [vmem:[#allocation7_spill] sm:$0xff] %v12235_v11 }
 0x4fd   : > { %4632 = vrot.lane.b32.xlu0 %v12191_v46, %s11026_s22 }
 0x50e   : > { %3563 = vadd.xlane.f32.xlu1 %v3562_v61  ;;  %v1847_v61 = vadd.f32 %v16043_v21, %v16042_v1  ;;  %v3211_v1 = vpop.f32.mrf.mxu0  ;;  %v3580_v21 = vsel %vm2033_vm3, %v12235_v11, 0.0 }
 0x510   : > { %v2651_v41 = vadd.f32 %v2492_v20, %v1847_v61  ;;  %v16050_v61 = vld [vmem:[#allocation8_spill] sm:$0xff]  ;;  %v10187_v53 = vpop.f32.mrf.mxu0 }
 0x51c   : > { %3566 = vadd.xlane.f32.xlu0 %v3565_v17  ;;  %v3360_v17 = vadd.f32 %v3201_v22, %v2651_v41  ;;  %v2654_v41 = vadd.f32 %v10080_v33, %v16050_v61 }
 0x51e   : > { %v12225_v38 = vadd.f32 %v11891_v32, %v3360_v17  ;;  %v3363_v22 = vadd.f32 %v10184_v7, %v2654_v41 }
 0x51f   : > { %4634 = vrot.lane.b32.xlu1 %v12201_v34, %s11026_s22 }
 0x520   : > { %16044 = vst [vmem:[#allocation6_spill] sm:$0xff] %v12225_v38  ;;  %v3577_v43 = vsel %vm2033_vm3, %v12225_v38, 0.0 }
 0x532   : > { %4636 = vrot.lane.b32.xlu0 %v12208_v62, %s11026_s22 }
 0x543   : > { %3569 = vadd.xlane.f32.xlu1 %v3568_v8  ;;  %v2502_v8 = vpop.f32.mrf.mxu1 }
 0x545   : > { %v10083_v39 = vpop.f32.mrf.mxu1 }
 0x547   : > { %v2512_v48 = vpop.f32.mrf.mxu1 }
 0x551   : > { %3572 = vadd.xlane.f32.xlu0 %v3571_v63  ;;  %v1857_v63 = vadd.f32 %v16048_v25, %v16047_v51 }
 0x553   : > { %v2653_v20 = vadd.f32 %v2502_v8, %v1857_v63  ;;  %v16053_v8 = vld [vmem:[#allocation13_spill] sm:$0xff]  ;;  %v3221_v63 = vpop.f32.mrf.mxu0 }
 0x554   : > { %4638 = vrot.lane.b32.xlu1 %v12218_v49, %s11026_s22  ;;  %v16075_v49 = vld [vmem:[#allocation23_spill] sm:$0xff] }
 0x555   : > { %v3362_v35 = vadd.f32 %v3211_v1, %v2653_v20  ;;  %v16055_v1 = vld [vmem:[#allocation11_spill] sm:$0xff] }
 0x557   : > { %v12242_v28 = vadd.f32 %v11891_v32, %v3362_v35  ;;  %v2656_v35 = vadd.f32 %v10083_v39, %v16055_v1 }
 0x559   : > { %16049 = vst [vmem:[#allocation5_spill] sm:$0xff] %v12242_v28  ;;  %v3583_v17 = vsel %vm2033_vm3, %v12242_v28, 0.0 }
 0x567   : > { %4640 = vrot.lane.b32.xlu0 %v12225_v38, %s11026_s22 }
 0x578   : > { %3575 = vadd.xlane.f32.xlu1 %v3574_v58  ;;  %v12252_v58 = vadd.f32 %v11891_v32, %v3363_v22  ;;  %v10086_v22 = vpop.f32.mrf.mxu1 }
 0x57a   : > { %16051 = vst [vmem:[#allocation9_spill] sm:$0xff] %v12252_v58  ;;  %v3586_v20 = vsel %vm2033_vm3, %v12252_v58, 0.0 }
 0x586   : > { %3578 = vadd.xlane.f32.xlu0 %v3577_v43  ;;  %v16052_v43 = vld [vmem:[#allocation12_spill] sm:$0xff] }
 0x587   : > { %v1867_v51 = vadd.f32 %v16053_v8, %v16052_v43  ;;  %v16057_v43 = vld [vmem:[#allocation15_spill] sm:$0xff]  ;;  %v16058_v8 = vld [vmem:[#allocation16_spill] sm:$0xff] }
 0x589   : > { %4642 = vrot.lane.b32.xlu1 %v12235_v11, %s11026_s22  ;;  %v2655_v25 = vadd.f32 %v2512_v48, %v1867_v51  ;;  %v10190_v48 = vpop.f32.mrf.mxu0  ;;  %v1877_v51 = vadd.f32 %v16058_v8, %v16057_v43 }
 0x58b   : > { %v3364_v33 = vadd.f32 %v3221_v63, %v2655_v25  ;;  %v3231_v63 = vpop.f32.mrf.mxu0 }
 0x58d   : > { %v12259_v7 = vadd.f32 %v11891_v32, %v3364_v33  ;;  %v10193_v8 = vpop.f32.mrf.mxu0 }
 0x58f   : > { %16054 = vst [vmem:[#allocation10_spill] sm:$0xff] %v12259_v7  ;;  %v3589_v61 = vsel %vm2033_vm3, %v12259_v7, 0.0 }
 0x59c   : > { %4644 = vrot.lane.b32.xlu0 %v12242_v28, %s11026_s22 }
 0x5ad   : > { %3581 = vadd.xlane.f32.xlu1 %v3580_v21  ;;  %v3365_v21 = vadd.f32 %v10187_v53, %v2656_v35 }
 0x5af   : > { %v12269_v41 = vadd.f32 %v11891_v32, %v3365_v21 }
 0x5b1   : > { %16056 = vst [vmem:[#allocation8_spill] sm:$0xff] %v12269_v41  ;;  %v3592_v33 = vsel %vm2033_vm3, %v12269_v41, 0.0 }
 0x5bb   : > { %3584 = vadd.xlane.f32.xlu0 %v3583_v17  ;;  %v2522_v17 = vpop.f32.mrf.mxu1 }
 0x5bc   : > { %v2657_v25 = vadd.f32 %v2522_v17, %v1877_v51  ;;  %v16062_v51 = vld [vmem:[#allocation18_spill] sm:$0xff] }
 0x5bd   : > { %v10089_v17 = vpop.f32.mrf.mxu1 }
 0x5be   : > { %4646 = vrot.lane.b32.xlu1 %v12252_v58, %s11026_s22  ;;  %v3366_v39 = vadd.f32 %v3231_v63, %v2657_v25  ;;  %v16063_v25 = vld [vmem:[#allocation19_spill] sm:$0xff]  ;;  %v16070_v58 = vld [vmem:[#allocation20_spill] sm:$0xff] }
 0x5bf   : > { %v2532_v43 = vpop.f32.mrf.mxu1  ;;  %v1887_v63 = vadd.f32 %v16063_v25, %v16062_v51  ;;  %v12305_v51 = vpop.permute.xlu1 %4562 }
 0x5c0   : > { %v12276_v53 = vadd.f32 %v11891_v32, %v3366_v39 }
 0x5c1   : > { %v2659_v39 = vadd.f32 %v2532_v43, %v1887_v63  ;;  %v10092_v25 = vpop.f32.mrf.mxu1 }
 0x5c2   : > { %16059 = vst [vmem:[#allocation12_spill] sm:$0xff] %v12276_v53  ;;  %v3595_v21 = vsel %vm2033_vm3, %v12276_v53, 0.0 }
 0x5c3   : > { %v2542_v63 = vpop.f32.mrf.mxu1 }
 0x5d1   : > { %4648 = vrot.lane.b32.xlu0 %v12259_v7, %s11026_s22 }
 0x5e2   : > { %3587 = vadd.xlane.f32.xlu1 %v3586_v20  ;;  %v16060_v20 = vld [vmem:[#allocation14_spill] sm:$0xff] }
 0x5e3   : > { %v2658_v1 = vadd.f32 %v10086_v22, %v16060_v20 }
 0x5e5   : > { %v3367_v35 = vadd.f32 %v10190_v48, %v2658_v1  ;;  %v16065_v1 = vld [vmem:[#allocation17_spill] sm:$0xff] }
 0x5f0   : > { %3590 = vadd.xlane.f32.xlu0 %v3589_v61  ;;  %v12286_v61 = vadd.f32 %v11891_v32, %v3367_v35  ;;  %v2660_v35 = vadd.f32 %v10089_v17, %v16065_v1 }
 0x5f2   : > { %16061 = vst [vmem:[#allocation13_spill] sm:$0xff] %v12286_v61  ;;  %v3598_v20 = vsel %vm2033_vm3, %v12286_v61, 0.0 }
 0x5f3   : > { %4650 = vrot.lane.b32.xlu1 %v12269_v41, %s11026_s22 }
 0x606   : > { %4652 = vrot.lane.b32.xlu0 %v12276_v53, %s11026_s22 }
 0x617   : > { %3593 = vadd.xlane.f32.xlu1 %v3592_v33  ;;  %v3241_v33 = vpop.f32.mrf.mxu0 }
 0x618   : > { %v3368_v22 = vadd.f32 %v3241_v33, %v2659_v39  ;;  %v16067_v33 = vld [vmem:[#allocation21_spill] sm:$0xff] }
 0x619   : > { %v10196_v39 = vpop.f32.mrf.mxu0 }
 0x61a   : > { %v12293_v48 = vadd.f32 %v11891_v32, %v3368_v22  ;;  %v16068_v22 = vld [vmem:[#allocation22_spill] sm:$0xff] }
 0x61c   : > { %16064 = vst [vmem:[#allocation11_spill] sm:$0xff] %v12293_v48  ;;  %v3601_v41 = vsel %vm2033_vm3, %v12293_v48, 0.0 }
 0x625   : > { %3596 = vadd.xlane.f32.xlu0 %v3595_v21  ;;  %v3369_v21 = vadd.f32 %v10193_v8, %v2660_v35  ;;  %v3251_v8 = vpop.f32.mrf.mxu0 }
 0x627   : > { %v12303_v43 = vadd.f32 %v11891_v32, %v3369_v21 }
 0x628   : > { %4654 = vrot.lane.b32.xlu1 %v12286_v61, %s11026_s22  ;;  %v12320_v61 = vpop.permute.xlu1 %4566 }
 0x629   : > { %16066 = vst [vmem:[#allocation15_spill] sm:$0xff] %v12303_v43  ;;  %v3604_v21 = vsel %vm2033_vm3, %v12303_v43, 0.0 }
 0x63b   : > { %4656 = vrot.lane.b32.xlu0 %v12293_v48, %s11026_s22  ;;  %v2662_v48 = vadd.f32 %v10092_v25, %v16070_v58  ;;  %v16073_v58 = vld [vmem:[#allocation25_spill] sm:$0xff] }
 0x64c   : > { %3599 = vadd.xlane.f32.xlu1 %v3598_v20  ;;  %v1897_v20 = vadd.f32 %v16068_v22, %v16067_v33  ;;  %v3371_v33 = vadd.f32 %v10196_v39, %v2662_v48 }
 0x64e   : > { %v2661_v17 = vadd.f32 %v2542_v63, %v1897_v20  ;;  %v12328_v20 = vadd.f32 %v11891_v32, %v3371_v33 }
 0x650   : > { %v3370_v1 = vadd.f32 %v3251_v8, %v2661_v17  ;;  %16071 = vst [vmem:[#allocation14_spill] sm:$0xff] %v12328_v20  ;;  %v12330_v17 = vpop.xlane.xlu1 %3467  ;;  %v10095_v8 = vpop.f32.mrf.mxu1  ;;  %v3610_v33 = vsel %vm2033_vm3, %v12328_v20, 0.0 }
 0x651   : > { %v2664_v7 = vadd.f32 %v10095_v8, %v16075_v49  ;;  %v16078_v49 = vld [vmem:[#allocation28_spill] sm:$0xff] }
 0x652   : > { %v12312_v35 = vadd.f32 %v11891_v32, %v3370_v1  ;;  %v2552_v1 = vpop.f32.mrf.mxu1 }
 0x654   : > { %16069 = vst [vmem:[#allocation16_spill] sm:$0xff] %v12312_v35  ;;  %v3607_v63 = vsel %vm2033_vm3, %v12312_v35, 0.0  ;;  %v12345_v53 = vpop.permute.xlu1 %4564 }
 0x65a   : > { %3602 = vadd.xlane.f32.xlu0 %v3601_v41  ;;  %v12314_v41 = vpop.xlane.xlu0 %3461 }
 0x65d   : > { %4658 = vrot.lane.b32.xlu1 %v12303_v43, %s11026_s22  ;;  %v16072_v43 = vld [vmem:[#allocation24_spill] sm:$0xff] }
 0x65e   : > { %v12325_v22 = vpop.permute.xlu0 %4560  ;;  %v1907_v48 = vadd.f32 %v16073_v58, %v16072_v43 }
 0x65f   : > { %v4752_v42 = vsel %vm2033_vm3, %v12325_v22, 0.0  ;;  %v4761_v22 = vsel %vm2033_vm3, %v12320_v61, 0.0 }
 0x660   : > { %v2663_v25 = vadd.f32 %v2552_v1, %v1907_v48  ;;  %v12355_v48 = vpop.xlane.xlu1 %3464 }
 0x664   : > { %v12370_v28 = vpop.permute.xlu1 %4570 }
 0x670   : > { %4660 = vrot.lane.b32.xlu0 %v12312_v35, %s11026_s22 }
 0x681   : > { %3605 = vadd.xlane.f32.xlu1 %v3604_v21  ;;  %v10199_v21 = vpop.f32.mrf.mxu0 }
 0x682   : > { %v3373_v43 = vadd.f32 %v10199_v21, %v2664_v7 }
 0x683   : > { %v3261_v39 = vpop.f32.mrf.mxu0 }
 0x684   : > { %v3372_v35 = vadd.f32 %v3261_v39, %v2663_v25  ;;  %v10098_v25 = vpop.f32.mrf.mxu1 }
 0x685   : > { %v2666_v38 = vadd.f32 %v10098_v25, %v16080_v23  ;;  %v16083_v23 = vld [vmem:[#allocation31_spill] sm:$0xff] }
 0x686   : > { %v12337_v11 = vadd.f32 %v11891_v32, %v3372_v35  ;;  %v12353_v35 = vadd.f32 %v11891_v32, %v3373_v43  ;;  %v2562_v39 = vpop.f32.mrf.mxu1 }
 0x688   : > { %16074 = vst [vmem:[#allocation18_spill] sm:$0xff] %v12337_v11  ;;  %v3613_v1 = vsel %vm2033_vm3, %v12337_v11, 0.0  ;;  %16076 = vst [vmem:[#allocation19_spill] sm:$0xff] %v12353_v35  ;;  %v3616_v43 = vsel %vm2033_vm3, %v12353_v35, 0.0 }
 0x68f   : > { %3608 = vadd.xlane.f32.xlu0 %v3607_v63  ;;  %v12339_v63 = vpop.xlane.xlu0 %3458 }
 0x692   : > { %4662 = vrot.lane.b32.xlu1 %v12328_v20, %s11026_s22  ;;  %v16077_v20 = vld [vmem:[#allocation27_spill] sm:$0xff] }
 0x693   : > { %v12350_v58 = vpop.permute.xlu0 %4568  ;;  %v1917_v7 = vadd.f32 %v16078_v49, %v16077_v20 }
 0x695   : > { %v2665_v8 = vadd.f32 %v2562_v39, %v1917_v7  ;;  %v12380_v7 = vpop.xlane.xlu1 %3473 }
 0x699   : > { %v12395_v62 = vpop.permute.xlu1 %4574 }
 0x6a5   : > { %4664 = vrot.lane.b32.xlu0 %v12337_v11, %s11026_s22 }
 0x6b6   : > { %3611 = vadd.xlane.f32.xlu1 %v3610_v33  ;;  %v10202_v33 = vpop.f32.mrf.mxu0 }
 0x6b7   : > { %v3375_v20 = vadd.f32 %v10202_v33, %v2666_v38 }
 0x6b8   : > { %v3271_v21 = vpop.f32.mrf.mxu0 }
 0x6b9   : > { %v3374_v11 = vadd.f32 %v3271_v21, %v2665_v8  ;;  %v10101_v8 = vpop.f32.mrf.mxu1 }
 0x6ba   : > { %v2668_v46 = vadd.f32 %v10101_v8, %v16085_v5  ;;  %v16087_v5 = vld [vmem:[#allocation33_spill] sm:$0xff] }
 0x6bb   : > { %v12362_v34 = vadd.f32 %v11891_v32, %v3374_v11  ;;  %v12378_v11 = vadd.f32 %v11891_v32, %v3375_v20  ;;  %v2572_v21 = vpop.f32.mrf.mxu1 }
 0x6bd   : > { %16079 = vst [vmem:[#allocation17_spill] sm:$0xff] %v12362_v34  ;;  %v3619_v39 = vsel %vm2033_vm3, %v12362_v34, 0.0  ;;  %16081 = vst [vmem:[#allocation21_spill] sm:$0xff] %v12378_v11  ;;  %v3622_v20 = vsel %vm2033_vm3, %v12378_v11, 0.0 }
 0x6c4   : > { %3614 = vadd.xlane.f32.xlu0 %v3613_v1  ;;  %v12364_v1 = vpop.xlane.xlu0 %3470 }
 0x6c7   : > { %4666 = vrot.lane.b32.xlu1 %v12353_v35, %s11026_s22  ;;  %v16082_v35 = vld [vmem:[#allocation30_spill] sm:$0xff] }
 0x6c8   : > { %v12375_v49 = vpop.permute.xlu0 %4572  ;;  %v1927_v38 = vadd.f32 %v16083_v23, %v16082_v35 }
 0x6ca   : > { %v2667_v25 = vadd.f32 %v2572_v21, %v1927_v38  ;;  %v12405_v38 = vpop.xlane.xlu1 %3479 }
 0x6da   : > { %4668 = vrot.lane.b32.xlu0 %v12362_v34, %s11026_s22 }
 0x6eb   : > { %3617 = vadd.xlane.f32.xlu1 %v3616_v43  ;;  %v10205_v43 = vpop.f32.mrf.mxu0 }
 0x6ec   : > { %v3377_v35 = vadd.f32 %v10205_v43, %v2668_v46  ;;  %v1937_v46 = vadd.f32 %v16087_v5, %v11871_v19 }
 0x6ed   : > { %v3281_v33 = vpop.f32.mrf.mxu0 }
 0x6ee   : > { %v3376_v34 = vadd.f32 %v3281_v33, %v2667_v25  ;;  %v10104_v25 = vpop.f32.mrf.mxu1 }
 0x6f0   : > { %v12387_v12 = vadd.f32 %v11891_v32, %v3376_v34  ;;  %v12403_v34 = vadd.f32 %v11891_v32, %v3377_v35  ;;  %v2582_v33 = vpop.f32.mrf.mxu1 }
 0x6f1   : > { %v2669_v8 = vadd.f32 %v2582_v33, %v1937_v46  ;;  %v12426_v33 = vpop.permute.xlu1 %4578 }
 0x6f2   : > { %16084 = vst [vmem:[#allocation22_spill] sm:$0xff] %v12387_v12  ;;  %v3625_v21 = vsel %vm2033_vm3, %v12387_v12, 0.0  ;;  %16086 = vst [vmem:[#allocation20_spill] sm:$0xff] %v12403_v34  ;;  %v3628_v19 = vsel %vm2033_vm3, %v12403_v34, 0.0 }
 0x6f5   : > { %v12445_v52 = vpop.xlane.xlu1 %3485 }
 0x6f9   : > { %3620 = vadd.xlane.f32.xlu0 %v3619_v39  ;;  %v12389_v39 = vpop.xlane.xlu0 %3476  ;;  %v12459_v26 = vpop.permute.xlu1 %4582 }
 0x6fc   : > { %4670 = vrot.lane.b32.xlu1 %v12378_v11, %s11026_s22 }
 0x6fd   : > { %v12400_v23 = vpop.permute.xlu0 %4576 }
 0x70f   : > { %4672 = vrot.lane.b32.xlu0 %v12387_v12, %s11026_s22 }
 0x720   : > { %3623 = vadd.xlane.f32.xlu1 %v3622_v20  ;;  %v10208_v20 = vpop.f32.mrf.mxu0 }
 0x722   : > { %v3291_v43 = vpop.f32.mrf.mxu0 }
 0x723   : > { %v3378_v11 = vadd.f32 %v3291_v43, %v2669_v8 }
 0x725   : > { %v12412_v12 = vadd.f32 %v11891_v32, %v3378_v11  ;;  %v16089_v32 = vld [vmem:[#allocation32_spill] sm:$0xff] }
 0x726   : > { %v2670_v11 = vadd.f32 %v10104_v25, %v16089_v32  ;;  %v10107_v32 = vpop.f32.mrf.mxu1 }
 0x727   : > { %16088 = vst [vmem:[#allocation24_spill] sm:$0xff] %v12412_v12 }
 0x728   : > { %v3379_v8 = vadd.f32 %v10208_v20, %v2670_v11  ;;  %v3631_v20 = vsel %vm2033_vm3, %v12412_v12, 0.0  ;;  %v2592_v31 = vpop.f32.mrf.mxu1 }
 0x72e   : > { %3626 = vadd.xlane.f32.xlu0 %v3625_v21  ;;  %v12414_v21 = vpop.xlane.xlu0 %3482 }
 0x731   : > { %4674 = vrot.lane.b32.xlu1 %v12403_v34, %s11026_s22  ;;  %v12440_v34 = vld [vmem:[%s15753_s8] ss:$0 sm:$0xff] }
 0x732   : > { %v12418_v35 = vpop.permute.xlu0 %4580 }
 0x736   : > { %v12420_v59 = vpop.xlane.xlu0 %3488 }
 0x73a   : > { %v12422_v10 = vpop.permute.xlu0 %4584 }
 0x73e   : > { %v12428_v5 = vpop.xlane.xlu0 %3494 }
 0x742   : > { %v12431_v46 = vpop.permute.xlu0 %4588 }
 0x744   : > { %4676 = vrot.lane.b32.xlu0 %v12412_v12, %s11026_s22  ;;  %v2671_v12 = vadd.f32 %v2592_v31, %v1947_v15 }
 0x746   : > { %v12433_v43 = vpop.xlane.xlu0 %3500 }
 0x74a   : > { %v12447_v25 = vpop.permute.xlu0 %4592 }
 0x755   : > { %3629 = vadd.xlane.f32.xlu1 %v3628_v19  ;;  %v12443_v19 = vadd.f32 %v12440_v34, %v3379_v8  ;;  %v10211_v8 = vpop.f32.mrf.mxu0 }
 0x757   : > { %16090 = vst [vmem:[#allocation25_spill] sm:$0xff] %v12443_v19  ;;  %v3301_v55 = vpop.f32.mrf.mxu0 }
 0x758   : > { %v3380_v61 = vadd.f32 %v3301_v55, %v2671_v12  ;;  %v4755_v55 = vsel %vm2033_vm3, %v12305_v51, 0.0  ;;  %v3634_v12 = vsel %vm2033_vm3, %v12443_v19, 0.0 }
 0x75a   : > { %v12474_v56 = vadd.f32 %v12440_v34, %v3380_v61 }
 0x75c   : > { %16096 = vst [vmem:[#allocation26_spill] sm:$0xff] %v12474_v56 }
 0x763   : > { %4753 = vadd.xlane.f32.xlu0 %v4752_v42  ;;  %v12453_v42 = vpop.xlane.xlu0 %3506 }
 0x766   : > { %4678 = vrot.lane.b32.xlu1 %v12443_v19, %s11026_s22 }
 0x767   : > { %3632 = vadd.xlane.f32.xlu0 %v3631_v20  ;;  %v12457_v11 = vpop.permute.xlu0 %4596  ;;  %v12465_v20 = vpop.xlane.xlu1 %3491 }
 0x768   : > { %16094 = vst [vmem:[#allocation27_spill] sm:$0xff] %v12465_v20 }
 0x76b   : > { %4762 = vadd.xlane.f32.xlu0 %v4761_v22  ;;  %v12461_v14 = vpop.xlane.xlu0 %3512  ;;  %v12469_v22 = vpop.permute.xlu1 %4586 }
 0x76c   : > { %16091 = vst [vmem:[#allocation23_spill] sm:$0xff] %v12461_v14 }
 0x76f   : > { %v12467_v4 = vpop.permute.xlu0 %4600  ;;  %v12476_v36 = vpop.xlane.xlu1 %3497 }
 0x770   : > { %16097 = vst [vmem:[#allocation30_spill] sm:$0xff] %v12476_v36 }
 0x773   : > { %v12471_v44 = vpop.xlane.xlu0 %3518  ;;  %v12482_v15 = vpop.permute.xlu1 %4590 }
 0x774   : > { %16095 = vst [vmem:[#allocation28_spill] sm:$0xff] %v12471_v44  ;;  %v16101_v44 = vld [vmem:[#allocation34_spill] sm:$0xff] }
 0x775   : > { %v2672_v36 = vadd.f32 %v10107_v32, %v16101_v44  ;;  %v4758_v44 = vsel %vm2033_vm3, %v12345_v53, 0.0  ;;  %v16110_v53 = vld [vmem:[#allocation38_spill] sm:$0xff] }
 0x777   : > { %v12480_v2 = vpop.permute.xlu0 %4604  ;;  %v12488_v31 = vpop.xlane.xlu1 %3503  ;;  %v3381_v51 = vadd.f32 %v10211_v8, %v2672_v36  ;;  %v3637_v36 = vsel %vm2033_vm3, %v12474_v56, 0.0 }
 0x778   : > { %16099 = vst [vmem:[#allocation29_spill] sm:$0xff] %v12488_v31 }
 0x779   : > { %v12508_v19 = vadd.f32 %v12440_v34, %v3381_v51  ;;  %v10110_v51 = vpop.f32.mrf.mxu1 }
 0x77b   : > { %v12484_v29 = vpop.xlane.xlu0 %3524  ;;  %v12494_v45 = vpop.permute.xlu1 %4594  ;;  %16104 = vst [vmem:[#allocation36_spill] sm:$0xff] %v12508_v19 }
 0x77c   : > { %16098 = vst [vmem:[#allocation31_spill] sm:$0xff] %v12484_v29 }
 0x77f   : > { %v12492_v61 = vpop.permute.xlu0 %4608  ;;  %v12499_v18 = vpop.xlane.xlu1 %3509 }
 0x780   : > { %16102 = vst [vmem:[#allocation32_spill] sm:$0xff] %v12499_v18  ;;  %v10214_v18 = vpop.f32.mrf.mxu0 }
 0x781   : > { %4680 = vrot.lane.b32.xlu0 %v12474_v56, %s11026_s22 }
 0x783   : > { %v12496_v24 = vpop.xlane.xlu0 %3530 }
 0x784   : > { %16100 = vst [vmem:[#allocation33_spill] sm:$0xff] %v12496_v24  ;;  %v2602_v24 = vpop.f32.mrf.mxu1 }
 0x787   : > { %v12501_v29 = vpop.permute.xlu0 %4612 }
 0x78a   : > { %4756 = vadd.xlane.f32.xlu1 %v4755_v55  ;;  %v12503_v55 = vpop.permute.xlu1 %4598 }
 0x78b   : > { %v12505_v31 = vpop.xlane.xlu0 %3536 }
 0x78c   : > { %16103 = vst [vmem:[#allocation35_spill] sm:$0xff] %v12505_v31 }
 0x78e   : > { %3635 = vadd.xlane.f32.xlu1 %v3634_v12  ;;  %v12510_v13 = vpop.xlane.xlu1 %3515 }
 0x78f   : > { %16105 = vst [vmem:[#allocation34_spill] sm:$0xff] %v12510_v13  ;;  %v12516_v32 = vpop.permute.xlu0 %4616 }
 0x790   : > { %16106 = vst [vmem:[#allocation77_spill] sm:$0xff] %v12516_v32 }
 0x792   : > { %v12520_v8 = vpop.permute.xlu1 %4602 }
 0x793   : > { %v12522_v12 = vpop.xlane.xlu0 %3542 }
 0x794   : > { %16107 = vst [vmem:[#allocation78_spill] sm:$0xff] %v12522_v12 }
 0x796   : > { %v12524_v31 = vpop.xlane.xlu1 %3521 }
 0x797   : > { %16108 = vst [vmem:[#allocation79_spill] sm:$0xff] %v12524_v31  ;;  %v12526_v13 = vpop.permute.xlu0 %4620 }
 0x798   : > { %16109 = vst [vmem:[#allocation80_spill] sm:$0xff] %v12526_v13 }
 0x79a   : > { %v12530_v14 = vpop.permute.xlu1 %4606 }
 0x79b   : > { %v12532_v9 = vpop.xlane.xlu0 %3548 }
 0x79c   : > { %16111 = vst [vmem:[#allocation38_spill] sm:$0xff] %v12532_v9 }
 0x79e   : > { %v12534_v56 = vpop.xlane.xlu1 %3527 }
 0x79f   : > { %4682 = vrot.lane.b32.xlu1 %v12508_v19, %s11026_s22  ;;  %16112 = vst [vmem:[#allocation81_spill] sm:$0xff] %v12534_v56  ;;  %v12536_v12 = vpop.permute.xlu0 %4624 }
 0x7a0   : > { %4759 = vadd.xlane.f32.xlu0 %v4758_v44  ;;  %v1957_v44 = vadd.f32 %v16110_v53, %v11883_v0  ;;  %16113 = vst [vmem:[#allocation82_spill] sm:$0xff] %v12536_v12  ;;  %v3640_v53 = vsel %vm2033_vm3, %v12508_v19, 0.0 }
 0x7a2   : > { %v2673_v20 = vadd.f32 %v2602_v24, %v1957_v44  ;;  %v12541_v13 = vpop.permute.xlu1 %4610 }
 0x7a3   : > { %v12543_v32 = vpop.xlane.xlu0 %3554 }
 0x7a4   : > { %3638 = vadd.xlane.f32.xlu0 %v3637_v36  ;;  %v3311_v36 = vpop.f32.mrf.mxu0  ;;  %16115 = vst [vmem:[#allocation84_spill] sm:$0xff] %v12543_v32 }
 0x7a5   : > { %v3382_v3 = vadd.f32 %v3311_v36, %v2673_v20  ;;  %v16119_v36 = vld [vmem:[#allocation37_spill] sm:$0xff] }
 0x7a6   : > { %v12547_v0 = vpop.xlane.xlu1 %3533  ;;  %v2674_v9 = vadd.f32 %v10110_v51, %v16119_v36  ;;  %v4764_v36 = vsel %vm2033_vm3, %v12350_v58, 0.0  ;;  %v4776_v58 = vsel %vm2033_vm3, %v12400_v23, 0.0  ;;  %v4788_v23 = vsel %vm2033_vm3, %v12422_v10, 0.0 }
 0x7a7   : > { %v12539_v31 = vadd.f32 %v12440_v34, %v3382_v3  ;;  %16116 = vst [vmem:[#allocation85_spill] sm:$0xff] %v12547_v0  ;;  %v12549_v24 = vpop.permute.xlu0 %4628 }
 0x7a8   : > { %16117 = vst [vmem:[#allocation86_spill] sm:$0xff] %v12549_v24  ;;  %v3383_v12 = vadd.f32 %v10214_v18, %v2674_v9 }
 0x7a9   : > { %16114 = vst [vmem:[#allocation83_spill] sm:$0xff] %v12539_v31  ;;  %v3643_v18 = vsel %vm2033_vm3, %v12539_v31, 0.0 }
 0x7aa   : > { %v12553_v20 = vpop.permute.xlu1 %4614  ;;  %v12569_v19 = vadd.f32 %v12440_v34, %v3383_v12  ;;  %v4770_v12 = vsel %vm2033_vm3, %v12375_v49, 0.0 }
 0x7ab   : > { %16118 = vst [vmem:[#allocation87_spill] sm:$0xff] %v12553_v20  ;;  %v12555_v44 = vpop.xlane.xlu0 %3560 }
 0x7ac   : > { %16122 = vst [vmem:[#allocation89_spill] sm:$0xff] %v12569_v19 }
 0x7ae   : > { %v12557_v3 = vpop.xlane.xlu1 %3539 }
 0x7af   : > { %v12560_v32 = vpop.permute.xlu0 %4632 }
 0x7b2   : > { %v12562_v56 = vpop.permute.xlu1 %4618 }
 0x7b3   : > { %v12564_v0 = vpop.xlane.xlu0 %3566 }
 0x7b4   : > { %16120 = vst [vmem:[#allocation37_spill] sm:$0xff] %v12564_v0 }
 0x7b6   : > { %v12566_v24 = vpop.xlane.xlu1 %3545 }
 0x7b7   : > { %16121 = vst [vmem:[#allocation88_spill] sm:$0xff] %v12566_v24  ;;  %v12571_v20 = vpop.permute.xlu0 %4636 }
 0x7ba   : > { %4684 = vrot.lane.b32.xlu0 %v12539_v31, %s11026_s22 }
 0x7bb   : > { %v12577_v51 = vpop.xlane.xlu0 %3572 }
 0x7bc   : > { %16123 = vst [vmem:[#allocation90_spill] sm:$0xff] %v12577_v51  ;;  %v3650_v51 = vmul.f32 0.03125, %v12339_v63  ;;  %v3652_v63 = vmul.f32 0.03125, %v12355_v48  ;;  %v4767_v48 = vsel %vm2033_vm3, %v12370_v28, 0.0 }
 0x7bf   : > { %v12585_v34 = vpop.permute.xlu0 %4640 }
 0x7c3   : > { %3641 = vadd.xlane.f32.xlu1 %v3640_v53  ;;  %v12575_v53 = vpop.permute.xlu1 %4622  ;;  %v12591_v24 = vpop.xlane.xlu0 %3578 }
 0x7c4   : > { %16124 = vst [vmem:[#allocation91_spill] sm:$0xff] %v12591_v24 }
 0x7c7   : > { %v12581_v9 = vpop.xlane.xlu1 %3551  ;;  %v12598_v31 = vpop.permute.xlu0 %4644 }
 0x7cb   : > { %v12589_v0 = vpop.permute.xlu1 %4626  ;;  %v12607_v24 = vpop.xlane.xlu0 %3584 }
 0x7d4   : > { %4686 = vrot.lane.b32.xlu1 %v12569_v19, %s11026_s22 }
 0x7d9   : > { %4765 = vadd.xlane.f32.xlu0 %v4764_v36  ;;  %v12595_v36 = vpop.xlane.xlu1 %3557 }
 0x7da   : > { %16125 = vst [vmem:[#allocation92_spill] sm:$0xff] %v12595_v36  ;;  %v4794_v36 = vsel %vm2033_vm3, %v12431_v46, 0.0  ;;  %v3654_v46 = vmul.f32 0.03125, %v12364_v1 }
 0x7dd   : > { %3644 = vadd.xlane.f32.xlu0 %v3643_v18  ;;  %v4782_v18 = vsel %vm2033_vm3, %v12418_v35, 0.0  ;;  %v12602_v49 = vpop.permute.xlu1 %4630 }
 0x7e1   : > { %4771 = vadd.xlane.f32.xlu0 %v4770_v12  ;;  %v12605_v12 = vsub.f32 %v11908_v30, %v3650_v51  ;;  %v12621_v51 = vsub.f32 %v11918_v27, %v3652_v63 }
 0x7e3   : > { %v3778_v35 = vmul.f32 %v12605_v12, %v12605_v12  ;;  %v3780_v63 = vmul.f32 %v12621_v51, %v12621_v51 }
 0x7e5   : > { %4777 = vadd.xlane.f32.xlu0 %v4776_v58  ;;  %v12611_v58 = vpop.xlane.xlu1 %3563  ;;  %v3842_v30 = vsel %vm2033_vm3, %v3778_v35, 0.0  ;;  %v12640_v35 = vsub.f32 %v11924_v37, %v3654_v46  ;;  %v3848_v28 = vsel %vm2033_vm3, %v3780_v63, 0.0  ;;  %v4806_v46 = vsel %vm2033_vm3, %v12457_v11, 0.0 }
 0x7e6   : > { %v4779_v63 = vsel %vm2033_vm3, %v12426_v33, 0.0  ;;  %v3651_v11 = vmul.f32 0.03125, %v12314_v41  ;;  %v4812_v33 = vsel %vm2033_vm3, %v12467_v4, 0.0 }
 0x7e9   : > { %4783 = vadd.xlane.f32.xlu0 %v4782_v18  ;;  %v12618_v18 = vpop.permute.xlu0 %4648  ;;  %v12624_v10 = vpop.permute.xlu1 %4634 }
 0x7ed   : > { %4789 = vadd.xlane.f32.xlu0 %v4788_v23  ;;  %v12626_v23 = vpop.xlane.xlu0 %3590  ;;  %v12635_v27 = vpop.xlane.xlu1 %3569 }
 0x7ee   : > { %16126 = vst [vmem:[#allocation93_spill] sm:$0xff] %v12626_v23 }
 0x7f1   : > { %4795 = vadd.xlane.f32.xlu0 %v4794_v36  ;;  %v4800_v36 = vsel %vm2033_vm3, %v12447_v25, 0.0  ;;  %v12642_v23 = vpop.permute.xlu0 %4652  ;;  %v12645_v1 = vpop.permute.xlu1 %4638  ;;  %v4773_v25 = vsel %vm2033_vm3, %v12395_v62, 0.0 }
 0x7f5   : > { %3843 = vadd.xlane.f32.xlu0 %v3842_v30  ;;  %v3646_v30 = vsel %vm2033_vm3, %v12569_v19, 0.0  ;;  %v3782_v19 = vmul.f32 %v12640_v35, %v12640_v35 }
 0x7f7   : > { %v3854_v62 = vsel %vm2033_vm3, %v3782_v19, 0.0 }
 0x7f8   : > { %4768 = vadd.xlane.f32.xlu1 %v4767_v48  ;;  %v3656_v48 = vmul.f32 0.03125, %v12389_v39 }
 0x7f9   : > { %4801 = vadd.xlane.f32.xlu0 %v4800_v36  ;;  %v12650_v36 = vpop.xlane.xlu0 %3596 }
 0x7fc   : > { %3647 = vadd.xlane.f32.xlu1 %v3646_v30  ;;  %v12656_v30 = vpop.xlane.xlu1 %3575 }
 0x7fd   : > { %3849 = vadd.xlane.f32.xlu0 %v3848_v28  ;;  %v12661_v28 = vsub.f32 %v11940_v40, %v3656_v48  ;;  %v12664_v39 = vpop.permute.xlu0 %4656  ;;  %v3660_v40 = vmul.f32 0.03125, %v12420_v59 }
 0x7ff   : > { %v3784_v48 = vmul.f32 %v12661_v28, %v12661_v28 }
 0x800   : > { %4774 = vadd.xlane.f32.xlu1 %v4773_v25  ;;  %v4785_v25 = vsel %vm2033_vm3, %v12459_v26, 0.0  ;;  %v4791_v26 = vsel %vm2033_vm3, %v12469_v22, 0.0 }
 0x801   : > { %4807 = vadd.xlane.f32.xlu0 %v4806_v46  ;;  %v3658_v46 = vmul.f32 0.03125, %v12414_v21  ;;  %v12676_v19 = vpop.xlane.xlu0 %3602  ;;  %v3860_v4 = vsel %vm2033_vm3, %v3784_v48, 0.0 }
 0x803   : > { %v12684_v41 = vsub.f32 %v11956_v50, %v3658_v46  ;;  %v4818_v46 = vsel %vm2033_vm3, %v12480_v2, 0.0  ;;  %v12708_v50 = vsub.f32 %v11972_v60, %v3660_v40  ;;  %v3655_v2 = vmul.f32 0.03125, %v12380_v7 }
 0x804   : > { %4780 = vadd.xlane.f32.xlu1 %v4779_v63  ;;  %v12674_v63 = vpop.permute.xlu1 %4642  ;;  %v4824_v40 = vsel %vm2033_vm3, %v12492_v61, 0.0  ;;  %v4809_v60 = vsel %vm2033_vm3, %v12503_v55, 0.0 }
 0x805   : > { %3855 = vadd.xlane.f32.xlu0 %v3854_v62  ;;  %v12679_v62 = vsub.f32 %v11894_v54, %v3651_v11  ;;  %16127 = vst [vmem:[#allocation94_spill] sm:$0xff] %v12684_v41  ;;  %v12695_v22 = vpop.permute.xlu0 %4660  ;;  %v3786_v48 = vmul.f32 %v12684_v41, %v12684_v41  ;;  %16129 = vst [vmem:[#allocation95_spill] sm:$0xff] %v12708_v50  ;;  %v12728_v7 = vsub.f32 %v11934_v47, %v3655_v2 }
 0x807   : > { %v3779_v11 = vmul.f32 %v12679_v62, %v12679_v62  ;;  %v3783_v2 = vmul.f32 %v12728_v7, %v12728_v7 }
 0x808   : > { %4786 = vadd.xlane.f32.xlu1 %v4785_v25  ;;  %v12687_v21 = vpop.xlane.xlu1 %3581  ;;  %v3653_v25 = vmul.f32 0.03125, %v12330_v17 }
 0x809   : > { %4813 = vadd.xlane.f32.xlu0 %v4812_v33  ;;  %v4797_v33 = vsel %vm2033_vm3, %v12482_v15, 0.0  ;;  %v3845_v15 = vsel %vm2033_vm3, %v3779_v11, 0.0  ;;  %v12710_v59 = vpop.xlane.xlu0 %3608  ;;  %v3662_v11 = vmul.f32 0.03125, %v12428_v5  ;;  %v3857_v55 = vsel %vm2033_vm3, %v3783_v2, 0.0 }
 0x80a   : > { %v3666_v2 = vmul.f32 0.03125, %v12453_v42 }
 0x80c   : > { %4792 = vadd.xlane.f32.xlu1 %v4791_v26  ;;  %v16128_v26 = vld [vmem:[#allocation40_spill] sm:$0xff] }
 0x80d   : > { %3861 = vadd.xlane.f32.xlu0 %v3860_v4  ;;  %v12702_v17 = vsub.f32 %v16128_v26, %v3653_v25  ;;  %v12704_v4 = vpop.permute.xlu1 %4646  ;;  %v4803_v25 = vsel %vm2033_vm3, %v12494_v45, 0.0 }
 0x810   : > { %4798 = vadd.xlane.f32.xlu1 %v4797_v33  ;;  %v3866_v33 = vsel %vm2033_vm3, %v3786_v48, 0.0  ;;  %v3788_v48 = vmul.f32 %v12708_v50, %v12708_v50 }
 0x811   : > { %4819 = vadd.xlane.f32.xlu0 %v4818_v46  ;;  %v12714_v37 = vpop.xlane.xlu1 %3587  ;;  %v3781_v46 = vmul.f32 %v12702_v17, %v12702_v17 }
 0x812   : > { %v3872_v5 = vsel %vm2033_vm3, %v3788_v48, 0.0 }
 0x813   : > { %v3851_v45 = vsel %vm2033_vm3, %v3781_v46, 0.0  ;;  %v3664_v46 = vmul.f32 0.03125, %v12433_v43  ;;  %v3659_v43 = vmul.f32 0.03125, %v12445_v52  ;;  %v16134_v52 = vld [vmem:[#allocation48_spill] sm:$0xff] }
 0x814   : > { %3846 = vadd.xlane.f32.xlu1 %v3845_v15  ;;  %v12725_v15 = vpop.permute.xlu0 %4664 }
 0x815   : > { %3867 = vadd.xlane.f32.xlu0 %v3866_v33  ;;  %v12732_v33 = vsub.f32 %v11988_v6, %v3662_v11  ;;  %v4830_v11 = vsel %vm2033_vm3, %v12501_v29, 0.0  ;;  %v16136_v6 = vld [vmem:[#allocation55_spill] sm:$0xff] }
 0x816   : > { %v12782_v26 = vsub.f32 %v16136_v6, %v3666_v2  ;;  %v16139_v2 = vld [vmem:[#allocation23_spill] sm:$0xff] }
 0x817   : > { %16130 = vst [vmem:[#allocation96_spill] sm:$0xff] %v12732_v33  ;;  %v3790_v48 = vmul.f32 %v12732_v33, %v12732_v33 }
 0x818   : > { %4804 = vadd.xlane.f32.xlu1 %v4803_v25  ;;  %v12735_v25 = vpop.permute.xlu1 %4650  ;;  %v12737_v61 = vpop.xlane.xlu0 %3614  ;;  %16137 = vst [vmem:[#allocation99_spill] sm:$0xff] %v12782_v26 }
 0x819   : > { %4825 = vadd.xlane.f32.xlu0 %v4824_v40  ;;  %v3657_v40 = vmul.f32 0.03125, %v12405_v38 }
 0x81b   : > { %v12752_v38 = vsub.f32 %v11950_v57, %v3657_v40  ;;  %v16133_v57 = vld [vmem:[#allocation77_spill] sm:$0xff] }
 0x81c   : > { %3852 = vadd.xlane.f32.xlu1 %v3851_v45  ;;  %v12749_v45 = vpop.xlane.xlu1 %3593  ;;  %v12758_v47 = vpop.permute.xlu0 %4668 }
 0x81d   : > { %3873 = vadd.xlane.f32.xlu0 %v3872_v5  ;;  %16131 = vst [vmem:[#allocation97_spill] sm:$0xff] %v12752_v38  ;;  %v12756_v5 = vsub.f32 %v12004_v16, %v3664_v46  ;;  %v3785_v40 = vmul.f32 %v12752_v38, %v12752_v38 }
 0x81f   : > { %16132 = vst [vmem:[#allocation98_spill] sm:$0xff] %v12756_v5 }
 0x820   : > { %4810 = vadd.xlane.f32.xlu1 %v4809_v60  ;;  %v3878_v60 = vsel %vm2033_vm3, %v3790_v48, 0.0  ;;  %v12762_v29 = vpop.permute.xlu1 %4654  ;;  %v12769_v46 = vpop.xlane.xlu0 %3620  ;;  %v3792_v48 = vmul.f32 %v12756_v5, %v12756_v5  ;;  %v16143_v5 = vld [vmem:[#allocation57_spill] sm:$0xff] }
 0x821   : > { %4831 = vadd.xlane.f32.xlu0 %v4830_v11  ;;  %v4815_v11 = vsel %vm2033_vm3, %v12520_v8, 0.0  ;;  %v3863_v8 = vsel %vm2033_vm3, %v3785_v40, 0.0  ;;  %v6051_v40 = vld [vmem:[%s15758_s13 + $0x18] sm:$0xff] }
 0x822   : > { %v3884_v42 = vsel %vm2033_vm3, %v3792_v48, 0.0  ;;  %10215 = vmatprep.subr.mxu1 %v6051_v40 }
 0x823   : > { %10216 = vmatpush3.msra.mxu1 %v6051_v40 }
 0x824   : > { %3858 = vadd.xlane.f32.xlu1 %v3857_v55  ;;  %v4836_v55 = vsel %vm2033_vm3, %v16133_v57, 0.0  ;;  %v12778_v16 = vpop.xlane.xlu1 %3599  ;;  %v16138_v57 = vld [vmem:[#allocation27_spill] sm:$0xff] }
 0x825   : > { %3879 = vadd.xlane.f32.xlu0 %v3878_v60  ;;  %v12776_v60 = vsub.f32 %v16134_v52, %v3659_v43  ;;  %v3661_v54 = vmul.f32 0.03125, %v16138_v57  ;;  %v3668_v52 = vmul.f32 0.03125, %v16139_v2  ;;  %v16141_v2 = vld [vmem:[#allocation50_spill] sm:$0xff] }
 0x827   : > { %16135 = vst [vmem:[#allocation77_spill] sm:$0xff] %v12776_v60  ;;  %v3787_v43 = vmul.f32 %v12776_v60, %v12776_v60 }
 0x828   : > { %4816 = vadd.xlane.f32.xlu1 %v4815_v11  ;;  %v12785_v11 = vpop.permute.xlu0 %4672  ;;  %v12800_v57 = vpop.permute.xlu1 %4658 }
 0x829   : > { %4837 = vadd.xlane.f32.xlu0 %v4836_v55  ;;  %v4821_v55 = vsel %vm2033_vm3, %v12530_v14, 0.0  ;;  %v6050_v14 = vld [vmem:[%s15758_s13 + $0x10] sm:$0xff] }
 0x82a   : > { %10217 = vmatprep.subr.mxu1 %v6050_v14 }
 0x82b   : > { %10218 = vmatpush3.msra.mxu1 %v6050_v14 }
 0x82c   : > { %3864 = vadd.xlane.f32.xlu1 %v3863_v8  ;;  %v16140_v8 = vld [vmem:[#allocation80_spill] sm:$0xff]  ;;  %v12805_v6 = vpop.xlane.xlu0 %3626  ;;  %v12818_v33 = vpop.xlane.xlu1 %3605 }
 0x82d   : > { %3885 = vadd.xlane.f32.xlu0 %v3884_v42  ;;  %v4842_v48 = vsel %vm2033_vm3, %v16140_v8, 0.0  ;;  %v3794_v42 = vmul.f32 %v12782_v26, %v12782_v26  ;;  %v3869_v8 = vsel %vm2033_vm3, %v3787_v43, 0.0  ;;  %v6049_v26 = vld [vmem:[%s15758_s13 + $0x8] sm:$0xff]  ;;  %16145 = vst [vmem:[#allocation80_spill] sm:$0xff] %v12818_v33  ;;  %v16146_v43 = vld [vmem:[#allocation30_spill] sm:$0xff] }
 0x82e   : > { %10219 = vmatprep.subr.mxu1 %v6049_v26  ;;  %v3663_v14 = vmul.f32 0.03125, %v16146_v43  ;;  %v16149_v43 = vld [vmem:[#allocation52_spill] sm:$0xff] }
 0x82f   : > { %v3890_v40 = vsel %vm2033_vm3, %v3794_v42, 0.0  ;;  %10220 = vmatpush3.msra.mxu1 %v6049_v26  ;;  %v16147_v42 = vld [vmem:[#allocation28_spill] sm:$0xff]  ;;  %v16148_v26 = vld [vmem:[#allocation82_spill] sm:$0xff] }
 0x830   : > { %4822 = vadd.xlane.f32.xlu1 %v4821_v55  ;;  %v12808_v55 = vsub.f32 %v16141_v2, %v3661_v54  ;;  %v6048_v54 = vld [vmem:[%s15758_s13] sm:$0xff]  ;;  %v4827_v2 = vsel %vm2033_vm3, %v12541_v13, 0.0  ;;  %v12836_v50 = vsub.f32 %v16149_v43, %v3663_v14  ;;  %v12838_v13 = vpop.permute.xlu1 %4662 }
 0x831   : > { %4843 = vadd.xlane.f32.xlu0 %v4842_v48  ;;  %v12815_v48 = vsub.f32 %v16143_v5, %v3668_v52  ;;  %10221 = vmatprep.subr.mxu1 %v6048_v54  ;;  %v12829_v5 = vpop.permute.xlu0 %4676 }
 0x832   : > { %16142 = vst [vmem:[#allocation27_spill] sm:$0xff] %v12808_v55  ;;  %v3789_v52 = vmul.f32 %v12808_v55, %v12808_v55  ;;  %10222 = vmatpush3.msra.mxu1 %v6048_v54  ;;  %16150 = vst [vmem:[#allocation30_spill] sm:$0xff] %v12836_v50  ;;  %v16151_v54 = vld [vmem:[#allocation59_spill] sm:$0xff]  ;;  %v3791_v43 = vmul.f32 %v12836_v50, %v12836_v50 }
 0x833   : > { %16144 = vst [vmem:[#allocation23_spill] sm:$0xff] %v12815_v48  ;;  %v3796_v60 = vmul.f32 %v12815_v48, %v12815_v48 }
 0x834   : > { %3870 = vadd.xlane.f32.xlu1 %v3869_v8  ;;  %v3670_v8 = vmul.f32 0.03125, %v16147_v42  ;;  %v3875_v55 = vsel %vm2033_vm3, %v3789_v52, 0.0  ;;  %v12848_v48 = vpop.xlane.xlu1 %3611  ;;  %v16157_v52 = vld [vmem:[#allocation31_spill] sm:$0xff] }
 0x835   : > { %3891 = vadd.xlane.f32.xlu0 %v3890_v40  ;;  %v4848_v40 = vsel %vm2033_vm3, %v16148_v26, 0.0  ;;  %v12844_v42 = vpop.xlane.xlu0 %4753  ;;  %v16154_v26 = vld [vmem:[#allocation29_spill] sm:$0xff]  ;;  %v3672_v41 = vmul.f32 0.03125, %v16157_v52 }
 0x836   : > { %v12842_v38 = vsub.f32 %v16151_v54, %v3670_v8  ;;  %16153 = vst [vmem:[#allocation82_spill] sm:$0xff] %v12844_v42  ;;  %v3665_v33 = vmul.f32 0.03125, %v16154_v26  ;;  %16155 = vst [vmem:[#allocation29_spill] sm:$0xff] %v12848_v48  ;;  %v16158_v8 = vld [vmem:[#allocation86_spill] sm:$0xff]  ;;  %v16162_v42 = vld [vmem:[#allocation61_spill] sm:$0xff] }
 0x837   : > { %v4854_v54 = vsel %vm2033_vm3, %v16158_v8, 0.0  ;;  %v12866_v48 = vsub.f32 %v16162_v42, %v3672_v41  ;;  %v16164_v8 = vld [vmem:[#allocation32_spill] sm:$0xff]  ;;  %v4860_v41 = vsel %vm2033_vm3, %v12560_v32, 0.0  ;;  %v16169_v42 = vld [vmem:[#allocation63_spill] sm:$0xff]  ;;  %v16171_v32 = vld [vmem:[#allocation34_spill] sm:$0xff] }
 0x838   : > { %4828 = vadd.xlane.f32.xlu1 %v4827_v2  ;;  %16152 = vst [vmem:[#allocation28_spill] sm:$0xff] %v12842_v38  ;;  %v3896_v2 = vsel %vm2033_vm3, %v3796_v60, 0.0  ;;  %v3798_v60 = vmul.f32 %v12842_v38, %v12842_v38  ;;  %v12869_v52 = vpop.permute.xlu1 %4666  ;;  %v3667_v50 = vmul.f32 0.03125, %v16164_v8 }
 0x839   : > { %4849 = vadd.xlane.f32.xlu0 %v4848_v40  ;;  %v16156_v40 = vld [vmem:[#allocation87_spill] sm:$0xff]  ;;  %16163 = vst [vmem:[#allocation86_spill] sm:$0xff] %v12866_v48 }
 0x83a   : > { %v4833_v14 = vsel %vm2033_vm3, %v16156_v40, 0.0  ;;  %v3881_v40 = vsel %vm2033_vm3, %v3791_v43, 0.0 }
 0x83c   : > { %3876 = vadd.xlane.f32.xlu1 %v3875_v55  ;;  %v12859_v55 = vpop.xlane.xlu0 %3632 }
 0x83d   : > { %3897 = vadd.xlane.f32.xlu0 %v3896_v2  ;;  %16159 = vst [vmem:[#allocation87_spill] sm:$0xff] %v12859_v55  ;;  %v16160_v2 = vld [vmem:[#allocation54_spill] sm:$0xff] }
 0x83e   : > { %v12862_v26 = vsub.f32 %v16160_v2, %v3665_v33  ;;  %v16165_v2 = vld [vmem:[#allocation33_spill] sm:$0xff] }
 0x83f   : > { %v3674_v38 = vmul.f32 0.03125, %v16165_v2 }
 0x840   : > { %4834 = vadd.xlane.f32.xlu1 %v4833_v14  ;;  %16161 = vst [vmem:[#allocation31_spill] sm:$0xff] %v12862_v26  ;;  %v3902_v14 = vsel %vm2033_vm3, %v3798_v60, 0.0  ;;  %v3793_v33 = vmul.f32 %v12862_v26, %v12862_v26  ;;  %v12877_v43 = vpop.xlane.xlu0 %4762  ;;  %v3800_v60 = vmul.f32 %v12866_v48, %v12866_v48 }
 0x841   : > { %4855 = vadd.xlane.f32.xlu0 %v4854_v54  ;;  %v4839_v54 = vsel %vm2033_vm3, %v12562_v56, 0.0  ;;  %16166 = vst [vmem:[#allocation32_spill] sm:$0xff] %v12877_v43  ;;  %v12890_v55 = vsub.f32 %v16169_v42, %v3674_v38  ;;  %v3669_v43 = vmul.f32 0.03125, %v16171_v32  ;;  %v4866_v38 = vsel %vm2033_vm3, %v12571_v20, 0.0  ;;  %v16178_v20 = vld [vmem:[#allocation79_spill] sm:$0xff] }
 0x842   : > { %v3887_v56 = vsel %vm2033_vm3, %v3793_v33, 0.0  ;;  %v3908_v2 = vsel %vm2033_vm3, %v3800_v60, 0.0  ;;  %v16172_v33 = vld [vmem:[#allocation35_spill] sm:$0xff] }
 0x843   : > { %16170 = vst [vmem:[#allocation100_spill] sm:$0xff] %v12890_v55  ;;  %v3802_v60 = vmul.f32 %v12890_v55, %v12890_v55 }
 0x844   : > { %3882 = vadd.xlane.f32.xlu1 %v3881_v40  ;;  %v12883_v40 = vpop.xlane.xlu1 %3617 }
 0x845   : > { %3903 = vadd.xlane.f32.xlu0 %v3902_v14  ;;  %v16167_v14 = vld [vmem:[#allocation56_spill] sm:$0xff] }
 0x846   : > { %v12886_v8 = vsub.f32 %v16167_v14, %v3667_v50  ;;  %v3676_v14 = vmul.f32 0.03125, %v16172_v33  ;;  %v3671_v33 = vmul.f32 0.03125, %v16178_v20  ;;  %v16183_v20 = vld [vmem:[#allocation67_spill] sm:$0xff] }
 0x848   : > { %4840 = vadd.xlane.f32.xlu1 %v4839_v54  ;;  %16168 = vst [vmem:[#allocation33_spill] sm:$0xff] %v12886_v8  ;;  %v12893_v54 = vpop.permute.xlu0 %4680  ;;  %v12896_v48 = vpop.permute.xlu1 %4670  ;;  %v3795_v50 = vmul.f32 %v12886_v8, %v12886_v8  ;;  %v16176_v8 = vld [vmem:[#allocation65_spill] sm:$0xff] }
 0x849   : > { %4861 = vadd.xlane.f32.xlu0 %v4860_v41  ;;  %v4845_v41 = vsel %vm2033_vm3, %v12575_v53, 0.0  ;;  %v12916_v26 = vsub.f32 %v16176_v8, %v3676_v14  ;;  %v4872_v14 = vsel %vm2033_vm3, %v12585_v34, 0.0 }
 0x84a   : > { %v3893_v53 = vsel %vm2033_vm3, %v3795_v50, 0.0 }
 0x84b   : > { %16177 = vst [vmem:[#allocation101_spill] sm:$0xff] %v12916_v26  ;;  %v3804_v50 = vmul.f32 %v12916_v26, %v12916_v26  ;;  %v16185_v26 = vld [vmem:[#allocation81_spill] sm:$0xff] }
 0x84c   : > { %3888 = vadd.xlane.f32.xlu1 %v3887_v56  ;;  %v12907_v56 = vpop.xlane.xlu0 %4759  ;;  %v12912_v42 = vpop.xlane.xlu1 %3623 }
 0x84d   : > { %3909 = vadd.xlane.f32.xlu0 %v3908_v2  ;;  %16173 = vst [vmem:[#allocation34_spill] sm:$0xff] %v12907_v56  ;;  %v16174_v2 = vld [vmem:[#allocation58_spill] sm:$0xff] }
 0x84e   : > { %v12910_v32 = vsub.f32 %v16174_v2, %v3669_v43  ;;  %v16179_v2 = vld [vmem:[#allocation78_spill] sm:$0xff] }
 0x84f   : > { %v3678_v56 = vmul.f32 0.03125, %v16179_v2  ;;  %v3920_v2 = vsel %vm2033_vm3, %v3804_v50, 0.0 }
 0x850   : > { %4846 = vadd.xlane.f32.xlu1 %v4845_v41  ;;  %16175 = vst [vmem:[#allocation35_spill] sm:$0xff] %v12910_v32  ;;  %v3914_v41 = vsel %vm2033_vm3, %v3802_v60, 0.0  ;;  %v3797_v43 = vmul.f32 %v12910_v32, %v12910_v32  ;;  %v12925_v55 = vpop.xlane.xlu0 %3638  ;;  %v12931_v60 = vpop.permute.xlu1 %4674  ;;  %v3673_v32 = vmul.f32 0.03125, %v16185_v26 }
 0x851   : > { %4867 = vadd.xlane.f32.xlu0 %v4866_v38  ;;  %v4851_v38 = vsel %vm2033_vm3, %v12589_v0, 0.0  ;;  %16180 = vst [vmem:[#allocation79_spill] sm:$0xff] %v12925_v55  ;;  %v12938_v8 = vsub.f32 %v16183_v20, %v3678_v56  ;;  %v4878_v56 = vsel %vm2033_vm3, %v12598_v31, 0.0 }
 0x852   : > { %v3899_v0 = vsel %vm2033_vm3, %v3797_v43, 0.0  ;;  %v16186_v43 = vld [vmem:[#allocation38_spill] sm:$0xff] }
 0x853   : > { %16184 = vst [vmem:[#allocation102_spill] sm:$0xff] %v12938_v8  ;;  %v3806_v50 = vmul.f32 %v12938_v8, %v12938_v8 }
 0x854   : > { %3894 = vadd.xlane.f32.xlu1 %v3893_v53  ;;  %v16181_v53 = vld [vmem:[#allocation60_spill] sm:$0xff]  ;;  %v12943_v34 = vpop.permute.xlu0 %4684 }
 0x855   : > { %3915 = vadd.xlane.f32.xlu0 %v3914_v41  ;;  %v12934_v41 = vsub.f32 %v16181_v53, %v3671_v33  ;;  %v3680_v53 = vmul.f32 0.03125, %v16186_v43  ;;  %v16191_v43 = vld [vmem:[#allocation85_spill] sm:$0xff] }
 0x857   : > { %16182 = vst [vmem:[#allocation78_spill] sm:$0xff] %v12934_v41  ;;  %v3799_v33 = vmul.f32 %v12934_v41, %v12934_v41  ;;  %v16189_v41 = vld [vmem:[#allocation69_spill] sm:$0xff] }
 0x858   : > { %4852 = vadd.xlane.f32.xlu1 %v4851_v38  ;;  %v12941_v38 = vpop.xlane.xlu1 %3629  ;;  %v12964_v55 = vsub.f32 %v16189_v41, %v3680_v53  ;;  %v4884_v53 = vsel %vm2033_vm3, %v12618_v18, 0.0  ;;  %v16195_v41 = vld [vmem:[#allocation71_spill] sm:$0xff] }
 0x859   : > { %4873 = vadd.xlane.f32.xlu0 %v4872_v14  ;;  %v4857_v14 = vsel %vm2033_vm3, %v12602_v49, 0.0  ;;  %v3905_v49 = vsel %vm2033_vm3, %v3799_v33, 0.0  ;;  %v16192_v33 = vld [vmem:[#allocation84_spill] sm:$0xff] }
 0x85c   : > { %3900 = vadd.xlane.f32.xlu1 %v3899_v0  ;;  %v12960_v20 = vpop.permute.xlu1 %4678 }
 0x85d   : > { %3921 = vadd.xlane.f32.xlu0 %v3920_v2  ;;  %v16188_v2 = vld [vmem:[#allocation62_spill] sm:$0xff] }
 0x85e   : > { %v12958_v26 = vsub.f32 %v16188_v2, %v3673_v32  ;;  %v4863_v32 = vsel %vm2033_vm3, %v12624_v10, 0.0 }
 0x860   : > { %4858 = vadd.xlane.f32.xlu1 %v4857_v14  ;;  %v3926_v14 = vsel %vm2033_vm3, %v3806_v50, 0.0  ;;  %v12970_v8 = vpop.xlane.xlu1 %4756  ;;  %v3801_v2 = vmul.f32 %v12958_v26, %v12958_v26  ;;  %v3808_v50 = vmul.f32 %v12964_v55, %v12964_v55 }
 0x861   : > { %4879 = vadd.xlane.f32.xlu0 %v4878_v56  ;;  %v3675_v56 = vmul.f32 0.03125, %v16191_v43 }
 0x862   : > { %v12955_v0 = vpop.xlane.xlu0 %4765  ;;  %v3911_v10 = vsel %vm2033_vm3, %v3801_v2, 0.0  ;;  %v3684_v2 = vmul.f32 0.03125, %v12555_v44 }
 0x863   : > { %16187 = vst [vmem:[#allocation81_spill] sm:$0xff] %v12955_v0  ;;  %v3682_v0 = vmul.f32 0.03125, %v16192_v33 }
 0x864   : > { %3906 = vadd.xlane.f32.xlu1 %v3905_v49  ;;  %v12991_v33 = vpop.xlane.xlu1 %3635 }
 0x865   : > { %3927 = vadd.xlane.f32.xlu0 %v3926_v14  ;;  %v16194_v14 = vld [vmem:[#allocation64_spill] sm:$0xff] }
 0x866   : > { %v12967_v31 = vpop.xlane.xlu0 %3644  ;;  %v12984_v43 = vsub.f32 %v16194_v14, %v3675_v56 }
 0x867   : > { %16190 = vst [vmem:[#allocation38_spill] sm:$0xff] %v12967_v31  ;;  %v12988_v31 = vsub.f32 %v16195_v41, %v3682_v0  ;;  %v4890_v0 = vsel %vm2033_vm3, %v12642_v23, 0.0  ;;  %v16200_v41 = vld [vmem:[#allocation73_spill] sm:$0xff] }
 0x868   : > { %4864 = vadd.xlane.f32.xlu1 %v4863_v32  ;;  %v3932_v32 = vsel %vm2033_vm3, %v3808_v50, 0.0  ;;  %v3803_v56 = vmul.f32 %v12984_v43, %v12984_v43  ;;  %v13010_v14 = vpop.permute.xlu1 %4682 }
 0x869   : > { %4885 = vadd.xlane.f32.xlu0 %v4884_v53  ;;  %16196 = vst [vmem:[#allocation84_spill] sm:$0xff] %v12988_v31  ;;  %v3677_v53 = vmul.f32 0.03125, %v12557_v3  ;;  %v3810_v50 = vmul.f32 %v12988_v31, %v12988_v31 }
 0x86a   : > { %v12981_v49 = vpop.xlane.xlu0 %4771 }
 0x86b   : > { %16193 = vst [vmem:[#allocation85_spill] sm:$0xff] %v12981_v49  ;;  %v4869_v49 = vsel %vm2033_vm3, %v12645_v1, 0.0  ;;  %v3917_v1 = vsel %vm2033_vm3, %v3803_v56, 0.0  ;;  %v3938_v44 = vsel %vm2033_vm3, %v3810_v50, 0.0  ;;  %v16205_v56 = vld [vmem:[#allocation37_spill] sm:$0xff] }
 0x86c   : > { %3912 = vadd.xlane.f32.xlu1 %v3911_v10  ;;  %v13020_v31 = vpop.xlane.xlu1 %3641 }
 0x86d   : > { %3933 = vadd.xlane.f32.xlu0 %v3932_v32  ;;  %v16199_v32 = vld [vmem:[#allocation66_spill] sm:$0xff] }
 0x86e   : > { %v12993_v18 = vpop.xlane.xlu0 %4777  ;;  %v13008_v3 = vsub.f32 %v16199_v32, %v3677_v53  ;;  %v4875_v53 = vsel %vm2033_vm3, %v12674_v63, 0.0 }
 0x86f   : > { %16197 = vst [vmem:[#allocation103_spill] sm:$0xff] %v12993_v18  ;;  %v13014_v18 = vsub.f32 %v16200_v41, %v3684_v2  ;;  %v4896_v2 = vsel %vm2033_vm3, %v12664_v39, 0.0  ;;  %v16208_v41 = vld [vmem:[#allocation75_spill] sm:$0xff] }
 0x870   : > { %4870 = vadd.xlane.f32.xlu1 %v4869_v49  ;;  %v16203_v49 = vld [vmem:[#allocation88_spill] sm:$0xff]  ;;  %v3805_v32 = vmul.f32 %v13008_v3, %v13008_v3 }
 0x871   : > { %4891 = vadd.xlane.f32.xlu0 %v4890_v0  ;;  %16201 = vst [vmem:[#allocation105_spill] sm:$0xff] %v13014_v18  ;;  %v3679_v0 = vmul.f32 0.03125, %v16203_v49  ;;  %16204 = vst [vmem:[#allocation88_spill] sm:$0xff] %v13020_v31  ;;  %v3812_v50 = vmul.f32 %v13014_v18, %v13014_v18  ;;  %v3681_v31 = vmul.f32 0.03125, %v12581_v9 }
 0x872   : > { %v13005_v10 = vpop.xlane.xlu0 %4783  ;;  %v3923_v63 = vsel %vm2033_vm3, %v3805_v32, 0.0  ;;  %v16209_v32 = vld [vmem:[#allocation90_spill] sm:$0xff] }
 0x873   : > { %16198 = vst [vmem:[#allocation104_spill] sm:$0xff] %v13005_v10  ;;  %v3686_v10 = vmul.f32 0.03125, %v16205_v56  ;;  %v13041_v56 = vpop.permute.xlu1 %4686 }
 0x874   : > { %3918 = vadd.xlane.f32.xlu1 %v3917_v1 }
 0x875   : > { %3939 = vadd.xlane.f32.xlu0 %v3938_v44  ;;  %v16207_v44 = vld [vmem:[#allocation68_spill] sm:$0xff] }
 0x876   : > { %v13017_v23 = vpop.xlane.xlu0 %4789  ;;  %v13034_v49 = vsub.f32 %v16207_v44, %v3679_v0  ;;  %v3688_v44 = vmul.f32 0.03125, %v16209_v32  ;;  %v16213_v32 = vld [vmem:[#allocation4_spill] sm:$0xff] }
 0x877   : > { %16202 = vst [vmem:[#allocation106_spill] sm:$0xff] %v13017_v23  ;;  %v13038_v23 = vsub.f32 %v16208_v41, %v3686_v10  ;;  %v4902_v10 = vsel %vm2033_vm3, %v12695_v22, 0.0 }
 0x878   : > { %4876 = vadd.xlane.f32.xlu1 %v4875_v53  ;;  %v3944_v53 = vsel %vm2033_vm3, %v3812_v50, 0.0  ;;  %v3807_v0 = vmul.f32 %v13034_v49, %v13034_v49 }
 0x879   : > { %4897 = vadd.xlane.f32.xlu0 %v4896_v2  ;;  %v3814_v50 = vmul.f32 %v13038_v23, %v13038_v23 }
 0x87a   : > { %v13031_v1 = vpop.xlane.xlu0 %4795  ;;  %v3929_v41 = vsel %vm2033_vm3, %v3807_v0, 0.0 }
 0x87b   : > { %16206 = vst [vmem:[#allocation37_spill] sm:$0xff] %v13031_v1  ;;  %v4881_v1 = vsel %vm2033_vm3, %v12704_v4, 0.0  ;;  %v3950_v22 = vsel %vm2033_vm3, %v3814_v50, 0.0 }
 0x87c   : > { %3924 = vadd.xlane.f32.xlu1 %v3923_v63 }
 0x87d   : > { %3945 = vadd.xlane.f32.xlu0 %v3944_v53 }
 0x87e   : > { %v3844_v39 = vpop.xlane.xlu0 %3843 }
 0x87f   : > { %v4034_v2 = vmul.f32 0.03125, %v3844_v39  ;;  %v16212_v39 = vld [vmem:[#allocation70_spill] sm:$0xff] }
 0x880   : > { %4882 = vadd.xlane.f32.xlu1 %v4881_v1  ;;  %v13058_v4 = vsub.f32 %v16212_v39, %v3681_v31  ;;  %v13062_v1 = vsub.f32 %v16213_v32, %v3688_v44  ;;  %v16220_v32 = vld [vmem:[#allocation6_spill] sm:$0xff] }
 0x881   : > { %v4098_v63 = vadd.f32 1e-05, %v4034_v2  ;;  %v13053_v53 = vpop.xlane.xlu1 %4768  ;;  %4903 = vadd.xlane.f32.xlu0 %v4902_v10 }
 0x882   : > { %16210 = vst [vmem:[#allocation90_spill] sm:$0xff] %v13053_v53  ;;  %v13055_v9 = vpop.xlane.xlu0 %4801  ;;  %v16215_v53 = vld [vmem:[#allocation92_spill] sm:$0xff]  ;;  %v3809_v31 = vmul.f32 %v13058_v4, %v13058_v4  ;;  %v3816_v44 = vmul.f32 %v13062_v1, %v13062_v1 }
 0x883   : > { %16211 = vst [vmem:[#allocation107_spill] sm:$0xff] %v13055_v9  ;;  %10436 = vrsqrt.f32 %v4098_v63  ;;  %v3683_v10 = vmul.f32 0.03125, %v16215_v53  ;;  %v4887_v9 = vsel %vm2033_vm3, %v12735_v25, 0.0  ;;  %v16216_v63 = vld [vmem:[#allocation91_spill] sm:$0xff]  ;;  %v16219_v53 = vld [vmem:[#allocation72_spill] sm:$0xff] }
 0x884   : > { %3930 = vadd.xlane.f32.xlu1 %v3929_v41  ;;  %v3690_v0 = vmul.f32 0.03125, %v16216_v63  ;;  %v4908_v41 = vsel %vm2033_vm3, %v12725_v15, 0.0  ;;  %v3935_v25 = vsel %vm2033_vm3, %v3809_v31, 0.0  ;;  %v3685_v63 = vmul.f32 0.03125, %v12611_v58  ;;  %v13104_v58 = vld [vmem:[%s15754_s9] ss:$0 sm:$0xff] }
 0x885   : > { %v13065_v18 = vpop.xlane.xlu1 %3647  ;;  %3951 = vadd.xlane.f32.xlu0 %v3950_v22  ;;  %v13082_v39 = vsub.f32 %v16219_v53, %v3683_v10  ;;  %v3692_v31 = vmul.f32 0.03125, %v12607_v24 }
 0x886   : > { %16214 = vst [vmem:[#allocation108_spill] sm:$0xff] %v13065_v18  ;;  %v3850_v2 = vpop.xlane.xlu0 %3849  ;;  %v13086_v18 = vsub.f32 %v16220_v32, %v3690_v0  ;;  %v4914_v0 = vsel %vm2033_vm3, %v12758_v47, 0.0  ;;  %v13117_v47 = vld [vmem:[%s15755_s10] ss:$0 sm:$0xff] }
 0x887   : > { %v3811_v10 = vmul.f32 %v13082_v39, %v13082_v39 }
 0x888   : > { %4888 = vadd.xlane.f32.xlu1 %v4887_v9  ;;  %16221 = vst [vmem:[#allocation109_spill] sm:$0xff] %v13086_v18  ;;  %v3956_v9 = vsel %vm2033_vm3, %v3816_v44, 0.0  ;;  %v3818_v44 = vmul.f32 %v13086_v18, %v13086_v18  ;;  %v16226_v18 = vld [vmem:[#allocation5_spill] sm:$0xff] }
 0x889   : > { %v13077_v50 = vpop.xlane.xlu1 %4774  ;;  %4909 = vadd.xlane.f32.xlu0 %v4908_v41  ;;  %v4893_v41 = vsel %vm2033_vm3, %v12762_v29, 0.0  ;;  %v3941_v32 = vsel %vm2033_vm3, %v3811_v10, 0.0 }
 0x88a   : > { %16217 = vst [vmem:[#allocation92_spill] sm:$0xff] %v13077_v50  ;;  %v13079_v22 = vpop.xlane.xlu0 %4807 }
 0x88b   : > { %16218 = vst [vmem:[#allocation91_spill] sm:$0xff] %v13079_v22 }
 0x88c   : > { %3936 = vadd.xlane.f32.xlu1 %v3935_v25 }
 0x88d   : > { %v13089_v15 = vpop.xlane.xlu1 %4780  ;;  %3957 = vadd.xlane.f32.xlu0 %v3956_v9  ;;  %v16224_v9 = vld [vmem:[#allocation74_spill] sm:$0xff] }
 0x88e   : > { %16222 = vst [vmem:[#allocation110_spill] sm:$0xff] %v13089_v15  ;;  %v3856_v50 = vpop.xlane.xlu0 %3855  ;;  %v13110_v15 = vsub.f32 %v16224_v9, %v3685_v63 }
 0x890   : > { %v10437_v53 = vpop.eup %10436  ;;  %4894 = vadd.xlane.f32.xlu1 %v4893_v41  ;;  %v4036_v41 = vmul.f32 0.03125, %v3850_v2  ;;  %v3813_v9 = vmul.f32 %v13110_v15, %v13110_v15  ;;  %v3687_v2 = vmul.f32 0.03125, %v12635_v27 }
 0x891   : > { %v13106_v25 = vpop.xlane.xlu1 %4786  ;;  %4915 = vadd.xlane.f32.xlu0 %v4914_v0  ;;  %v4226_v29 = vmul.f32 %v10437_v53, %v12605_v12  ;;  %v3962_v12 = vsel %vm2033_vm3, %v3818_v44, 0.0  ;;  %v4920_v44 = vsel %vm2033_vm3, %v12785_v11, 0.0 }
 0x892   : > { %16223 = vst [vmem:[#allocation111_spill] sm:$0xff] %v13106_v25  ;;  %v13112_v24 = vpop.xlane.xlu0 %4813  ;;  %v13122_v25 = vsub.f32 %v16226_v18, %v3692_v31  ;;  %v4100_v10 = vadd.f32 1e-05, %v4036_v41  ;;  %v16228_v18 = vld [vmem:[#allocation93_spill] sm:$0xff]  ;;  %v16231_v41 = vld [vmem:[#allocation76_spill] sm:$0xff] }
 0x893   : > { %16225 = vst [vmem:[#allocation112_spill] sm:$0xff] %v13112_v24  ;;  %v4296_v22 = vmul.f32 %v13104_v58, %v4226_v29  ;;  %v4899_v29 = vsel %vm2033_vm3, %v12800_v57, 0.0  ;;  %v4038_v57 = vmul.f32 0.03125, %v3856_v50 }
 0x894   : > { %3942 = vadd.xlane.f32.xlu1 %v3941_v32  ;;  %v3694_v32 = vmul.f32 0.03125, %v16228_v18  ;;  %10438 = vrsqrt.f32 %v4100_v10  ;;  %v3947_v18 = vsel %vm2033_vm3, %v3813_v9, 0.0  ;;  %v3696_v9 = vmul.f32 0.03125, %v12650_v36 }
 0x895   : > { %v13125_v53 = vpop.xlane.xlu1 %4792  ;;  %3963 = vadd.xlane.f32.xlu0 %v3962_v12  ;;  %v4366_v63 = vadd.f32 %v13117_v47, %v4296_v22  ;;  %v3820_v22 = vmul.f32 %v13122_v25, %v13122_v25 }
 0x896   : > { %16227 = vst [vmem:[#allocation113_spill] sm:$0xff] %v13125_v53  ;;  %v3862_v0 = vpop.xlane.xlu0 %3861  ;;  %v13144_v53 = vsub.f32 %v16231_v41, %v3687_v2  ;;  %v4905_v2 = vsel %vm2033_vm3, %v12838_v13, 0.0  ;;  %v16234_v13 = vld [vmem:[#allocation3_spill] sm:$0xff] }
 0x897   : > { %v4430_v31 = vmax.f32 %v4366_v63, 0.0  ;;  %v16232_v63 = vld [vmem:[#allocation10_spill] sm:$0xff]  ;;  %v3968_v11 = vsel %vm2033_vm3, %v3820_v22, 0.0 }
 0x898   : > { %4900 = vadd.xlane.f32.xlu1 %v4899_v29  ;;  %v13148_v29 = vsub.f32 %v16232_v63, %v3694_v32  ;;  %v3815_v50 = vmul.f32 %v13144_v53, %v13144_v53  ;;  %v4926_v32 = vsel %vm2033_vm3, %v12829_v5, 0.0 }
 0x899   : > { %v13138_v12 = vpop.xlane.xlu1 %4798  ;;  %4921 = vadd.xlane.f32.xlu0 %v4920_v44  ;;  %10223 = vmatprep.mubr.msk.f32.mxu1 %vm2033_vm3, %v4430_v31  ;;  %v3689_v31 = vmul.f32 0.03125, %v12656_v30 }
 0x89a   : > { %16229 = vst [vmem:[#allocation93_spill] sm:$0xff] %v13138_v12  ;;  %v13141_v27 = vpop.xlane.xlu0 %4819  ;;  %v3953_v36 = vsel %vm2033_vm3, %v3815_v50, 0.0  ;;  %v3698_v50 = vmul.f32 0.03125, %v12676_v19 }
 0x89b   : > { %16230 = vst [vmem:[#allocation114_spill] sm:$0xff] %v13141_v27  ;;  %v4102_v27 = vadd.f32 1e-05, %v4038_v57  ;;  %v13166_v57 = vsub.f32 %v16234_v13, %v3689_v31  ;;  %v4911_v31 = vsel %vm2033_vm3, %v12869_v52, 0.0  ;;  %v3700_v52 = vmul.f32 0.03125, %v12710_v59 }
 0x89c   : > { %3948 = vadd.xlane.f32.xlu1 %v3947_v18  ;;  %v4040_v18 = vmul.f32 0.03125, %v3862_v0 }
 0x89d   : > { %v3847_v24 = vpop.xlane.xlu1 %3846  ;;  %3969 = vadd.xlane.f32.xlu0 %v3968_v11  ;;  %v16235_v11 = vld [vmem:[#allocation12_spill] sm:$0xff]  ;;  %v3817_v0 = vmul.f32 %v13166_v57, %v13166_v57 }
 0x89e   : > { %v4035_v44 = vmul.f32 0.03125, %v3847_v24  ;;  %v3868_v12 = vpop.xlane.xlu0 %3867  ;;  %v3822_v24 = vmul.f32 %v13148_v29, %v13148_v29 }
 0x89f   : > { %v4042_v19 = vmul.f32 0.03125, %v3868_v12  ;;  %v3702_v12 = vmul.f32 0.03125, %v12737_v61 }
 0x8a0   : > { %v4099_v10 = vadd.f32 1e-05, %v4035_v44  ;;  %4906 = vadd.xlane.f32.xlu1 %v4905_v2  ;;  %v13170_v44 = vsub.f32 %v16235_v11, %v3696_v9  ;;  %v3974_v5 = vsel %vm2033_vm3, %v3822_v24, 0.0  ;;  %v3691_v2 = vmul.f32 0.03125, %v12687_v21 }
 0x8a1   : > { %v13161_v22 = vpop.xlane.xlu1 %4804  ;;  %4927 = vadd.xlane.f32.xlu0 %v4926_v32  ;;  %v4932_v24 = vsel %vm2033_vm3, %v12893_v54, 0.0 }
 0x8a2   : > { %16233 = vst [vmem:[#allocation115_spill] sm:$0xff] %v13161_v22  ;;  %10440 = vrsqrt.f32 %v4099_v10  ;;  %v13163_v30 = vpop.xlane.xlu0 %4825  ;;  %v4104_v22 = vadd.f32 1e-05, %v4040_v18  ;;  %v3824_v21 = vmul.f32 %v13170_v44, %v13170_v44 }
 0x8a3   : > { %10442 = vrsqrt.f32 %v4102_v27  ;;  %v10439_v27 = vpop.eup %10438 }
 0x8a4   : > { %3954 = vadd.xlane.f32.xlu1 %v3953_v36  ;;  %v4228_v54 = vmul.f32 %v10439_v27, %v12621_v51 }
 0x8a5   : > { %v3853_v41 = vpop.xlane.xlu1 %3852  ;;  %3975 = vadd.xlane.f32.xlu0 %v3974_v5 }
 0x8a6   : > { %v4037_v10 = vmul.f32 0.03125, %v3853_v41  ;;  %v3874_v32 = vpop.xlane.xlu0 %3873  ;;  %v16236_v41 = vld [vmem:[#allocation7_spill] sm:$0xff] }
 0x8a7   : > { %v13184_v36 = vsub.f32 %v16236_v41, %v3691_v2  ;;  %v3980_v2 = vsel %vm2033_vm3, %v3824_v21, 0.0  ;;  %v3693_v41 = vmul.f32 0.03125, %v12714_v37  ;;  %v4298_v21 = vmul.f32 %v13104_v58, %v4228_v54  ;;  %v16242_v54 = vld [vmem:[#allocation18_spill] sm:$0xff] }
 0x8a8   : > { %v4101_v9 = vadd.f32 1e-05, %v4037_v10  ;;  %4912 = vadd.xlane.f32.xlu1 %v4911_v31  ;;  %v3959_v10 = vsel %vm2033_vm3, %v3817_v0, 0.0  ;;  %v16238_v31 = vld [vmem:[#allocation11_spill] sm:$0xff] }
 0x8a9   : > { %v13186_v18 = vpop.xlane.xlu1 %4810  ;;  %4933 = vadd.xlane.f32.xlu0 %v4932_v24  ;;  %v13194_v13 = vsub.f32 %v16238_v31, %v3698_v50  ;;  %v3819_v59 = vmul.f32 %v13184_v36, %v13184_v36  ;;  %v4106_v50 = vadd.f32 1e-05, %v4042_v19  ;;  %v13219_v31 = vsub.f32 %v16242_v54, %v3702_v12 }
 0x8aa   : > { %16237 = vst [vmem:[#allocation116_spill] sm:$0xff] %v13186_v18  ;;  %10444 = vrsqrt.f32 %v4101_v9  ;;  %v13189_v5 = vpop.xlane.xlu0 %4831  ;;  %v16239_v9 = vld [vmem:[#allocation16_spill] sm:$0xff] }
 0x8ab   : > { %10446 = vrsqrt.f32 %v4104_v22  ;;  %v13201_v22 = vsub.f32 %v16239_v9, %v3700_v52  ;;  %v4938_v52 = vsel %vm2033_vm3, %v12943_v34, 0.0  ;;  %v3826_v61 = vmul.f32 %v13194_v13, %v13194_v13 }
 0x8ac   : > { %3960 = vadd.xlane.f32.xlu1 %v3959_v10  ;;  %v4917_v10 = vsel %vm2033_vm3, %v12896_v48, 0.0  ;;  %v3965_v48 = vsel %vm2033_vm3, %v3819_v59, 0.0 }
 0x8ad   : > { %v3859_v24 = vpop.xlane.xlu1 %3858  ;;  %3981 = vadd.xlane.f32.xlu0 %v3980_v2  ;;  %v3828_v34 = vmul.f32 %v13201_v22, %v13201_v22  ;;  %v3986_v12 = vsel %vm2033_vm3, %v3826_v61, 0.0  ;;  %v4923_v61 = vsel %vm2033_vm3, %v12931_v60, 0.0  ;;  %v16245_v60 = vld [vmem:[#allocation8_spill] sm:$0xff] }
 0x8ae   : > { %v4039_v0 = vmul.f32 0.03125, %v3859_v24  ;;  %v3880_v51 = vpop.xlane.xlu0 %3879  ;;  %v16240_v24 = vld [vmem:[#allocation9_spill] sm:$0xff] }
 0x8af   : > { %v10441_v27 = vpop.eup %10440  ;;  %v13213_v9 = vsub.f32 %v16240_v24, %v3693_v41  ;;  %v4368_v41 = vadd.f32 %v13117_v47, %v4298_v21  ;;  %v3992_v21 = vsel %vm2033_vm3, %v3828_v34, 0.0 }
 0x8b0   : > { %v10443_v37 = vpop.eup %10442  ;;  %v4227_v2 = vmul.f32 %v10441_v27, %v12679_v62  ;;  %v4103_v18 = vadd.f32 1e-05, %v4039_v0  ;;  %4918 = vadd.xlane.f32.xlu1 %v4917_v10  ;;  %v4044_v27 = vmul.f32 0.03125, %v3874_v32 }
 0x8b1   : > { %v13215_v19 = vpop.xlane.xlu1 %4816  ;;  %4939 = vadd.xlane.f32.xlu0 %v4938_v52  ;;  %v4230_v10 = vmul.f32 %v10443_v37, %v12640_v35  ;;  %v3704_v52 = vmul.f32 0.03125, %v12769_v46  ;;  %v3821_v24 = vmul.f32 %v13213_v9, %v13213_v9  ;;  %v3830_v35 = vmul.f32 %v13219_v31, %v13219_v31 }
 0x8b2   : > { %16241 = vst [vmem:[#allocation117_spill] sm:$0xff] %v13215_v19  ;;  %v4297_v62 = vmul.f32 %v13104_v58, %v4227_v2  ;;  %10448 = vrsqrt.f32 %v4103_v18  ;;  %v13222_v0 = vpop.xlane.xlu0 %4837  ;;  %v3695_v18 = vmul.f32 0.03125, %v12749_v45  ;;  %v4108_v37 = vadd.f32 1e-05, %v4044_v27 }
 0x8b3   : > { %10450 = vrsqrt.f32 %v4106_v50  ;;  %v4300_v45 = vmul.f32 %v13104_v58, %v4230_v10  ;;  %v3971_v10 = vsel %vm2033_vm3, %v3821_v24, 0.0 }
 0x8b4   : > { %v4367_v59 = vadd.f32 %v13117_v47, %v4297_v62  ;;  %3966 = vadd.xlane.f32.xlu1 %v3965_v48  ;;  %v4432_v48 = vmax.f32 %v4368_v41, 0.0  ;;  %v13250_v27 = vsub.f32 %v16245_v60, %v3695_v18  ;;  %v3998_v18 = vsel %vm2033_vm3, %v3830_v35, 0.0 }
 0x8b5   : > { %v3865_v2 = vpop.xlane.xlu1 %3864  ;;  %3987 = vadd.xlane.f32.xlu0 %v3986_v12  ;;  %v16243_v12 = vld [vmem:[#allocation17_spill] sm:$0xff]  ;;  %v4929_v35 = vsel %vm2033_vm3, %v12960_v20, 0.0 }
 0x8b6   : > { %v4431_v50 = vmax.f32 %v4367_v59, 0.0  ;;  %v4041_v32 = vmul.f32 0.03125, %v3865_v2  ;;  %v3886_v19 = vpop.xlane.xlu0 %3885  ;;  %v13241_v54 = vsub.f32 %v16243_v12, %v3704_v52  ;;  %v3706_v59 = vmul.f32 0.03125, %v12805_v6  ;;  %v16248_v20 = vld [vmem:[#allocation13_spill] sm:$0xff]  ;;  %v16265_v12 = vld [vmem:[#allocation27_spill] sm:$0xff] }
 0x8b7   : > { %v10445_v46 = vpop.eup %10444  ;;  %v4046_v52 = vmul.f32 0.03125, %v3880_v51 }
 0x8b8   : > { %v10447_v62 = vpop.eup %10446  ;;  %v4105_v2 = vadd.f32 1e-05, %v4041_v32  ;;  %4924 = vadd.xlane.f32.xlu1 %v4923_v61  ;;  %10224 = vmatmul.mubr.msk.f32.vlgmr.msra.gmra.mxu1 %vm2033_vm3, %v4431_v50  ;;  %v4229_v34 = vmul.f32 %v10445_v46, %v12702_v17  ;;  %v4370_v50 = vadd.f32 %v13117_v47, %v4300_v45  ;;  %v16246_v32 = vld [vmem:[#allocation22_spill] sm:$0xff]  ;;  %v3832_v61 = vmul.f32 %v13241_v54, %v13241_v54 }
 0x8b9   : > { %v13246_v11 = vpop.xlane.xlu1 %4822  ;;  %3993 = vadd.xlane.f32.xlu0 %v3992_v21  ;;  %10226 = vmatprep.mubr.msk.f32.mxu1 %vm2033_vm3, %v4432_v48  ;;  %v4232_v17 = vmul.f32 %v10447_v62, %v12661_v28  ;;  %v13259_v21 = vsub.f32 %v16246_v32, %v3706_v59  ;;  %v3823_v28 = vmul.f32 %v13250_v27, %v13250_v27  ;;  %v4110_v59 = vadd.f32 1e-05, %v4046_v52 }
 0x8ba   : > { %16244 = vst [vmem:[#allocation118_spill] sm:$0xff] %v13246_v11  ;;  %10452 = vrsqrt.f32 %v4105_v2  ;;  %v13252_v41 = vpop.xlane.xlu0 %4843  ;;  %v4299_v6 = vmul.f32 %v13104_v58, %v4229_v34  ;;  %v4434_v2 = vmax.f32 %v4370_v50, 0.0 }
 0x8bb   : > { %10454 = vrsqrt.f32 %v4108_v37  ;;  %v3697_v37 = vmul.f32 0.03125, %v12778_v16  ;;  %v4302_v34 = vmul.f32 %v13104_v58, %v4232_v17  ;;  %v4004_v16 = vsel %vm2033_vm3, %v3832_v61, 0.0 }
 0x8bc   : > { %3972 = vadd.xlane.f32.xlu1 %v3971_v10  ;;  %v4369_v46 = vadd.f32 %v13117_v47, %v4299_v6  ;;  %v3977_v17 = vsel %vm2033_vm3, %v3823_v28, 0.0 }
 0x8bd   : > { %v3871_v24 = vpop.xlane.xlu1 %3870  ;;  %3999 = vadd.xlane.f32.xlu0 %v3998_v18  ;;  %v3834_v18 = vmul.f32 %v13259_v21, %v13259_v21  ;;  %v13280_v52 = vsub.f32 %v16248_v20, %v3697_v37  ;;  %v16250_v37 = vld [vmem:[#allocation80_spill] sm:$0xff] }
 0x8be   : > { %v4043_v51 = vmul.f32 0.03125, %v3871_v24  ;;  %v3892_v48 = vpop.xlane.xlu0 %3891  ;;  %v4433_v45 = vmax.f32 %v4369_v46, 0.0 }
 0x8bf   : > { %v10449_v62 = vpop.eup %10448 }
 0x8c0   : > { %v10451_v10 = vpop.eup %10450  ;;  %v4107_v6 = vadd.f32 1e-05, %v4043_v51  ;;  %4930 = vadd.xlane.f32.xlu1 %v4929_v35  ;;  %10227 = vmatmul.mubr.msk.f32.gmra.mxu1 %vm2033_vm3, %v4433_v45  ;;  %v4231_v46 = vmul.f32 %v10449_v62, %v12728_v7  ;;  %v4048_v51 = vmul.f32 0.03125, %v3886_v19  ;;  %v4372_v45 = vadd.f32 %v13117_v47, %v4302_v34  ;;  %v16249_v7 = vld [vmem:[#allocation94_spill] sm:$0xff] }
 0x8c1   : > { %v13276_v24 = vpop.xlane.xlu1 %4828  ;;  %4005 = vadd.xlane.f32.xlu0 %v4004_v16  ;;  %10229 = vmatprep.mubr.msk.f32.mxu1 %vm2033_vm3, %v4434_v2  ;;  %v4234_v62 = vmul.f32 %v10451_v10, %v16249_v7  ;;  %v4010_v35 = vsel %vm2033_vm3, %v3834_v18, 0.0  ;;  %v3699_v16 = vmul.f32 0.03125, %v16250_v37  ;;  %v4935_v34 = vsel %vm2033_vm3, %v13010_v14, 0.0  ;;  %v16251_v7 = vld [vmem:[#allocation97_spill] sm:$0xff]  ;;  %v16252_v37 = vld [vmem:[#allocation15_spill] sm:$0xff] }
 0x8c2   : > { %16247 = vst [vmem:[#allocation119_spill] sm:$0xff] %v13276_v24  ;;  %10456 = vrsqrt.f32 %v4107_v6  ;;  %v13282_v50 = vpop.xlane.xlu0 %4849  ;;  %v4301_v61 = vmul.f32 %v13104_v58, %v4231_v46  ;;  %v4112_v46 = vadd.f32 1e-05, %v4048_v51  ;;  %v4436_v10 = vmax.f32 %v4372_v45, 0.0  ;;  %v16254_v51 = vld [vmem:[#allocation29_spill] sm:$0xff] }
 0x8c3   : > { %10458 = vrsqrt.f32 %v4110_v59  ;;  %v3825_v59 = vmul.f32 %v13280_v52, %v13280_v52  ;;  %v4304_v18 = vmul.f32 %v13104_v58, %v4234_v62  ;;  %v3701_v24 = vmul.f32 0.03125, %v16254_v51  ;;  %v16256_v51 = vld [vmem:[#allocation14_spill] sm:$0xff] }
 0x8c4   : > { %3978 = vadd.xlane.f32.xlu1 %v3977_v17  ;;  %v4371_v2 = vadd.f32 %v13117_v47, %v4301_v61  ;;  %v4050_v62 = vmul.f32 0.03125, %v3892_v48 }
 0x8c5   : > { %v3877_v6 = vpop.xlane.xlu1 %3876  ;;  %4011 = vadd.xlane.f32.xlu0 %v4010_v35  ;;  %v3983_v45 = vsel %vm2033_vm3, %v3825_v59, 0.0 }
 0x8c6   : > { %v4045_v20 = vmul.f32 0.03125, %v3877_v6  ;;  %v3898_v60 = vpop.xlane.xlu0 %3897  ;;  %v4435_v28 = vmax.f32 %v4371_v2, 0.0  ;;  %v13299_v2 = vsub.f32 %v16252_v37, %v3699_v16  ;;  %v13316_v37 = vsub.f32 %v16256_v51, %v3701_v24  ;;  %v16258_v24 = vld [vmem:[#allocation19_spill] sm:$0xff] }
 0x8c7   : > { %v10453_v19 = vpop.eup %10452 }
 0x8c8   : > { %v10455_v17 = vpop.eup %10454  ;;  %v4109_v61 = vadd.f32 1e-05, %v4045_v20  ;;  %4936 = vadd.xlane.f32.xlu1 %v4935_v34  ;;  %10230 = vmatmul.mubr.msk.f32.gmra.mxu1 %vm2033_vm3, %v4435_v28  ;;  %v4233_v35 = vmul.f32 %v10453_v19, %v16251_v7  ;;  %v4374_v28 = vadd.f32 %v13117_v47, %v4304_v18  ;;  %v16255_v19 = vld [vmem:[#allocation95_spill] sm:$0xff]  ;;  %v4941_v18 = vsel %vm2033_vm3, %v13041_v56, 0.0 }
 0x8c9   : > { %v13301_v6 = vpop.xlane.xlu1 %4834  ;;  %10232 = vmatprep.mubr.msk.f32.mxu1 %vm2033_vm3, %v4436_v10  ;;  %v4236_v16 = vmul.f32 %v10455_v17, %v16255_v19  ;;  %v3703_v10 = vmul.f32 0.03125, %v12883_v40  ;;  %v16257_v19 = vld [vmem:[#allocation77_spill] sm:$0xff] }
 0x8ca   : > { %16253 = vst [vmem:[#allocation94_spill] sm:$0xff] %v13301_v6  ;;  %10460 = vrsqrt.f32 %v4109_v61  ;;  %v13305_v14 = vpop.xlane.xlu0 %4855  ;;  %v4303_v20 = vmul.f32 %v13104_v58, %v4233_v35  ;;  %v3827_v61 = vmul.f32 %v13299_v2, %v13299_v2  ;;  %v4114_v6 = vadd.f32 1e-05, %v4050_v62 }
 0x8cb   : > { %10462 = vrsqrt.f32 %v4112_v46  ;;  %v4438_v17 = vmax.f32 %v4374_v28, 0.0  ;;  %v13324_v51 = vsub.f32 %v16258_v24, %v3703_v10  ;;  %v3705_v62 = vmul.f32 0.03125, %v12912_v42 }
 0x8cc   : > { %3984 = vadd.xlane.f32.xlu1 %v3983_v45  ;;  %v4373_v34 = vadd.f32 %v13117_v47, %v4303_v20  ;;  %v4306_v45 = vmul.f32 %v13104_v58, %v4236_v16  ;;  %v3989_v56 = vsel %vm2033_vm3, %v3827_v61, 0.0  ;;  %v3829_v16 = vmul.f32 %v13316_v37, %v13316_v37  ;;  %v16262_v61 = vld [vmem:[#allocation41_spill] sm:$0xff] }
 0x8cd   : > { %v3883_v7 = vpop.xlane.xlu1 %3882  ;;  %v4052_v10 = vmul.f32 0.03125, %v3898_v60 }
 0x8ce   : > { %v4047_v59 = vmul.f32 0.03125, %v3883_v7  ;;  %v3904_v35 = vpop.xlane.xlu0 %3903  ;;  %v4437_v46 = vmax.f32 %v4373_v34, 0.0  ;;  %v16259_v7 = vld [vmem:[#allocation82_spill] sm:$0xff] }
 0x8cf   : > { %v10457_v48 = vpop.eup %10456  ;;  %v4944_v34 = vmul.f32 0.03125, %v16259_v7  ;;  %v16264_v7 = vld [vmem:[#allocation21_spill] sm:$0xff] }
 0x8d0   : > { %v10459_v20 = vpop.eup %10458  ;;  %v4111_v40 = vadd.f32 1e-05, %v4047_v59  ;;  %4942 = vadd.xlane.f32.xlu1 %v4941_v18  ;;  %10233 = vmatmul.mubr.msk.f32.gmra.mxu1 %vm2033_vm3, %v4437_v46  ;;  %v4235_v11 = vmul.f32 %v10457_v48, %v16257_v19  ;;  %v4376_v46 = vadd.f32 %v13117_v47, %v4306_v45  ;;  %v16261_v48 = vld [vmem:[#allocation96_spill] sm:$0xff]  ;;  %v13346_v24 = vsub.f32 %v16264_v7, %v3705_v62 }
 0x8d1   : > { %v13327_v32 = vpop.xlane.xlu1 %4840  ;;  %10235 = vmatprep.mubr.msk.f32.mxu1 %vm2033_vm3, %v4438_v17  ;;  %v4238_v18 = vmul.f32 %v10459_v20, %v16261_v48  ;;  %v13341_v19 = vsub.f32 %v16262_v61, %v4944_v34  ;;  %v4116_v20 = vadd.f32 1e-05, %v4052_v10 }
 0x8d2   : > { %16260 = vst [vmem:[#allocation80_spill] sm:$0xff] %v13327_v32  ;;  %10464 = vrsqrt.f32 %v4111_v40  ;;  %v13332_v28 = vpop.xlane.xlu0 %4861  ;;  %v4305_v59 = vmul.f32 %v13104_v58, %v4235_v11  ;;  %v3831_v40 = vmul.f32 %v13324_v51, %v13324_v51  ;;  %v3707_v11 = vmul.f32 0.03125, %v12941_v38 }
 0x8d3   : > { %10466 = vrsqrt.f32 %v4114_v6  ;;  %16263 = vst [vmem:[#allocation97_spill] sm:$0xff] %v13341_v19  ;;  %v4308_v34 = vmul.f32 %v13104_v58, %v4238_v18  ;;  %v5072_v38 = vmul.f32 %v13341_v19, %v13341_v19 }
 0x8d4   : > { %3990 = vadd.xlane.f32.xlu1 %v3989_v56  ;;  %v4375_v17 = vadd.f32 %v13117_v47, %v4305_v59  ;;  %v3995_v56 = vsel %vm2033_vm3, %v3829_v16, 0.0  ;;  %v4440_v59 = vmax.f32 %v4376_v46, 0.0  ;;  %v4001_v10 = vsel %vm2033_vm3, %v3831_v40, 0.0  ;;  %v16267_v16 = vld [vmem:[#allocation20_spill] sm:$0xff] }
 0x8d5   : > { %v3889_v42 = vpop.xlane.xlu1 %3888  ;;  %v13360_v46 = vsub.f32 %v16267_v16, %v3707_v11 }
 0x8d6   : > { %v4049_v60 = vmul.f32 0.03125, %v3889_v42  ;;  %v3910_v6 = vpop.xlane.xlu0 %3909  ;;  %v4439_v45 = vmax.f32 %v4375_v17, 0.0  ;;  %v3833_v17 = vmul.f32 %v13346_v24, %v13346_v24 }
 0x8d7   : > { %v10461_v32 = vpop.eup %10460  ;;  %v3835_v16 = vmul.f32 %v13360_v46, %v13360_v46 }
 0x8d8   : > { %v10463_v48 = vpop.eup %10462  ;;  %v4113_v61 = vadd.f32 1e-05, %v4049_v60  ;;  %3996 = vadd.xlane.f32.xlu1 %v3995_v56  ;;  %10236 = vmatmul.mubr.msk.f32.gmra.mxu1 %vm2033_vm3, %v4439_v45  ;;  %v4237_v62 = vmul.f32 %v10461_v32, %v16265_v12  ;;  %v4054_v32 = vmul.f32 0.03125, %v3904_v35  ;;  %v4378_v60 = vadd.f32 %v13117_v47, %v4308_v34  ;;  %v16268_v45 = vld [vmem:[#allocation98_spill] sm:$0xff] }
 0x8d9   : > { %v13355_v42 = vpop.xlane.xlu1 %4846  ;;  %10238 = vmatprep.mubr.msk.f32.mxu1 %vm2033_vm3, %v4440_v59  ;;  %v4240_v56 = vmul.f32 %v10463_v48, %v16268_v45  ;;  %v4007_v35 = vsel %vm2033_vm3, %v3833_v17, 0.0  ;;  %v16269_v48 = vld [vmem:[#allocation30_spill] sm:$0xff] }
 0x8da   : > { %16266 = vst [vmem:[#allocation29_spill] sm:$0xff] %v13355_v42  ;;  %10468 = vrsqrt.f32 %v4113_v61  ;;  %v13362_v18 = vpop.xlane.xlu0 %4867  ;;  %v4307_v12 = vmul.f32 %v13104_v58, %v4237_v62  ;;  %v4118_v62 = vadd.f32 1e-05, %v4054_v32  ;;  %v4013_v32 = vsel %vm2033_vm3, %v3835_v16, 0.0 }
 0x8db   : > { %10470 = vrsqrt.f32 %v4116_v20  ;;  %5200 = vrot.lane.b32.xlu0 %v5072_v38, %s11026_s22  ;;  %v4442_v20 = vmax.f32 %v4378_v60, 0.0  ;;  %v4310_v38 = vmul.f32 %v13104_v58, %v4240_v56  ;;  %v4056_v60 = vmul.f32 0.03125, %v3910_v6  ;;  %v16273_v6 = vld [vmem:[#allocation31_spill] sm:$0xff] }
 0x8dc   : > { %4002 = vadd.xlane.f32.xlu1 %v4001_v10  ;;  %v4377_v40 = vadd.f32 %v13117_v47, %v4307_v12 }
 0x8dd   : > { %v3895_v11 = vpop.xlane.xlu1 %3894  ;;  %v4380_v56 = vadd.f32 %v13117_v47, %v4310_v38 }
 0x8de   : > { %v4051_v59 = vmul.f32 0.03125, %v3895_v11  ;;  %v3916_v61 = vpop.xlane.xlu0 %3915  ;;  %v4441_v19 = vmax.f32 %v4377_v40, 0.0  ;;  %v16272_v40 = vld [vmem:[#allocation99_spill] sm:$0xff] }
 0x8df   : > { %v10465_v7 = vpop.eup %10464 }
 0x8e0   : > { %v10467_v34 = vpop.eup %10466  ;;  %v4115_v42 = vadd.f32 1e-05, %v4051_v59  ;;  %4008 = vadd.xlane.f32.xlu1 %v4007_v35  ;;  %10239 = vmatmul.mubr.msk.f32.gmra.mxu1 %vm2033_vm3, %v4441_v19  ;;  %v4239_v10 = vmul.f32 %v10465_v7, %v16269_v48  ;;  %v4120_v48 = vadd.f32 1e-05, %v4056_v60  ;;  %v4058_v60 = vmul.f32 0.03125, %v3916_v61 }
 0x8e1   : > { %v13377_v12 = vpop.xlane.xlu1 %4852  ;;  %10241 = vmatprep.mubr.msk.f32.mxu1 %vm2033_vm3, %v4442_v20  ;;  %v4242_v11 = vmul.f32 %v10467_v34, %v16272_v40  ;;  %v4945_v34 = vmul.f32 0.03125, %v12970_v8  ;;  %v16276_v40 = vld [vmem:[#allocation23_spill] sm:$0xff] }
 0x8e2   : > { %16270 = vst [vmem:[#allocation95_spill] sm:$0xff] %v13377_v12  ;;  %10472 = vrsqrt.f32 %v4115_v42  ;;  %v13380_v45 = vpop.xlane.xlu0 %4873  ;;  %v4309_v17 = vmul.f32 %v13104_v58, %v4239_v10  ;;  %v4444_v12 = vmax.f32 %v4380_v56, 0.0 }
 0x8e3   : > { %16271 = vst [vmem:[#allocation77_spill] sm:$0xff] %v13380_v45  ;;  %10474 = vrsqrt.f32 %v4118_v62  ;;  %v4312_v16 = vmul.f32 %v13104_v58, %v4242_v11  ;;  %v16283_v45 = vld [vmem:[#allocation79_spill] sm:$0xff] }
 0x8e4   : > { %4014 = vadd.xlane.f32.xlu1 %v4013_v32  ;;  %v4379_v19 = vadd.f32 %v13117_v47, %v4309_v17 }
 0x8e5   : > { %v3901_v7 = vpop.xlane.xlu1 %3900  ;;  %v4382_v56 = vadd.f32 %v13117_v47, %v4312_v16 }
 0x8e6   : > { %v4053_v59 = vmul.f32 0.03125, %v3901_v7  ;;  %v3922_v35 = vpop.xlane.xlu0 %3921  ;;  %v4443_v20 = vmax.f32 %v4379_v19, 0.0  ;;  %v16277_v7 = vld [vmem:[#allocation87_spill] sm:$0xff] }
 0x8e7   : > { %v10469_v42 = vpop.eup %10468 }
 0x8e8   : > { %v10471_v63 = vpop.eup %10470  ;;  %v4117_v10 = vadd.f32 1e-05, %v4053_v59  ;;  %10242 = vmatmul.mubr.msk.f32.gmra.mxu1 %vm2033_vm3, %v4443_v20  ;;  %v4241_v62 = vmul.f32 %v10469_v42, %v16273_v6  ;;  %v3708_v59 = vmul.f32 0.03125, %v16277_v7  ;;  %v16278_v42 = vld [vmem:[#allocation39_spill] sm:$0xff] }
 0x8e9   : > { %v13390_v38 = vpop.xlane.xlu1 %4858  ;;  %10244 = vmatprep.mubr.msk.f32.mxu1 %vm2033_vm3, %v4444_v12  ;;  %v4244_v11 = vmul.f32 %v10471_v63, %v16276_v40  ;;  %v13402_v12 = vsub.f32 %v16278_v42, %v4945_v34  ;;  %v16280_v63 = vld [vmem:[#allocation33_spill] sm:$0xff]  ;;  %v16281_v40 = vld [vmem:[#allocation24_spill] sm:$0xff]  ;;  %v3710_v34 = vmul.f32 0.03125, %v16283_v45 }
 0x8ea   : > { %16274 = vst [vmem:[#allocation82_spill] sm:$0xff] %v13390_v38  ;;  %10476 = vrsqrt.f32 %v4117_v10  ;;  %v13394_v32 = vpop.xlane.xlu0 %4879  ;;  %v4311_v17 = vmul.f32 %v13104_v58, %v4241_v62  ;;  %v4446_v62 = vmax.f32 %v4382_v56, 0.0  ;;  %v13408_v7 = vsub.f32 %v16281_v40, %v3708_v59  ;;  %v16285_v59 = vld [vmem:[#allocation28_spill] sm:$0xff] }
 0x8eb   : > { %16275 = vst [vmem:[#allocation96_spill] sm:$0xff] %v13394_v32  ;;  %10478 = vrsqrt.f32 %v4120_v48  ;;  %16279 = vst [vmem:[#allocation41_spill] sm:$0xff] %v13402_v12  ;;  %v4122_v32 = vadd.f32 1e-05, %v4058_v60  ;;  %v4314_v61 = vmul.f32 %v13104_v58, %v4244_v11  ;;  %v5073_v60 = vmul.f32 %v13402_v12, %v13402_v12 }
 0x8ec   : > { %v4381_v19 = vadd.f32 %v13117_v47, %v4311_v17  ;;  %16282 = vst [vmem:[#allocation27_spill] sm:$0xff] %v13408_v7 }
 0x8ed   : > { %v3907_v20 = vpop.xlane.xlu1 %3906 }
 0x8ee   : > { %v4055_v8 = vmul.f32 0.03125, %v3907_v20  ;;  %v3928_v10 = vpop.xlane.xlu0 %3927  ;;  %v4445_v6 = vmax.f32 %v4381_v19, 0.0  ;;  %v4060_v19 = vmul.f32 0.03125, %v3922_v35 }
 0x8ef   : > { %v10473_v38 = vpop.eup %10472 }
 0x8f0   : > { %v10475_v48 = vpop.eup %10474  ;;  %v4119_v16 = vadd.f32 1e-05, %v4055_v8  ;;  %10245 = vmatmul.mubr.msk.f32.gmra.mxu1 %vm2033_vm3, %v4445_v6  ;;  %v4243_v17 = vmul.f32 %v10473_v38, %v16280_v63  ;;  %v4384_v38 = vadd.f32 %v13117_v47, %v4314_v61  ;;  %v16286_v8 = vld [vmem:[#allocation26_spill] sm:$0xff]  ;;  %v4124_v35 = vadd.f32 1e-05, %v4060_v19 }
 0x8f1   : > { %v13411_v42 = vpop.xlane.xlu1 %4864  ;;  %10247 = vmatprep.mubr.msk.f32.mxu1 %vm2033_vm3, %v4446_v62  ;;  %v4246_v20 = vmul.f32 %v10475_v48, %v16285_v59  ;;  %v13423_v6 = vsub.f32 %v16286_v8, %v3710_v34  ;;  %v16288_v34 = vld [vmem:[#allocation35_spill] sm:$0xff] }
 0x8f2   : > { %16284 = vst [vmem:[#allocation98_spill] sm:$0xff] %v13411_v42  ;;  %10480 = vrsqrt.f32 %v4119_v16  ;;  %v13416_v56 = vpop.xlane.xlu0 %4885  ;;  %v4313_v11 = vmul.f32 %v13104_v58, %v4243_v17  ;;  %v3836_v16 = vmul.f32 %v13408_v7, %v13408_v7  ;;  %v4448_v42 = vmax.f32 %v4384_v38, 0.0 }
 0x8f3   : > { %10482 = vrsqrt.f32 %v4122_v32  ;;  %16287 = vst [vmem:[#allocation30_spill] sm:$0xff] %v13423_v6  ;;  %v4316_v61 = vmul.f32 %v13104_v58, %v4246_v20  ;;  %v4062_v20 = vmul.f32 0.03125, %v3928_v10 }
 0x8f4   : > { %v4383_v45 = vadd.f32 %v13117_v47, %v4313_v11 }
 0x8f5   : > { %5202 = vrot.lane.b32.xlu1 %v5073_v60, %s11026_s22  ;;  %v3913_v62 = vpop.xlane.xlu1 %3912  ;;  %v4016_v60 = vsel %vm2033_vm3, %v3836_v16, 0.0 }
 0x8f6   : > { %v4057_v63 = vmul.f32 0.03125, %v3913_v62  ;;  %v3934_v12 = vpop.xlane.xlu0 %3933  ;;  %v4447_v17 = vmax.f32 %v4383_v45, 0.0  ;;  %v3838_v45 = vmul.f32 %v13423_v6, %v13423_v6  ;;  %v4386_v62 = vadd.f32 %v13117_v47, %v4316_v61  ;;  %v16291_v61 = vld [vmem:[#allocation78_spill] sm:$0xff] }
 0x8f7   : > { %v10477_v32 = vpop.eup %10476  ;;  %v4126_v6 = vadd.f32 1e-05, %v4062_v20  ;;  %v4064_v20 = vmul.f32 0.03125, %v3934_v12 }
 0x8f8   : > { %v10479_v48 = vpop.eup %10478  ;;  %v4121_v59 = vadd.f32 1e-05, %v4057_v63  ;;  %10248 = vmatmul.mubr.msk.f32.gmra.mxu1 %vm2033_vm3, %v4447_v17  ;;  %v4245_v11 = vmul.f32 %v10477_v32, %v16288_v34  ;;  %v16290_v63 = vld [vmem:[#allocation86_spill] sm:$0xff]  ;;  %v4022_v16 = vsel %vm2033_vm3, %v3838_v45, 0.0  ;;  %v4450_v40 = vmax.f32 %v4386_v62, 0.0 }
 0x8f9   : > { %v13431_v8 = vpop.xlane.xlu1 %4870  ;;  %10250 = vmatprep.mubr.msk.f32.mxu1 %vm2033_vm3, %v4448_v42  ;;  %v4248_v17 = vmul.f32 %v10479_v48, %v16290_v63 }
 0x8fa   : > { %16289 = vst [vmem:[#allocation99_spill] sm:$0xff] %v13431_v8  ;;  %10484 = vrsqrt.f32 %v4121_v59  ;;  %4017 = vadd.xlane.f32.xlu0 %v4016_v60  ;;  %v13437_v19 = vpop.xlane.xlu0 %4891  ;;  %v4315_v38 = vmul.f32 %v13104_v58, %v4245_v11 }
 0x8fb   : > { %10486 = vrsqrt.f32 %v4124_v35  ;;  %v4318_v11 = vmul.f32 %v13104_v58, %v4248_v17  ;;  %v16294_v17 = vld [vmem:[#allocation100_spill] sm:$0xff] }
 0x8fc   : > { %v4385_v32 = vadd.f32 %v13117_v47, %v4315_v38 }
 0x8fd   : > { %v3919_v42 = vpop.xlane.xlu1 %3918  ;;  %v4388_v62 = vadd.f32 %v13117_v47, %v4318_v11  ;;  %v16296_v11 = vld [vmem:[#allocation81_spill] sm:$0xff] }
 0x8fe   : > { %v4059_v34 = vmul.f32 0.03125, %v3919_v42  ;;  %4023 = vadd.xlane.f32.xlu0 %v4022_v16  ;;  %v3940_v8 = vpop.xlane.xlu0 %3939  ;;  %v4449_v59 = vmax.f32 %v4385_v32, 0.0 }
 0x8ff   : > { %v10481_v60 = vpop.eup %10480 }
 0x900   : > { %v10483_v35 = vpop.eup %10482  ;;  %v4123_v10 = vadd.f32 1e-05, %v4059_v34  ;;  %10251 = vmatmul.mubr.msk.f32.gmra.mxu1 %vm2033_vm3, %v4449_v59  ;;  %v4247_v48 = vmul.f32 %v10481_v60, %v16291_v61 }
 0x901   : > { %v13447_v63 = vpop.xlane.xlu1 %4876  ;;  %10253 = vmatprep.mubr.msk.f32.mxu1 %vm2033_vm3, %v4450_v40  ;;  %v4250_v32 = vmul.f32 %v10483_v35, %v16294_v17  ;;  %v4452_v40 = vmax.f32 %v4388_v62, 0.0  ;;  %v4948_v35 = vmul.f32 0.03125, %v16296_v11  ;;  %v16298_v17 = vld [vmem:[#allocation101_spill] sm:$0xff] }
 0x902   : > { %16292 = vst [vmem:[#allocation31_spill] sm:$0xff] %v13447_v63  ;;  %10488 = vrsqrt.f32 %v4123_v10  ;;  %v13450_v45 = vpop.xlane.xlu0 %4897  ;;  %v4317_v38 = vmul.f32 %v13104_v58, %v4247_v48  ;;  %v4128_v63 = vadd.f32 1e-05, %v4064_v20  ;;  %v4066_v20 = vmul.f32 0.03125, %v3940_v8 }
 0x903   : > { %16293 = vst [vmem:[#allocation23_spill] sm:$0xff] %v13450_v45  ;;  %10490 = vrsqrt.f32 %v4126_v6  ;;  %v4320_v10 = vmul.f32 %v13104_v58, %v4250_v32 }
 0x904   : > { %v4387_v42 = vadd.f32 %v13117_v47, %v4317_v38 }
 0x905   : > { %v3925_v16 = vpop.xlane.xlu1 %3924  ;;  %v4390_v62 = vadd.f32 %v13117_v47, %v4320_v10  ;;  %v16301_v10 = vld [vmem:[#allocation25_spill] sm:$0xff] }
 0x906   : > { %v4061_v34 = vmul.f32 0.03125, %v3925_v16  ;;  %v3946_v59 = vpop.xlane.xlu0 %3945  ;;  %v4451_v60 = vmax.f32 %v4387_v42, 0.0  ;;  %v3709_v42 = vmul.f32 0.03125, %v12991_v33 }
 0x907   : > { %v10485_v61 = vpop.eup %10484 }
 0x908   : > { %v10487_v7 = vpop.eup %10486  ;;  %v4125_v45 = vadd.f32 1e-05, %v4061_v34  ;;  %10254 = vmatmul.mubr.msk.f32.gmra.mxu1 %vm2033_vm3, %v4451_v60  ;;  %v4249_v12 = vmul.f32 %v10485_v61, %v12958_v26  ;;  %v16299_v34 = vld [vmem:[#allocation43_spill] sm:$0xff] }
 0x909   : > { %v13459_v6 = vpop.xlane.xlu1 %4882  ;;  %10256 = vmatprep.mubr.msk.f32.mxu1 %vm2033_vm3, %v4452_v40  ;;  %v4252_v32 = vmul.f32 %v10487_v7, %v16298_v17  ;;  %v13471_v60 = vsub.f32 %v16299_v34, %v4948_v35  ;;  %v4068_v17 = vmul.f32 0.03125, %v3946_v59 }
 0x90a   : > { %16295 = vst [vmem:[#allocation87_spill] sm:$0xff] %v13459_v6  ;;  %10492 = vrsqrt.f32 %v4125_v45  ;;  %v13463_v48 = vpop.xlane.xlu0 %4903  ;;  %v4319_v38 = vmul.f32 %v13104_v58, %v4249_v12  ;;  %v4130_v6 = vadd.f32 1e-05, %v4066_v20  ;;  %v4454_v12 = vmax.f32 %v4390_v62, 0.0 }
 0x90b   : > { %16297 = vst [vmem:[#allocation39_spill] sm:$0xff] %v13463_v48  ;;  %10494 = vrsqrt.f32 %v4128_v63  ;;  %16300 = vst [vmem:[#allocation33_spill] sm:$0xff] %v13471_v60  ;;  %v4322_v8 = vmul.f32 %v13104_v58, %v4252_v32  ;;  %v13475_v48 = vsub.f32 %v16301_v10, %v3709_v42  ;;  %v5076_v35 = vmul.f32 %v13471_v60, %v13471_v60  ;;  %v16302_v42 = vld [vmem:[#allocation102_spill] sm:$0xff]  ;;  %v16303_v10 = vld [vmem:[#allocation32_spill] sm:$0xff] }
 0x90c   : > { %v4389_v26 = vadd.f32 %v13117_v47, %v4319_v38 }
 0x90d   : > { %v3931_v16 = vpop.xlane.xlu1 %3930  ;;  %v4392_v32 = vadd.f32 %v13117_v47, %v4322_v8 }
 0x90e   : > { %v4063_v61 = vmul.f32 0.03125, %v3931_v16  ;;  %v3952_v45 = vpop.xlane.xlu0 %3951  ;;  %v4453_v40 = vmax.f32 %v4389_v26, 0.0  ;;  %v3837_v16 = vmul.f32 %v13475_v48, %v13475_v48 }
 0x90f   : > { %v10489_v11 = vpop.eup %10488 }
 0x910   : > { %v10491_v63 = vpop.eup %10490  ;;  %v4127_v7 = vadd.f32 1e-05, %v4063_v61  ;;  %10257 = vmatmul.mubr.msk.f32.gmra.mxu1 %vm2033_vm3, %v4453_v40  ;;  %v4251_v33 = vmul.f32 %v10489_v11, %v12984_v43 }
 0x911   : > { %v13479_v38 = vpop.xlane.xlu1 %4888  ;;  %10259 = vmatprep.mubr.msk.f32.mxu1 %vm2033_vm3, %v4454_v12  ;;  %v4254_v26 = vmul.f32 %v10491_v63, %v16302_v42  ;;  %v4019_v63 = vsel %vm2033_vm3, %v3837_v16, 0.0 }
 0x912   : > { %10496 = vrsqrt.f32 %v4127_v7  ;;  %v13484_v20 = vpop.xlane.xlu0 %4909  ;;  %v4321_v62 = vmul.f32 %v13104_v58, %v4251_v33  ;;  %v4132_v7 = vadd.f32 1e-05, %v4068_v17  ;;  %v4456_v33 = vmax.f32 %v4392_v32, 0.0 }
 0x913   : > { %10498 = vrsqrt.f32 %v4130_v6  ;;  %v4324_v59 = vmul.f32 %v13104_v58, %v4254_v26  ;;  %v4070_v32 = vmul.f32 0.03125, %v3952_v45 }
 0x914   : > { %5208 = vrot.lane.b32.xlu0 %v5076_v35, %s11026_s22  ;;  %v4391_v43 = vadd.f32 %v13117_v47, %v4321_v62 }
 0x915   : > { %v3937_v34 = vpop.xlane.xlu1 %3936  ;;  %v4394_v26 = vadd.f32 %v13117_v47, %v4324_v59 }
 0x916   : > { %v4065_v61 = vmul.f32 0.03125, %v3937_v34  ;;  %v3958_v40 = vpop.xlane.xlu0 %3957  ;;  %v4455_v11 = vmax.f32 %v4391_v43, 0.0 }
 0x917   : > { %v10493_v12 = vpop.eup %10492 }
 0x918   : > { %v10495_v6 = vpop.eup %10494  ;;  %v4129_v8 = vadd.f32 1e-05, %v4065_v61  ;;  %10260 = vmatmul.mubr.msk.f32.gmra.mxu1 %vm2033_vm3, %v4455_v11  ;;  %v4253_v35 = vmul.f32 %v10493_v12, %v13008_v3 }
 0x919   : > { %4020 = vadd.xlane.f32.xlu1 %v4019_v63  ;;  %v13497_v62 = vpop.xlane.xlu1 %4894  ;;  %10262 = vmatprep.mubr.msk.f32.mxu1 %vm2033_vm3, %v4456_v33  ;;  %v4256_v43 = vmul.f32 %v10495_v6, %v12964_v55  ;;  %v4134_v63 = vadd.f32 1e-05, %v4070_v32  ;;  %v4458_v33 = vmax.f32 %v4394_v26, 0.0  ;;  %v13518_v6 = vld [vmem:[%s15754_s9] ss:$0 sm:$0xff]  ;;  %v16305_v32 = vld [vmem:[#allocation84_spill] sm:$0xff] }
 0x91a   : > { %10500 = vrsqrt.f32 %v4129_v8  ;;  %v13500_v42 = vpop.xlane.xlu0 %4915  ;;  %v4323_v17 = vmul.f32 %v13104_v58, %v4253_v35  ;;  %v4947_v35 = vmul.f32 0.03125, %v16303_v10  ;;  %v4072_v10 = vmul.f32 0.03125, %v3958_v40  ;;  %v16306_v26 = vld [vmem:[#allocation40_spill] sm:$0xff] }
 0x91b   : > { %10502 = vrsqrt.f32 %v4132_v7  ;;  %v4326_v8 = vmul.f32 %v13104_v58, %v4256_v43 }
 0x91c   : > { %v4393_v16 = vadd.f32 %v13117_v47, %v4323_v17  ;;  %v13524_v43 = vsub.f32 %v16306_v26, %v4947_v35 }
 0x91d   : > { %v3943_v34 = vpop.xlane.xlu1 %3942  ;;  %v4396_v17 = vadd.f32 %v13117_v47, %v4326_v8  ;;  %v4136_v47 = vadd.f32 1e-05, %v4072_v10 }
 0x91e   : > { %v4067_v3 = vmul.f32 0.03125, %v3943_v34  ;;  %v3964_v61 = vpop.xlane.xlu0 %3963  ;;  %v4457_v11 = vmax.f32 %v4393_v16, 0.0  ;;  %16307 = vst [vmem:[#allocation28_spill] sm:$0xff] %v13524_v43  ;;  %v13529_v16 = vld [vmem:[%s15755_s10] ss:$0 sm:$0xff] }
 0x91f   : > { %v10497_v12 = vpop.eup %10496  ;;  %v4460_v8 = vmax.f32 %v4396_v17, 0.0 }
 0x920   : > { %v10499_v60 = vpop.eup %10498  ;;  %v4131_v7 = vadd.f32 1e-05, %v4067_v3  ;;  %10263 = vmatmul.mubr.msk.f32.gmra.mxu1 %vm2033_vm3, %v4457_v11  ;;  %v4255_v45 = vmul.f32 %v10497_v12, %v13034_v49  ;;  %v16308_v11 = vld [vmem:[#allocation38_spill] sm:$0xff] }
 0x921   : > { %v13510_v55 = vpop.xlane.xlu1 %4900  ;;  %10265 = vmatprep.mubr.msk.f32.mxu1 %vm2033_vm3, %v4458_v33  ;;  %v4258_v49 = vmul.f32 %v10499_v60, %v16305_v32  ;;  %v3712_v12 = vmul.f32 0.03125, %v16308_v11 }
 0x922   : > { %16304 = vst [vmem:[#allocation79_spill] sm:$0xff] %v13510_v55  ;;  %10504 = vrsqrt.f32 %v4131_v7  ;;  %v13513_v59 = vpop.xlane.xlu0 %4921  ;;  %v4325_v58 = vmul.f32 %v13518_v6, %v4255_v45  ;;  %v5075_v45 = vmul.f32 %v13524_v43, %v13524_v43 }
 0x923   : > { %10506 = vrsqrt.f32 %v4134_v63  ;;  %v4328_v60 = vmul.f32 %v13518_v6, %v4258_v49  ;;  %v4074_v49 = vmul.f32 0.03125, %v3964_v61 }
 0x924   : > { %v4395_v34 = vadd.f32 %v13529_v16, %v4325_v58 }
 0x925   : > { %v3949_v3 = vpop.xlane.xlu1 %3948  ;;  %v4398_v11 = vadd.f32 %v13529_v16, %v4328_v60 }
 0x926   : > { %v4069_v33 = vmul.f32 0.03125, %v3949_v3  ;;  %v3970_v63 = vpop.xlane.xlu0 %3969  ;;  %v4459_v40 = vmax.f32 %v4395_v34, 0.0  ;;  %v16310_v3 = vld [vmem:[#allocation83_spill] sm:$0xff] }
 0x927   : > { %v10501_v7 = vpop.eup %10500  ;;  %v13542_v34 = vsub.f32 %v16310_v3, %v3712_v12  ;;  %v4462_v55 = vmax.f32 %v4398_v11, 0.0  ;;  %v4076_v11 = vmul.f32 0.03125, %v3970_v63 }
 0x928   : > { %v10503_v35 = vpop.eup %10502  ;;  %v4133_v32 = vadd.f32 1e-05, %v4069_v33  ;;  %10266 = vmatmul.mubr.msk.f32.gmra.mxu1 %vm2033_vm3, %v4459_v40  ;;  %v4257_v58 = vmul.f32 %v10501_v7, %v13058_v4  ;;  %v16312_v33 = vld [vmem:[#allocation105_spill] sm:$0xff] }
 0x929   : > { %v13538_v26 = vpop.xlane.xlu1 %4906  ;;  %10268 = vmatprep.mubr.msk.f32.mxu1 %vm2033_vm3, %v4460_v8  ;;  %16311 = vst [vmem:[#allocation86_spill] sm:$0xff] %v13542_v34  ;;  %v4260_v4 = vmul.f32 %v10503_v35, %v16312_v33 }
 0x92a   : > { %16309 = vst [vmem:[#allocation35_spill] sm:$0xff] %v13538_v26  ;;  %10508 = vrsqrt.f32 %v4133_v32  ;;  %5206 = vrot.lane.b32.xlu1 %v5075_v45, %s11026_s22  ;;  %v13545_v10 = vpop.xlane.xlu0 %4927  ;;  %v4327_v17 = vmul.f32 %v13518_v6, %v4257_v58  ;;  %v3840_v32 = vmul.f32 %v13542_v34, %v13542_v34  ;;  %v4138_v26 = vadd.f32 1e-05, %v4074_v49 }
 0x92b   : > { %10510 = vrsqrt.f32 %v4136_v47  ;;  %v4330_v58 = vmul.f32 %v13518_v6, %v4260_v4 }
 0x92c   : > { %v4397_v40 = vadd.f32 %v13529_v16, %v4327_v17  ;;  %v4028_v33 = vsel %vm2033_vm3, %v3840_v32, 0.0 }
 0x92d   : > { %v3955_v7 = vpop.xlane.xlu1 %3954  ;;  %v4400_v4 = vadd.f32 %v13529_v16, %v4330_v58 }
 0x92e   : > { %v4071_v8 = vmul.f32 0.03125, %v3955_v7  ;;  %v3976_v43 = vpop.xlane.xlu0 %3975  ;;  %v4461_v12 = vmax.f32 %v4397_v40, 0.0 }
 0x92f   : > { %v10505_v45 = vpop.eup %10504 }
 0x930   : > { %v10507_v47 = vpop.eup %10506  ;;  %v4135_v61 = vadd.f32 1e-05, %v4071_v8  ;;  %10269 = vmatmul.mubr.msk.f32.gmra.mxu1 %vm2033_vm3, %v4461_v12  ;;  %v4259_v60 = vmul.f32 %v10505_v45, %v13082_v39  ;;  %v4140_v45 = vadd.f32 1e-05, %v4076_v11 }
 0x931   : > { %v13556_v35 = vpop.xlane.xlu1 %4912  ;;  %10271 = vmatprep.mubr.msk.f32.mxu1 %vm2033_vm3, %v4462_v55  ;;  %v4262_v40 = vmul.f32 %v10507_v47, %v13038_v23 }
 0x932   : > { %16313 = vst [vmem:[#allocation78_spill] sm:$0xff] %v13556_v35  ;;  %10512 = vrsqrt.f32 %v4135_v61  ;;  %v13559_v17 = vpop.xlane.xlu0 %4933  ;;  %v4329_v49 = vmul.f32 %v13518_v6, %v4259_v60  ;;  %v4464_v61 = vmax.f32 %v4400_v4, 0.0 }
 0x933   : > { %10514 = vrsqrt.f32 %v4138_v26  ;;  %4029 = vadd.xlane.f32.xlu0 %v4028_v33  ;;  %v4332_v35 = vmul.f32 %v13518_v6, %v4262_v40  ;;  %v4078_v26 = vmul.f32 0.03125, %v3976_v43 }
 0x934   : > { %v4399_v39 = vadd.f32 %v13529_v16, %v4329_v49 }
 0x935   : > { %v3961_v7 = vpop.xlane.xlu1 %3960  ;;  %v4402_v47 = vadd.f32 %v13529_v16, %v4332_v35  ;;  %v4142_v11 = vadd.f32 1e-05, %v4078_v26  ;;  %v16316_v35 = vld [vmem:[#allocation88_spill] sm:$0xff] }
 0x936   : > { %v4073_v8 = vmul.f32 0.03125, %v3961_v7  ;;  %v4463_v12 = vmax.f32 %v4399_v39, 0.0  ;;  %v3982_v60 = vpop.xlane.xlu0 %3981  ;;  %v16315_v7 = vld [vmem:[#allocation85_spill] sm:$0xff] }
 0x937   : > { %v10509_v55 = vpop.eup %10508 }
 0x938   : > { %v10511_v32 = vpop.eup %10510  ;;  %v4137_v34 = vadd.f32 1e-05, %v4073_v8  ;;  %10272 = vmatmul.mubr.msk.f32.gmra.mxu1 %vm2033_vm3, %v4463_v12  ;;  %v4261_v63 = vmul.f32 %v10509_v55, %v13110_v15  ;;  %v4950_v8 = vmul.f32 0.03125, %v16315_v7  ;;  %v4466_v12 = vmax.f32 %v4402_v47, 0.0  ;;  %v16319_v47 = vld [vmem:[#allocation45_spill] sm:$0xff]  ;;  %v16322_v7 = vld [vmem:[#allocation36_spill] sm:$0xff] }
 0x939   : > { %v13569_v58 = vpop.xlane.xlu1 %4918  ;;  %10274 = vmatprep.mubr.msk.f32.mxu1 %vm2033_vm3, %v4464_v61  ;;  %v4264_v33 = vmul.f32 %v10511_v32, %v13062_v1  ;;  %v3711_v61 = vmul.f32 0.03125, %v16316_v35  ;;  %v16317_v32 = vld [vmem:[#allocation103_spill] sm:$0xff] }
 0x93a   : > { %16314 = vst [vmem:[#allocation100_spill] sm:$0xff] %v13569_v58  ;;  %10516 = vrsqrt.f32 %v4137_v34  ;;  %v4331_v23 = vmul.f32 %v13518_v6, %v4261_v63  ;;  %v13576_v40 = vpop.xlane.xlu0 %4939  ;;  %v4952_v63 = vmul.f32 0.03125, %v16317_v32  ;;  %v16323_v35 = vld [vmem:[#allocation47_spill] sm:$0xff] }
 0x93b   : > { %10518 = vrsqrt.f32 %v4140_v45  ;;  %v4334_v34 = vmul.f32 %v13518_v6, %v4264_v33  ;;  %v13589_v33 = vsub.f32 %v16319_v47, %v4950_v8 }
 0x93c   : > { %v4401_v49 = vadd.f32 %v13529_v16, %v4331_v23  ;;  %10520 = vrsqrt.f32 %v4142_v11  ;;  %v13595_v11 = vsub.f32 %v16322_v7, %v3711_v61  ;;  %v13598_v32 = vsub.f32 %v16323_v35, %v4952_v63 }
 0x93d   : > { %v3967_v4 = vpop.xlane.xlu1 %3966  ;;  %16320 = vst [vmem:[#allocation101_spill] sm:$0xff] %v13589_v33 }
 0x93e   : > { %v4075_v15 = vmul.f32 0.03125, %v3967_v4  ;;  %v4465_v43 = vmax.f32 %v4401_v49, 0.0  ;;  %v4080_v49 = vmul.f32 0.03125, %v3982_v60  ;;  %v4404_v4 = vadd.f32 %v13529_v16, %v4334_v34  ;;  %16324 = vst [vmem:[#allocation43_spill] sm:$0xff] %v13598_v32 }
 0x93f   : > { %v10513_v39 = vpop.eup %10512  ;;  %v5078_v60 = vmul.f32 %v13589_v33, %v13589_v33  ;;  %v5080_v63 = vmul.f32 %v13598_v32, %v13598_v32 }
 0x940   : > { %v10515_v55 = vpop.eup %10514  ;;  %v4139_v45 = vadd.f32 1e-05, %v4075_v15  ;;  %10275 = vmatmul.mubr.msk.f32.gmra.mxu1 %vm2033_vm3, %v4465_v43  ;;  %v4263_v1 = vmul.f32 %v10513_v39, %v13144_v53  ;;  %v16321_v15 = vld [vmem:[#allocation109_spill] sm:$0xff]  ;;  %v3988_v43 = vpop.xlane.xlu0 %3987  ;;  %v4144_v34 = vadd.f32 1e-05, %v4080_v49  ;;  %v3839_v49 = vmul.f32 %v13595_v11, %v13595_v11 }
 0x941   : > { %v13584_v26 = vpop.xlane.xlu1 %4924  ;;  %10277 = vmatprep.mubr.msk.f32.mxu1 %vm2033_vm3, %v4466_v12  ;;  %v4266_v53 = vmul.f32 %v10515_v55, %v16321_v15  ;;  %v4468_v55 = vmax.f32 %v4404_v4, 0.0  ;;  %v16327_v4 = vld [vmem:[#allocation49_spill] sm:$0xff] }
 0x942   : > { %16318 = vst [vmem:[#allocation81_spill] sm:$0xff] %v13584_v26  ;;  %10522 = vrsqrt.f32 %v4139_v45  ;;  %v4333_v23 = vmul.f32 %v13518_v6, %v4263_v1  ;;  %v16325_v45 = vld [vmem:[#allocation104_spill] sm:$0xff] }
 0x943   : > { %v4954_v1 = vmul.f32 0.03125, %v16325_v45  ;;  %v4336_v15 = vmul.f32 %v13518_v6, %v4266_v53  ;;  %v4082_v45 = vmul.f32 0.03125, %v3988_v43 }
 0x944   : > { %v4403_v39 = vadd.f32 %v13529_v16, %v4333_v23 }
 0x945   : > { %v3973_v12 = vpop.xlane.xlu1 %3972  ;;  %v13615_v53 = vsub.f32 %v16327_v4, %v4954_v1  ;;  %v4025_v1 = vsel %vm2033_vm3, %v3839_v49, 0.0 }
 0x946   : > { %v4077_v26 = vmul.f32 0.03125, %v3973_v12  ;;  %v4467_v8 = vmax.f32 %v4403_v39, 0.0  ;;  %v3994_v12 = vpop.xlane.xlu0 %3993 }
 0x947   : > { %v10517_v47 = vpop.eup %10516  ;;  %16328 = vst [vmem:[#allocation32_spill] sm:$0xff] %v13615_v53 }
 0x948   : > { %v10519_v23 = vpop.eup %10518  ;;  %v4141_v58 = vadd.f32 1e-05, %v4077_v26  ;;  %10278 = vmatmul.mubr.msk.f32.gmra.mxu1 %vm2033_vm3, %v4467_v8  ;;  %v4265_v61 = vmul.f32 %v10517_v47, %v13166_v57  ;;  %v16329_v26 = vld [vmem:[#allocation106_spill] sm:$0xff]  ;;  %v4406_v8 = vadd.f32 %v13529_v16, %v4336_v15 }
 0x949   : > { %v13608_v35 = vpop.xlane.xlu1 %4930  ;;  %5212 = vrot.lane.b32.xlu0 %v5078_v60, %s11026_s22  ;;  %10280 = vmatprep.mubr.msk.f32.mxu1 %vm2033_vm3, %v4468_v55  ;;  %v4956_v39 = vmul.f32 0.03125, %v16329_v26  ;;  %v4268_v47 = vmul.f32 %v10519_v23, %v13122_v25  ;;  %v10521_v4 = vpop.eup %10520  ;;  %v5082_v26 = vmul.f32 %v13615_v53, %v13615_v53  ;;  %v4146_v23 = vadd.f32 1e-05, %v4082_v45  ;;  %v16333_v53 = vld [vmem:[#allocation107_spill] sm:$0xff] }
 0x94a   : > { %16326 = vst [vmem:[#allocation102_spill] sm:$0xff] %v13608_v35  ;;  %10524 = vrsqrt.f32 %v4141_v58  ;;  %v4335_v57 = vmul.f32 %v13518_v6, %v4265_v61  ;;  %v16330_v58 = vld [vmem:[#allocation51_spill] sm:$0xff]  ;;  %v16332_v61 = vld [vmem:[#allocation37_spill] sm:$0xff]  ;;  %v4960_v35 = vmul.f32 0.03125, %v16333_v53 }
 0x94b   : > { %10526 = vrsqrt.f32 %v4144_v34  ;;  %v13627_v32 = vsub.f32 %v16330_v58, %v4956_v39  ;;  %v4958_v25 = vmul.f32 0.03125, %v16332_v61  ;;  %v4338_v33 = vmul.f32 %v13518_v6, %v4268_v47 }
 0x94c   : > { %v4405_v60 = vadd.f32 %v13529_v16, %v4335_v57  ;;  %v4470_v57 = vmax.f32 %v4406_v8, 0.0  ;;  %v4270_v47 = vmul.f32 %v10521_v4, %v13148_v29 }
 0x94d   : > { %v3979_v55 = vpop.xlane.xlu1 %3978  ;;  %5216 = vrot.lane.b32.xlu0 %v5080_v63, %s11026_s22  ;;  %16331 = vst [vmem:[#allocation84_spill] sm:$0xff] %v13627_v32  ;;  %v4000_v63 = vpop.xlane.xlu0 %3999  ;;  %v5084_v45 = vmul.f32 %v13627_v32, %v13627_v32  ;;  %v4408_v53 = vadd.f32 %v13529_v16, %v4338_v33 }
 0x94e   : > { %v4079_v34 = vmul.f32 0.03125, %v3979_v55  ;;  %4026 = vadd.xlane.f32.xlu1 %v4025_v1  ;;  %v4469_v43 = vmax.f32 %v4405_v60, 0.0  ;;  %v16334_v60 = vld [vmem:[#allocation53_spill] sm:$0xff] }
 0x94f   : > { %v10523_v15 = vpop.eup %10522  ;;  %v13643_v55 = vsub.f32 %v16334_v60, %v4958_v25 }
 0x950   : > { %v4143_v7 = vadd.f32 1e-05, %v4079_v34  ;;  %10281 = vmatmul.mubr.msk.f32.gmra.mxu1 %vm2033_vm3, %v4469_v43  ;;  %v4267_v49 = vmul.f32 %v10523_v15, %v13184_v36  ;;  %v4084_v36 = vmul.f32 0.03125, %v3994_v12  ;;  %v16337_v34 = vld [vmem:[#allocation55_spill] sm:$0xff] }
 0x951   : > { %v13634_v39 = vpop.xlane.xlu1 %4936  ;;  %5220 = vrot.lane.b32.xlu0 %v5082_v26, %s11026_s22  ;;  %10283 = vmatprep.mubr.msk.f32.mxu1 %vm2033_vm3, %v4470_v57  ;;  %16335 = vst [vmem:[#allocation40_spill] sm:$0xff] %v13643_v55  ;;  %v16336_v26 = vld [vmem:[#allocation34_spill] sm:$0xff]  ;;  %v13649_v43 = vsub.f32 %v16337_v34, %v4960_v35  ;;  %v4006_v29 = vpop.xlane.xlu0 %4005  ;;  %v5086_v33 = vmul.f32 %v13643_v55, %v13643_v55 }
 0x952   : > { %10528 = vrsqrt.f32 %v4143_v7  ;;  %v4337_v8 = vmul.f32 %v13518_v6, %v4267_v49  ;;  %v4946_v58 = vmul.f32 0.03125, %v16336_v26  ;;  %v16338_v7 = vld [vmem:[#allocation91_spill] sm:$0xff]  ;;  %v4148_v57 = vadd.f32 1e-05, %v4084_v36  ;;  %v16339_v26 = vld [vmem:[#allocation42_spill] sm:$0xff] }
 0x953   : > { %10530 = vrsqrt.f32 %v4146_v23  ;;  %v4962_v61 = vmul.f32 0.03125, %v16338_v7  ;;  %v4340_v23 = vmul.f32 %v13518_v6, %v4270_v47  ;;  %v4086_v49 = vmul.f32 0.03125, %v4000_v63  ;;  %v16341_v7 = vld [vmem:[#allocation112_spill] sm:$0xff]  ;;  %v16342_v63 = vld [vmem:[#allocation57_spill] sm:$0xff] }
 0x954   : > { %v4407_v1 = vadd.f32 %v13529_v16, %v4337_v8  ;;  %v4472_v8 = vmax.f32 %v4408_v53, 0.0  ;;  %v13659_v34 = vsub.f32 %v16339_v26, %v4946_v58  ;;  %v5088_v47 = vmul.f32 %v13649_v43, %v13649_v43 }
 0x955   : > { %v3985_v15 = vpop.xlane.xlu1 %3984  ;;  %5224 = vrot.lane.b32.xlu0 %v5084_v45, %s11026_s22  ;;  %v4964_v32 = vmul.f32 0.03125, %v16341_v7  ;;  %v13670_v36 = vsub.f32 %v16342_v63, %v4962_v61  ;;  %v4410_v53 = vadd.f32 %v13529_v16, %v4340_v23  ;;  %v4150_v58 = vadd.f32 1e-05, %v4086_v49  ;;  %v16344_v61 = vld [vmem:[#allocation59_spill] sm:$0xff] }
 0x956   : > { %v4081_v4 = vmul.f32 0.03125, %v3985_v15  ;;  %v4471_v25 = vmax.f32 %v4407_v1, 0.0  ;;  %v16340_v15 = vld [vmem:[#allocation90_spill] sm:$0xff] }
 0x957   : > { %v10525_v12 = vpop.eup %10524  ;;  %v4949_v1 = vmul.f32 0.03125, %v16340_v15  ;;  %v4474_v49 = vmax.f32 %v4410_v53, 0.0 }
 0x958   : > { %v10527_v60 = vpop.eup %10526  ;;  %v4145_v35 = vadd.f32 1e-05, %v4081_v4  ;;  %10284 = vmatmul.mubr.msk.f32.gmra.mxu1 %vm2033_vm3, %v4471_v25  ;;  %v4269_v45 = vmul.f32 %v10525_v12, %v13213_v9  ;;  %v4088_v4 = vmul.f32 0.03125, %v4006_v29  ;;  %v4012_v12 = vpop.xlane.xlu0 %4011 }
 0x959   : > { %v13665_v55 = vpop.xlane.xlu1 %4942  ;;  %5228 = vrot.lane.b32.xlu0 %v5086_v33, %s11026_s22  ;;  %10286 = vmatprep.mubr.msk.f32.mxu1 %vm2033_vm3, %v4472_v8  ;;  %v4272_v25 = vmul.f32 %v10527_v60, %v13170_v44  ;;  %v5074_v33 = vmul.f32 %v13659_v34, %v13659_v34  ;;  %v16343_v8 = vld [vmem:[#allocation44_spill] sm:$0xff]  ;;  %v5090_v44 = vmul.f32 %v13670_v36, %v13670_v36 }
 0x95a   : > { %10532 = vrsqrt.f32 %v4145_v35  ;;  %v4339_v9 = vmul.f32 %v13518_v6, %v4269_v45  ;;  %v13679_v15 = vsub.f32 %v16343_v8, %v4949_v1  ;;  %v13682_v35 = vsub.f32 %v16344_v61, %v4964_v32  ;;  %v16345_v45 = vld [vmem:[#allocation114_spill] sm:$0xff] }
 0x95b   : > { %10534 = vrsqrt.f32 %v4148_v57  ;;  %v4966_v7 = vmul.f32 0.03125, %v16345_v45  ;;  %v4152_v63 = vadd.f32 1e-05, %v4088_v4  ;;  %v4342_v32 = vmul.f32 %v13518_v6, %v4272_v25 }
 0x95c   : > { %v4409_v26 = vadd.f32 %v13529_v16, %v4339_v9  ;;  %10536 = vrsqrt.f32 %v4150_v58  ;;  %v4090_v9 = vmul.f32 0.03125, %v4012_v12  ;;  %v5077_v61 = vmul.f32 %v13679_v15, %v13679_v15 }
 0x95d   : > { %v3991_v23 = vpop.xlane.xlu1 %3990  ;;  %5232 = vrot.lane.b32.xlu0 %v5088_v47, %s11026_s22  ;;  %v5092_v53 = vmul.f32 %v13682_v35, %v13682_v35  ;;  %v4968_v25 = vmul.f32 0.03125, %v13163_v30  ;;  %v4412_v45 = vadd.f32 %v13529_v16, %v4342_v32  ;;  %v4970_v30 = vmul.f32 0.03125, %v13189_v5  ;;  %v16348_v5 = vld [vmem:[#allocation65_spill] sm:$0xff] }
 0x95e   : > { %v4083_v29 = vmul.f32 0.03125, %v3991_v23  ;;  %v4473_v57 = vmax.f32 %v4409_v26, 0.0  ;;  %v16346_v26 = vld [vmem:[#allocation61_spill] sm:$0xff] }
 0x95f   : > { %v10529_v60 = vpop.eup %10528  ;;  %5204 = vrot.lane.b32.xlu1 %v5074_v33, %s11026_s22  ;;  %v13697_v58 = vsub.f32 %v16346_v26, %v4966_v7  ;;  %v4154_v33 = vadd.f32 1e-05, %v4090_v9  ;;  %v16347_v9 = vld [vmem:[#allocation63_spill] sm:$0xff]  ;;  %v13720_v26 = vsub.f32 %v16348_v5, %v4970_v30 }
 0x960   : > { %v10531_v1 = vpop.eup %10530  ;;  %v4147_v8 = vadd.f32 1e-05, %v4083_v29  ;;  %10287 = vmatmul.mubr.msk.f32.gmra.mxu1 %vm2033_vm3, %v4473_v57  ;;  %v4271_v47 = vmul.f32 %v10529_v60, %v13250_v27 }
 0x961   : > { %v3997_v4 = vpop.xlane.xlu1 %3996  ;;  %5236 = vrot.lane.b32.xlu0 %v5090_v44, %s11026_s22  ;;  %10289 = vmatprep.mubr.msk.f32.mxu1 %vm2033_vm3, %v4474_v49  ;;  %v4274_v7 = vmul.f32 %v10531_v1, %v13194_v13  ;;  %v5094_v44 = vmul.f32 %v13697_v58, %v13697_v58  ;;  %v4476_v13 = vmax.f32 %v4412_v45, 0.0  ;;  %16349 = vst [vmem:[#allocation38_spill] sm:$0xff] %v13720_v26 }
 0x962   : > { %10538 = vrsqrt.f32 %v4147_v8  ;;  %v4085_v12 = vmul.f32 0.03125, %v3997_v4  ;;  %v4341_v27 = vmul.f32 %v13518_v6, %v4271_v47  ;;  %v13712_v8 = vsub.f32 %v16347_v9, %v4968_v25 }
 0x963   : > { %10540 = vrsqrt.f32 %v4152_v63  ;;  %5210 = vrot.lane.b32.xlu1 %v5077_v61, %s11026_s22  ;;  %v4344_v32 = vmul.f32 %v13518_v6, %v4274_v7 }
 0x964   : > { %v4149_v23 = vadd.f32 1e-05, %v4085_v12  ;;  %v4411_v29 = vadd.f32 %v13529_v16, %v4341_v27  ;;  %v5096_v12 = vmul.f32 %v13712_v8, %v13712_v8  ;;  %v4972_v27 = vmul.f32 0.03125, %v13222_v0 }
 0x965   : > { %v4003_v57 = vpop.xlane.xlu1 %4002  ;;  %5240 = vrot.lane.b32.xlu0 %v5092_v53, %s11026_s22 }
 0x966   : > { %10542 = vrsqrt.f32 %v4149_v23  ;;  %v4087_v49 = vmul.f32 0.03125, %v4003_v57  ;;  %v4475_v60 = vmax.f32 %v4411_v29, 0.0  ;;  %v4974_v29 = vmul.f32 0.03125, %v13252_v41 }
 0x967   : > { %v10533_v63 = vpop.eup %10532  ;;  %10544 = vrsqrt.f32 %v4154_v33  ;;  %v4414_v33 = vadd.f32 %v13529_v16, %v4344_v32  ;;  %v5098_v57 = vmul.f32 %v13720_v26, %v13720_v26 }
 0x968   : > { %v10535_v1 = vpop.eup %10534  ;;  %v4151_v47 = vadd.f32 1e-05, %v4087_v49  ;;  %10290 = vmatmul.mubr.msk.f32.gmra.mxu1 %vm2033_vm3, %v4475_v60  ;;  %v4273_v61 = vmul.f32 %v10533_v63, %v13280_v52  ;;  %v16350_v60 = vld [vmem:[#allocation67_spill] sm:$0xff] }
 0x969   : > { %v4009_v53 = vpop.xlane.xlu1 %4008  ;;  %5244 = vrot.lane.b32.xlu0 %v5094_v44, %s11026_s22  ;;  %10292 = vmatprep.mubr.msk.f32.mxu1 %vm2033_vm3, %v4476_v13  ;;  %v4276_v52 = vmul.f32 %v10535_v1, %v13201_v22  ;;  %v10537_v45 = vpop.eup %10536  ;;  %v13734_v63 = vsub.f32 %v16350_v60, %v4972_v27  ;;  %v4478_v22 = vmax.f32 %v4414_v33, 0.0 }
 0x96a   : > { %10546 = vrsqrt.f32 %v4151_v47  ;;  %v4089_v4 = vmul.f32 0.03125, %v4009_v53  ;;  %v4343_v25 = vmul.f32 %v13518_v6, %v4273_v61  ;;  %v4278_v13 = vmul.f32 %v10537_v45, %v13219_v31  ;;  %v16352_v47 = vld [vmem:[#allocation69_spill] sm:$0xff]  ;;  %v16354_v45 = vld [vmem:[#allocation71_spill] sm:$0xff] }
 0x96b   : > { %16351 = vst [vmem:[#allocation83_spill] sm:$0xff] %v13734_v63  ;;  %v4346_v9 = vmul.f32 %v13518_v6, %v4276_v52  ;;  %v13741_v61 = vsub.f32 %v16352_v47, %v4974_v29  ;;  %v4976_v53 = vmul.f32 0.03125, %v13282_v50  ;;  %v5100_v31 = vmul.f32 %v13734_v63, %v13734_v63 }
 0x96c   : > { %v4153_v7 = vadd.f32 1e-05, %v4089_v4  ;;  %v4413_v23 = vadd.f32 %v13529_v16, %v4343_v25  ;;  %v4980_v47 = vmul.f32 0.03125, %v13332_v28 }
 0x96d   : > { %v4015_v44 = vpop.xlane.xlu1 %4014  ;;  %5248 = vrot.lane.b32.xlu0 %v5096_v12, %s11026_s22  ;;  %16353 = vst [vmem:[#allocation105_spill] sm:$0xff] %v13741_v61  ;;  %v4416_v25 = vadd.f32 %v13529_v16, %v4346_v9  ;;  %v5102_v50 = vmul.f32 %v13741_v61, %v13741_v61 }
 0x96e   : > { %10548 = vrsqrt.f32 %v4153_v7  ;;  %v4091_v30 = vmul.f32 0.03125, %v4015_v44  ;;  %v4477_v49 = vmax.f32 %v4413_v23, 0.0  ;;  %v13758_v7 = vsub.f32 %v16354_v45, %v4976_v53 }
 0x96f   : > { %v10539_v0 = vpop.eup %10538  ;;  %v4978_v23 = vmul.f32 0.03125, %v13305_v14  ;;  %v4982_v45 = vmul.f32 0.03125, %v13362_v18 }
 0x970   : > { %v10541_v32 = vpop.eup %10540  ;;  %v4155_v41 = vadd.f32 1e-05, %v4091_v30  ;;  %10293 = vmatmul.mubr.msk.f32.gmra.mxu1 %vm2033_vm3, %v4477_v49  ;;  %v4275_v1 = vmul.f32 %v10539_v0, %v13299_v2  ;;  %v4348_v2 = vmul.f32 %v13518_v6, %v4278_v13  ;;  %16355 = vst [vmem:[#allocation85_spill] sm:$0xff] %v13758_v7  ;;  %v5104_v14 = vmul.f32 %v13758_v7, %v13758_v7  ;;  %v16357_v13 = vld [vmem:[#allocation73_spill] sm:$0xff] }
 0x971   : > { %5252 = vrot.lane.b32.xlu0 %v5098_v57, %s11026_s22  ;;  %10295 = vmatprep.mubr.msk.f32.mxu1 %vm2033_vm3, %v4478_v22  ;;  %v4280_v12 = vmul.f32 %v10541_v32, %v13241_v54  ;;  %v4480_v54 = vmax.f32 %v4416_v25, 0.0  ;;  %v16356_v22 = vld [vmem:[#allocation108_spill] sm:$0xff]  ;;  %v13774_v32 = vsub.f32 %v16357_v13, %v4978_v23  ;;  %v16359_v25 = vld [vmem:[#allocation89_spill] sm:$0xff] }
 0x972   : > { %10550 = vrsqrt.f32 %v4155_v41  ;;  %v4345_v5 = vmul.f32 %v13518_v6, %v4275_v1  ;;  %v4418_v30 = vadd.f32 %v13529_v16, %v4348_v2  ;;  %v3713_v9 = vmul.f32 0.03125, %v16356_v22 }
 0x973   : > { %v10543_v4 = vpop.eup %10542  ;;  %v4350_v49 = vmul.f32 %v13518_v6, %v4280_v12  ;;  %16358 = vst [vmem:[#allocation88_spill] sm:$0xff] %v13774_v32  ;;  %v5106_v28 = vmul.f32 %v13774_v32, %v13774_v32 }
 0x974   : > { %v10545_v27 = vpop.eup %10544  ;;  %v4415_v33 = vadd.f32 %v13529_v16, %v4345_v5  ;;  %v4277_v52 = vmul.f32 %v10543_v4, %v13316_v37  ;;  %v4482_v53 = vmax.f32 %v4418_v30, 0.0  ;;  %v13786_v2 = vsub.f32 %v16359_v25, %v3713_v9 }
 0x975   : > { %5256 = vrot.lane.b32.xlu0 %v5100_v31, %s11026_s22  ;;  %v4282_v37 = vmul.f32 %v10545_v27, %v13259_v21 }
 0x976   : > { %v4479_v29 = vmax.f32 %v4415_v33, 0.0  ;;  %v4347_v44 = vmul.f32 %v13518_v6, %v4277_v52  ;;  %v16360_v52 = vld [vmem:[#allocation75_spill] sm:$0xff]  ;;  %v3841_v30 = vmul.f32 %v13786_v2, %v13786_v2 }
 0x977   : > { %v10547_v57 = vpop.eup %10546  ;;  %v4352_v5 = vmul.f32 %v13518_v6, %v4282_v37  ;;  %v16362_v37 = vld [vmem:[#allocation4_spill] sm:$0xff] }
 0x978   : > { %10296 = vmatmul.mubr.msk.f32.gmra.mxu1 %vm2033_vm3, %v4479_v29  ;;  %v4417_v0 = vadd.f32 %v13529_v16, %v4347_v44  ;;  %v4279_v60 = vmul.f32 %v10547_v57, %v13324_v51  ;;  %v4420_v51 = vadd.f32 %v13529_v16, %v4350_v49 }
 0x979   : > { %5260 = vrot.lane.b32.xlu0 %v5102_v50, %s11026_s22  ;;  %10298 = vmatprep.mubr.msk.f32.mxu1 %vm2033_vm3, %v4480_v54  ;;  %v13792_v50 = vsub.f32 %v16360_v52, %v4980_v47  ;;  %v4422_v29 = vadd.f32 %v13529_v16, %v4352_v5  ;;  %v16367_v5 = vld [vmem:[#allocation96_spill] sm:$0xff] }
 0x97a   : > { %v4481_v41 = vmax.f32 %v4417_v0, 0.0  ;;  %v4349_v21 = vmul.f32 %v13518_v6, %v4279_v60  ;;  %v4484_v23 = vmax.f32 %v4420_v51, 0.0  ;;  %v13809_v0 = vsub.f32 %v16362_v37, %v4982_v45  ;;  %v16364_v60 = vld [vmem:[#allocation77_spill] sm:$0xff] }
 0x97b   : > { %v10549_v1 = vpop.eup %10548  ;;  %16361 = vst [vmem:[#allocation103_spill] sm:$0xff] %v13792_v50  ;;  %v5108_v49 = vmul.f32 %v13792_v50, %v13792_v50  ;;  %v4984_v22 = vmul.f32 0.03125, %v16364_v60  ;;  %v16377_v60 = vld [vmem:[#allocation23_spill] sm:$0xff] }
 0x97c   : > { %10299 = vmatmul.mubr.msk.f32.gmra.mxu1 %vm2033_vm3, %v4481_v41  ;;  %v4419_v4 = vadd.f32 %v13529_v16, %v4349_v21  ;;  %v4281_v31 = vmul.f32 %v10549_v1, %v13346_v24  ;;  %v13795_v24 = vpop.permute.xlu0 %5200  ;;  %16363 = vst [vmem:[#allocation45_spill] sm:$0xff] %v13809_v0  ;;  %v4031_v21 = vsel %vm2033_vm3, %v3841_v30, 0.0  ;;  %v5110_v47 = vmul.f32 %v13809_v0, %v13809_v0  ;;  %v16374_v30 = vld [vmem:[#allocation110_spill] sm:$0xff] }
 0x97d   : > { %5264 = vrot.lane.b32.xlu0 %v5104_v14, %s11026_s22  ;;  %10301 = vmatprep.mubr.msk.f32.mxu1 %vm2033_vm3, %v4482_v53  ;;  %v16365_v53 = vld [vmem:[#allocation6_spill] sm:$0xff] }
 0x97e   : > { %v4483_v12 = vmax.f32 %v4419_v4, 0.0  ;;  %v4351_v27 = vmul.f32 %v13518_v6, %v4281_v31  ;;  %v13820_v51 = vsub.f32 %v16365_v53, %v4984_v22  ;;  %v4986_v4 = vmul.f32 0.03125, %v16367_v5  ;;  %v16381_v5 = vld [vmem:[#allocation11_spill] sm:$0xff] }
 0x97f   : > { %v10551_v33 = vpop.eup %10550  ;;  %v4992_v22 = vmul.f32 0.03125, %v16377_v60  ;;  %v4996_v60 = vmul.f32 0.03125, %v13484_v20 }
 0x980   : > { %10302 = vmatmul.mubr.msk.f32.gmra.mxu1 %vm2033_vm3, %v4483_v12  ;;  %v4421_v44 = vadd.f32 %v13529_v16, %v4351_v27  ;;  %v4283_v57 = vmul.f32 %v10551_v33, %v13360_v46  ;;  %v4486_v46 = vmax.f32 %v4422_v29, 0.0  ;;  %16366 = vst [vmem:[#allocation109_spill] sm:$0xff] %v13820_v51  ;;  %v5112_v31 = vmul.f32 %v13820_v51, %v13820_v51  ;;  %v16370_v33 = vld [vmem:[#allocation92_spill] sm:$0xff] }
 0x981   : > { %5268 = vrot.lane.b32.xlu0 %v5106_v28, %s11026_s22  ;;  %10304 = vmatprep.mubr.msk.f32.mxu1 %vm2033_vm3, %v4484_v23  ;;  %v16368_v28 = vld [vmem:[#allocation5_spill] sm:$0xff]  ;;  %v4988_v27 = vmul.f32 0.03125, %v13416_v56  ;;  %v4951_v52 = vmul.f32 0.03125, %v16370_v33  ;;  %v16371_v23 = vld [vmem:[#allocation10_spill] sm:$0xff] }
 0x982   : > { %v4485_v54 = vmax.f32 %v4421_v44, 0.0  ;;  %v4353_v18 = vmul.f32 %v13518_v6, %v4283_v57  ;;  %v13828_v12 = vsub.f32 %v16368_v28, %v4986_v4  ;;  %v4990_v44 = vmul.f32 0.03125, %v13437_v19  ;;  %v16373_v57 = vld [vmem:[#allocation46_spill] sm:$0xff] }
 0x983   : > { %v4018_v9 = vpop.xlane.xlu0 %4017  ;;  %v13836_v29 = vsub.f32 %v16371_v23, %v4988_v27  ;;  %v13861_v4 = vsub.f32 %v16381_v5, %v4992_v22  ;;  %v4998_v5 = vmul.f32 0.03125, %v13500_v42  ;;  %v5000_v42 = vmul.f32 0.03125, %v13513_v59 }
 0x984   : > { %v4092_v14 = vmul.f32 0.03125, %v4018_v9  ;;  %10305 = vmatmul.mubr.msk.f32.gmra.mxu1 %vm2033_vm3, %v4485_v54  ;;  %v4423_v13 = vadd.f32 %v13529_v16, %v4353_v18  ;;  %16369 = vst [vmem:[#allocation47_spill] sm:$0xff] %v13828_v12  ;;  %v5114_v45 = vmul.f32 %v13828_v12, %v13828_v12  ;;  %v13841_v54 = vsub.f32 %v16373_v57, %v4951_v52 }
 0x985   : > { %5272 = vrot.lane.b32.xlu0 %v5108_v49, %s11026_s22  ;;  %10307 = vmatprep.mubr.msk.f32.mxu1 %vm2033_vm3, %v4486_v46  ;;  %16372 = vst [vmem:[#allocation104_spill] sm:$0xff] %v13836_v29  ;;  %v4953_v18 = vmul.f32 0.03125, %v16374_v30  ;;  %v5116_v56 = vmul.f32 %v13836_v29, %v13836_v29  ;;  %v16375_v49 = vld [vmem:[#allocation12_spill] sm:$0xff]  ;;  %16382 = vst [vmem:[#allocation106_spill] sm:$0xff] %v13861_v4  ;;  %v5002_v59 = vmul.f32 0.03125, %v13545_v10  ;;  %v5004_v10 = vmul.f32 0.03125, %v13559_v17 }
 0x986   : > { %v4156_v41 = vadd.f32 1e-05, %v4092_v14  ;;  %v4487_v1 = vmax.f32 %v4423_v13, 0.0  ;;  %v13847_v37 = vsub.f32 %v16375_v49, %v4990_v44  ;;  %v5079_v19 = vmul.f32 %v13841_v54, %v13841_v54  ;;  %v16378_v14 = vld [vmem:[#allocation48_spill] sm:$0xff]  ;;  %v16385_v44 = vld [vmem:[#allocation113_spill] sm:$0xff] }
 0x987   : > { %4032 = vadd.xlane.f32.xlu1 %v4031_v21  ;;  %v4024_v46 = vpop.xlane.xlu0 %4023  ;;  %v13854_v13 = vsub.f32 %v16378_v14, %v4953_v18  ;;  %v4957_v57 = vmul.f32 0.03125, %v16385_v44  ;;  %v5120_v18 = vmul.f32 %v13861_v4, %v13861_v4  ;;  %v5006_v17 = vmul.f32 0.03125, %v13576_v40 }
 0x988   : > { %10552 = vrsqrt.f32 %v4156_v41  ;;  %10308 = vmatmul.mubr.msk.f32.gmra.mxu1 %vm2033_vm3, %v4487_v1  ;;  %16376 = vst [vmem:[#allocation49_spill] sm:$0xff] %v13847_v37  ;;  %v16379_v41 = vld [vmem:[#allocation111_spill] sm:$0xff]  ;;  %v5118_v53 = vmul.f32 %v13847_v37, %v13847_v37  ;;  %v4094_v27 = vmul.f32 0.03125, %v4024_v46 }
 0x989   : > { %5276 = vrot.lane.b32.xlu0 %v5110_v47, %s11026_s22  ;;  %v4955_v21 = vmul.f32 0.03125, %v16379_v41  ;;  %v16380_v1 = vld [vmem:[#allocation27_spill] sm:$0xff]  ;;  %v5081_v52 = vmul.f32 %v13854_v13, %v13854_v13  ;;  %v16389_v41 = vld [vmem:[#allocation93_spill] sm:$0xff] }
 0x98a   : > { %v4158_v22 = vadd.f32 1e-05, %v4094_v27 }
 0x98c   : > { %10554 = vrsqrt.f32 %v4158_v22  ;;  %v16396_v22 = vld [vmem:[#allocation56_spill] sm:$0xff] }
 0x98d   : > { %5280 = vrot.lane.b32.xlu0 %v5112_v31, %s11026_s22  ;;  %v16383_v31 = vld [vmem:[#allocation39_spill] sm:$0xff] }
 0x98e   : > { %v4994_v28 = vmul.f32 0.03125, %v16383_v31 }
 0x991   : > { %5284 = vrot.lane.b32.xlu0 %v5114_v45, %s11026_s22  ;;  %v16384_v45 = vld [vmem:[#allocation50_spill] sm:$0xff] }
 0x992   : > { %v13870_v23 = vsub.f32 %v16384_v45, %v4955_v21  ;;  %v4959_v21 = vmul.f32 0.03125, %v16389_v41 }
 0x994   : > { %v5083_v46 = vmul.f32 %v13870_v23, %v13870_v23 }
 0x995   : > { %v10553_v9 = vpop.eup %10552  ;;  %5288 = vrot.lane.b32.xlu0 %v5116_v56, %s11026_s22  ;;  %v16386_v56 = vld [vmem:[#allocation16_spill] sm:$0xff] }
 0x996   : > { %v4284_v47 = vmul.f32 %v10553_v9, %v16380_v1  ;;  %v13877_v49 = vsub.f32 %v16386_v56, %v4994_v28  ;;  %v13888_v1 = vpop.permute.xlu1 %5202  ;;  %v16392_v28 = vld [vmem:[#allocation54_spill] sm:$0xff] }
 0x997   : > { %v13902_v27 = vsub.f32 %v16392_v28, %v4959_v21  ;;  %v16398_v21 = vld [vmem:[#allocation22_spill] sm:$0xff]  ;;  %v16401_v28 = vld [vmem:[#allocation117_spill] sm:$0xff] }
 0x998   : > { %5214 = vrot.lane.b32.xlu1 %v5079_v19, %s11026_s22  ;;  %v4354_v33 = vmul.f32 %v13518_v6, %v4284_v47  ;;  %16387 = vst [vmem:[#allocation51_spill] sm:$0xff] %v13877_v49  ;;  %v16388_v19 = vld [vmem:[#allocation52_spill] sm:$0xff]  ;;  %v5122_v20 = vmul.f32 %v13877_v49, %v13877_v49  ;;  %v16390_v47 = vld [vmem:[#allocation18_spill] sm:$0xff] }
 0x999   : > { %5292 = vrot.lane.b32.xlu0 %v5118_v53, %s11026_s22  ;;  %v13885_v14 = vsub.f32 %v16388_v19, %v4957_v57  ;;  %v13894_v53 = vsub.f32 %v16390_v47, %v4996_v60  ;;  %v16394_v57 = vld [vmem:[#allocation17_spill] sm:$0xff]  ;;  %v5087_v60 = vmul.f32 %v13902_v27, %v13902_v27 }
 0x99a   : > { %v4424_v30 = vadd.f32 %v13529_v16, %v4354_v33  ;;  %v16393_v33 = vld [vmem:[#allocation115_spill] sm:$0xff] }
 0x99b   : > { %16391 = vst [vmem:[#allocation37_spill] sm:$0xff] %v13894_v53  ;;  %v5085_v31 = vmul.f32 %v13885_v14, %v13885_v14  ;;  %v5124_v44 = vmul.f32 %v13894_v53, %v13894_v53 }
 0x99c   : > { %5218 = vrot.lane.b32.xlu1 %v5081_v52, %s11026_s22  ;;  %v4488_v9 = vmax.f32 %v4424_v30, 0.0  ;;  %v4961_v52 = vmul.f32 0.03125, %v16393_v33  ;;  %v13908_v30 = vsub.f32 %v16394_v57, %v4998_v5  ;;  %v16400_v5 = vld [vmem:[#allocation58_spill] sm:$0xff]  ;;  %v4965_v33 = vmul.f32 0.03125, %v16401_v28  ;;  %v10555_v57 = vpop.eup %10554 }
 0x99d   : > { %5296 = vrot.lane.b32.xlu0 %v5120_v18, %s11026_s22 }
 0x99e   : > { %10310 = vmatprep.mubr.msk.f32.mxu1 %vm2033_vm3, %v4488_v9  ;;  %16395 = vst [vmem:[#allocation107_spill] sm:$0xff] %v13908_v30  ;;  %v13916_v9 = vsub.f32 %v16396_v22, %v4961_v52  ;;  %v5126_v41 = vmul.f32 %v13908_v30, %v13908_v30 }
 0x9a0   : > { %5222 = vrot.lane.b32.xlu1 %v5083_v46, %s11026_s22  ;;  %v16397_v46 = vld [vmem:[#allocation116_spill] sm:$0xff]  ;;  %v5089_v47 = vmul.f32 %v13916_v9, %v13916_v9 }
 0x9a1   : > { %5300 = vrot.lane.b32.xlu0 %v5122_v20, %s11026_s22  ;;  %v4963_v19 = vmul.f32 0.03125, %v16397_v46  ;;  %v13922_v20 = vsub.f32 %v16398_v21, %v5000_v42  ;;  %v16408_v21 = vld [vmem:[#allocation30_spill] sm:$0xff] }
 0x9a2   : > { %v4021_v45 = vpop.xlane.xlu1 %4020 }
 0x9a3   : > { %v4093_v18 = vmul.f32 0.03125, %v4021_v45  ;;  %16399 = vst [vmem:[#allocation53_spill] sm:$0xff] %v13922_v20  ;;  %v5128_v52 = vmul.f32 %v13922_v20, %v13922_v20  ;;  %v16402_v45 = vld [vmem:[#allocation24_spill] sm:$0xff] }
 0x9a4   : > { %5226 = vrot.lane.b32.xlu1 %v5085_v31, %s11026_s22  ;;  %v13930_v31 = vsub.f32 %v16400_v5, %v4963_v19  ;;  %v16406_v19 = vld [vmem:[#allocation26_spill] sm:$0xff] }
 0x9a5   : > { %v4157_v56 = vadd.f32 1e-05, %v4093_v18  ;;  %5304 = vrot.lane.b32.xlu0 %v5124_v44, %s11026_s22  ;;  %v13936_v44 = vsub.f32 %v16402_v45, %v5002_v59  ;;  %v16404_v18 = vld [vmem:[#allocation60_spill] sm:$0xff]  ;;  %v4286_v59 = vmul.f32 %v10555_v57, %v16408_v21  ;;  %v16409_v5 = vld [vmem:[#allocation62_spill] sm:$0xff]  ;;  %v13980_v21 = vpop.permute.xlu0 %5208 }
 0x9a6   : > { %v5091_v42 = vmul.f32 %v13930_v31, %v13930_v31  ;;  %v5207_v53 = vpop.permute.xlu1 %5206 }
 0x9a7   : > { %10556 = vrsqrt.f32 %v4157_v56  ;;  %16403 = vst [vmem:[#allocation34_spill] sm:$0xff] %v13936_v44  ;;  %v13944_v56 = vsub.f32 %v16404_v18, %v4965_v33  ;;  %v5130_v46 = vmul.f32 %v13936_v44, %v13936_v44  ;;  %v16411_v33 = vld [vmem:[#allocation119_spill] sm:$0xff]  ;;  %v4356_v57 = vmul.f32 %v13518_v6, %v4286_v59 }
 0x9a8   : > { %5230 = vrot.lane.b32.xlu1 %v5087_v60, %s11026_s22  ;;  %v16405_v60 = vld [vmem:[#allocation118_spill] sm:$0xff] }
 0x9a9   : > { %5308 = vrot.lane.b32.xlu0 %v5126_v41, %s11026_s22  ;;  %v4967_v22 = vmul.f32 0.03125, %v16405_v60  ;;  %v13950_v41 = vsub.f32 %v16406_v19, %v5004_v10  ;;  %v13965_v10 = vsub.f32 %v16310_v3, %v5006_v17  ;;  %v16413_v60 = vld [vmem:[#allocation64_spill] sm:$0xff]  ;;  %v4426_v59 = vadd.f32 %v13529_v16, %v4356_v57 }
 0x9ab   : > { %16407 = vst [vmem:[#allocation55_spill] sm:$0xff] %v13950_v41  ;;  %v13959_v28 = vsub.f32 %v16409_v5, %v4967_v22  ;;  %v5132_v45 = vmul.f32 %v13950_v41, %v13950_v41  ;;  %16412 = vst [vmem:[#allocation42_spill] sm:$0xff] %v13965_v10  ;;  %v5134_v3 = vmul.f32 %v13965_v10, %v13965_v10  ;;  %v16416_v5 = vld [vmem:[#allocation66_spill] sm:$0xff]  ;;  %v16433_v41 = vld [vmem:[#allocation99_spill] sm:$0xff] }
 0x9ac   : > { %5234 = vrot.lane.b32.xlu1 %v5089_v47, %s11026_s22  ;;  %v5093_v47 = vmul.f32 %v13944_v56, %v13944_v56  ;;  %v4983_v44 = vmul.f32 0.03125, %v16433_v41 }
 0x9ad   : > { %5312 = vrot.lane.b32.xlu0 %v5128_v52, %s11026_s22  ;;  %16410 = vst [vmem:[#allocation91_spill] sm:$0xff] %v13959_v28  ;;  %v4969_v52 = vmul.f32 0.03125, %v16411_v33  ;;  %v5095_v18 = vmul.f32 %v13959_v28, %v13959_v28 }
 0x9af   : > { %v13974_v22 = vsub.f32 %v16413_v60, %v4969_v52  ;;  %v16418_v52 = vld [vmem:[#allocation80_spill] sm:$0xff]  ;;  %v16421_v60 = vld [vmem:[#allocation29_spill] sm:$0xff] }
 0x9b0   : > { %5238 = vrot.lane.b32.xlu1 %v5091_v42, %s11026_s22 }
 0x9b1   : > { %5316 = vrot.lane.b32.xlu0 %v5130_v46, %s11026_s22  ;;  %16414 = vst [vmem:[#allocation90_spill] sm:$0xff] %v13974_v22  ;;  %v16415_v46 = vld [vmem:[#allocation94_spill] sm:$0xff] }
 0x9b2   : > { %v4971_v19 = vmul.f32 0.03125, %v16415_v46  ;;  %v4975_v46 = vmul.f32 0.03125, %v16421_v60 }
 0x9b4   : > { %v10557_v40 = vpop.eup %10556  ;;  %5242 = vrot.lane.b32.xlu1 %v5093_v47, %s11026_s22  ;;  %v5097_v47 = vmul.f32 %v13974_v22, %v13974_v22  ;;  %v13989_v33 = vsub.f32 %v16416_v5, %v4971_v19 }
 0x9b5   : > { %5320 = vrot.lane.b32.xlu0 %v5132_v45, %s11026_s22  ;;  %v4285_v42 = vmul.f32 %v10557_v40, %v13475_v48  ;;  %v4973_v45 = vmul.f32 0.03125, %v16418_v52 }
 0x9b6   : > { %16417 = vst [vmem:[#allocation112_spill] sm:$0xff] %v13989_v33  ;;  %v5099_v57 = vmul.f32 %v13989_v33, %v13989_v33 }
 0x9b7   : > { %v4355_v17 = vmul.f32 %v13518_v6, %v4285_v42  ;;  %v4490_v42 = vmax.f32 %v4426_v59, 0.0 }
 0x9b8   : > { %5246 = vrot.lane.b32.xlu1 %v5095_v18, %s11026_s22  ;;  %v16419_v18 = vld [vmem:[#allocation68_spill] sm:$0xff] }
 0x9b9   : > { %5324 = vrot.lane.b32.xlu0 %v5134_v3, %s11026_s22  ;;  %v4425_v48 = vadd.f32 %v13529_v16, %v4355_v17  ;;  %v13997_v16 = vsub.f32 %v16419_v18, %v4973_v45  ;;  %v16422_v17 = vld [vmem:[#allocation70_spill] sm:$0xff]  ;;  %v16425_v45 = vld [vmem:[#allocation72_spill] sm:$0xff] }
 0x9ba   : > { %v14007_v59 = vsub.f32 %v16422_v17, %v4975_v46  ;;  %v16428_v46 = vld [vmem:[#allocation74_spill] sm:$0xff] }
 0x9bb   : > { %v4489_v40 = vmax.f32 %v4425_v48, 0.0  ;;  %16420 = vst [vmem:[#allocation57_spill] sm:$0xff] %v13997_v16  ;;  %v5101_v3 = vmul.f32 %v13997_v16, %v13997_v16  ;;  %v16424_v48 = vld [vmem:[#allocation95_spill] sm:$0xff] }
 0x9bc   : > { %5250 = vrot.lane.b32.xlu1 %v5097_v47, %s11026_s22  ;;  %v4030_v6 = vpop.xlane.xlu0 %4029  ;;  %16423 = vst [vmem:[#allocation44_spill] sm:$0xff] %v14007_v59  ;;  %v4977_v47 = vmul.f32 0.03125, %v16424_v48  ;;  %v5103_v52 = vmul.f32 %v14007_v59, %v14007_v59 }
 0x9bd   : > { %10311 = vmatmul.mubr.msk.f32.gmra.mxu1 %vm2033_vm3, %v4489_v40 }
 0x9be   : > { %10313 = vmatprep.mubr.msk.f32.mxu1 %vm2033_vm3, %v4490_v42  ;;  %v14016_v40 = vsub.f32 %v16425_v45, %v4977_v47  ;;  %v16427_v42 = vld [vmem:[#allocation82_spill] sm:$0xff]  ;;  %v4096_v47 = vmul.f32 0.03125, %v4030_v6  ;;  %v16436_v6 = vld [vmem:[#allocation31_spill] sm:$0xff] }
 0x9bf   : > { %v4985_v30 = vmul.f32 0.03125, %v16436_v6  ;;  %v16440_v6 = vld [vmem:[#allocation9_spill] sm:$0xff] }
 0x9c0   : > { %5254 = vrot.lane.b32.xlu1 %v5099_v57, %s11026_s22  ;;  %v14002_v19 = vpop.permute.xlu0 %5212  ;;  %16426 = vst [vmem:[#allocation59_spill] sm:$0xff] %v14016_v40  ;;  %v4979_v57 = vmul.f32 0.03125, %v16427_v42  ;;  %v5105_v60 = vmul.f32 %v14016_v40, %v14016_v40  ;;  %v16431_v42 = vld [vmem:[#allocation76_spill] sm:$0xff] }
 0x9c2   : > { %v14025_v17 = vsub.f32 %v16428_v46, %v4979_v57  ;;  %v4160_v57 = vadd.f32 1e-05, %v4096_v47  ;;  %v16439_v47 = vld [vmem:[#allocation87_spill] sm:$0xff] }
 0x9c3   : > { %v4987_v49 = vmul.f32 0.03125, %v16439_v47 }
 0x9c4   : > { %5258 = vrot.lane.b32.xlu1 %v5101_v3, %s11026_s22  ;;  %v14011_v5 = vpop.permute.xlu0 %5216  ;;  %16429 = vst [vmem:[#allocation114_spill] sm:$0xff] %v14025_v17  ;;  %v16430_v3 = vld [vmem:[#allocation98_spill] sm:$0xff]  ;;  %v5107_v45 = vmul.f32 %v14025_v17, %v14025_v17  ;;  %10558 = vrsqrt.f32 %v4160_v57 }
 0x9c5   : > { %v4981_v48 = vmul.f32 0.03125, %v16430_v3  ;;  %v14063_v37 = vsub.f32 %v16440_v6, %v4987_v49  ;;  %v4991_v49 = vmul.f32 0.03125, %v13497_v62  ;;  %v5404_v62 = vsel %vm2033_vm3, %v13980_v21, 0.0  ;;  %v14106_v21 = vld [vmem:[%s15754_s9] ss:$0 sm:$0xff] }
 0x9c7   : > { %16441 = vst [vmem:[#allocation67_spill] sm:$0xff] %v14063_v37 }
 0x9c8   : > { %5262 = vrot.lane.b32.xlu1 %v5103_v52, %s11026_s22  ;;  %v14020_v18 = vpop.permute.xlu0 %5220  ;;  %v14034_v52 = vsub.f32 %v16431_v42, %v4981_v48 }
 0x9ca   : > { %16432 = vst [vmem:[#allocation61_spill] sm:$0xff] %v14034_v52  ;;  %v5109_v46 = vmul.f32 %v14034_v52, %v14034_v52 }
 0x9cc   : > { %5266 = vrot.lane.b32.xlu1 %v5105_v60, %s11026_s22  ;;  %v14029_v10 = vpop.permute.xlu0 %5224  ;;  %v16434_v60 = vld [vmem:[#allocation3_spill] sm:$0xff] }
 0x9cd   : > { %v14043_v3 = vsub.f32 %v16434_v60, %v4983_v44  ;;  %v5392_v44 = vsel %vm2033_vm3, %v13795_v24, 0.0 }
 0x9cf   : > { %16435 = vst [vmem:[#allocation63_spill] sm:$0xff] %v14043_v3  ;;  %v5111_v41 = vmul.f32 %v14043_v3, %v14043_v3 }
 0x9d0   : > { %5270 = vrot.lane.b32.xlu1 %v5107_v45, %s11026_s22  ;;  %v14038_v20 = vpop.permute.xlu0 %5228  ;;  %v16437_v45 = vld [vmem:[#allocation7_spill] sm:$0xff] }
 0x9d1   : > { %v14052_v42 = vsub.f32 %v16437_v45, %v4985_v30  ;;  %v4989_v30 = vmul.f32 0.03125, %v13479_v38 }
 0x9d3   : > { %16438 = vst [vmem:[#allocation65_spill] sm:$0xff] %v14052_v42  ;;  %v5113_v57 = vmul.f32 %v14052_v42, %v14052_v42 }
 0x9d4   : > { %5274 = vrot.lane.b32.xlu1 %v5109_v46, %s11026_s22  ;;  %v14047_v48 = vpop.permute.xlu0 %5232 }
 0x9d7   : > { %v4027_v4 = vpop.xlane.xlu1 %4026 }
 0x9d8   : > { %v4095_v60 = vmul.f32 0.03125, %v4027_v4  ;;  %5278 = vrot.lane.b32.xlu1 %v5111_v41, %s11026_s22  ;;  %5393 = vadd.xlane.f32.xlu0 %v5392_v44  ;;  %v14058_v46 = vpop.permute.xlu0 %5236  ;;  %v5115_v41 = vmul.f32 %v14063_v37, %v14063_v37  ;;  %v16442_v44 = vld [vmem:[#allocation8_spill] sm:$0xff] }
 0x9d9   : > { %v14073_v29 = vsub.f32 %v16442_v44, %v4989_v30 }
 0x9da   : > { %v4159_v45 = vadd.f32 1e-05, %v4095_v60  ;;  %v5401_v60 = vsel %vm2033_vm3, %v5207_v53, 0.0 }
 0x9db   : > { %v5205_v47 = vpop.permute.xlu1 %5204  ;;  %16443 = vst [vmem:[#allocation69_spill] sm:$0xff] %v14073_v29  ;;  %v5117_v6 = vmul.f32 %v14073_v29, %v14073_v29 }
 0x9dc   : > { %10560 = vrsqrt.f32 %v4159_v45  ;;  %5282 = vrot.lane.b32.xlu1 %v5113_v57, %s11026_s22  ;;  %v14067_v24 = vpop.permute.xlu0 %5240  ;;  %v5398_v4 = vsel %vm2033_vm3, %v5205_v47, 0.0  ;;  %v10559_v57 = vpop.eup %10558  ;;  %v16444_v45 = vld [vmem:[#allocation13_spill] sm:$0xff] }
 0x9dd   : > { %5399 = vadd.xlane.f32.xlu0 %v5398_v4  ;;  %v14083_v47 = vsub.f32 %v16444_v45, %v4991_v49  ;;  %v16446_v4 = vld [vmem:[#allocation79_spill] sm:$0xff] }
 0x9de   : > { %v4993_v37 = vmul.f32 0.03125, %v16446_v4  ;;  %v16450_v49 = vld [vmem:[#allocation35_spill] sm:$0xff] }
 0x9df   : > { %16445 = vst [vmem:[#allocation71_spill] sm:$0xff] %v14083_v47  ;;  %v5119_v44 = vmul.f32 %v14083_v47, %v14083_v47  ;;  %v4995_v45 = vmul.f32 0.03125, %v16450_v49  ;;  %v5416_v49 = vsel %vm2033_vm3, %v14011_v5, 0.0 }
 0x9e0   : > { %5286 = vrot.lane.b32.xlu1 %v5115_v41, %s11026_s22  ;;  %v14077_v38 = vpop.permute.xlu0 %5244  ;;  %v16447_v41 = vld [vmem:[#allocation86_spill] sm:$0xff] }
 0x9e1   : > { %5402 = vadd.xlane.f32.xlu0 %v5401_v60  ;;  %v4288_v53 = vmul.f32 %v10559_v57, %v16447_v41  ;;  %v16448_v60 = vld [vmem:[#allocation15_spill] sm:$0xff] }
 0x9e2   : > { %v14095_v29 = vsub.f32 %v16448_v60, %v4993_v37 }
 0x9e3   : > { %v4358_v57 = vmul.f32 %v14106_v21, %v4288_v53  ;;  %v14123_v53 = vld [vmem:[%s15755_s10] ss:$0 sm:$0xff] }
 0x9e4   : > { %5290 = vrot.lane.b32.xlu1 %v5117_v6, %s11026_s22  ;;  %v14087_v30 = vpop.permute.xlu0 %5248  ;;  %16449 = vst [vmem:[#allocation108_spill] sm:$0xff] %v14095_v29  ;;  %v5410_v6 = vsel %vm2033_vm3, %v14002_v19, 0.0  ;;  %v5121_v37 = vmul.f32 %v14095_v29, %v14095_v29 }
 0x9e5   : > { %5405 = vadd.xlane.f32.xlu0 %v5404_v62  ;;  %v16451_v62 = vld [vmem:[#allocation14_spill] sm:$0xff] }
 0x9e6   : > { %v14112_v41 = vsub.f32 %v16451_v62, %v4995_v45  ;;  %v4428_v45 = vadd.f32 %v14123_v53, %v4358_v57 }
 0x9e8   : > { %5294 = vrot.lane.b32.xlu1 %v5119_v44, %s11026_s22  ;;  %v14101_v42 = vpop.permute.xlu0 %5252  ;;  %16452 = vst [vmem:[#allocation73_spill] sm:$0xff] %v14112_v41  ;;  %v16453_v44 = vld [vmem:[#allocation78_spill] sm:$0xff]  ;;  %v5123_v62 = vmul.f32 %v14112_v41, %v14112_v41  ;;  %v4492_v47 = vmax.f32 %v4428_v45, 0.0  ;;  %v16457_v41 = vld [vmem:[#allocation21_spill] sm:$0xff] }
 0x9e9   : > { %v10561_v4 = vpop.eup %10560  ;;  %5411 = vadd.xlane.f32.xlu0 %v5410_v6  ;;  %v4997_v60 = vmul.f32 0.03125, %v16453_v44  ;;  %v16454_v44 = vld [vmem:[#allocation19_spill] sm:$0xff] }
 0x9ea   : > { %v4287_v19 = vmul.f32 %v10561_v4, %v13595_v11  ;;  %v16456_v4 = vld [vmem:[#allocation100_spill] sm:$0xff] }
 0x9eb   : > { %v14129_v11 = vsub.f32 %v16454_v44, %v4997_v60  ;;  %v16459_v60 = vld [vmem:[#allocation81_spill] sm:$0xff] }
 0x9ec   : > { %5298 = vrot.lane.b32.xlu1 %v5121_v37, %s11026_s22  ;;  %v4357_v6 = vmul.f32 %v14106_v21, %v4287_v19  ;;  %v4999_v37 = vmul.f32 0.03125, %v16456_v4  ;;  %v5257_v29 = vpop.permute.xlu0 %5256  ;;  %v5422_v19 = vsel %vm2033_vm3, %v14020_v18, 0.0  ;;  %v5001_v44 = vmul.f32 0.03125, %v16459_v60 }
 0x9ed   : > { %5417 = vadd.xlane.f32.xlu0 %v5416_v49  ;;  %16455 = vst [vmem:[#allocation89_spill] sm:$0xff] %v14129_v11  ;;  %v5125_v57 = vmul.f32 %v14129_v11, %v14129_v11  ;;  %v5428_v18 = vsel %vm2033_vm3, %v14029_v10, 0.0  ;;  %v16463_v10 = vld [vmem:[#allocation25_spill] sm:$0xff]  ;;  %v5440_v60 = vsel %vm2033_vm3, %v14047_v48, 0.0 }
 0x9ee   : > { %v4427_v5 = vadd.f32 %v14123_v53, %v4357_v6  ;;  %v14139_v12 = vsub.f32 %v16457_v41, %v4999_v37  ;;  %v16462_v41 = vld [vmem:[#allocation102_spill] sm:$0xff] }
 0x9ef   : > { %v5003_v37 = vmul.f32 0.03125, %v16462_v41 }
 0x9f0   : > { %5302 = vrot.lane.b32.xlu1 %v5123_v62, %s11026_s22  ;;  %v4491_v49 = vmax.f32 %v4427_v5, 0.0  ;;  %16458 = vst [vmem:[#allocation75_spill] sm:$0xff] %v14139_v12  ;;  %v5261_v6 = vpop.permute.xlu0 %5260  ;;  %v5127_v45 = vmul.f32 %v14139_v12, %v14139_v12  ;;  %v16460_v62 = vld [vmem:[#allocation20_spill] sm:$0xff] }
 0x9f1   : > { %5423 = vadd.xlane.f32.xlu0 %v5422_v19  ;;  %v14150_v4 = vsub.f32 %v16460_v62, %v5001_v44  ;;  %v14159_v19 = vsub.f32 %v16463_v10, %v5003_v37  ;;  %v5452_v37 = vsel %vm2033_vm3, %v14067_v24, 0.0  ;;  %v5470_v24 = vsel %vm2033_vm3, %v14101_v42, 0.0 }
 0x9f2   : > { %10314 = vmatmul.mubr.msk.f32.gmra.mxu1 %vm2033_vm3, %v4491_v49  ;;  %v5005_v49 = vmul.f32 0.03125, %v13634_v39  ;;  %v5446_v39 = vsel %vm2033_vm3, %v14058_v46, 0.0  ;;  %v5458_v46 = vsel %vm2033_vm3, %v14077_v38, 0.0 }
 0x9f3   : > { %10316 = vmatprep.mubr.msk.f32.mxu1 %vm2033_vm3, %v4492_v47  ;;  %16461 = vst [vmem:[#allocation4_spill] sm:$0xff] %v14150_v4  ;;  %v5434_v47 = vsel %vm2033_vm3, %v14038_v20, 0.0  ;;  %v5129_v5 = vmul.f32 %v14150_v4, %v14150_v4  ;;  %16464 = vst [vmem:[#allocation77_spill] sm:$0xff] %v14159_v19  ;;  %v5131_v44 = vmul.f32 %v14159_v19, %v14159_v19  ;;  %v16465_v20 = vld [vmem:[#allocation36_spill] sm:$0xff] }
 0x9f4   : > { %5306 = vrot.lane.b32.xlu1 %v5125_v57, %s11026_s22  ;;  %v5265_v57 = vpop.permute.xlu0 %5264 }
 0x9f5   : > { %5429 = vadd.xlane.f32.xlu0 %v5428_v18  ;;  %v14168_v18 = vsub.f32 %v16465_v20, %v5005_v49 }
 0x9f7   : > { %16466 = vst [vmem:[#allocation6_spill] sm:$0xff] %v14168_v18  ;;  %v5133_v41 = vmul.f32 %v14168_v18, %v14168_v18 }
 0x9f8   : > { %5310 = vrot.lane.b32.xlu1 %v5127_v45, %s11026_s22  ;;  %v5007_v45 = vmul.f32 0.03125, %v13665_v55  ;;  %v5269_v62 = vpop.permute.xlu0 %5268 }
 0x9f9   : > { %5435 = vadd.xlane.f32.xlu0 %v5434_v47 }
 0x9fa   : > { %v14177_v48 = vsub.f32 %v16359_v25, %v5007_v45  ;;  %v5464_v25 = vsel %vm2033_vm3, %v14087_v30, 0.0 }
 0x9fc   : > { %5314 = vrot.lane.b32.xlu1 %v5129_v5, %s11026_s22  ;;  %16467 = vst [vmem:[#allocation96_spill] sm:$0xff] %v14177_v48  ;;  %v5135_v55 = vmul.f32 %v14177_v48, %v14177_v48  ;;  %v5273_v47 = vpop.permute.xlu0 %5272  ;;  %v5211_v5 = vpop.permute.xlu1 %5210 }
 0x9fd   : > { %5441 = vadd.xlane.f32.xlu0 %v5440_v60 }
 0xa00   : > { %5318 = vrot.lane.b32.xlu1 %v5131_v44, %s11026_s22  ;;  %v5277_v10 = vpop.permute.xlu0 %5276 }
 0xa01   : > { %5447 = vadd.xlane.f32.xlu0 %v5446_v39  ;;  %v5476_v39 = vsel %vm2033_vm3, %v5257_v29, 0.0 }
 0xa04   : > { %5322 = vrot.lane.b32.xlu1 %v5133_v41, %s11026_s22  ;;  %v5281_v44 = vpop.permute.xlu0 %5280  ;;  %v5482_v41 = vsel %vm2033_vm3, %v5261_v6, 0.0 }
 0xa05   : > { %5453 = vadd.xlane.f32.xlu0 %v5452_v37 }
 0xa08   : > { %5326 = vrot.lane.b32.xlu1 %v5135_v55, %s11026_s22  ;;  %v5285_v37 = vpop.permute.xlu0 %5284  ;;  %v5488_v55 = vsel %vm2033_vm3, %v5265_v57, 0.0  ;;  %v5506_v57 = vsel %vm2033_vm3, %v5277_v10, 0.0 }
 0xa09   : > { %5459 = vadd.xlane.f32.xlu0 %v5458_v46 }
 0xa0c   : > { %v5289_v46 = vpop.permute.xlu0 %5288 }
 0xa0d   : > { %5465 = vadd.xlane.f32.xlu0 %v5464_v25  ;;  %v5494_v25 = vsel %vm2033_vm3, %v5269_v62, 0.0 }
 0xa10   : > { %v4033_v49 = vpop.xlane.xlu1 %4032 }
 0xa11   : > { %v4097_v60 = vmul.f32 0.03125, %v4033_v49  ;;  %5471 = vadd.xlane.f32.xlu0 %v5470_v24 }
 0xa13   : > { %v4161_v20 = vadd.f32 1e-05, %v4097_v60  ;;  %v5500_v60 = vsel %vm2033_vm3, %v5273_v47, 0.0  ;;  %v5512_v47 = vsel %vm2033_vm3, %v5281_v44, 0.0 }
 0xa14   : > { %v5215_v45 = vpop.permute.xlu1 %5214 }
 0xa15   : > { %10562 = vrsqrt.f32 %v4161_v20  ;;  %5477 = vadd.xlane.f32.xlu0 %v5476_v39  ;;  %v5293_v20 = vpop.permute.xlu0 %5292 }
 0xa18   : > { %v5219_v38 = vpop.permute.xlu1 %5218 }
 0xa19   : > { %5483 = vadd.xlane.f32.xlu0 %v5482_v41  ;;  %v5297_v48 = vpop.permute.xlu0 %5296 }
 0xa1c   : > { %v5223_v30 = vpop.permute.xlu1 %5222 }
 0xa1d   : > { %5489 = vadd.xlane.f32.xlu0 %v5488_v55  ;;  %v5301_v10 = vpop.permute.xlu0 %5300 }
 0xa20   : > { %v5227_v42 = vpop.permute.xlu1 %5226 }
 0xa21   : > { %5495 = vadd.xlane.f32.xlu0 %v5494_v25  ;;  %v5518_v25 = vsel %vm2033_vm3, %v5285_v37, 0.0 }
 0xa22   : > { %v10563_v49 = vpop.eup %10562 }
 0xa23   : > { %v4289_v24 = vmul.f32 %v10563_v49, %v13786_v2  ;;  %v5395_v2 = vsel %vm2033_vm3, %v13888_v1, 0.0  ;;  %v5413_v49 = vsel %vm2033_vm3, %v5215_v45, 0.0  ;;  %v5305_v1 = vpop.permute.xlu0 %5304 }
 0xa24   : > { %v5231_v29 = vpop.permute.xlu1 %5230 }
 0xa25   : > { %5501 = vadd.xlane.f32.xlu0 %v5500_v60  ;;  %v4359_v6 = vmul.f32 %v14106_v21, %v4289_v24  ;;  %v5407_v21 = vsel %vm2033_vm3, %v5211_v5, 0.0  ;;  %v5524_v60 = vsel %vm2033_vm3, %v5289_v46, 0.0  ;;  %v5530_v5 = vsel %vm2033_vm3, %v5293_v20, 0.0 }
 0xa27   : > { %v4429_v39 = vadd.f32 %v14123_v53, %v4359_v6  ;;  %v5419_v6 = vsel %vm2033_vm3, %v5219_v38, 0.0  ;;  %v5309_v45 = vpop.permute.xlu0 %5308 }
 0xa28   : > { %v5235_v41 = vpop.permute.xlu1 %5234 }
 0xa29   : > { %5507 = vadd.xlane.f32.xlu0 %v5506_v57  ;;  %v4493_v55 = vmax.f32 %v4429_v39, 0.0  ;;  %v5425_v39 = vsel %vm2033_vm3, %v5223_v30, 0.0  ;;  %v5536_v57 = vsel %vm2033_vm3, %v5297_v48, 0.0  ;;  %v5548_v30 = vsel %vm2033_vm3, %v5305_v1, 0.0 }
 0xa2b   : > { %10317 = vmatmul.mubr.msk.f32.gmra.mxu1 %vm2033_vm3, %v4493_v55  ;;  %v5431_v55 = vsel %vm2033_vm3, %v5227_v42, 0.0  ;;  %v5313_v38 = vpop.permute.xlu0 %5312 }
 0xa2c   : > { %5396 = vadd.xlane.f32.xlu1 %v5395_v2  ;;  %v5239_v62 = vpop.permute.xlu1 %5238  ;;  %v5542_v2 = vsel %vm2033_vm3, %v5301_v10, 0.0 }
 0xa2d   : > { %5513 = vadd.xlane.f32.xlu0 %v5512_v47  ;;  %v5437_v47 = vsel %vm2033_vm3, %v5231_v29, 0.0 }
 0xa2f   : > { %v5317_v42 = vpop.permute.xlu0 %5316 }
 0xa30   : > { %5408 = vadd.xlane.f32.xlu1 %v5407_v21  ;;  %v5243_v53 = vpop.permute.xlu1 %5242  ;;  %v5443_v21 = vsel %vm2033_vm3, %v5235_v41, 0.0  ;;  %v5566_v1 = vsel %vm2033_vm3, %v5317_v42, 0.0 }
 0xa31   : > { %5519 = vadd.xlane.f32.xlu0 %v5518_v25  ;;  %v5554_v25 = vsel %vm2033_vm3, %v5309_v45, 0.0 }
 0xa33   : > { %v5321_v29 = vpop.permute.xlu0 %5320 }
 0xa34   : > { %5414 = vadd.xlane.f32.xlu1 %v5413_v49  ;;  %v5247_v24 = vpop.permute.xlu1 %5246  ;;  %v5449_v49 = vsel %vm2033_vm3, %v5239_v62, 0.0 }
 0xa35   : > { %5525 = vadd.xlane.f32.xlu0 %v5524_v60  ;;  %v5560_v60 = vsel %vm2033_vm3, %v5313_v38, 0.0 }
 0xa38   : > { %5420 = vadd.xlane.f32.xlu1 %v5419_v6  ;;  %v5251_v44 = vpop.permute.xlu1 %5250  ;;  %v5455_v6 = vsel %vm2033_vm3, %v5243_v53, 0.0 }
 0xa39   : > { %5531 = vadd.xlane.f32.xlu0 %v5530_v5  ;;  %v5461_v5 = vsel %vm2033_vm3, %v5247_v24, 0.0  ;;  %v5467_v62 = vsel %vm2033_vm3, %v5251_v44, 0.0 }
 0xa3c   : > { %5426 = vadd.xlane.f32.xlu1 %v5425_v39  ;;  %v5255_v37 = vpop.permute.xlu1 %5254  ;;  %v5572_v39 = vsel %vm2033_vm3, %v5321_v29, 0.0 }
 0xa3d   : > { %5537 = vadd.xlane.f32.xlu0 %v5536_v57  ;;  %v5325_v57 = vpop.permute.xlu0 %5324  ;;  %v5473_v53 = vsel %vm2033_vm3, %v5255_v37, 0.0  ;;  %v9206_v37 = vld [vmem:[%s15756_s11] ss:$0 sm:$0xff] }
 0xa40   : > { %5432 = vadd.xlane.f32.xlu1 %v5431_v55  ;;  %v5259_v46 = vpop.permute.xlu1 %5258  ;;  %v5578_v55 = vsel %vm2033_vm3, %v5325_v57, 0.0 }
 0xa41   : > { %5543 = vadd.xlane.f32.xlu0 %v5542_v2  ;;  %v5479_v38 = vsel %vm2033_vm3, %v5259_v46, 0.0 }
 0xa44   : > { %5438 = vadd.xlane.f32.xlu1 %v5437_v47  ;;  %v5263_v20 = vpop.permute.xlu1 %5262 }
 0xa45   : > { %5549 = vadd.xlane.f32.xlu0 %v5548_v30  ;;  %v5485_v24 = vsel %vm2033_vm3, %v5263_v20, 0.0 }
 0xa48   : > { %5444 = vadd.xlane.f32.xlu1 %v5443_v21  ;;  %v5267_v48 = vpop.permute.xlu1 %5266 }
 0xa49   : > { %5555 = vadd.xlane.f32.xlu0 %v5554_v25  ;;  %v5491_v44 = vsel %vm2033_vm3, %v5267_v48, 0.0 }
 0xa4c   : > { %5450 = vadd.xlane.f32.xlu1 %v5449_v49  ;;  %v5271_v10 = vpop.permute.xlu1 %5270 }
 0xa4d   : > { %5561 = vadd.xlane.f32.xlu0 %v5560_v60  ;;  %v5497_v25 = vsel %vm2033_vm3, %v5271_v10, 0.0 }
 0xa50   : > { %5456 = vadd.xlane.f32.xlu1 %v5455_v6  ;;  %v5275_v41 = vpop.permute.xlu1 %5274 }
 0xa51   : > { %5567 = vadd.xlane.f32.xlu0 %v5566_v1  ;;  %v5503_v46 = vsel %vm2033_vm3, %v5275_v41, 0.0 }
 0xa54   : > { %5462 = vadd.xlane.f32.xlu1 %v5461_v5  ;;  %v5279_v45 = vpop.permute.xlu1 %5278 }
 0xa55   : > { %5573 = vadd.xlane.f32.xlu0 %v5572_v39  ;;  %v5509_v48 = vsel %vm2033_vm3, %v5279_v45, 0.0 }
 0xa58   : > { %5468 = vadd.xlane.f32.xlu1 %v5467_v62  ;;  %v5283_v2 = vpop.permute.xlu1 %5282 }
 0xa59   : > { %5579 = vadd.xlane.f32.xlu0 %v5578_v55  ;;  %v5515_v60 = vsel %vm2033_vm3, %v5283_v2, 0.0 }
 0xa5c   : > { %5474 = vadd.xlane.f32.xlu1 %v5473_v53  ;;  %v5287_v47 = vpop.permute.xlu1 %5286 }
 0xa5d   : > { %v5521_v6 = vsel %vm2033_vm3, %v5287_v47, 0.0 }
 0xa60   : > { %5480 = vadd.xlane.f32.xlu1 %v5479_v38  ;;  %v5291_v21 = vpop.permute.xlu1 %5290 }
 0xa61   : > { %v14229_v30 = vpop.xlane.xlu0 %5393  ;;  %v5527_v5 = vsel %vm2033_vm3, %v5291_v21, 0.0 }
 0xa64   : > { %5486 = vadd.xlane.f32.xlu1 %v5485_v24  ;;  %v5295_v20 = vpop.permute.xlu1 %5294 }
 0xa65   : > { %v5533_v57 = vsel %vm2033_vm3, %v5295_v20, 0.0 }
 0xa66   : > { %v14236_v42 = vpop.xlane.xlu0 %5399 }
 0xa68   : > { %5492 = vadd.xlane.f32.xlu1 %v5491_v44  ;;  %v5299_v10 = vpop.permute.xlu1 %5298 }
 0xa69   : > { %v5539_v45 = vsel %vm2033_vm3, %v5299_v10, 0.0 }
 0xa6a   : > { %v14240_v49 = vpop.xlane.xlu0 %5402 }
 0xa6c   : > { %5498 = vadd.xlane.f32.xlu1 %v5497_v25  ;;  %v5303_v1 = vpop.permute.xlu1 %5302 }
 0xa6d   : > { %v5545_v2 = vsel %vm2033_vm3, %v5303_v1, 0.0 }
 0xa6e   : > { %v14244_v29 = vpop.xlane.xlu0 %5405 }
 0xa6f   : > { %5845 = vrot.lane.b32.xlu0 %v9206_v37, %s11027_s18 }
 0xa70   : > { %5504 = vadd.xlane.f32.xlu1 %v5503_v46  ;;  %v5307_v39 = vpop.permute.xlu1 %5306 }
 0xa71   : > { %v5551_v24 = vsel %vm2033_vm3, %v5307_v39, 0.0 }
 0xa72   : > { %v14247_v41 = vpop.xlane.xlu0 %5411 }
 0xa74   : > { %5510 = vadd.xlane.f32.xlu1 %v5509_v48  ;;  %v5311_v55 = vpop.permute.xlu1 %5310 }
 0xa75   : > { %v5557_v44 = vsel %vm2033_vm3, %v5311_v55, 0.0 }
 0xa76   : > { %v14251_v62 = vpop.xlane.xlu0 %5417 }
 0xa78   : > { %5516 = vadd.xlane.f32.xlu1 %v5515_v60  ;;  %v5315_v38 = vpop.permute.xlu1 %5314 }
 0xa79   : > { %v5563_v37 = vsel %vm2033_vm3, %v5315_v38, 0.0 }
 0xa7a   : > { %v14254_v53 = vpop.xlane.xlu0 %5423 }
 0xa7c   : > { %5522 = vadd.xlane.f32.xlu1 %v5521_v6  ;;  %v5319_v21 = vpop.permute.xlu1 %5318 }
 0xa7d   : > { %v5569_v20 = vsel %vm2033_vm3, %v5319_v21, 0.0 }
 0xa7e   : > { %v14258_v47 = vpop.xlane.xlu0 %5429 }
 0xa80   : > { %5528 = vadd.xlane.f32.xlu1 %v5527_v5  ;;  %v5323_v46 = vpop.permute.xlu1 %5322 }
 0xa81   : > { %v5575_v10 = vsel %vm2033_vm3, %v5323_v46, 0.0 }
 0xa82   : > { %v14261_v25 = vpop.xlane.xlu0 %5435 }
 0xa84   : > { %5534 = vadd.xlane.f32.xlu1 %v5533_v57  ;;  %v5327_v60 = vpop.permute.xlu1 %5326  ;;  %v9207_v57 = vld [vmem:[%s15757_s12] ss:$0 sm:$0xff] }
 0xa85   : > { %v5581_v1 = vsel %vm2033_vm3, %v5327_v60, 0.0 }
 0xa86   : > { %v14265_v48 = vpop.xlane.xlu0 %5441 }
 0xa88   : > { %5540 = vadd.xlane.f32.xlu1 %v5539_v45 }
 0xa8a   : > { %v14268_v6 = vpop.xlane.xlu0 %5447 }
 0xa8c   : > { %5546 = vadd.xlane.f32.xlu1 %v5545_v2 }
 0xa8e   : > { %v14271_v5 = vpop.xlane.xlu0 %5453 }
 0xa90   : > { %5552 = vadd.xlane.f32.xlu1 %v5551_v24 }
 0xa92   : > { %v14273_v39 = vpop.xlane.xlu0 %5459 }
 0xa94   : > { %5558 = vadd.xlane.f32.xlu1 %v5557_v44 }
 0xa96   : > { %v14278_v45 = vpop.xlane.xlu0 %5465 }
 0xa98   : > { %5564 = vadd.xlane.f32.xlu1 %v5563_v37 }
 0xa9a   : > { %v14281_v38 = vpop.xlane.xlu0 %5471 }
 0xa9c   : > { %5570 = vadd.xlane.f32.xlu1 %v5569_v20 }
 0xa9e   : > { %v14285_v44 = vpop.xlane.xlu0 %5477 }
 0xaa0   : > { %5576 = vadd.xlane.f32.xlu1 %v5575_v10 }
 0xaa2   : > { %v14291_v46 = vpop.xlane.xlu0 %5483 }
 0xaa4   : > { %5582 = vadd.xlane.f32.xlu1 %v5581_v1 }
 0xaa6   : > { %v14295_v10 = vpop.xlane.xlu0 %5489 }
 0xab5   : > { %v5397_v55 = vpop.xlane.xlu1 %5396  ;;  %5917 = vrot.lane.b32.xlu1 %v9207_v57, %s11027_s18  ;;  %v14301_v57 = vpop.xlane.xlu0 %5495 }
 0xab9   : > { %v5409_v2 = vpop.xlane.xlu1 %5408  ;;  %v14305_v19 = vpop.xlane.xlu0 %5501 }
 0xabd   : > { %v14283_v24 = vpop.xlane.xlu1 %5414  ;;  %v14311_v11 = vpop.xlane.xlu0 %5507 }
 0xabe   : > { %16468 = vst [vmem:[#allocation5_spill] sm:$0xff] %v14311_v11 }
 0xac1   : > { %v14287_v21 = vpop.xlane.xlu1 %5420  ;;  %v14315_v51 = vpop.xlane.xlu0 %5513 }
 0xac2   : > { %16469 = vst [vmem:[#allocation92_spill] sm:$0xff] %v14315_v51 }
 0xac5   : > { %v14289_v37 = vpop.xlane.xlu1 %5426  ;;  %v14321_v17 = vpop.xlane.xlu0 %5519 }
 0xac6   : > { %16470 = vst [vmem:[#allocation10_spill] sm:$0xff] %v14321_v17 }
 0xac9   : > { %v14293_v20 = vpop.xlane.xlu1 %5432  ;;  %v14325_v40 = vpop.xlane.xlu0 %5525 }
 0xaca   : > { %16471 = vst [vmem:[#allocation46_spill] sm:$0xff] %v14325_v40 }
 0xacd   : > { %v14297_v60 = vpop.xlane.xlu1 %5438  ;;  %v14331_v7 = vpop.xlane.xlu0 %5531 }
 0xace   : > { %16473 = vst [vmem:[#allocation12_spill] sm:$0xff] %v14331_v7 }
 0xad1   : > { %v14299_v1 = vpop.xlane.xlu1 %5444  ;;  %v14335_v61 = vpop.xlane.xlu0 %5537 }
 0xad2   : > { %16475 = vst [vmem:[#allocation48_spill] sm:$0xff] %v14335_v61  ;;  %v5584_v61 = vmul.f32 0.03125, %v14229_v30 }
 0xad5   : > { %v14303_v18 = vpop.xlane.xlu1 %5450  ;;  %v14341_v51 = vpop.xlane.xlu0 %5543 }
 0xad6   : > { %16478 = vst [vmem:[#allocation11_spill] sm:$0xff] %v14341_v51  ;;  %v5586_v51 = vmul.f32 0.03125, %v14236_v42  ;;  %v5592_v42 = vmul.f32 0.03125, %v14251_v62 }
 0xad9   : > { %v14307_v4 = vpop.xlane.xlu1 %5456  ;;  %v14345_v22 = vpop.xlane.xlu0 %5549 }
 0xada   : > { %16480 = vst [vmem:[#allocation50_spill] sm:$0xff] %v14345_v22  ;;  %v5648_v22 = vadd.f32 1e-05, %v5584_v61 }
 0xadc   : > { %10564 = vrsqrt.f32 %v5648_v22  ;;  %v5591_v22 = vmul.f32 0.03125, %v14283_v24  ;;  %v5598_v24 = vmul.f32 0.03125, %v14261_v25 }
 0xadd   : > { %v14309_v12 = vpop.xlane.xlu1 %5462  ;;  %v14351_v11 = vpop.xlane.xlu0 %5555 }
 0xade   : > { %16483 = vst [vmem:[#allocation52_spill] sm:$0xff] %v14351_v11  ;;  %v5655_v62 = vadd.f32 1e-05, %v5591_v22  ;;  %v5662_v25 = vadd.f32 1e-05, %v5598_v24  ;;  %v16493_v24 = vld [vmem:[#allocation33_spill] sm:$0xff] }
 0xae1   : > { %v14313_v3 = vpop.xlane.xlu1 %5468 }
 0xae5   : > { %v14317_v52 = vpop.xlane.xlu1 %5474 }
 0xae9   : > { %v14319_v0 = vpop.xlane.xlu1 %5480 }
 0xaed   : > { %v14323_v50 = vpop.xlane.xlu1 %5486 }
 0xaf1   : > { %v14327_v32 = vpop.xlane.xlu1 %5492 }
 0xaf5   : > { %v14329_v59 = vpop.xlane.xlu1 %5498 }
 0xaf6   : > { %16472 = vst [vmem:[#allocation110_spill] sm:$0xff] %v14329_v59 }
 0xaf9   : > { %v14333_v16 = vpop.xlane.xlu1 %5504 }
 0xafa   : > { %16474 = vst [vmem:[#allocation23_spill] sm:$0xff] %v14333_v16  ;;  %v14356_v16 = vpop.xlane.xlu0 %5561 }
 0xafb   : > { %16485 = vst [vmem:[#allocation18_spill] sm:$0xff] %v14356_v16 }
 0xafd   : > { %v14337_v33 = vpop.xlane.xlu1 %5510 }
 0xafe   : > { %16476 = vst [vmem:[#allocation111_spill] sm:$0xff] %v14337_v33  ;;  %v14366_v59 = vpop.xlane.xlu0 %5567 }
 0xb01   : > { %v14339_v63 = vpop.xlane.xlu1 %5516 }
 0xb02   : > { %16477 = vst [vmem:[#allocation27_spill] sm:$0xff] %v14339_v63  ;;  %v5585_v63 = vmul.f32 0.03125, %v5397_v55 }
 0xb04   : > { %v5649_v30 = vadd.f32 1e-05, %v5585_v63  ;;  %v6639_v63 = vld [vmem:[%s15760_s15 + $0x18] sm:$0xff] }
 0xb05   : > { %v14343_v17 = vpop.xlane.xlu1 %5522  ;;  %10319 = vmatprep.subr.mxu0 %v6639_v63 }
 0xb06   : > { %16479 = vst [vmem:[#allocation39_spill] sm:$0xff] %v14343_v17  ;;  %v5588_v17 = vmul.f32 0.03125, %v14244_v29  ;;  %v5589_v29 = vmul.f32 0.03125, %v5409_v2  ;;  %10320 = vmatpush3.msra.mxu0 %v6639_v63  ;;  %v6637_v2 = vld [vmem:[%s15760_s15 + $0x8] sm:$0xff] }
 0xb08   : > { %v5652_v11 = vadd.f32 1e-05, %v5588_v17  ;;  %v14372_v17 = vpop.xlane.xlu0 %5573 }
 0xb09   : > { %v14347_v40 = vpop.xlane.xlu1 %5528  ;;  %16487 = vst [vmem:[#allocation115_spill] sm:$0xff] %v14372_v17  ;;  %v5602_v17 = vmul.f32 0.03125, %v14268_v6 }
 0xb0a   : > { %16481 = vst [vmem:[#allocation113_spill] sm:$0xff] %v14347_v40  ;;  %v5587_v40 = vmul.f32 0.03125, %v14240_v49 }
 0xb0c   : > { %v5651_v16 = vadd.f32 1e-05, %v5587_v40  ;;  %v14387_v55 = vpop.xlane.xlu0 %5579 }
 0xb0d   : > { %v14349_v26 = vpop.xlane.xlu1 %5534  ;;  %16489 = vst [vmem:[#allocation56_spill] sm:$0xff] %v14387_v55  ;;  %v16494_v55 = vld [vmem:[#allocation41_spill] sm:$0xff] }
 0xb0e   : > { %16482 = vst [vmem:[#allocation16_spill] sm:$0xff] %v14349_v26  ;;  %v5650_v26 = vadd.f32 1e-05, %v5586_v51  ;;  %v5594_v51 = vmul.f32 0.03125, %v14254_v53  ;;  %v5593_v53 = vmul.f32 0.03125, %v14287_v21  ;;  %v6636_v21 = vld [vmem:[%s15760_s15] sm:$0xff] }
 0xb10   : > { %10566 = vrsqrt.f32 %v5650_v26  ;;  %v5653_v26 = vadd.f32 1e-05, %v5589_v29  ;;  %v5657_v29 = vadd.f32 1e-05, %v5593_v53  ;;  %v14400_v22 = vpop.permute.xlu0 %5845 }
 0xb11   : > { %v14353_v7 = vpop.xlane.xlu1 %5540  ;;  %10568 = vrsqrt.f32 %v5652_v11  ;;  %v6638_v11 = vld [vmem:[%s15760_s15 + $0x10] sm:$0xff] }
 0xb12   : > { %16484 = vst [vmem:[#allocation93_spill] sm:$0xff] %v14353_v7  ;;  %v5590_v7 = vmul.f32 0.03125, %v14247_v41  ;;  %10570 = vrsqrt.f32 %v5649_v30  ;;  %v5656_v41 = vadd.f32 1e-05, %v5592_v42  ;;  %10321 = vmatprep.subr.mxu0 %v6638_v11  ;;  %v10565_v42 = vpop.eup %10564 }
 0xb13   : > { %10572 = vrsqrt.f32 %v5651_v16  ;;  %v5596_v16 = vmul.f32 0.03125, %v14258_v47  ;;  %10322 = vmatpush3.msra.mxu0 %v6638_v11 }
 0xb14   : > { %v5654_v61 = vadd.f32 1e-05, %v5590_v7  ;;  %v5658_v7 = vadd.f32 1e-05, %v5594_v51  ;;  %10323 = vmatprep.subr.mxu0 %v6637_v2  ;;  %v5595_v51 = vmul.f32 0.03125, %v14289_v37  ;;  %v5597_v37 = vmul.f32 0.03125, %v14293_v20 }
 0xb15   : > { %v14358_v33 = vpop.xlane.xlu1 %5546  ;;  %v5660_v47 = vadd.f32 1e-05, %v5596_v16  ;;  %10324 = vmatpush3.msra.mxu0 %v6637_v2  ;;  %v16492_v2 = vld [vmem:[#allocation97_spill] sm:$0xff] }
 0xb16   : > { %16486 = vst [vmem:[#allocation54_spill] sm:$0xff] %v14358_v33  ;;  %10574 = vrsqrt.f32 %v5654_v61  ;;  %10325 = vmatprep.subr.mxu0 %v6636_v21  ;;  %v5659_v53 = vadd.f32 1e-05, %v5595_v51 }
 0xb17   : > { %10576 = vrsqrt.f32 %v5656_v41  ;;  %10326 = vmatpush3.msra.mxu0 %v6636_v21 }
 0xb18   : > { %10578 = vrsqrt.f32 %v5653_v26  ;;  %v5600_v26 = vmul.f32 0.03125, %v14265_v48 }
 0xb19   : > { %v14363_v28 = vpop.xlane.xlu1 %5552  ;;  %10580 = vrsqrt.f32 %v5658_v7 }
 0xb1a   : > { %10582 = vrsqrt.f32 %v5655_v62  ;;  %v5776_v62 = vmul.f32 %v10565_v42, %v16492_v2  ;;  %v16495_v42 = vld [vmem:[#allocation28_spill] sm:$0xff] }
 0xb1b   : > { %10584 = vrsqrt.f32 %v5660_v47 }
 0xb1c   : > { %10586 = vrsqrt.f32 %v5657_v29  ;;  %v5848_v47 = vmul.f32 %v14400_v22, %v5776_v62 }
 0xb1d   : > { %v14368_v33 = vpop.xlane.xlu1 %5558  ;;  %v10567_v61 = vpop.eup %10566  ;;  %10588 = vrsqrt.f32 %v5662_v25 }
 0xb1e   : > { %v10569_v41 = vpop.eup %10568  ;;  %v5778_v11 = vmul.f32 %v10567_v61, %v13659_v34  ;;  %10590 = vrsqrt.f32 %v5659_v53 }
 0xb1f   : > { %v10571_v63 = vpop.eup %10570  ;;  %v5780_v48 = vmul.f32 %v10569_v41, %v16493_v24  ;;  %v5661_v41 = vadd.f32 1e-05, %v5597_v37  ;;  %v5604_v37 = vmul.f32 0.03125, %v14271_v5 }
 0xb20   : > { %v10573_v16 = vpop.eup %10572  ;;  %v5850_v21 = vmul.f32 %v14400_v22, %v5778_v11 }
 0xb21   : > { %v14374_v49 = vpop.xlane.xlu1 %5564  ;;  %v5779_v61 = vmul.f32 %v10573_v16, %v16495_v42  ;;  %v5852_v51 = vmul.f32 %v14400_v22, %v5780_v48  ;;  %v5601_v48 = vmul.f32 0.03125, %v14299_v1 }
 0xb25   : > { %v14381_v40 = vpop.xlane.xlu1 %5570 }
 0xb26   : > { %16488 = vst [vmem:[#allocation17_spill] sm:$0xff] %v14381_v40  ;;  %v5777_v40 = vmul.f32 %v10571_v63, %v16494_v55  ;;  %v5599_v55 = vmul.f32 0.03125, %v14297_v60  ;;  %v16496_v63 = vld [vmem:[#allocation101_spill] sm:$0xff] }
 0xb28   : > { %v5849_v11 = vmul.f32 %v14400_v22, %v5777_v40  ;;  %v5851_v40 = vmul.f32 %v14400_v22, %v5779_v61  ;;  %v5663_v42 = vadd.f32 1e-05, %v5599_v55  ;;  %v5665_v61 = vadd.f32 1e-05, %v5601_v48 }
 0xb29   : > { %v14393_v30 = vpop.xlane.xlu1 %5576  ;;  %v5606_v55 = vmul.f32 0.03125, %v14273_v39 }
 0xb2a   : > { %16490 = vst [vmem:[#allocation116_spill] sm:$0xff] %v14393_v30  ;;  %v10575_v30 = vpop.eup %10574 }
 0xb2b   : > { %v10577_v2 = vpop.eup %10576  ;;  %v5782_v25 = vmul.f32 %v10575_v30, %v16496_v63  ;;  %v16497_v30 = vld [vmem:[#allocation43_spill] sm:$0xff] }
 0xb2c   : > { %v10579_v6 = vpop.eup %10578  ;;  %v5784_v53 = vmul.f32 %v10577_v2, %v16497_v30  ;;  %v5603_v2 = vmul.f32 0.03125, %v14303_v18  ;;  %v5670_v30 = vadd.f32 1e-05, %v5606_v55 }
 0xb2d   : > { %v14402_v7 = vpop.xlane.xlu1 %5582  ;;  %v10581_v24 = vpop.eup %10580  ;;  %v5854_v60 = vmul.f32 %v14400_v22, %v5782_v25 }
 0xb2e   : > { %16491 = vst [vmem:[#allocation22_spill] sm:$0xff] %v14402_v7  ;;  %v5664_v7 = vadd.f32 1e-05, %v5600_v26 }
 0xb30   : > { %10592 = vrsqrt.f32 %v5664_v7  ;;  %v5781_v7 = vmul.f32 %v10579_v6, %v13679_v15  ;;  %v5856_v15 = vmul.f32 %v14400_v22, %v5784_v53  ;;  %v5608_v53 = vmul.f32 0.03125, %v14278_v45 }
 0xb31   : > { %v14412_v34 = vpop.permute.xlu1 %5917  ;;  %10594 = vrsqrt.f32 %v5661_v41  ;;  %v5668_v41 = vadd.f32 1e-05, %v5604_v37 }
 0xb32   : > { %v5922_v29 = vadd.f32 %v14412_v34, %v5850_v21  ;;  %v5920_v20 = vadd.f32 %v14412_v34, %v5848_v47  ;;  %v5924_v16 = vadd.f32 %v14412_v34, %v5852_v51  ;;  %v5921_v21 = vadd.f32 %v14412_v34, %v5849_v11  ;;  %v16498_v11 = vld [vmem:[#allocation32_spill] sm:$0xff] }
 0xb33   : > { %v5666_v47 = vadd.f32 1e-05, %v5602_v17  ;;  %v10583_v17 = vpop.eup %10582  ;;  %v5926_v1 = vadd.f32 %v14412_v34, %v5854_v60  ;;  %v5923_v51 = vadd.f32 %v14412_v34, %v5851_v40  ;;  %v5786_v63 = vmul.f32 %v10581_v24, %v16498_v11  ;;  %v16499_v24 = vld [vmem:[#allocation84_spill] sm:$0xff] }
 0xb34   : > { %v5986_v26 = vmax.f32 %v5922_v29, 0.0  ;;  %v5984_v62 = vmax.f32 %v5920_v20, 0.0  ;;  %v5988_v29 = vmax.f32 %v5924_v16, 0.0  ;;  %v5985_v20 = vmax.f32 %v5921_v21, 0.0  ;;  %v10585_v25 = vpop.eup %10584 }
 0xb35   : > { %10596 = vrsqrt.f32 %v5666_v47  ;;  %v5853_v5 = vmul.f32 %v14400_v22, %v5781_v7  ;;  %v5783_v6 = vmul.f32 %v10583_v17, %v13841_v54  ;;  %v5987_v16 = vmax.f32 %v5923_v51, 0.0 }
 0xb36   : > { %6715 = vrot.lane.b32.xlu0 %v5986_v26, %s11026_s22  ;;  %6711 = vrot.lane.b32.xlu1 %v5984_v62, %s11026_s22  ;;  %10598 = vrsqrt.f32 %v5663_v42  ;;  %v10587_v26 = vpop.eup %10586  ;;  %v5990_v62 = vmax.f32 %v5926_v1, 0.0  ;;  %v5928_v21 = vadd.f32 %v14412_v34, %v5856_v15  ;;  %v5605_v47 = vmul.f32 0.03125, %v14307_v4  ;;  %v16500_v1 = vld [vmem:[#allocation40_spill] sm:$0xff] }
 0xb37   : > { %v5925_v18 = vadd.f32 %v14412_v34, %v5853_v5  ;;  %v5788_v48 = vmul.f32 %v10585_v25, %v16499_v24  ;;  %v10589_v60 = vpop.eup %10588  ;;  %10600 = vrsqrt.f32 %v5665_v61  ;;  %v5667_v40 = vadd.f32 1e-05, %v5603_v2 }
 0xb38   : > { %v5858_v54 = vmul.f32 %v14400_v22, %v5786_v63  ;;  %v5855_v39 = vmul.f32 %v14400_v22, %v5783_v6  ;;  %10602 = vrsqrt.f32 %v5668_v41  ;;  %v5785_v37 = vmul.f32 %v10587_v26, %v13854_v13  ;;  %v10591_v4 = vpop.eup %10590 }
 0xb39   : > { %v5992_v42 = vmax.f32 %v5928_v21, 0.0  ;;  %v5989_v7 = vmax.f32 %v5925_v18, 0.0  ;;  %v5790_v51 = vmul.f32 %v10589_v60, %v16500_v1  ;;  %10604 = vrsqrt.f32 %v5667_v40 }
 0xb3a   : > { %6719 = vrot.lane.b32.xlu0 %v5988_v29, %s11026_s22  ;;  %6713 = vrot.lane.b32.xlu1 %v5985_v20, %s11026_s22  ;;  %v5930_v17 = vadd.f32 %v14412_v34, %v5858_v54  ;;  %v5927_v29 = vadd.f32 %v14412_v34, %v5855_v39  ;;  %v5669_v20 = vadd.f32 1e-05, %v5605_v47  ;;  %v5607_v63 = vmul.f32 0.03125, %v14309_v12 }
 0xb3b   : > { %v5860_v13 = vmul.f32 %v14400_v22, %v5788_v48  ;;  %v5857_v45 = vmul.f32 %v14400_v22, %v5785_v37  ;;  %10606 = vrsqrt.f32 %v5670_v30  ;;  %v5672_v25 = vadd.f32 1e-05, %v5608_v53 }
 0xb3c   : > { %v5610_v61 = vmul.f32 0.03125, %v14281_v38  ;;  %v5787_v2 = vmul.f32 %v10591_v4, %v13870_v23  ;;  %v5994_v5 = vmax.f32 %v5930_v17, 0.0  ;;  %v5991_v41 = vmax.f32 %v5927_v29, 0.0 }
 0xb3d   : > { %v10593_v11 = vpop.eup %10592  ;;  %v5932_v55 = vadd.f32 %v14412_v34, %v5860_v13  ;;  %v5929_v12 = vadd.f32 %v14412_v34, %v5857_v45  ;;  %10608 = vrsqrt.f32 %v5669_v20  ;;  %v5862_v23 = vmul.f32 %v14400_v22, %v5790_v51 }
 0xb3e   : > { %6723 = vrot.lane.b32.xlu0 %v5990_v62, %s11026_s22  ;;  %6717 = vrot.lane.b32.xlu1 %v5987_v16, %s11026_s22  ;;  %v10595_v15 = vpop.eup %10594  ;;  %v5792_v6 = vmul.f32 %v10593_v11, %v13649_v43  ;;  %v5671_v62 = vadd.f32 1e-05, %v5607_v63  ;;  %v5609_v16 = vmul.f32 0.03125, %v14313_v3  ;;  %v5859_v38 = vmul.f32 %v14400_v22, %v5787_v2 }
 0xb3f   : > { %10610 = vrsqrt.f32 %v5672_v25  ;;  %v5674_v21 = vadd.f32 1e-05, %v5610_v61  ;;  %v5612_v18 = vmul.f32 0.03125, %v14285_v44  ;;  %v5789_v47 = vmul.f32 %v10595_v15, %v13885_v14 }
 0xb40   : > { %v5996_v43 = vmax.f32 %v5932_v55, 0.0  ;;  %v5993_v48 = vmax.f32 %v5929_v12, 0.0  ;;  %v5934_v60 = vadd.f32 %v14412_v34, %v5862_v23  ;;  %v5931_v3 = vadd.f32 %v14412_v34, %v5859_v38 }
 0xb41   : > { %v5611_v40 = vmul.f32 0.03125, %v14317_v52  ;;  %10612 = vrsqrt.f32 %v5671_v62  ;;  %v5673_v39 = vadd.f32 1e-05, %v5609_v16  ;;  %v5864_v44 = vmul.f32 %v14400_v22, %v5792_v6 }
 0xb42   : > { %6727 = vrot.lane.b32.xlu0 %v5992_v42, %s11026_s22  ;;  %6721 = vrot.lane.b32.xlu1 %v5989_v7, %s11026_s22  ;;  %v10597_v26 = vpop.eup %10596  ;;  %v5861_v14 = vmul.f32 %v14400_v22, %v5789_v47  ;;  %10614 = vrsqrt.f32 %v5674_v21  ;;  %v5676_v53 = vadd.f32 1e-05, %v5612_v18  ;;  %v5614_v37 = vmul.f32 0.03125, %v14291_v46 }
 0xb43   : > { %v10599_v24 = vpop.eup %10598  ;;  %v5794_v54 = vmul.f32 %v10597_v26, %v13670_v36  ;;  %v5998_v42 = vmax.f32 %v5934_v60, 0.0  ;;  %v5995_v36 = vmax.f32 %v5931_v3, 0.0  ;;  %v5936_v7 = vadd.f32 %v14412_v34, %v5864_v44  ;;  %v16501_v44 = vld [vmem:[#allocation110_spill] sm:$0xff] }
 0xb44   : > { %v10601_v30 = vpop.eup %10600  ;;  %v5791_v4 = vmul.f32 %v10599_v24, %v13902_v27  ;;  %v5933_v17 = vadd.f32 %v14412_v34, %v5861_v14  ;;  %v5675_v29 = vadd.f32 1e-05, %v5611_v40  ;;  %v5613_v20 = vmul.f32 0.03125, %v14319_v0 }
 0xb45   : > { %v10603_v52 = vpop.eup %10602  ;;  %10616 = vrsqrt.f32 %v5673_v39  ;;  %v5866_v1 = vmul.f32 %v14400_v22, %v5794_v54  ;;  %v5793_v27 = vmul.f32 %v10601_v30, %v13916_v9  ;;  %v5678_v11 = vadd.f32 1e-05, %v5614_v37  ;;  %v16503_v37 = vld [vmem:[#allocation5_spill] sm:$0xff] }
 0xb46   : > { %6731 = vrot.lane.b32.xlu0 %v5994_v5, %s11026_s22  ;;  %6725 = vrot.lane.b32.xlu1 %v5991_v41, %s11026_s22  ;;  %v5863_v46 = vmul.f32 %v14400_v22, %v5791_v4  ;;  %v10605_v51 = vpop.eup %10604  ;;  %10618 = vrsqrt.f32 %v5676_v53  ;;  %v5616_v63 = vmul.f32 0.03125, %v14295_v10  ;;  %v5796_v13 = vmul.f32 %v10603_v52, %v13682_v35  ;;  %v16504_v52 = vld [vmem:[#allocation38_spill] sm:$0xff] }
 0xb47   : > { %v6000_v0 = vmax.f32 %v5936_v7, 0.0  ;;  %v5997_v25 = vmax.f32 %v5933_v17, 0.0  ;;  %v5938_v61 = vadd.f32 %v14412_v34, %v5866_v1  ;;  %10620 = vrsqrt.f32 %v5675_v29  ;;  %v16505_v1 = vld [vmem:[#allocation23_spill] sm:$0xff] }
 0xb48   : > { %v10607_v45 = vpop.eup %10606  ;;  %v5935_v2 = vadd.f32 %v14412_v34, %v5863_v46  ;;  %v5677_v15 = vadd.f32 1e-05, %v5613_v20  ;;  %v5615_v41 = vmul.f32 0.03125, %v14323_v50  ;;  %v5868_v9 = vmul.f32 %v14400_v22, %v5796_v13  ;;  %v16506_v13 = vld [vmem:[#allocation90_spill] sm:$0xff] }
 0xb49   : > { %v5865_v35 = vmul.f32 %v14400_v22, %v5793_v27  ;;  %v5795_v10 = vmul.f32 %v10605_v51, %v13930_v31  ;;  %10622 = vrsqrt.f32 %v5678_v11  ;;  %v5680_v55 = vadd.f32 1e-05, %v5616_v63 }
 0xb4a   : > { %6735 = vrot.lane.b32.xlu0 %v5996_v43, %s11026_s22  ;;  %6729 = vrot.lane.b32.xlu1 %v5993_v48, %s11026_s22  ;;  %v10609_v5 = vpop.eup %10608  ;;  %v5618_v12 = vmul.f32 0.03125, %v14301_v57  ;;  %v5798_v6 = vmul.f32 %v10607_v45, %v13697_v58  ;;  %v6002_v62 = vmax.f32 %v5938_v61, 0.0  ;;  %v5999_v16 = vmax.f32 %v5935_v2, 0.0  ;;  %v16508_v2 = vld [vmem:[#allocation83_spill] sm:$0xff] }
 0xb4b   : > { %v5940_v50 = vadd.f32 %v14412_v34, %v5868_v9  ;;  %v5937_v23 = vadd.f32 %v14412_v34, %v5865_v35  ;;  %10624 = vrsqrt.f32 %v5677_v15  ;;  %v5617_v38 = vmul.f32 0.03125, %v14327_v32 }
 0xb4c   : > { %v10611_v26 = vpop.eup %10610  ;;  %v5679_v21 = vadd.f32 1e-05, %v5615_v41  ;;  %v5870_v31 = vmul.f32 %v14400_v22, %v5798_v6  ;;  %v5867_v57 = vmul.f32 %v14400_v22, %v5795_v10  ;;  %v5797_v58 = vmul.f32 %v10609_v5, %v13944_v56 }
 0xb4d   : > { %10626 = vrsqrt.f32 %v5680_v55  ;;  %v5682_v47 = vadd.f32 1e-05, %v5618_v12  ;;  %v5620_v24 = vmul.f32 0.03125, %v14305_v19  ;;  %v5800_v43 = vmul.f32 %v10611_v26, %v13712_v8  ;;  %v16502_v8 = vld [vmem:[#allocation91_spill] sm:$0xff] }
 0xb4e   : > { %6739 = vrot.lane.b32.xlu0 %v5998_v42, %s11026_s22  ;;  %6733 = vrot.lane.b32.xlu1 %v5995_v36, %s11026_s22  ;;  %v10613_v18 = vpop.eup %10612  ;;  %v6004_v32 = vmax.f32 %v5940_v50, 0.0  ;;  %v6001_v60 = vmax.f32 %v5937_v23, 0.0  ;;  %v5942_v3 = vadd.f32 %v14412_v34, %v5870_v31  ;;  %v5939_v40 = vadd.f32 %v14412_v34, %v5867_v57  ;;  %v16509_v26 = vld [vmem:[#allocation111_spill] sm:$0xff]  ;;  %v16510_v50 = vld [vmem:[#allocation112_spill] sm:$0xff]  ;;  %v16512_v57 = vld [vmem:[#allocation105_spill] sm:$0xff] }
 0xb4f   : > { %v10615_v48 = vpop.eup %10614  ;;  %v5681_v54 = vadd.f32 1e-05, %v5617_v38  ;;  %v5872_v39 = vmul.f32 %v14400_v22, %v5800_v43  ;;  %10628 = vrsqrt.f32 %v5679_v21  ;;  %v5619_v56 = vmul.f32 0.03125, %v16501_v44  ;;  %v16511_v21 = vld [vmem:[#allocation10_spill] sm:$0xff] }
 0xb50   : > { %v5869_v19 = vmul.f32 %v14400_v22, %v5797_v58  ;;  %v5799_v14 = vmul.f32 %v10613_v18, %v16502_v8  ;;  %10630 = vrsqrt.f32 %v5682_v47  ;;  %v5684_v53 = vadd.f32 1e-05, %v5620_v24  ;;  %v16515_v8 = vld [vmem:[#allocation46_spill] sm:$0xff] }
 0xb51   : > { %v5622_v4 = vmul.f32 0.03125, %v16503_v37  ;;  %v5802_v42 = vmul.f32 %v10615_v48, %v16504_v52  ;;  %v6006_v7 = vmax.f32 %v5942_v3, 0.0  ;;  %v6003_v17 = vmax.f32 %v5939_v40, 0.0  ;;  %v16514_v40 = vld [vmem:[#allocation27_spill] sm:$0xff] }
 0xb52   : > { %6743 = vrot.lane.b32.xlu0 %v6000_v0, %s11026_s22  ;;  %6737 = vrot.lane.b32.xlu1 %v5997_v25, %s11026_s22  ;;  %v10617_v30 = vpop.eup %10616  ;;  %v5944_v29 = vadd.f32 %v14412_v34, %v5872_v39  ;;  %v5941_v20 = vadd.f32 %v14412_v34, %v5869_v19  ;;  %10632 = vrsqrt.f32 %v5681_v54  ;;  %v5621_v46 = vmul.f32 0.03125, %v16505_v1  ;;  %v16507_v25 = vld [vmem:[#allocation92_spill] sm:$0xff]  ;;  %v16517_v1 = vld [vmem:[#allocation39_spill] sm:$0xff] }
 0xb53   : > { %v10619_v36 = vpop.eup %10618  ;;  %v5683_v51 = vadd.f32 1e-05, %v5619_v56  ;;  %v5874_v11 = vmul.f32 %v14400_v22, %v5802_v42  ;;  %v5871_v63 = vmul.f32 %v14400_v22, %v5799_v14  ;;  %v5801_v45 = vmul.f32 %v10617_v30, %v16506_v13  ;;  %v16516_v30 = vld [vmem:[#allocation85_spill] sm:$0xff] }
 0xb54   : > { %v10621_v27 = vpop.eup %10620  ;;  %10634 = vrsqrt.f32 %v5684_v53  ;;  %v5686_v0 = vadd.f32 1e-05, %v5622_v4  ;;  %v5624_v61 = vmul.f32 0.03125, %v16507_v25  ;;  %v5804_v15 = vmul.f32 %v10619_v36, %v16508_v2 }
 0xb55   : > { %v6008_v41 = vmax.f32 %v5944_v29, 0.0  ;;  %v6005_v9 = vmax.f32 %v5941_v20, 0.0  ;;  %v5946_v35 = vadd.f32 %v14412_v34, %v5874_v11  ;;  %v5943_v10 = vadd.f32 %v14412_v34, %v5871_v63  ;;  %v16519_v63 = vld [vmem:[#allocation12_spill] sm:$0xff] }
 0xb56   : > { %6747 = vrot.lane.b32.xlu0 %v6002_v62, %s11026_s22  ;;  %6741 = vrot.lane.b32.xlu1 %v5999_v16, %s11026_s22  ;;  %v10623_v5 = vpop.eup %10622  ;;  %v5685_v55 = vadd.f32 1e-05, %v5621_v46  ;;  %v5876_v12 = vmul.f32 %v14400_v22, %v5804_v15  ;;  %10636 = vrsqrt.f32 %v5683_v51  ;;  %v5623_v62 = vmul.f32 0.03125, %v16509_v26 }
 0xb57   : > { %v5873_v16 = vmul.f32 %v14400_v22, %v5801_v45  ;;  %v5803_v23 = vmul.f32 %v10621_v27, %v16510_v50  ;;  %10638 = vrsqrt.f32 %v5686_v0  ;;  %v5688_v38 = vadd.f32 1e-05, %v5624_v61  ;;  %v16518_v27 = vld [vmem:[#allocation44_spill] sm:$0xff] }
 0xb58   : > { %v10625_v6 = vpop.eup %10624  ;;  %v5626_v31 = vmul.f32 0.03125, %v16511_v21  ;;  %v5806_v58 = vmul.f32 %v10623_v5, %v16512_v57  ;;  %v6010_v47 = vmax.f32 %v5946_v35, 0.0  ;;  %v6007_v24 = vmax.f32 %v5943_v10, 0.0  ;;  %v16520_v45 = vld [vmem:[#allocation88_spill] sm:$0xff] }
 0xb59   : > { %v5948_v43 = vadd.f32 %v14412_v34, %v5876_v12  ;;  %v5945_v48 = vadd.f32 %v14412_v34, %v5873_v16  ;;  %10640 = vrsqrt.f32 %v5685_v55  ;;  %v5687_v3 = vadd.f32 1e-05, %v5623_v62  ;;  %v16522_v55 = vld [vmem:[#allocation113_spill] sm:$0xff]  ;;  %v16523_v16 = vld [vmem:[#allocation48_spill] sm:$0xff] }
 0xb5a   : > { %6751 = vrot.lane.b32.xlu0 %v6004_v32, %s11026_s22  ;;  %6745 = vrot.lane.b32.xlu1 %v6001_v60, %s11026_s22  ;;  %v10627_v18 = vpop.eup %10626  ;;  %v16513_v32 = vld [vmem:[#allocation57_spill] sm:$0xff]  ;;  %v5625_v54 = vmul.f32 0.03125, %v16514_v40  ;;  %v5878_v39 = vmul.f32 %v14400_v22, %v5806_v58  ;;  %v5875_v44 = vmul.f32 %v14400_v22, %v5803_v23  ;;  %10642 = vrsqrt.f32 %v5688_v38  ;;  %v16524_v23 = vld [vmem:[#allocation103_spill] sm:$0xff] }
 0xb5b   : > { %v5805_v60 = vmul.f32 %v10625_v6, %v16513_v32  ;;  %v5690_v19 = vadd.f32 1e-05, %v5626_v31  ;;  %v5628_v14 = vmul.f32 0.03125, %v16515_v8  ;;  %v5808_v53 = vmul.f32 %v10627_v18, %v16516_v30  ;;  %v16525_v32 = vld [vmem:[#allocation16_spill] sm:$0xff] }
 0xb5c   : > { %v10629_v56 = vpop.eup %10628  ;;  %v6012_v4 = vmax.f32 %v5948_v43, 0.0  ;;  %v6009_v52 = vmax.f32 %v5945_v48, 0.0  ;;  %v5950_v42 = vadd.f32 %v14412_v34, %v5878_v39  ;;  %v5947_v36 = vadd.f32 %v14412_v34, %v5875_v44  ;;  %v16527_v39 = vld [vmem:[#allocation11_spill] sm:$0xff] }
 0xb5d   : > { %v10631_v37 = vpop.eup %10630  ;;  %10644 = vrsqrt.f32 %v5687_v3  ;;  %v5689_v20 = vadd.f32 1e-05, %v5625_v54  ;;  %v5627_v46 = vmul.f32 0.03125, %v16517_v1  ;;  %v5807_v51 = vmul.f32 %v10629_v56, %v16518_v27  ;;  %v16526_v3 = vld [vmem:[#allocation114_spill] sm:$0xff]  ;;  %v16528_v56 = vld [vmem:[#allocation45_spill] sm:$0xff] }
 0xb5e   : > { %6755 = vrot.lane.b32.xlu0 %v6006_v7, %s11026_s22  ;;  %6749 = vrot.lane.b32.xlu1 %v6003_v17, %s11026_s22  ;;  %v5880_v7 = vmul.f32 %v14400_v22, %v5808_v53  ;;  %v5877_v17 = vmul.f32 %v14400_v22, %v5805_v60  ;;  %10646 = vrsqrt.f32 %v5690_v19  ;;  %v5692_v11 = vadd.f32 1e-05, %v5628_v14 }
 0xb5f   : > { %v10633_v29 = vpop.eup %10632  ;;  %v5630_v13 = vmul.f32 0.03125, %v16519_v63  ;;  %v5810_v0 = vmul.f32 %v10631_v37, %v16520_v45  ;;  %v6014_v61 = vmax.f32 %v5950_v42, 0.0  ;;  %v6011_v2 = vmax.f32 %v5947_v36, 0.0 }
 0xb60   : > { %v5952_v15 = vadd.f32 %v14412_v34, %v5880_v7  ;;  %v5949_v5 = vadd.f32 %v14412_v34, %v5877_v17  ;;  %10648 = vrsqrt.f32 %v5689_v20  ;;  %v5691_v10 = vadd.f32 1e-05, %v5627_v46  ;;  %v16530_v7 = vld [vmem:[#allocation93_spill] sm:$0xff]  ;;  %v16531_v46 = vld [vmem:[#allocation50_spill] sm:$0xff] }
 0xb61   : > { %v10635_v25 = vpop.eup %10634  ;;  %v5629_v12 = vmul.f32 0.03125, %v16522_v55  ;;  %v5879_v6 = vmul.f32 %v14400_v22, %v5807_v51  ;;  %10650 = vrsqrt.f32 %v5692_v11  ;;  %v5694_v62 = vadd.f32 1e-05, %v5630_v13  ;;  %v16532_v51 = vld [vmem:[#allocation109_spill] sm:$0xff] }
 0xb62   : > { %6759 = vrot.lane.b32.xlu0 %v6008_v41, %s11026_s22  ;;  %6753 = vrot.lane.b32.xlu1 %v6005_v9, %s11026_s22  ;;  %v5882_v41 = vmul.f32 %v14400_v22, %v5810_v0  ;;  %v16521_v9 = vld [vmem:[#allocation59_spill] sm:$0xff]  ;;  %v5632_v50 = vmul.f32 0.03125, %v16523_v16  ;;  %v5812_v38 = vmul.f32 %v10635_v25, %v16524_v23  ;;  %v6016_v31 = vmax.f32 %v5952_v15, 0.0 }
 0xb63   : > { %v5809_v35 = vmul.f32 %v10633_v29, %v16521_v9  ;;  %v10637_v26 = vpop.eup %10636  ;;  %v6013_v57 = vmax.f32 %v5949_v5, 0.0  ;;  %v5951_v18 = vadd.f32 %v14412_v34, %v5879_v6  ;;  %10652 = vrsqrt.f32 %v5691_v10  ;;  %v16534_v9 = vld [vmem:[#allocation54_spill] sm:$0xff]  ;;  %v16535_v10 = vld [vmem:[#allocation63_spill] sm:$0xff] }
 0xb64   : > { %v10639_v21 = vpop.eup %10638  ;;  %v5954_v58 = vadd.f32 %v14412_v34, %v5882_v41  ;;  %v5693_v48 = vadd.f32 1e-05, %v5629_v12  ;;  %v5631_v60 = vmul.f32 0.03125, %v16525_v32  ;;  %v5811_v40 = vmul.f32 %v10637_v26, %v16526_v3  ;;  %v16536_v26 = vld [vmem:[#allocation18_spill] sm:$0xff]  ;;  %v16537_v16 = vld [vmem:[#allocation47_spill] sm:$0xff] }
 0xb65   : > { %10654 = vrsqrt.f32 %v5694_v62  ;;  %v5696_v54 = vadd.f32 1e-05, %v5632_v50  ;;  %v5634_v44 = vmul.f32 0.03125, %v16527_v39  ;;  %v5814_v19 = vmul.f32 %v10639_v21, %v16528_v56 }
 0xb66   : > { %6763 = vrot.lane.b32.xlu0 %v6010_v47, %s11026_s22  ;;  %6757 = vrot.lane.b32.xlu1 %v6007_v24, %s11026_s22  ;;  %v5884_v47 = vmul.f32 %v14400_v22, %v5812_v38  ;;  %v5881_v24 = vmul.f32 %v14400_v22, %v5809_v35  ;;  %v10641_v43 = vpop.eup %10640  ;;  %v6018_v14 = vmax.f32 %v5954_v58, 0.0  ;;  %v6015_v30 = vmax.f32 %v5951_v18, 0.0 }
 0xb67   : > { %v10643_v8 = vpop.eup %10642  ;;  %10656 = vrsqrt.f32 %v5693_v48  ;;  %v5695_v36 = vadd.f32 1e-05, %v5631_v60  ;;  %v5633_v17 = vmul.f32 0.03125, %v16530_v7  ;;  %v5883_v29 = vmul.f32 %v14400_v22, %v5811_v40  ;;  %v16538_v48 = vld [vmem:[#allocation65_spill] sm:$0xff] }
 0xb68   : > { %v5956_v53 = vadd.f32 %v14412_v34, %v5884_v47  ;;  %v5953_v37 = vadd.f32 %v14412_v34, %v5881_v24  ;;  %10658 = vrsqrt.f32 %v5696_v54  ;;  %v5698_v1 = vadd.f32 1e-05, %v5634_v44  ;;  %v16539_v54 = vld [vmem:[#allocation104_spill] sm:$0xff]  ;;  %v16541_v7 = vld [vmem:[#allocation49_spill] sm:$0xff] }
 0xb69   : > { %v5636_v27 = vmul.f32 0.03125, %v16531_v46  ;;  %v5816_v11 = vmul.f32 %v10643_v8, %v16532_v51  ;;  %v5955_v25 = vadd.f32 %v14412_v34, %v5883_v29  ;;  %10660 = vrsqrt.f32 %v5695_v36 }
 0xb6a   : > { %6767 = vrot.lane.b32.xlu0 %v6012_v4, %s11026_s22  ;;  %6761 = vrot.lane.b32.xlu1 %v6009_v52, %s11026_s22  ;;  %v5886_v4 = vmul.f32 %v14400_v22, %v5814_v19  ;;  %v16529_v52 = vld [vmem:[#allocation61_spill] sm:$0xff]  ;;  %v10645_v20 = vpop.eup %10644  ;;  %v6020_v13 = vmax.f32 %v5956_v53, 0.0  ;;  %v6017_v45 = vmax.f32 %v5953_v37, 0.0  ;;  %v5697_v41 = vadd.f32 1e-05, %v5633_v17  ;;  %v16540_v37 = vld [vmem:[#allocation67_spill] sm:$0xff] }
 0xb6b   : > { %v5813_v42 = vmul.f32 %v10641_v43, %v16529_v52  ;;  %v10647_v63 = vpop.eup %10646  ;;  %v5888_v15 = vmul.f32 %v14400_v22, %v5816_v11  ;;  %v5635_v35 = vmul.f32 0.03125, %v16534_v9  ;;  %v5815_v55 = vmul.f32 %v10645_v20, %v16535_v10 }
 0xb6c   : > { %v5958_v0 = vadd.f32 %v14412_v34, %v5886_v4  ;;  %10662 = vrsqrt.f32 %v5698_v1  ;;  %v5700_v6 = vadd.f32 1e-05, %v5636_v27  ;;  %v5640_v62 = vmul.f32 0.03125, %v16536_v26  ;;  %v16542_v27 = vld [vmem:[#allocation115_spill] sm:$0xff] }
 0xb6d   : > { %v5885_v5 = vmul.f32 %v14400_v22, %v5813_v42  ;;  %v10649_v12 = vpop.eup %10648  ;;  %v5818_v50 = vmul.f32 %v10647_v63, %v16537_v16  ;;  %v6019_v21 = vmax.f32 %v5955_v25, 0.0  ;;  %v5637_v18 = vmul.f32 0.03125, %v14363_v28 }
 0xb6e   : > { %6771 = vrot.lane.b32.xlu0 %v6014_v61, %s11026_s22  ;;  %6765 = vrot.lane.b32.xlu1 %v6011_v2, %s11026_s22  ;;  %v16533_v61 = vld [vmem:[#allocation52_spill] sm:$0xff]  ;;  %v10651_v23 = vpop.eup %10650  ;;  %v6022_v38 = vmax.f32 %v5958_v0, 0.0  ;;  %10664 = vrsqrt.f32 %v5697_v41  ;;  %v5699_v24 = vadd.f32 1e-05, %v5635_v35  ;;  %v5887_v43 = vmul.f32 %v14400_v22, %v5815_v55 }
 0xb6f   : > { %v5638_v2 = vmul.f32 0.03125, %v16533_v61  ;;  %v5890_v47 = vmul.f32 %v14400_v22, %v5818_v50  ;;  %v5817_v32 = vmul.f32 %v10649_v12, %v16538_v48  ;;  %10666 = vrsqrt.f32 %v5700_v6  ;;  %v16544_v61 = vld [vmem:[#allocation17_spill] sm:$0xff]  ;;  %v16546_v6 = vld [vmem:[#allocation56_spill] sm:$0xff]  ;;  %v16547_v50 = vld [vmem:[#allocation71_spill] sm:$0xff] }
 0xb70   : > { %v10653_v60 = vpop.eup %10652  ;;  %v5704_v3 = vadd.f32 1e-05, %v5640_v62  ;;  %v5639_v40 = vmul.f32 0.03125, %v14368_v33  ;;  %v5820_v39 = vmul.f32 %v10651_v23, %v16539_v54  ;;  %v5959_v8 = vadd.f32 %v14412_v34, %v5887_v43 }
 0xb71   : > { %v5702_v58 = vadd.f32 1e-05, %v5638_v2  ;;  %v5962_v19 = vadd.f32 %v14412_v34, %v5890_v47  ;;  %v5889_v53 = vmul.f32 %v14400_v22, %v5817_v32  ;;  %v5819_v4 = vmul.f32 %v10653_v60, %v16540_v37 }
 0xb72   : > { %6775 = vrot.lane.b32.xlu0 %v6016_v31, %s11026_s22  ;;  %6769 = vrot.lane.b32.xlu1 %v6013_v57, %s11026_s22  ;;  %v5960_v31 = vadd.f32 %v14412_v34, %v5888_v15  ;;  %v5957_v57 = vadd.f32 %v14412_v34, %v5885_v5  ;;  %v10655_v28 = vpop.eup %10654  ;;  %v5892_v33 = vmul.f32 %v14400_v22, %v5820_v39  ;;  %v5703_v42 = vadd.f32 1e-05, %v5639_v40  ;;  %v16545_v15 = vld [vmem:[#allocation106_spill] sm:$0xff]  ;;  %v16550_v39 = vld [vmem:[#allocation108_spill] sm:$0xff] }
 0xb73   : > { %10668 = vrsqrt.f32 %v5702_v58  ;;  %v5641_v36 = vmul.f32 0.03125, %v14374_v49  ;;  %v5822_v17 = vmul.f32 %v10655_v28, %v16541_v7  ;;  %v6026_v29 = vmax.f32 %v5962_v19, 0.0  ;;  %v16549_v58 = vld [vmem:[#allocation51_spill] sm:$0xff]  ;;  %v16551_v19 = vld [vmem:[#allocation22_spill] sm:$0xff] }
 0xb74   : > { %v6024_v44 = vmax.f32 %v5960_v31, 0.0  ;;  %v6021_v56 = vmax.f32 %v5957_v57, 0.0  ;;  %10670 = vrsqrt.f32 %v5699_v24  ;;  %v10657_v52 = vpop.eup %10656  ;;  %v6023_v20 = vmax.f32 %v5959_v8, 0.0  ;;  %v16548_v31 = vld [vmem:[#allocation116_spill] sm:$0xff] }
 0xb75   : > { %10672 = vrsqrt.f32 %v5704_v3  ;;  %v5964_v1 = vadd.f32 %v14412_v34, %v5892_v33  ;;  %v5961_v46 = vadd.f32 %v14412_v34, %v5889_v53  ;;  %v5644_v51 = vmul.f32 0.03125, %v16542_v27 }
 0xb76   : > { %6779 = vrot.lane.b32.xlu0 %v6018_v14, %s11026_s22  ;;  %6773 = vrot.lane.b32.xlu1 %v6015_v30, %s11026_s22  ;;  %v5642_v14 = vmul.f32 0.03125, %v14366_v59  ;;  %v5701_v30 = vadd.f32 1e-05, %v5637_v18  ;;  %v10659_v59 = vpop.eup %10658  ;;  %v5894_v63 = vmul.f32 %v14400_v22, %v5822_v17  ;;  %v5891_v49 = vmul.f32 %v14400_v22, %v5819_v4 }
 0xb77   : > { %v10661_v0 = vpop.eup %10660  ;;  %v5705_v25 = vadd.f32 1e-05, %v5641_v36  ;;  %v5643_v2 = vmul.f32 0.03125, %v16544_v61  ;;  %v5824_v5 = vmul.f32 %v10659_v59, %v16545_v15  ;;  %v6028_v9 = vmax.f32 %v5964_v1, 0.0  ;;  %v16557_v15 = vld [vmem:[#allocation75_spill] sm:$0xff] }
 0xb78   : > { %10674 = vrsqrt.f32 %v5701_v30  ;;  %v5706_v11 = vadd.f32 1e-05, %v5642_v14  ;;  %v6025_v35 = vmax.f32 %v5961_v46, 0.0  ;;  %v5966_v10 = vadd.f32 %v14412_v34, %v5894_v63  ;;  %v16552_v14 = vld [vmem:[#allocation37_spill] sm:$0xff] }
 0xb79   : > { %10676 = vrsqrt.f32 %v5703_v42  ;;  %v10663_v41 = vpop.eup %10662  ;;  %v5963_v55 = vadd.f32 %v14412_v34, %v5891_v49  ;;  %v5708_v12 = vadd.f32 1e-05, %v5644_v51  ;;  %v5646_v26 = vmul.f32 0.03125, %v16546_v6  ;;  %v16553_v42 = vld [vmem:[#allocation107_spill] sm:$0xff]  ;;  %v16555_v49 = vld [vmem:[#allocation53_spill] sm:$0xff] }
 0xb7a   : > { %6783 = vrot.lane.b32.xlu0 %v6020_v13, %s11026_s22  ;;  %6777 = vrot.lane.b32.xlu1 %v6017_v45, %s11026_s22  ;;  %v16543_v13 = vld [vmem:[#allocation69_spill] sm:$0xff]  ;;  %10678 = vrsqrt.f32 %v5706_v11  ;;  %v5896_v62 = vmul.f32 %v14400_v22, %v5824_v5  ;;  %v5823_v23 = vmul.f32 %v10661_v0, %v16547_v50  ;;  %v5645_v57 = vmul.f32 0.03125, %v16548_v31 }
 0xb7b   : > { %v5821_v45 = vmul.f32 %v10657_v52, %v16543_v13  ;;  %10680 = vrsqrt.f32 %v5705_v25  ;;  %v5826_v18 = vmul.f32 %v10663_v41, %v16549_v58  ;;  %v6030_v24 = vmax.f32 %v5966_v10, 0.0  ;;  %v16559_v58 = vld [vmem:[#allocation4_spill] sm:$0xff] }
 0xb7c   : > { %v6027_v43 = vmax.f32 %v5963_v55, 0.0  ;;  %v5968_v48 = vadd.f32 %v14412_v34, %v5896_v62  ;;  %10682 = vrsqrt.f32 %v5708_v12  ;;  %v5710_v60 = vadd.f32 1e-05, %v5646_v26  ;;  %v16558_v62 = vld [vmem:[#allocation34_spill] sm:$0xff] }
 0xb7d   : > { %v5893_v16 = vmul.f32 %v14400_v22, %v5821_v45  ;;  %v5898_v40 = vmul.f32 %v14400_v22, %v5826_v18  ;;  %v5895_v54 = vmul.f32 %v14400_v22, %v5823_v23  ;;  %v5647_v8 = vmul.f32 0.03125, %v16551_v19  ;;  %v16556_v45 = vld [vmem:[#allocation89_spill] sm:$0xff]  ;;  %v16562_v19 = vld [vmem:[#allocation42_spill] sm:$0xff] }
 0xb7e   : > { %6787 = vrot.lane.b32.xlu0 %v6022_v38, %s11026_s22  ;;  %6781 = vrot.lane.b32.xlu1 %v6019_v21, %s11026_s22  ;;  %v10665_v38 = vpop.eup %10664  ;;  %v5707_v21 = vadd.f32 1e-05, %v5643_v2  ;;  %v6032_v53 = vmax.f32 %v5968_v48, 0.0 }
 0xb7f   : > { %v10667_v47 = vpop.eup %10666  ;;  %v5965_v32 = vadd.f32 %v14412_v34, %v5893_v16  ;;  %v5825_v28 = vmul.f32 %v10665_v38, %v16550_v39  ;;  %v5970_v4 = vadd.f32 %v14412_v34, %v5898_v40  ;;  %v5967_v52 = vadd.f32 %v14412_v34, %v5895_v54 }
 0xb80   : > { %v10669_v3 = vpop.eup %10668  ;;  %10684 = vrsqrt.f32 %v5707_v21  ;;  %v5828_v30 = vmul.f32 %v10667_v47, %v16552_v14  ;;  %v5711_v1 = vadd.f32 1e-05, %v5647_v8  ;;  %v16560_v47 = vld [vmem:[#allocation55_spill] sm:$0xff] }
 0xb81   : > { %v6029_v37 = vmax.f32 %v5965_v32, 0.0  ;;  %10686 = vrsqrt.f32 %v5710_v60  ;;  %v5830_v36 = vmul.f32 %v10669_v3, %v16553_v42  ;;  %v5897_v59 = vmul.f32 %v14400_v22, %v5825_v28  ;;  %v16561_v28 = vld [vmem:[#allocation77_spill] sm:$0xff] }
 0xb82   : > { %6791 = vrot.lane.b32.xlu0 %v6024_v44, %s11026_s22  ;;  %6785 = vrot.lane.b32.xlu1 %v6021_v56, %s11026_s22  ;;  %v10671_v44 = vpop.eup %10670  ;;  %v5709_v56 = vadd.f32 1e-05, %v5645_v57  ;;  %v5900_v17 = vmul.f32 %v14400_v22, %v5828_v30  ;;  %v6034_v27 = vmax.f32 %v5970_v4, 0.0  ;;  %v6031_v51 = vmax.f32 %v5967_v52, 0.0  ;;  %v16563_v30 = vld [vmem:[#allocation6_spill] sm:$0xff] }
 0xb83   : > { %v10673_v33 = vpop.eup %10672  ;;  %v5969_v63 = vadd.f32 %v14412_v34, %v5897_v59  ;;  %v5902_v25 = vmul.f32 %v14400_v22, %v5830_v36 }
 0xb84   : > { %10688 = vrsqrt.f32 %v5709_v56  ;;  %v5972_v11 = vadd.f32 %v14412_v34, %v5900_v17  ;;  %v5832_v13 = vmul.f32 %v10673_v33, %v16555_v49 }
 0xb85   : > { %v10675_v7 = vpop.eup %10674  ;;  %10690 = vrsqrt.f32 %v5711_v1  ;;  %v5974_v10 = vadd.f32 %v14412_v34, %v5902_v25 }
 0xb86   : > { %6795 = vrot.lane.b32.xlu0 %v6026_v29, %s11026_s22  ;;  %6789 = vrot.lane.b32.xlu1 %v6023_v20, %s11026_s22  ;;  %v16554_v29 = vld [vmem:[#allocation73_spill] sm:$0xff]  ;;  %v10677_v46 = vpop.eup %10676  ;;  %v5829_v0 = vmul.f32 %v10675_v7, %v16556_v45  ;;  %v5904_v12 = vmul.f32 %v14400_v22, %v5832_v13 }
 0xb87   : > { %v5827_v20 = vmul.f32 %v10671_v44, %v16554_v29  ;;  %v10679_v2 = vpop.eup %10678  ;;  %v5831_v5 = vmul.f32 %v10677_v46, %v16557_v15  ;;  %v6038_v21 = vmax.f32 %v5974_v10, 0.0 }
 0xb88   : > { %v10681_v41 = vpop.eup %10680  ;;  %v5901_v6 = vmul.f32 %v14400_v22, %v5829_v0  ;;  %v5834_v16 = vmul.f32 %v10679_v2, %v16558_v62  ;;  %v5976_v50 = vadd.f32 %v14412_v34, %v5904_v12 }
 0xb89   : > { %v5899_v61 = vmul.f32 %v14400_v22, %v5827_v20  ;;  %v10683_v26 = vpop.eup %10682  ;;  %v5903_v57 = vmul.f32 %v14400_v22, %v5831_v5  ;;  %v5833_v18 = vmul.f32 %v10681_v41, %v16559_v58 }
 0xb8a   : > { %6799 = vrot.lane.b32.xlu0 %v6028_v9, %s11026_s22  ;;  %6793 = vrot.lane.b32.xlu1 %v6025_v35, %s11026_s22  ;;  %v6036_v9 = vmax.f32 %v5972_v11, 0.0  ;;  %v6033_v35 = vmax.f32 %v5969_v63, 0.0  ;;  %v5973_v23 = vadd.f32 %v14412_v34, %v5901_v6  ;;  %v5906_v48 = vmul.f32 %v14400_v22, %v5834_v16  ;;  %v14727_v6 = vld [vmem:[%s15762_s17] ss:$0 sm:$0xff] }
 0xb8b   : > { %v5971_v55 = vadd.f32 %v14412_v34, %v5899_v61  ;;  %v6040_v32 = vmax.f32 %v5976_v50, 0.0  ;;  %v5975_v54 = vadd.f32 %v14412_v34, %v5903_v57  ;;  %v5905_v39 = vmul.f32 %v14400_v22, %v5833_v18  ;;  %v10953_v16 = vld [vmem:[%s11161_s1] sm:$0xff] }
 0xb8c   : > { %v6037_v60 = vmax.f32 %v5973_v23, 0.0  ;;  %v5978_v40 = vadd.f32 %v14412_v34, %v5906_v48  ;;  %v7359_v50 = vmul.f32 %v10953_v16, %v14727_v6 }
 0xb8d   : > { %v10685_v38 = vpop.eup %10684  ;;  %v6035_v31 = vmax.f32 %v5971_v55, 0.0  ;;  %v6039_v4 = vmax.f32 %v5975_v54, 0.0  ;;  %v5977_v52 = vadd.f32 %v14412_v34, %v5905_v39  ;;  %v10957_v54 = vld [vmem:[%s11161_s1 + $0x8] sm:$0xff] }
 0xb8e   : > { %6803 = vrot.lane.b32.xlu0 %v6030_v24, %s11026_s22  ;;  %6797 = vrot.lane.b32.xlu1 %v6027_v43, %s11026_s22  ;;  %v5836_v24 = vmul.f32 %v10683_v26, %v16560_v47  ;;  %v10687_v43 = vpop.eup %10686  ;;  %v5835_v44 = vmul.f32 %v10685_v38, %v16561_v28  ;;  %v7360_v39 = vmul.f32 %v10957_v54, %v14727_v6 }
 0xb8f   : > { %v5838_v8 = vmul.f32 %v10687_v43, %v16562_v19  ;;  %v6041_v20 = vmax.f32 %v5977_v52, 0.0  ;;  %v10958_v19 = vld [vmem:[%s11161_s1 + $0x30] sm:$0xff]  ;;  %v10960_v52 = vld [vmem:[%s11161_s1 + $0x40] sm:$0xff] }
 0xb90   : > { %v5908_v56 = vmul.f32 %v14400_v22, %v5836_v24  ;;  %v5907_v42 = vmul.f32 %v14400_v22, %v5835_v44  ;;  %v10955_v24 = vld [vmem:[%s11161_s1 + $0x18] sm:$0xff] }
 0xb91   : > { %v10689_v3 = vpop.eup %10688  ;;  %v5910_v36 = vmul.f32 %v14400_v22, %v5838_v8  ;;  %v7362_v43 = vmul.f32 %v10955_v24, %v14727_v6  ;;  %v7365_v8 = vmul.f32 %v10958_v19, %v14727_v6  ;;  %v10971_v24 = vld [vmem:[%s11161_s1 + $0x88] sm:$0xff] }
 0xb92   : > { %6807 = vrot.lane.b32.xlu0 %v6032_v53, %s11026_s22  ;;  %6801 = vrot.lane.b32.xlu1 %v6029_v37, %s11026_s22  ;;  %v5980_v14 = vadd.f32 %v14412_v34, %v5908_v56  ;;  %v5837_v33 = vmul.f32 %v10689_v3, %v16563_v30  ;;  %v10691_v53 = vpop.eup %10690  ;;  %v6042_v37 = vmax.f32 %v5978_v40, 0.0  ;;  %v5979_v1 = vadd.f32 %v14412_v34, %v5907_v42  ;;  %v10956_v3 = vld [vmem:[%s11161_s1 + $0x20] sm:$0xff]  ;;  %v10959_v30 = vld [vmem:[%s11161_s1 + $0x28] sm:$0xff] }
 0xb93   : > { %v5982_v17 = vadd.f32 %v14412_v34, %v5910_v36  ;;  %v7363_v40 = vmul.f32 %v10956_v3, %v14727_v6  ;;  %v7367_v42 = vmul.f32 %v10960_v52, %v14727_v6  ;;  %v10972_v3 = vld [vmem:[%s11161_s1 + $0xa0] sm:$0xff] }
 0xb94   : > { %v6044_v7 = vmax.f32 %v5980_v14, 0.0  ;;  %v5909_v46 = vmul.f32 %v14400_v22, %v5837_v33  ;;  %v6043_v13 = vmax.f32 %v5979_v1, 0.0  ;;  %v7426_v14 = vsel %vm805_vm1, %v7360_v39, 0.0  ;;  %v10962_v1 = vld [vmem:[%s11161_s1 + $0x50] sm:$0xff]  ;;  %v10973_v39 = vld [vmem:[%s11161_s1 + $0x98] sm:$0xff] }
 0xb95   : > { %v6046_v49 = vmax.f32 %v5982_v17, 0.0  ;;  %v7435_v56 = vsel %vm805_vm1, %v7363_v40, 0.0  ;;  %v7364_v33 = vmul.f32 %v10959_v30, %v14727_v6  ;;  %v7379_v40 = vmul.f32 %v10972_v3, %v14727_v6 }
 0xb96   : > { %6811 = vrot.lane.b32.xlu0 %v6034_v27, %s11026_s22  ;;  %6805 = vrot.lane.b32.xlu1 %v6031_v51, %s11026_s22  ;;  %v16564_v27 = vld [vmem:[#allocation96_spill] sm:$0xff]  ;;  %v5981_v45 = vadd.f32 %v14412_v34, %v5909_v46  ;;  %v7369_v46 = vmul.f32 %v10962_v1, %v14727_v6 }
 0xb97   : > { %v5839_v51 = vmul.f32 %v10691_v53, %v16564_v27  ;;  %v7438_v36 = vsel %vm805_vm1, %v7364_v33, 0.0  ;;  %v7483_v19 = vsel %vm805_vm1, %v7379_v40, 0.0  ;;  %v10975_v33 = vld [vmem:[%s11161_s1 + $0xa8] sm:$0xff] }
 0xb98   : > { %v6045_v2 = vmax.f32 %v5981_v45, 0.0  ;;  %v10964_v45 = vld [vmem:[%s11161_s1 + $0x60] sm:$0xff] }
 0xb99   : > { %v5911_v0 = vmul.f32 %v14400_v22, %v5839_v51  ;;  %v10963_v51 = vld [vmem:[%s11161_s1 + $0x48] sm:$0xff] }
 0xb9a   : > { %6815 = vrot.lane.b32.xlu0 %v6036_v9, %s11026_s22  ;;  %6809 = vrot.lane.b32.xlu1 %v6033_v35, %s11026_s22 }
 0xb9b   : > { %v5983_v15 = vadd.f32 %v14412_v34, %v5911_v0  ;;  %v7371_v0 = vmul.f32 %v10964_v45, %v14727_v6 }
 0xb9d   : > { %v6047_v41 = vmax.f32 %v5983_v15, 0.0 }
 0xb9e   : > { %6819 = vrot.lane.b32.xlu0 %v6038_v21, %s11026_s22  ;;  %6813 = vrot.lane.b32.xlu1 %v6035_v31, %s11026_s22  ;;  %v7423_v21 = vsel %vm805_vm1, %v7359_v50, 0.0  ;;  %v10954_v31 = vld [vmem:[%s11161_s1 + $0x10] sm:$0xff] }
 0xb9f   : > { %v7361_v57 = vmul.f32 %v10954_v31, %v14727_v6 }
 0xba1   : > { %v7429_v47 = vsel %vm805_vm1, %v7361_v57, 0.0 }
 0xba2   : > { %6823 = vrot.lane.b32.xlu0 %v6040_v32, %s11026_s22  ;;  %6817 = vrot.lane.b32.xlu1 %v6037_v60, %s11026_s22  ;;  %v7432_v60 = vsel %vm805_vm1, %v7362_v43, 0.0  ;;  %v7376_v43 = vmul.f32 %v10971_v24, %v14727_v6 }
 0xba4   : > { %v7474_v54 = vsel %vm805_vm1, %v7376_v43, 0.0  ;;  %v10987_v43 = vld [vmem:[%s11161_s1 + $0x108] sm:$0xff] }
 0xba6   : > { %6827 = vrot.lane.b32.xlu0 %v6042_v37, %s11026_s22  ;;  %6821 = vrot.lane.b32.xlu1 %v6039_v4, %s11026_s22  ;;  %v7441_v4 = vsel %vm805_vm1, %v7365_v8, 0.0  ;;  %v10974_v8 = vld [vmem:[%s11161_s1 + $0xb0] sm:$0xff] }
 0xba8   : > { %v6716_v59 = vpop.permute.xlu0 %6715  ;;  %v6712_v29 = vpop.permute.xlu1 %6711 }
 0xba9   : > { %10327 = vmatprep.mubr.msk.f32.mxu0 %vm2033_vm3, %v6712_v29 }
 0xbaa   : > { %6831 = vrot.lane.b32.xlu0 %v6044_v7, %s11026_s22  ;;  %6825 = vrot.lane.b32.xlu1 %v6041_v20, %s11026_s22  ;;  %v10961_v7 = vld [vmem:[%s11161_s1 + $0x38] sm:$0xff]  ;;  %v7447_v20 = vsel %vm805_vm1, %v7367_v42, 0.0  ;;  %v10976_v42 = vld [vmem:[%s11161_s1 + $0xc0] sm:$0xff] }
 0xbab   : > { %v7366_v17 = vmul.f32 %v10961_v7, %v14727_v6 }
 0xbac   : > { %v6720_v11 = vpop.permute.xlu0 %6719  ;;  %v6714_v63 = vpop.permute.xlu1 %6713 }
 0xbad   : > { %10328 = vmatmul.mubr.msk.f32.vlgmr.msra.gmra.mxu0 %vm2033_vm3, %v6714_v63  ;;  %v7444_v27 = vsel %vm805_vm1, %v7366_v17, 0.0  ;;  %v10977_v17 = vld [vmem:[%s11161_s1 + $0xb8] sm:$0xff] }
 0xbae   : > { %6835 = vrot.lane.b32.xlu0 %v6046_v49, %s11026_s22  ;;  %6829 = vrot.lane.b32.xlu1 %v6043_v13, %s11026_s22  ;;  %v7453_v13 = vsel %vm805_vm1, %v7369_v46, 0.0  ;;  %v10978_v46 = vld [vmem:[%s11161_s1 + $0xd0] sm:$0xff] }
 0xbaf   : > { %10330 = vmatprep.mubr.msk.f32.mxu0 %vm2033_vm3, %v6716_v59 }
 0xbb0   : > { %v6724_v25 = vpop.permute.xlu0 %6723  ;;  %v6718_v61 = vpop.permute.xlu1 %6717 }
 0xbb1   : > { %10331 = vmatmul.mubr.msk.f32.gmra.mxu0 %vm2033_vm3, %v6718_v61  ;;  %v10965_v61 = vld [vmem:[%s11161_s1 + $0x58] sm:$0xff] }
 0xbb2   : > { %6833 = vrot.lane.b32.xlu1 %v6045_v2, %s11026_s22  ;;  %10333 = vmatprep.mubr.msk.f32.mxu0 %vm2033_vm3, %v6720_v11  ;;  %v7368_v11 = vmul.f32 %v10963_v51, %v14727_v6  ;;  %v7370_v2 = vmul.f32 %v10965_v61, %v14727_v6 }
 0xbb4   : > { %v6728_v22 = vpop.permute.xlu0 %6727  ;;  %v6722_v5 = vpop.permute.xlu1 %6721 }
 0xbb5   : > { %10334 = vmatmul.mubr.msk.f32.gmra.mxu0 %vm2033_vm3, %v6722_v5  ;;  %v7459_v5 = vsel %vm805_vm1, %v7371_v0, 0.0  ;;  %v10980_v0 = vld [vmem:[%s11161_s1 + $0xe0] sm:$0xff] }
 0xbb6   : > { %6837 = vrot.lane.b32.xlu1 %v6047_v41, %s11026_s22  ;;  %10336 = vmatprep.mubr.msk.f32.mxu0 %vm2033_vm3, %v6724_v25  ;;  %v7450_v25 = vsel %vm805_vm1, %v7368_v11, 0.0  ;;  %v10966_v41 = vld [vmem:[%s11161_s1 + $0x70] sm:$0xff]  ;;  %v10979_v11 = vld [vmem:[%s11161_s1 + $0xc8] sm:$0xff] }
 0xbb8   : > { %v6732_v9 = vpop.permute.xlu0 %6731  ;;  %v6726_v35 = vpop.permute.xlu1 %6725 }
 0xbb9   : > { %10337 = vmatmul.mubr.msk.f32.gmra.mxu0 %vm2033_vm3, %v6726_v35  ;;  %v7456_v35 = vsel %vm805_vm1, %v7370_v2, 0.0  ;;  %v10981_v2 = vld [vmem:[%s11161_s1 + $0xd8] sm:$0xff] }
 0xbba   : > { %10339 = vmatprep.mubr.msk.f32.mxu0 %vm2033_vm3, %v6728_v22 }
 0xbbc   : > { %v6736_v34 = vpop.permute.xlu0 %6735  ;;  %v6730_v10 = vpop.permute.xlu1 %6729 }
 0xbbd   : > { %10340 = vmatmul.mubr.msk.f32.gmra.mxu0 %vm2033_vm3, %v6730_v10 }
 0xbbe   : > { %10342 = vmatprep.mubr.msk.f32.mxu0 %vm2033_vm3, %v6732_v9  ;;  %v7373_v9 = vmul.f32 %v10966_v41, %v14727_v6 }
 0xbc0   : > { %v6740_v55 = vpop.permute.xlu0 %6739  ;;  %v6734_v12 = vpop.permute.xlu1 %6733 }
 0xbc1   : > { %10343 = vmatmul.mubr.msk.f32.gmra.mxu0 %vm2033_vm3, %v6734_v12 }
 0xbc2   : > { %10345 = vmatprep.mubr.msk.f32.mxu0 %vm2033_vm3, %v6736_v34  ;;  %v10967_v34 = vld [vmem:[%s11161_s1 + $0x68] sm:$0xff] }
 0xbc3   : > { %v7372_v10 = vmul.f32 %v10967_v34, %v14727_v6 }
 0xbc4   : > { %v6744_v26 = vpop.permute.xlu0 %6743  ;;  %v6738_v62 = vpop.permute.xlu1 %6737 }
 0xbc5   : > { %10346 = vmatmul.mubr.msk.f32.gmra.mxu0 %vm2033_vm3, %v6738_v62  ;;  %v10968_v62 = vld [vmem:[%s11161_s1 + $0x80] sm:$0xff]  ;;  %v7462_v50 = vsel %vm805_vm1, %v7372_v10, 0.0  ;;  %v10983_v10 = vld [vmem:[%s11161_s1 + $0xe8] sm:$0xff] }
 0xbc6   : > { %10348 = vmatprep.mubr.msk.f32.mxu0 %vm2033_vm3, %v6740_v55  ;;  %v7375_v16 = vmul.f32 %v10968_v62, %v14727_v6 }
 0xbc8   : > { %v6748_v23 = vpop.permute.xlu0 %6747  ;;  %v6742_v38 = vpop.permute.xlu1 %6741  ;;  %v7471_v57 = vsel %vm805_vm1, %v7375_v16, 0.0  ;;  %v10984_v16 = vld [vmem:[%s11161_s1 + $0x100] sm:$0xff] }
 0xbc9   : > { %10349 = vmatmul.mubr.msk.f32.gmra.mxu0 %vm2033_vm3, %v6742_v38 }
 0xbca   : > { %10351 = vmatprep.mubr.msk.f32.mxu0 %vm2033_vm3, %v6744_v26  ;;  %v7465_v26 = vsel %vm805_vm1, %v7373_v9, 0.0  ;;  %v10982_v9 = vld [vmem:[%s11161_s1 + $0xf0] sm:$0xff] }
 0xbcc   : > { %v6752_v58 = vpop.permute.xlu0 %6751  ;;  %v6746_v18 = vpop.permute.xlu1 %6745 }
 0xbcd   : > { %7424 = vadd.xlane.f32.xlu0 %v7423_v21  ;;  %10352 = vmatmul.mubr.msk.f32.gmra.mxu0 %vm2033_vm3, %v6746_v18 }
 0xbce   : > { %10354 = vmatprep.mubr.msk.f32.mxu0 %vm2033_vm3, %v6748_v23  ;;  %v10969_v23 = vld [vmem:[%s11161_s1 + $0x78] sm:$0xff] }
 0xbcf   : > { %v7374_v38 = vmul.f32 %v10969_v23, %v14727_v6 }
 0xbd0   : > { %v6756_v48 = vpop.permute.xlu0 %6755  ;;  %v6750_v32 = vpop.permute.xlu1 %6749 }
 0xbd1   : > { %10355 = vmatmul.mubr.msk.f32.gmra.mxu0 %vm2033_vm3, %v6750_v32  ;;  %7430 = vadd.xlane.f32.xlu0 %v7429_v47  ;;  %v7468_v47 = vsel %vm805_vm1, %v7374_v38, 0.0  ;;  %v10985_v38 = vld [vmem:[%s11161_s1 + $0xf8] sm:$0xff] }
 0xbd2   : > { %10357 = vmatprep.mubr.msk.f32.mxu0 %vm2033_vm3, %v6752_v58  ;;  %v10970_v58 = vld [vmem:[%s11161_s1 + $0x90] sm:$0xff] }
 0xbd3   : > { %v7377_v18 = vmul.f32 %v10970_v58, %v14727_v6 }
 0xbd4   : > { %v6760_v28 = vpop.permute.xlu0 %6759  ;;  %v6754_v44 = vpop.permute.xlu1 %6753 }
 0xbd5   : > { %10358 = vmatmul.mubr.msk.f32.gmra.mxu0 %vm2033_vm3, %v6754_v44  ;;  %7433 = vadd.xlane.f32.xlu0 %v7432_v60  ;;  %v7477_v60 = vsel %vm805_vm1, %v7377_v18, 0.0  ;;  %v10986_v18 = vld [vmem:[%s11161_s1 + $0x110] sm:$0xff] }
 0xbd6   : > { %10360 = vmatprep.mubr.msk.f32.mxu0 %vm2033_vm3, %v6756_v48 }
 0xbd8   : > { %v6764_v53 = vpop.permute.xlu0 %6763  ;;  %v6758_v37 = vpop.permute.xlu1 %6757 }
 0xbd9   : > { %10361 = vmatmul.mubr.msk.f32.gmra.mxu0 %vm2033_vm3, %v6758_v37  ;;  %7436 = vadd.xlane.f32.xlu0 %v7435_v56 }
 0xbda   : > { %7427 = vadd.xlane.f32.xlu1 %v7426_v14  ;;  %10363 = vmatprep.mubr.msk.f32.mxu0 %vm2033_vm3, %v6760_v28  ;;  %v7378_v28 = vmul.f32 %v10973_v39, %v14727_v6  ;;  %v7381_v14 = vmul.f32 %v10974_v8, %v14727_v6 }
 0xbdc   : > { %v6768_v59 = vpop.permute.xlu0 %6767  ;;  %v6762_v29 = vpop.permute.xlu1 %6761  ;;  %v7480_v30 = vsel %vm805_vm1, %v7378_v28, 0.0  ;;  %v7489_v52 = vsel %vm805_vm1, %v7381_v14, 0.0 }
 0xbdd   : > { %10364 = vmatmul.mubr.msk.f32.gmra.mxu0 %vm2033_vm3, %v6762_v29  ;;  %7442 = vadd.xlane.f32.xlu0 %v7441_v4 }
 0xbde   : > { %7439 = vadd.xlane.f32.xlu1 %v7438_v36  ;;  %10366 = vmatprep.mubr.msk.f32.mxu0 %vm2033_vm3, %v6764_v53  ;;  %v7380_v53 = vmul.f32 %v10975_v33, %v14727_v6  ;;  %v7383_v36 = vmul.f32 %v10976_v42, %v14727_v6 }
 0xbe0   : > { %v6772_v63 = vpop.permute.xlu0 %6771  ;;  %v6766_v49 = vpop.permute.xlu1 %6765  ;;  %v7486_v7 = vsel %vm805_vm1, %v7380_v53, 0.0  ;;  %v7495_v1 = vsel %vm805_vm1, %v7383_v36, 0.0 }
 0xbe1   : > { %10367 = vmatmul.mubr.msk.f32.gmra.mxu0 %vm2033_vm3, %v6766_v49  ;;  %7448 = vadd.xlane.f32.xlu0 %v7447_v20 }
 0xbe2   : > { %7445 = vadd.xlane.f32.xlu1 %v7444_v27  ;;  %10369 = vmatprep.mubr.msk.f32.mxu0 %vm2033_vm3, %v6768_v59  ;;  %v7382_v59 = vmul.f32 %v10977_v17, %v14727_v6  ;;  %v7385_v27 = vmul.f32 %v10978_v46, %v14727_v6 }
 0xbe4   : > { %v6776_v15 = vpop.permute.xlu0 %6775  ;;  %v6770_v22 = vpop.permute.xlu1 %6769  ;;  %v7492_v51 = vsel %vm805_vm1, %v7382_v59, 0.0  ;;  %v7501_v45 = vsel %vm805_vm1, %v7385_v27, 0.0  ;;  %v10994_v27 = vld [vmem:[%s11161_s1 + $0x150] sm:$0xff] }
 0xbe5   : > { %10370 = vmatmul.mubr.msk.f32.gmra.mxu0 %vm2033_vm3, %v6770_v22  ;;  %7454 = vadd.xlane.f32.xlu0 %v7453_v13 }
 0xbe6   : > { %7451 = vadd.xlane.f32.xlu1 %v7450_v25  ;;  %10372 = vmatprep.mubr.msk.f32.mxu0 %vm2033_vm3, %v6772_v63  ;;  %v7384_v63 = vmul.f32 %v10979_v11, %v14727_v6  ;;  %v7387_v25 = vmul.f32 %v10980_v0, %v14727_v6 }
 0xbe8   : > { %v6780_v55 = vpop.permute.xlu0 %6779  ;;  %v6774_v12 = vpop.permute.xlu1 %6773  ;;  %v7498_v61 = vsel %vm805_vm1, %v7384_v63, 0.0  ;;  %v7507_v41 = vsel %vm805_vm1, %v7387_v25, 0.0  ;;  %v10996_v25 = vld [vmem:[%s11161_s1 + $0x160] sm:$0xff] }
 0xbe9   : > { %10373 = vmatmul.mubr.msk.f32.gmra.mxu0 %vm2033_vm3, %v6774_v12  ;;  %7460 = vadd.xlane.f32.xlu0 %v7459_v5 }
 0xbea   : > { %7457 = vadd.xlane.f32.xlu1 %v7456_v35  ;;  %10375 = vmatprep.mubr.msk.f32.mxu0 %vm2033_vm3, %v6776_v15  ;;  %v7386_v15 = vmul.f32 %v10981_v2, %v14727_v6  ;;  %v7389_v35 = vmul.f32 %v10982_v9, %v14727_v6 }
 0xbec   : > { %v6784_v21 = vpop.permute.xlu0 %6783  ;;  %v6778_v31 = vpop.permute.xlu1 %6777  ;;  %v7504_v34 = vsel %vm805_vm1, %v7386_v15, 0.0  ;;  %v7513_v62 = vsel %vm805_vm1, %v7389_v35, 0.0  ;;  %v10997_v15 = vld [vmem:[%s11161_s1 + $0x158] sm:$0xff]  ;;  %v10998_v35 = vld [vmem:[%s11161_s1 + $0x170] sm:$0xff] }
 0xbed   : > { %10376 = vmatmul.mubr.msk.f32.gmra.mxu0 %vm2033_vm3, %v6778_v31  ;;  %7466 = vadd.xlane.f32.xlu0 %v7465_v26 }
 0xbee   : > { %7463 = vadd.xlane.f32.xlu1 %v7462_v50  ;;  %10378 = vmatprep.mubr.msk.f32.mxu0 %vm2033_vm3, %v6780_v55  ;;  %v7388_v55 = vmul.f32 %v10983_v10, %v14727_v6  ;;  %v7391_v50 = vmul.f32 %v10984_v16, %v14727_v6  ;;  %v11000_v16 = vld [vmem:[%s11161_s1 + $0x180] sm:$0xff] }
 0xbf0   : > { %v6788_v48 = vpop.permute.xlu0 %6787  ;;  %v6782_v32 = vpop.permute.xlu1 %6781  ;;  %v7510_v23 = vsel %vm805_vm1, %v7388_v55, 0.0  ;;  %v7519_v58 = vsel %vm805_vm1, %v7391_v50, 0.0  ;;  %v10999_v55 = vld [vmem:[%s11161_s1 + $0x168] sm:$0xff]  ;;  %v7407_v50 = vmul.f32 %v11000_v16, %v14727_v6 }
 0xbf1   : > { %10379 = vmatmul.mubr.msk.f32.gmra.mxu0 %vm2033_vm3, %v6782_v32  ;;  %7472 = vadd.xlane.f32.xlu0 %v7471_v57  ;;  %v11028_v32 = vmov 0  }
 0xbf2   : > { %7469 = vadd.xlane.f32.xlu1 %v7468_v47  ;;  %10381 = vmatprep.mubr.msk.f32.mxu0 %vm2033_vm3, %v6784_v21  ;;  %v7390_v21 = vmul.f32 %v10985_v38, %v14727_v6  ;;  %v7393_v47 = vmul.f32 %v10986_v18, %v14727_v6  ;;  %v11001_v38 = vld [vmem:[%s11161_s1 + $0x178] sm:$0xff] }
 0xbf3   : > { %10434 = vset.pattern.permute.xlu0 %v11028_v32  ;;  %10435 = vset.pattern.permute.xlu1 %v11028_v32 }
 0xbf4   : > { %v6792_v44 = vpop.permute.xlu0 %6791  ;;  %v6786_v56 = vpop.permute.xlu1 %6785  ;;  %v7516_v24 = vsel %vm805_vm1, %v7390_v21, 0.0  ;;  %v7525_v40 = vsel %vm805_vm1, %v7393_v47, 0.0  ;;  %v7406_v21 = vmul.f32 %v11001_v38, %v14727_v6  ;;  %v11003_v47 = vld [vmem:[%s11161_s1 + $0x188] sm:$0xff] }
 0xbf5   : > { %10382 = vmatmul.mubr.msk.f32.gmra.mxu0 %vm2033_vm3, %v6786_v56  ;;  %7478 = vadd.xlane.f32.xlu0 %v7477_v60 }
 0xbf6   : > { %7475 = vadd.xlane.f32.xlu1 %v7474_v54  ;;  %10384 = vmatprep.mubr.msk.f32.mxu0 %vm2033_vm3, %v6788_v48  ;;  %v7392_v48 = vmul.f32 %v10987_v43, %v14727_v6  ;;  %v10988_v54 = vld [vmem:[%s11161_s1 + $0x120] sm:$0xff]  ;;  %v7564_v18 = vsel %vm805_vm1, %v7406_v21, 0.0 }
 0xbf7   : > { %v7395_v39 = vmul.f32 %v10988_v54, %v14727_v6 }
 0xbf8   : > { %v6796_v37 = vpop.permute.xlu0 %6795  ;;  %v6790_v4 = vpop.permute.xlu1 %6789  ;;  %v7522_v28 = vsel %vm805_vm1, %v7392_v48, 0.0  ;;  %v11004_v48 = vld [vmem:[%s11161_s1 + $0x1a0] sm:$0xff] }
 0xbf9   : > { %10385 = vmatmul.mubr.msk.f32.gmra.mxu0 %vm2033_vm3, %v6790_v4  ;;  %7484 = vadd.xlane.f32.xlu0 %v7483_v19  ;;  %v7531_v14 = vsel %vm805_vm1, %v7395_v39, 0.0  ;;  %v7411_v32 = vmul.f32 %v11004_v48, %v14727_v6  ;;  %v11006_v39 = vld [vmem:[%s11161_s1 + $0x1b0] sm:$0xff] }
 0xbfa   : > { %7481 = vadd.xlane.f32.xlu1 %v7480_v30  ;;  %10387 = vmatprep.mubr.msk.f32.mxu0 %vm2033_vm3, %v6792_v44  ;;  %v10989_v44 = vld [vmem:[%s11161_s1 + $0x118] sm:$0xff]  ;;  %v10990_v30 = vld [vmem:[%s11161_s1 + $0x130] sm:$0xff] }
 0xbfb   : > { %v7394_v56 = vmul.f32 %v10989_v44, %v14727_v6  ;;  %v7397_v33 = vmul.f32 %v10990_v30, %v14727_v6  ;;  %v7579_v54 = vsel %vm805_vm1, %v7411_v32, 0.0 }
 0xbfc   : > { %v6800_v29 = vpop.permute.xlu0 %6799  ;;  %v6794_v20 = vpop.permute.xlu1 %6793 }
 0xbfd   : > { %10388 = vmatmul.mubr.msk.f32.gmra.mxu0 %vm2033_vm3, %v6794_v20  ;;  %7490 = vadd.xlane.f32.xlu0 %v7489_v52  ;;  %v7528_v53 = vsel %vm805_vm1, %v7394_v56, 0.0  ;;  %v7537_v36 = vsel %vm805_vm1, %v7397_v33, 0.0  ;;  %v11007_v56 = vld [vmem:[%s11161_s1 + $0x1a8] sm:$0xff] }
 0xbfe   : > { %7487 = vadd.xlane.f32.xlu1 %v7486_v7  ;;  %10390 = vmatprep.mubr.msk.f32.mxu0 %vm2033_vm3, %v6796_v37  ;;  %v10991_v37 = vld [vmem:[%s11161_s1 + $0x128] sm:$0xff]  ;;  %v10992_v7 = vld [vmem:[%s11161_s1 + $0x140] sm:$0xff] }
 0xbff   : > { %v7396_v4 = vmul.f32 %v10991_v37, %v14727_v6  ;;  %v7399_v17 = vmul.f32 %v10992_v7, %v14727_v6  ;;  %v11011_v7 = vld [vmem:[%s11161_s1 + $0x1c8] sm:$0xff] }
 0xc00   : > { %v6804_v49 = vpop.permute.xlu0 %6803  ;;  %v6798_v13 = vpop.permute.xlu1 %6797 }
 0xc01   : > { %10391 = vmatmul.mubr.msk.f32.gmra.mxu0 %vm2033_vm3, %v6798_v13  ;;  %7496 = vadd.xlane.f32.xlu0 %v7495_v1  ;;  %v7534_v59 = vsel %vm805_vm1, %v7396_v4, 0.0  ;;  %v7543_v46 = vsel %vm805_vm1, %v7399_v17, 0.0  ;;  %v7416_v17 = vmul.f32 %v11011_v7, %v14727_v6 }
 0xc02   : > { %7493 = vadd.xlane.f32.xlu1 %v7492_v51  ;;  %10393 = vmatprep.mubr.msk.f32.mxu0 %vm2033_vm3, %v6800_v29  ;;  %v10993_v29 = vld [vmem:[%s11161_s1 + $0x138] sm:$0xff]  ;;  %v7401_v51 = vmul.f32 %v10994_v27, %v14727_v6 }
 0xc03   : > { %v7398_v20 = vmul.f32 %v10993_v29, %v14727_v6  ;;  %v11012_v29 = vld [vmem:[%s11161_s1 + $0x1e0] sm:$0xff] }
 0xc04   : > { %v6808_v22 = vpop.permute.xlu0 %6807  ;;  %v6802_v5 = vpop.permute.xlu1 %6801  ;;  %v7549_v0 = vsel %vm805_vm1, %v7401_v51, 0.0 }
 0xc05   : > { %10394 = vmatmul.mubr.msk.f32.gmra.mxu0 %vm2033_vm3, %v6802_v5  ;;  %7502 = vadd.xlane.f32.xlu0 %v7501_v45  ;;  %v7540_v63 = vsel %vm805_vm1, %v7398_v20, 0.0  ;;  %v7419_v20 = vmul.f32 %v11012_v29, %v14727_v6 }
 0xc06   : > { %7499 = vadd.xlane.f32.xlu1 %v7498_v61  ;;  %10396 = vmatprep.mubr.msk.f32.mxu0 %vm2033_vm3, %v6804_v49  ;;  %v10995_v49 = vld [vmem:[%s11161_s1 + $0x148] sm:$0xff]  ;;  %v7403_v61 = vmul.f32 %v10996_v25, %v14727_v6 }
 0xc07   : > { %v7400_v13 = vmul.f32 %v10995_v49, %v14727_v6  ;;  %v7603_v51 = vsel %vm805_vm1, %v7419_v20, 0.0 }
 0xc08   : > { %v6812_v12 = vpop.permute.xlu0 %6811  ;;  %v6806_v26 = vpop.permute.xlu1 %6805  ;;  %v7555_v9 = vsel %vm805_vm1, %v7403_v61, 0.0  ;;  %v11016_v61 = vld [vmem:[%s11161_s1 + $0x1f8] sm:$0xff] }
 0xc09   : > { %10397 = vmatmul.mubr.msk.f32.gmra.mxu0 %vm2033_vm3, %v6806_v26  ;;  %7508 = vadd.xlane.f32.xlu0 %v7507_v41  ;;  %v7546_v2 = vsel %vm805_vm1, %v7400_v13, 0.0  ;;  %v11015_v13 = vld [vmem:[%s11161_s1 + $0x1e8] sm:$0xff] }
 0xc0a   : > { %7505 = vadd.xlane.f32.xlu1 %v7504_v34  ;;  %10399 = vmatprep.mubr.msk.f32.mxu0 %vm2033_vm3, %v6808_v22  ;;  %v7402_v22 = vmul.f32 %v10997_v15, %v14727_v6  ;;  %v7405_v34 = vmul.f32 %v10998_v35, %v14727_v6 }
 0xc0c   : > { %v6816_v31 = vpop.permute.xlu0 %6815  ;;  %v6810_v57 = vpop.permute.xlu1 %6809  ;;  %v7552_v10 = vsel %vm805_vm1, %v7402_v22, 0.0  ;;  %v14972_v22 = vld [vmem:[#allocation2] ss:$0 sm:$0xff] }
 0xc0d   : > { %10400 = vmatmul.mubr.msk.f32.gmra.mxu0 %vm2033_vm3, %v6810_v57  ;;  %7514 = vadd.xlane.f32.xlu0 %v7513_v62  ;;  %v7561_v62 = vsel %vm805_vm1, %v7405_v34, 0.0  ;;  %v11002_v57 = vld [vmem:[%s11161_s1 + $0x190] sm:$0xff] }
 0xc0e   : > { %7511 = vadd.xlane.f32.xlu1 %v7510_v23  ;;  %10402 = vmatprep.mubr.msk.f32.mxu0 %vm2033_vm3, %v6812_v12  ;;  %v7404_v12 = vmul.f32 %v10999_v55, %v14727_v6 }
 0xc10   : > { %v6820_v60 = vpop.permute.xlu0 %6819  ;;  %v6814_v3 = vpop.permute.xlu1 %6813  ;;  %v7558_v23 = vsel %vm805_vm1, %v7404_v12, 0.0 }
 0xc11   : > { %10403 = vmatmul.mubr.msk.f32.gmra.mxu0 %vm2033_vm3, %v6814_v3  ;;  %7520 = vadd.xlane.f32.xlu0 %v7519_v58  ;;  %v7409_v58 = vmul.f32 %v11002_v57, %v14727_v6  ;;  %v11005_v3 = vld [vmem:[%s11161_s1 + $0x198] sm:$0xff] }
 0xc12   : > { %7517 = vadd.xlane.f32.xlu1 %v7516_v24  ;;  %10405 = vmatprep.mubr.msk.f32.mxu0 %vm2033_vm3, %v6816_v31  ;;  %v7567_v31 = vsel %vm805_vm1, %v7407_v50, 0.0  ;;  %v7408_v24 = vmul.f32 %v11003_v47, %v14727_v6 }
 0xc13   : > { %v7573_v43 = vsel %vm805_vm1, %v7409_v58, 0.0 }
 0xc14   : > { %v6824_v19 = vpop.permute.xlu0 %6823  ;;  %v6818_v8 = vpop.permute.xlu1 %6817 }
 0xc15   : > { %10406 = vmatmul.mubr.msk.f32.gmra.mxu0 %vm2033_vm3, %v6818_v8  ;;  %7526 = vadd.xlane.f32.xlu0 %v7525_v40  ;;  %v7410_v40 = vmul.f32 %v11005_v3, %v14727_v6 }
 0xc16   : > { %7523 = vadd.xlane.f32.xlu1 %v7522_v28  ;;  %10408 = vmatprep.mubr.msk.f32.mxu0 %vm2033_vm3, %v6820_v60  ;;  %v7570_v60 = vsel %vm805_vm1, %v7408_v24, 0.0  ;;  %v7413_v28 = vmul.f32 %v11006_v39, %v14727_v6 }
 0xc17   : > { %v7576_v44 = vsel %vm805_vm1, %v7410_v40, 0.0 }
 0xc18   : > { %v6822_v52 = vpop.permute.xlu1 %6821  ;;  %v6828_v42 = vpop.permute.xlu0 %6827  ;;  %v7585_v8 = vsel %vm805_vm1, %v7413_v28, 0.0 }
 0xc19   : > { %10409 = vmatmul.mubr.msk.f32.gmra.mxu0 %vm2033_vm3, %v6822_v52  ;;  %7532 = vadd.xlane.f32.xlu0 %v7531_v14  ;;  %v11008_v14 = vld [vmem:[%s11161_s1 + $0x1c0] sm:$0xff]  ;;  %v11010_v52 = vld [vmem:[%s11161_s1 + $0x1d0] sm:$0xff] }
 0xc1a   : > { %7529 = vadd.xlane.f32.xlu1 %v7528_v53  ;;  %10411 = vmatprep.mubr.msk.f32.mxu0 %vm2033_vm3, %v6824_v19  ;;  %v7412_v19 = vmul.f32 %v11007_v56, %v14727_v6  ;;  %v7415_v30 = vmul.f32 %v11008_v14, %v14727_v6  ;;  %v11009_v53 = vld [vmem:[%s11161_s1 + $0x1b8] sm:$0xff] }
 0xc1b   : > { %v7414_v37 = vmul.f32 %v11009_v53, %v14727_v6 }
 0xc1c   : > { %v6826_v1 = vpop.permute.xlu1 %6825  ;;  %v6832_v11 = vpop.permute.xlu0 %6831  ;;  %v7582_v33 = vsel %vm805_vm1, %v7412_v19, 0.0  ;;  %v7591_v4 = vsel %vm805_vm1, %v7415_v30, 0.0 }
 0xc1d   : > { %10412 = vmatmul.mubr.msk.f32.gmra.mxu0 %vm2033_vm3, %v6826_v1  ;;  %7538 = vadd.xlane.f32.xlu0 %v7537_v36  ;;  %v7588_v36 = vsel %vm805_vm1, %v7414_v37, 0.0  ;;  %v7594_v1 = vsel %vm805_vm1, %v7416_v17, 0.0 }
 0xc1e   : > { %7535 = vadd.xlane.f32.xlu1 %v7534_v59  ;;  %10414 = vmatprep.mubr.msk.f32.mxu0 %vm2033_vm3, %v6828_v42  ;;  %v7417_v42 = vmul.f32 %v11010_v52, %v14727_v6 }
 0xc20   : > { %v6830_v45 = vpop.permute.xlu1 %6829  ;;  %v6836_v41 = vpop.permute.xlu0 %6835  ;;  %v7597_v59 = vsel %vm805_vm1, %v7417_v42, 0.0 }
 0xc21   : > { %10415 = vmatmul.mubr.msk.f32.gmra.mxu0 %vm2033_vm3, %v6830_v45  ;;  %7544 = vadd.xlane.f32.xlu0 %v7543_v46  ;;  %v11013_v46 = vld [vmem:[%s11161_s1 + $0x1d8] sm:$0xff]  ;;  %v7420_v45 = vmul.f32 %v11015_v13, %v14727_v6 }
 0xc22   : > { %7541 = vadd.xlane.f32.xlu1 %v7540_v63  ;;  %10417 = vmatprep.mubr.msk.f32.mxu0 %vm2033_vm3, %v6832_v11  ;;  %v7418_v27 = vmul.f32 %v11013_v46, %v14727_v6  ;;  %v11014_v11 = vld [vmem:[%s11161_s1 + $0x1f0] sm:$0xff] }
 0xc23   : > { %v7421_v63 = vmul.f32 %v11014_v11, %v14727_v6  ;;  %v7606_v25 = vsel %vm805_vm1, %v7420_v45, 0.0 }
 0xc24   : > { %v6834_v5 = vpop.permute.xlu1 %6833  ;;  %v7600_v49 = vsel %vm805_vm1, %v7418_v27, 0.0 }
 0xc25   : > { %10418 = vmatmul.mubr.msk.f32.gmra.mxu0 %vm2033_vm3, %v6834_v5  ;;  %7550 = vadd.xlane.f32.xlu0 %v7549_v0  ;;  %v7609_v0 = vsel %vm805_vm1, %v7421_v63, 0.0 }
 0xc26   : > { %7547 = vadd.xlane.f32.xlu1 %v7546_v2  ;;  %10420 = vmatprep.mubr.msk.f32.mxu0 %vm2033_vm3, %v6836_v41  ;;  %v7422_v2 = vmul.f32 %v11016_v61, %v14727_v6 }
 0xc28   : > { %v6838_v26 = vpop.permute.xlu1 %6837  ;;  %v7612_v15 = vsel %vm805_vm1, %v7422_v2, 0.0 }
 0xc29   : > { %10421 = vmatmul.mubr.msk.f32.gmra.mxu0 %vm2033_vm3, %v6838_v26  ;;  %7556 = vadd.xlane.f32.xlu0 %v7555_v9 }
 0xc2a   : > { %7553 = vadd.xlane.f32.xlu1 %v7552_v10 }
 0xc2d   : > { %7562 = vadd.xlane.f32.xlu0 %v7561_v62 }
 0xc2e   : > { %7559 = vadd.xlane.f32.xlu1 %v7558_v23 }
 0xc31   : > { %7568 = vadd.xlane.f32.xlu0 %v7567_v31 }
 0xc32   : > { %7565 = vadd.xlane.f32.xlu1 %v7564_v18 }
 0xc35   : > { %7574 = vadd.xlane.f32.xlu0 %v7573_v43 }
 0xc36   : > { %7571 = vadd.xlane.f32.xlu1 %v7570_v60 }
 0xc39   : > { %7580 = vadd.xlane.f32.xlu0 %v7579_v54 }
 0xc3a   : > { %7577 = vadd.xlane.f32.xlu1 %v7576_v44 }
 0xc3d   : > { %7586 = vadd.xlane.f32.xlu0 %v7585_v8 }
 0xc3e   : > { %7583 = vadd.xlane.f32.xlu1 %v7582_v33 }
 0xc41   : > { %7592 = vadd.xlane.f32.xlu0 %v7591_v4 }
 0xc42   : > { %7589 = vadd.xlane.f32.xlu1 %v7588_v36 }
 0xc45   : > { %7598 = vadd.xlane.f32.xlu0 %v7597_v59 }
 0xc46   : > { %7595 = vadd.xlane.f32.xlu1 %v7594_v1 }
 0xc49   : > { %7604 = vadd.xlane.f32.xlu0 %v7603_v51 }
 0xc4a   : > { %7601 = vadd.xlane.f32.xlu1 %v7600_v49 }
 0xc4d   : > { %7610 = vadd.xlane.f32.xlu0 %v7609_v0 }
 0xc4e   : > { %7607 = vadd.xlane.f32.xlu1 %v7606_v25 }
 0xc52   : > { %7613 = vadd.xlane.f32.xlu1 %v7612_v15 }
 0xc56   : > { %v7425_v5 = vpop.xlane.xlu0 %7424 }
 0xc57   : > { %v7622_v41 = vadd.f32 %v14972_v22, %v7425_v5 }
 0xc59   : > { %v9340_v9 = vmul.f32 -1.442695, %v7622_v41 }
 0xc5a   : > { %v7431_v35 = vpop.xlane.xlu0 %7430 }
 0xc5b   : > { %10692 = vpow2.f32 %v9340_v9  ;;  %v7624_v34 = vadd.f32 %v14972_v22, %v7431_v35 }
 0xc5d   : > { %v9342_v12 = vmul.f32 -1.442695, %v7624_v34 }
 0xc5e   : > { %v7434_v10 = vpop.xlane.xlu0 %7433 }
 0xc5f   : > { %v7625_v55 = vadd.f32 %v14972_v22, %v7434_v10  ;;  %10694 = vpow2.f32 %v9342_v12 }
 0xc61   : > { %v9343_v50 = vmul.f32 -1.442695, %v7625_v55 }
 0xc62   : > { %v7437_v6 = vpop.xlane.xlu0 %7436 }
 0xc63   : > { %v7428_v26 = vpop.xlane.xlu1 %7427  ;;  %v7626_v16 = vadd.f32 %v14972_v22, %v7437_v6 }
 0xc64   : > { %v7623_v62 = vadd.f32 %v14972_v22, %v7428_v26 }
 0xc65   : > { %v9344_v57 = vmul.f32 -1.442695, %v7626_v16 }
 0xc66   : > { %v9341_v23 = vmul.f32 -1.442695, %v7623_v62  ;;  %v7443_v38 = vpop.xlane.xlu0 %7442 }
 0xc67   : > { %v7440_v21 = vpop.xlane.xlu1 %7439  ;;  %v7628_v43 = vadd.f32 %v14972_v22, %v7443_v38 }
 0xc68   : > { %v10693_v31 = vpop.eup %10692  ;;  %10696 = vpow2.f32 %v9341_v23  ;;  %v7627_v18 = vadd.f32 %v14972_v22, %v7440_v21 }
 0xc69   : > { %v7878_v58 = vadd.f32 1.0, %v10693_v31  ;;  %10698 = vpow2.f32 %v9343_v50  ;;  %v9346_v40 = vmul.f32 -1.442695, %v7628_v43 }
 0xc6a   : > { %v7449_v47 = vpop.xlane.xlu0 %7448  ;;  %v9345_v48 = vmul.f32 -1.442695, %v7627_v18 }
 0xc6b   : > { %10700 = vrcp.f32 %v7878_v58  ;;  %v7446_v24 = vpop.xlane.xlu1 %7445  ;;  %v7630_v8 = vadd.f32 %v14972_v22, %v7449_v47 }
 0xc6c   : > { %10702 = vpow2.f32 %v9344_v57  ;;  %v7629_v60 = vadd.f32 %v14972_v22, %v7446_v24  ;;  %v10695_v44 = vpop.eup %10694 }
 0xc6d   : > { %10704 = vpow2.f32 %v9345_v48  ;;  %v7880_v37 = vadd.f32 1.0, %v10695_v44  ;;  %v9348_v36 = vmul.f32 -1.442695, %v7630_v8 }
 0xc6e   : > { %v7455_v32 = vpop.xlane.xlu0 %7454  ;;  %v9347_v56 = vmul.f32 -1.442695, %v7629_v60  ;;  %10706 = vpow2.f32 %v9346_v40 }
 0xc6f   : > { %v7452_v3 = vpop.xlane.xlu1 %7451  ;;  %v7632_v7 = vadd.f32 %v14972_v22, %v7455_v32 }
 0xc70   : > { %v7631_v54 = vadd.f32 %v14972_v22, %v7452_v3  ;;  %v14995_v3 = vpop.f32.mrf.mxu0 }
 0xc71   : > { %v9350_v11 = vmul.f32 -1.442695, %v7632_v7 }
 0xc72   : > { %v9349_v39 = vmul.f32 -1.442695, %v7631_v54  ;;  %v7461_v28 = vpop.xlane.xlu0 %7460 }
 0xc73   : > { %v7458_v19 = vpop.xlane.xlu1 %7457  ;;  %v7634_v46 = vadd.f32 %v14972_v22, %v7461_v28 }
 0xc74   : > { %10708 = vpow2.f32 %v9349_v39  ;;  %v7633_v14 = vadd.f32 %v14972_v22, %v7458_v19 }
 0xc75   : > { %v10697_v30 = vpop.eup %10696  ;;  %10710 = vpow2.f32 %v9347_v56  ;;  %v9352_v25 = vmul.f32 -1.442695, %v7634_v46 }
 0xc76   : > { %v10699_v33 = vpop.eup %10698  ;;  %v7879_v53 = vadd.f32 1.0, %v10697_v30  ;;  %v9351_v4 = vmul.f32 -1.442695, %v7633_v14  ;;  %v7467_v52 = vpop.xlane.xlu0 %7466 }
 0xc77   : > { %v7464_v42 = vpop.xlane.xlu1 %7463  ;;  %v7881_v20 = vadd.f32 1.0, %v10699_v33  ;;  %v7636_v63 = vadd.f32 %v14972_v22, %v7467_v52 }
 0xc78   : > { %v10701_v17 = vpop.eup %10700  ;;  %10712 = vrcp.f32 %v7879_v53  ;;  %v7635_v59 = vadd.f32 %v14972_v22, %v7464_v42  ;;  %v14999_v53 = vpop.f32.mrf.mxu0 }
 0xc79   : > { %v10703_v29 = vpop.eup %10702  ;;  %10714 = vpow2.f32 %v9351_v4  ;;  %8072 = vperm.xlu0 %10434, %v10701_v17   ;;  %v9354_v15 = vmul.f32 -1.442695, %v7636_v63 }
 0xc7a   : > { %10716 = vrcp.f32 %v7880_v37  ;;  %v9353_v1 = vmul.f32 -1.442695, %v7635_v59  ;;  %v7473_v27 = vpop.xlane.xlu0 %7472  ;;  %v7882_v49 = vadd.f32 1.0, %v10703_v29  ;;  %v10705_v45 = vpop.eup %10704 }
 0xc7b   : > { %v7470_v51 = vpop.xlane.xlu1 %7469  ;;  %10718 = vpow2.f32 %v9348_v36  ;;  %v10707_v5 = vpop.eup %10706  ;;  %v7883_v35 = vadd.f32 1.0, %v10705_v45  ;;  %v7638_v55 = vadd.f32 %v14972_v22, %v7473_v27 }
 0xc7c   : > { %v7637_v13 = vadd.f32 %v14972_v22, %v7470_v51  ;;  %10720 = vrcp.f32 %v7881_v20  ;;  %v7884_v6 = vadd.f32 1.0, %v10707_v5  ;;  %v15003_v27 = vpop.f32.mrf.mxu0 }
 0xc7d   : > { %10722 = vpow2.f32 %v9353_v1  ;;  %v9356_v31 = vmul.f32 -1.442695, %v7638_v55 }
 0xc7e   : > { %v9355_v0 = vmul.f32 -1.442695, %v7637_v13  ;;  %v7479_v61 = vpop.xlane.xlu0 %7478  ;;  %10724 = vpow2.f32 %v9350_v11 }
 0xc7f   : > { %v7476_v2 = vpop.xlane.xlu1 %7475  ;;  %10726 = vrcp.f32 %v7882_v49  ;;  %v7640_v23 = vadd.f32 %v14972_v22, %v7479_v61 }
 0xc80   : > { %v7639_v41 = vadd.f32 %v14972_v22, %v7476_v2  ;;  %10728 = vpow2.f32 %v9355_v0 }
 0xc81   : > { %v10709_v9 = vpop.eup %10708  ;;  %10730 = vpow2.f32 %v9352_v25  ;;  %v9358_v32 = vmul.f32 -1.442695, %v7640_v23 }
 0xc82   : > { %v7887_v34 = vadd.f32 1.0, %v10709_v9  ;;  %v9357_v10 = vmul.f32 -1.442695, %v7639_v41  ;;  %v7485_v12 = vpop.xlane.xlu0 %7484  ;;  %10732 = vpow2.f32 %v9354_v15  ;;  %v10711_v62 = vpop.eup %10710 }
 0xc83   : > { %v7482_v26 = vpop.xlane.xlu1 %7481  ;;  %v7885_v18 = vadd.f32 1.0, %v10711_v62  ;;  %v7642_v54 = vadd.f32 %v14972_v22, %v7485_v12  ;;  %v15007_v41 = vpop.f32.mrf.mxu0 }
 0xc84   : > { %10734 = vrcp.f32 %v7887_v34  ;;  %v7641_v16 = vadd.f32 %v14972_v22, %v7482_v26 }
 0xc85   : > { %v10713_v50 = vpop.eup %10712  ;;  %10736 = vpow2.f32 %v9357_v10  ;;  %v9360_v4 = vmul.f32 -1.442695, %v7642_v54 }
 0xc86   : > { %v10715_v38 = vpop.eup %10714  ;;  %10738 = vrcp.f32 %v7883_v35  ;;  %v9359_v21 = vmul.f32 -1.442695, %v7641_v16  ;;  %8077 = vperm.xlu1 %10435, %v10713_v50   ;;  %v7491_v57 = vpop.xlane.xlu0 %7490 }
 0xc87   : > { %v10717_v58 = vpop.eup %10716  ;;  %v7889_v47 = vadd.f32 1.0, %v10715_v38  ;;  %10740 = vrcp.f32 %v7884_v6  ;;  %v7488_v24 = vpop.xlane.xlu1 %7487  ;;  %v7644_v52 = vadd.f32 %v14972_v22, %v7491_v57 }
 0xc88   : > { %v10719_v43 = vpop.eup %10718  ;;  %10742 = vpow2.f32 %v9359_v21  ;;  %v7643_v48 = vadd.f32 %v14972_v22, %v7488_v24  ;;  %v15011_v38 = vpop.f32.mrf.mxu0 }
 0xc89   : > { %10744 = vrcp.f32 %v7889_v47  ;;  %v10721_v60 = vpop.eup %10720  ;;  %v7886_v44 = vadd.f32 1.0, %v10719_v43  ;;  %v9362_v11 = vmul.f32 -1.442695, %v7644_v52 }
 0xc8a   : > { %v9361_v40 = vmul.f32 -1.442695, %v7643_v48  ;;  %8082 = vperm.xlu1 %10435, %v10717_v58   ;;  %10746 = vpow2.f32 %v9356_v31  ;;  %v7497_v39 = vpop.xlane.xlu0 %7496  ;;  %v10723_v28 = vpop.eup %10722 }
 0xc8b   : > { %10748 = vrcp.f32 %v7885_v18  ;;  %v7494_v56 = vpop.xlane.xlu1 %7493  ;;  %v10725_v19 = vpop.eup %10724  ;;  %v7891_v8 = vadd.f32 1.0, %v10723_v28  ;;  %v7646_v25 = vadd.f32 %v14972_v22, %v7497_v39 }
 0xc8c   : > { %10750 = vpow2.f32 %v9361_v40  ;;  %v7645_v14 = vadd.f32 %v14972_v22, %v7494_v56  ;;  %v10727_v30 = vpop.eup %10726  ;;  %v7888_v17 = vadd.f32 1.0, %v10725_v19  ;;  %v15015_v54 = vpop.f32.mrf.mxu0 }
 0xc8d   : > { %10752 = vpow2.f32 %v9358_v32  ;;  %v10729_v33 = vpop.eup %10728  ;;  %v9364_v6 = vmul.f32 -1.442695, %v7646_v25 }
 0xc8e   : > { %10754 = vrcp.f32 %v7891_v8  ;;  %v9363_v37 = vmul.f32 -1.442695, %v7645_v14  ;;  %8087 = vperm.xlu1 %10435, %v10721_v60   ;;  %v7503_v42 = vpop.xlane.xlu0 %7502  ;;  %v10731_v36 = vpop.eup %10730  ;;  %v7893_v7 = vadd.f32 1.0, %v10729_v33 }
 0xc8f   : > { %10756 = vrcp.f32 %v7886_v44  ;;  %v7500_v59 = vpop.xlane.xlu1 %7499  ;;  %v10733_v29 = vpop.eup %10732  ;;  %v7890_v45 = vadd.f32 1.0, %v10731_v36  ;;  %v7648_v26 = vadd.f32 %v14972_v22, %v7503_v42 }
 0xc90   : > { %10758 = vpow2.f32 %v9363_v37  ;;  %v7647_v20 = vadd.f32 %v14972_v22, %v7500_v59  ;;  %v7892_v35 = vadd.f32 1.0, %v10733_v29  ;;  %v15019_v42 = vpop.f32.mrf.mxu0 }
 0xc91   : > { %v10735_v1 = vpop.eup %10734  ;;  %10760 = vrcp.f32 %v7893_v7  ;;  %v9366_v24 = vmul.f32 -1.442695, %v7648_v26 }
 0xc92   : > { %v10737_v46 = vpop.eup %10736  ;;  %v9365_v51 = vmul.f32 -1.442695, %v7647_v20  ;;  %8092 = vperm.xlu1 %10435, %v10727_v30   ;;  %8117 = vperm.xlu0 %10434, %v10735_v1   ;;  %10762 = vpow2.f32 %v9360_v4  ;;  %v7509_v63 = vpop.xlane.xlu0 %7508 }
 0xc93   : > { %v10739_v49 = vpop.eup %10738  ;;  %v7895_v13 = vadd.f32 1.0, %v10737_v46  ;;  %10764 = vrcp.f32 %v7888_v17  ;;  %v7506_v0 = vpop.xlane.xlu1 %7505  ;;  %v7650_v43 = vadd.f32 %v14972_v22, %v7509_v63 }
 0xc94   : > { %v10741_v61 = vpop.eup %10740  ;;  %10766 = vpow2.f32 %v9365_v51  ;;  %v7649_v2 = vadd.f32 %v14972_v22, %v7506_v0 }
 0xc95   : > { %v10743_v15 = vpop.eup %10742  ;;  %10768 = vrcp.f32 %v7895_v13  ;;  %v9368_v14 = vmul.f32 -1.442695, %v7650_v43  ;;  %v15023_v13 = vpop.f32.mrf.mxu0 }
 0xc96   : > { %v10745_v5 = vpop.eup %10744  ;;  %v7897_v9 = vadd.f32 1.0, %v10743_v15  ;;  %v9367_v34 = vmul.f32 -1.442695, %v7649_v2  ;;  %8097 = vperm.xlu1 %10435, %v10739_v49   ;;  %10770 = vpow2.f32 %v9362_v11  ;;  %v7515_v10 = vpop.xlane.xlu0 %7514 }
 0xc97   : > { %v10747_v55 = vpop.eup %10746  ;;  %10772 = vrcp.f32 %v7890_v45  ;;  %8127 = vperm.xlu0 %10434, %v10745_v5   ;;  %v7512_v12 = vpop.xlane.xlu1 %7511  ;;  %v7652_v30 = vadd.f32 %v14972_v22, %v7515_v10 }
 0xc98   : > { %v10749_v62 = vpop.eup %10748  ;;  %10774 = vrcp.f32 %v7897_v9  ;;  %v7651_v16 = vadd.f32 %v14972_v22, %v7512_v12  ;;  %v7894_v31 = vadd.f32 1.0, %v10747_v55  ;;  %v15027_v12 = vpop.f32.mrf.mxu0 }
 0xc99   : > { %v10751_v50 = vpop.eup %10750  ;;  %10776 = vpow2.f32 %v9367_v34  ;;  %v9370_v1 = vmul.f32 -1.442695, %v7652_v30 }
 0xc9a   : > { %v10753_v23 = vpop.eup %10752  ;;  %v7899_v21 = vadd.f32 1.0, %v10751_v50  ;;  %10778 = vrcp.f32 %v7892_v35  ;;  %v9369_v57 = vmul.f32 -1.442695, %v7651_v16  ;;  %8102 = vperm.xlu1 %10435, %v10741_v61   ;;  %v7521_v58 = vpop.xlane.xlu0 %7520 }
 0xc9b   : > { %v10755_v18 = vpop.eup %10754  ;;  %v7518_v47 = vpop.xlane.xlu1 %7517  ;;  %10780 = vpow2.f32 %v9364_v6  ;;  %v7896_v28 = vadd.f32 1.0, %v10753_v23  ;;  %v7654_v46 = vadd.f32 %v14972_v22, %v7521_v58 }
 0xc9c   : > { %v10757_v48 = vpop.eup %10756  ;;  %10782 = vrcp.f32 %v7899_v21  ;;  %8137 = vperm.xlu0 %10434, %v10755_v18   ;;  %v7653_v32 = vadd.f32 %v14972_v22, %v7518_v47 }
 0xc9d   : > { %v10759_v60 = vpop.eup %10758  ;;  %10784 = vpow2.f32 %v9369_v57  ;;  %v9372_v9 = vmul.f32 -1.442695, %v7654_v46 }
 0xc9e   : > { %v10761_v40 = vpop.eup %10760  ;;  %v7901_v39 = vadd.f32 1.0, %v10759_v60  ;;  %10786 = vrcp.f32 %v7894_v31  ;;  %v9371_v44 = vmul.f32 -1.442695, %v7653_v32  ;;  %8107 = vperm.xlu1 %10435, %v10749_v62   ;;  %v7527_v56 = vpop.xlane.xlu0 %7526 }
 0xc9f   : > { %v10763_v19 = vpop.eup %10762  ;;  %v7524_v8 = vpop.xlane.xlu1 %7523  ;;  %10788 = vpow2.f32 %v9366_v24  ;;  %v7656_v25 = vadd.f32 %v14972_v22, %v7527_v56 }
 0xca0   : > { %v10765_v33 = vpop.eup %10764  ;;  %10790 = vrcp.f32 %v7901_v39  ;;  %8147 = vperm.xlu0 %10434, %v10761_v40   ;;  %v7655_v37 = vadd.f32 %v14972_v22, %v7524_v8  ;;  %v7898_v7 = vadd.f32 1.0, %v10763_v19  ;;  %v15031_v24 = vpop.f32.mrf.mxu0 }
 0xca1   : > { %v10767_v4 = vpop.eup %10766  ;;  %10792 = vpow2.f32 %v9371_v44  ;;  %v9374_v26 = vmul.f32 -1.442695, %v7656_v25 }
 0xca2   : > { %v10769_v52 = vpop.eup %10768  ;;  %v7903_v36 = vadd.f32 1.0, %v10767_v4  ;;  %10794 = vrcp.f32 %v7896_v28  ;;  %v9373_v17 = vmul.f32 -1.442695, %v7655_v37  ;;  %8112 = vperm.xlu1 %10435, %v10757_v48   ;;  %v7533_v59 = vpop.xlane.xlu0 %7532 }
 0xca3   : > { %v10771_v29 = vpop.eup %10770  ;;  %v7530_v20 = vpop.xlane.xlu1 %7529  ;;  %10796 = vpow2.f32 %v9368_v14  ;;  %v7658_v62 = vadd.f32 %v14972_v22, %v7533_v59 }
 0xca4   : > { %v10773_v51 = vpop.eup %10772  ;;  %10798 = vrcp.f32 %v7903_v36  ;;  %8157 = vperm.xlu0 %10434, %v10769_v52   ;;  %v7657_v11 = vadd.f32 %v14972_v22, %v7530_v20  ;;  %v7900_v45 = vadd.f32 1.0, %v10771_v29 }
 0xca5   : > { %v10775_v63 = vpop.eup %10774  ;;  %10800 = vpow2.f32 %v9373_v17  ;;  %v9376_v48 = vmul.f32 -1.442695, %v7658_v62 }
 0xca6   : > { %v10777_v49 = vpop.eup %10776  ;;  %10802 = vrcp.f32 %v7898_v7  ;;  %v9375_v0 = vmul.f32 -1.442695, %v7657_v11  ;;  %8122 = vperm.xlu1 %10435, %v10765_v33   ;;  %v7539_v61 = vpop.xlane.xlu0 %7538 }
 0xca7   : > { %v10779_v2 = vpop.eup %10778  ;;  %v7905_v15 = vadd.f32 1.0, %v10777_v49  ;;  %v7536_v5 = vpop.xlane.xlu1 %7535  ;;  %10804 = vpow2.f32 %v9370_v1  ;;  %v7660_v32 = vadd.f32 %v14972_v22, %v7539_v61 }
 0xca8   : > { %v10781_v35 = vpop.eup %10780  ;;  %10806 = vpow2.f32 %v9375_v0  ;;  %8167 = vperm.xlu0 %10434, %v10775_v63   ;;  %v7659_v34 = vadd.f32 %v14972_v22, %v7536_v5  ;;  %v15036_v33 = vpop.f32.mrf.mxu0 }
 0xca9   : > { %v10783_v10 = vpop.eup %10782  ;;  %10808 = vrcp.f32 %v7905_v15  ;;  %v7902_v21 = vadd.f32 1.0, %v10781_v35  ;;  %v9378_v4 = vmul.f32 -1.442695, %v7660_v32 }
 0xcaa   : > { %v10785_v55 = vpop.eup %10784  ;;  %10810 = vrcp.f32 %v7900_v45  ;;  %v9377_v6 = vmul.f32 -1.442695, %v7659_v34  ;;  %8132 = vperm.xlu1 %10435, %v10773_v51   ;;  %v7545_v16 = vpop.xlane.xlu0 %7544 }
 0xcab   : > { %v10787_v50 = vpop.eup %10786  ;;  %v7907_v23 = vadd.f32 1.0, %v10785_v55  ;;  %v7542_v31 = vpop.xlane.xlu1 %7541  ;;  %10812 = vpow2.f32 %v9372_v9  ;;  %v7662_v14 = vadd.f32 %v14972_v22, %v7545_v16 }
 0xcac   : > { %v10789_v57 = vpop.eup %10788  ;;  %10814 = vpow2.f32 %v9377_v6  ;;  %8177 = vperm.xlu0 %10434, %v10783_v10   ;;  %v7661_v58 = vadd.f32 %v14972_v22, %v7542_v31  ;;  %v15039_v11 = vpop.f32.mrf.mxu0 }
 0xcad   : > { %v10791_v18 = vpop.eup %10790  ;;  %10816 = vrcp.f32 %v7907_v23  ;;  %v7904_v28 = vadd.f32 1.0, %v10789_v57  ;;  %v9380_v46 = vmul.f32 -1.442695, %v7662_v14 }
 0xcae   : > { %v10793_v47 = vpop.eup %10792  ;;  %v9379_v43 = vmul.f32 -1.442695, %v7661_v58  ;;  %8142 = vperm.xlu1 %10435, %v10779_v2   ;;  %10818 = vpow2.f32 %v9374_v26  ;;  %v7551_v60 = vpop.xlane.xlu0 %7550 }
 0xcaf   : > { %v10795_v40 = vpop.eup %10794  ;;  %v7909_v39 = vadd.f32 1.0, %v10793_v47  ;;  %10820 = vrcp.f32 %v7902_v21  ;;  %v7548_v44 = vpop.xlane.xlu1 %7547  ;;  %v7664_v45 = vadd.f32 %v14972_v22, %v7551_v60 }
 0xcb0   : > { %v10797_v56 = vpop.eup %10796  ;;  %10822 = vpow2.f32 %v9379_v43  ;;  %8187 = vperm.xlu0 %10434, %v10791_v18   ;;  %v7663_v19 = vadd.f32 %v14972_v22, %v7548_v44  ;;  %v15043_v34 = vpop.f32.mrf.mxu0 }
 0xcb1   : > { %v10799_v8 = vpop.eup %10798  ;;  %10824 = vrcp.f32 %v7909_v39  ;;  %v7906_v17 = vadd.f32 1.0, %v10797_v56  ;;  %v9382_v6 = vmul.f32 -1.442695, %v7664_v45 }
 0xcb2   : > { %v10801_v30 = vpop.eup %10800  ;;  %v9381_v37 = vmul.f32 -1.442695, %v7663_v19  ;;  %8152 = vperm.xlu1 %10435, %v10787_v50   ;;  %10826 = vpow2.f32 %v9376_v48  ;;  %v7557_v52 = vpop.xlane.xlu0 %7556 }
 0xcb3   : > { %v10803_v36 = vpop.eup %10802  ;;  %v7911_v7 = vadd.f32 1.0, %v10801_v30  ;;  %10828 = vrcp.f32 %v7904_v28  ;;  %v7554_v59 = vpop.xlane.xlu1 %7553  ;;  %v7666_v23 = vadd.f32 %v14972_v22, %v7557_v52 }
 0xcb4   : > { %v10805_v29 = vpop.eup %10804  ;;  %10830 = vpow2.f32 %v9381_v37  ;;  %8197 = vperm.xlu0 %10434, %v10799_v8   ;;  %v7665_v20 = vadd.f32 %v14972_v22, %v7554_v59  ;;  %v15047_v18 = vpop.f32.mrf.mxu0 }
 0xcb5   : > { %v10807_v1 = vpop.eup %10806  ;;  %10832 = vrcp.f32 %v7911_v7  ;;  %v7908_v61 = vadd.f32 1.0, %v10805_v29  ;;  %v9384_v39 = vmul.f32 -1.442695, %v7666_v23 }
 0xcb6   : > { %v10809_v51 = vpop.eup %10808  ;;  %v7913_v63 = vadd.f32 1.0, %v10807_v1  ;;  %v9383_v49 = vmul.f32 -1.442695, %v7665_v20  ;;  %8162 = vperm.xlu1 %10435, %v10795_v40   ;;  %10834 = vpow2.f32 %v9378_v4  ;;  %v7563_v0 = vpop.xlane.xlu0 %7562 }
 0xcb7   : > { %v10811_v25 = vpop.eup %10810  ;;  %10836 = vrcp.f32 %v7906_v17  ;;  %v7560_v2 = vpop.xlane.xlu1 %7559  ;;  %v7668_v28 = vadd.f32 %v14972_v22, %v7563_v0 }
 0xcb8   : > { %v10813_v15 = vpop.eup %10812  ;;  %10838 = vrcp.f32 %v7913_v63  ;;  %8207 = vperm.xlu0 %10434, %v10809_v51   ;;  %v7667_v5 = vadd.f32 %v14972_v22, %v7560_v2  ;;  %v15051_v14 = vpop.f32.mrf.mxu0 }
 0xcb9   : > { %v10815_v9 = vpop.eup %10814  ;;  %10840 = vpow2.f32 %v9383_v49  ;;  %v7910_v16 = vadd.f32 1.0, %v10813_v15  ;;  %v9386_v17 = vmul.f32 -1.442695, %v7668_v28 }
 0xcba   : > { %v10817_v35 = vpop.eup %10816  ;;  %v7915_v10 = vadd.f32 1.0, %v10815_v9  ;;  %v9385_v55 = vmul.f32 -1.442695, %v7667_v5  ;;  %8172 = vperm.xlu1 %10435, %v10803_v36   ;;  %10842 = vpow2.f32 %v9380_v46  ;;  %v7569_v26 = vpop.xlane.xlu0 %7568 }
 0xcbb   : > { %v10819_v62 = vpop.eup %10818  ;;  %10844 = vrcp.f32 %v7908_v61  ;;  %v7566_v50 = vpop.xlane.xlu1 %7565  ;;  %v7670_v59 = vadd.f32 %v14972_v22, %v7569_v26 }
 0xcbc   : > { %v10821_v21 = vpop.eup %10820  ;;  %10846 = vrcp.f32 %v7915_v10  ;;  %8217 = vperm.xlu0 %10434, %v10817_v35   ;;  %v7669_v31 = vadd.f32 %v14972_v22, %v7566_v50  ;;  %v7912_v43 = vadd.f32 1.0, %v10819_v62  ;;  %v15055_v51 = vpop.f32.mrf.mxu0 }
 0xcbd   : > { %v10823_v57 = vpop.eup %10822  ;;  %10848 = vpow2.f32 %v9385_v55  ;;  %v9388_v61 = vmul.f32 -1.442695, %v7670_v59 }
 0xcbe   : > { %v10825_v58 = vpop.eup %10824  ;;  %v7917_v47 = vadd.f32 1.0, %v10823_v57  ;;  %v9387_v48 = vmul.f32 -1.442695, %v7669_v31  ;;  %8182 = vperm.xlu1 %10435, %v10811_v25   ;;  %10850 = vpow2.f32 %v9382_v6  ;;  %v7575_v32 = vpop.xlane.xlu0 %7574 }
 0xcbf   : > { %v10827_v60 = vpop.eup %10826  ;;  %10852 = vrcp.f32 %v7910_v16  ;;  %v7572_v40 = vpop.xlane.xlu1 %7571  ;;  %v7672_v2 = vadd.f32 %v14972_v22, %v7575_v32 }
 0xcc0   : > { %v10829_v44 = vpop.eup %10828  ;;  %10854 = vrcp.f32 %v7917_v47  ;;  %8227 = vperm.xlu0 %10434, %v10825_v58   ;;  %v7671_v56 = vadd.f32 %v14972_v22, %v7572_v40  ;;  %v7914_v37 = vadd.f32 1.0, %v10827_v60  ;;  %v15059_v55 = vpop.f32.mrf.mxu0 }
 0xcc1   : > { %v10831_v19 = vpop.eup %10830  ;;  %10856 = vpow2.f32 %v9387_v48  ;;  %v9390_v23 = vmul.f32 -1.442695, %v7672_v2 }
 0xcc2   : > { %v10833_v8 = vpop.eup %10832  ;;  %v7919_v30 = vadd.f32 1.0, %v10831_v19  ;;  %10858 = vrcp.f32 %v7912_v43  ;;  %v9389_v4 = vmul.f32 -1.442695, %v7671_v56  ;;  %8192 = vperm.xlu1 %10435, %v10821_v21   ;;  %v7581_v52 = vpop.xlane.xlu0 %7580 }
 0xcc3   : > { %v10835_v36 = vpop.eup %10834  ;;  %v7578_v7 = vpop.xlane.xlu1 %7577  ;;  %10860 = vpow2.f32 %v9384_v39  ;;  %v7674_v21 = vadd.f32 %v14972_v22, %v7581_v52 }
 0xcc4   : > { %v10837_v29 = vpop.eup %10836  ;;  %10862 = vrcp.f32 %v7919_v30  ;;  %8237 = vperm.xlu0 %10434, %v10833_v8   ;;  %v7673_v20 = vadd.f32 %v14972_v22, %v7578_v7  ;;  %v7916_v63 = vadd.f32 1.0, %v10835_v36  ;;  %v15063_v48 = vpop.f32.mrf.mxu0 }
 0xcc5   : > { %v10839_v1 = vpop.eup %10838  ;;  %10864 = vpow2.f32 %v9389_v4 }
 0xcc6   : > { %v10841_v46 = vpop.eup %10840  ;;  %10866 = vrcp.f32 %v7914_v37  ;;  %v9391_v49 = vmul.f32 -1.442695, %v7673_v20  ;;  %8202 = vperm.xlu1 %10435, %v10829_v44   ;;  %v7587_v15 = vpop.xlane.xlu0 %7586  ;;  %v9392_v44 = vmul.f32 -1.442695, %v7674_v21 }
 0xcc7   : > { %v10843_v45 = vpop.eup %10842  ;;  %v7921_v0 = vadd.f32 1.0, %v10841_v46  ;;  %v7584_v25 = vpop.xlane.xlu1 %7583  ;;  %10868 = vpow2.f32 %v9386_v17  ;;  %v7676_v52 = vadd.f32 %v14972_v22, %v7587_v15 }
 0xcc8   : > { %v10845_v5 = vpop.eup %10844  ;;  %10870 = vpow2.f32 %v9391_v49  ;;  %8247 = vperm.xlu0 %10434, %v10839_v1   ;;  %v7675_v9 = vadd.f32 %v14972_v22, %v7584_v25  ;;  %v7918_v6 = vadd.f32 1.0, %v10843_v45  ;;  %v15066_v37 = vpop.f32.mrf.mxu0 }
 0xcc9   : > { %v10847_v35 = vpop.eup %10846  ;;  %10872 = vrcp.f32 %v7921_v0  ;;  %v9394_v0 = vmul.f32 -1.442695, %v7676_v52 }
 0xcca   : > { %v10849_v10 = vpop.eup %10848  ;;  %10874 = vrcp.f32 %v7916_v63  ;;  %v9393_v26 = vmul.f32 -1.442695, %v7675_v9  ;;  %8212 = vperm.xlu1 %10435, %v10837_v29   ;;  %v7593_v47 = vpop.xlane.xlu0 %7592 }
 0xccb   : > { %v10851_v62 = vpop.eup %10850  ;;  %v7923_v16 = vadd.f32 1.0, %v10849_v10  ;;  %v7590_v50 = vpop.xlane.xlu1 %7589  ;;  %10876 = vpow2.f32 %v9388_v61  ;;  %v7678_v25 = vadd.f32 %v14972_v22, %v7593_v47 }
 0xccc   : > { %v10853_v31 = vpop.eup %10852  ;;  %10878 = vpow2.f32 %v9393_v26  ;;  %8257 = vperm.xlu0 %10434, %v10847_v35   ;;  %v7677_v57 = vadd.f32 %v14972_v22, %v7590_v50  ;;  %v7920_v32 = vadd.f32 1.0, %v10851_v62  ;;  %v15071_v2 = vpop.f32.mrf.mxu0 }
 0xccd   : > { %v10855_v58 = vpop.eup %10854  ;;  %10880 = vrcp.f32 %v7923_v16 }
 0xcce   : > { %v10857_v43 = vpop.eup %10856  ;;  %10882 = vrcp.f32 %v7918_v6  ;;  %v9395_v60 = vmul.f32 -1.442695, %v7677_v57  ;;  %8222 = vperm.xlu1 %10435, %v10845_v5   ;;  %v7599_v29 = vpop.xlane.xlu0 %7598 }
 0xccf   : > { %v10859_v40 = vpop.eup %10858  ;;  %v7925_v39 = vadd.f32 1.0, %v10857_v43  ;;  %v7596_v28 = vpop.xlane.xlu1 %7595  ;;  %10884 = vpow2.f32 %v9390_v23  ;;  %v7680_v6 = vadd.f32 %v14972_v22, %v7599_v29  ;;  %v9396_v23 = vmul.f32 -1.442695, %v7678_v25 }
 0xcd0   : > { %v10861_v56 = vpop.eup %10860  ;;  %10886 = vpow2.f32 %v9395_v60  ;;  %8267 = vperm.xlu0 %10434, %v10855_v58   ;;  %v7679_v19 = vadd.f32 %v14972_v22, %v7596_v28 }
 0xcd1   : > { %v10863_v8 = vpop.eup %10862  ;;  %10888 = vrcp.f32 %v7925_v39  ;;  %v7922_v17 = vadd.f32 1.0, %v10861_v56  ;;  %v9398_v60 = vmul.f32 -1.442695, %v7680_v6 }
 0xcd2   : > { %v10865_v30 = vpop.eup %10864  ;;  %10890 = vrcp.f32 %v7920_v32  ;;  %v9397_v4 = vmul.f32 -1.442695, %v7679_v19  ;;  %8232 = vperm.xlu1 %10435, %v10853_v31   ;;  %v7605_v26 = vpop.xlane.xlu0 %7604 }
 0xcd3   : > { %v10867_v36 = vpop.eup %10866  ;;  %v7927_v7 = vadd.f32 1.0, %v10865_v30  ;;  %v7602_v59 = vpop.xlane.xlu1 %7601  ;;  %10892 = vpow2.f32 %v9392_v44  ;;  %v11017_v44 = vld [vmem:[#allocation2] ss:$0 sm:$0xff] }
 0xcd4   : > { %v10869_v20 = vpop.eup %10868  ;;  %10894 = vpow2.f32 %v9397_v4  ;;  %8277 = vperm.xlu0 %10434, %v10863_v8   ;;  %v7681_v1 = vadd.f32 %v14972_v22, %v7602_v59  ;;  %v15075_v31 = vpop.f32.mrf.mxu0  ;;  %v7682_v56 = vadd.f32 %v11017_v44, %v7605_v26 }
 0xcd5   : > { %v10871_v46 = vpop.eup %10870  ;;  %10896 = vrcp.f32 %v7927_v7  ;;  %v7924_v15 = vadd.f32 1.0, %v10869_v20 }
 0xcd6   : > { %v10873_v63 = vpop.eup %10872  ;;  %v7929_v49 = vadd.f32 1.0, %v10871_v46  ;;  %v9399_v45 = vmul.f32 -1.442695, %v7681_v1  ;;  %8242 = vperm.xlu1 %10435, %v10859_v40   ;;  %10898 = vrcp.f32 %v7922_v17  ;;  %v15078_v8 = vpop.f32.mrf.mxu0  ;;  %v9400_v17 = vmul.f32 -1.442695, %v7682_v56 }
 0xcd7   : > { %v10875_v61 = vpop.eup %10874  ;;  %v7608_v5 = vpop.xlane.xlu1 %7607 }
 0xcd8   : > { %v10877_v9 = vpop.eup %10876  ;;  %10900 = vrcp.f32 %v7929_v49  ;;  %8287 = vperm.xlu0 %10434, %v10873_v63   ;;  %v7683_v35 = vadd.f32 %v14972_v22, %v7608_v5  ;;  %v7611_v30 = vpop.xlane.xlu0 %7610 }
 0xcd9   : > { %v10879_v10 = vpop.eup %10878  ;;  %10902 = vpow2.f32 %v9399_v45  ;;  %v7926_v57 = vadd.f32 1.0, %v10877_v9  ;;  %v7684_v59 = vadd.f32 %v11017_v44, %v7611_v30  ;;  %v15080_v29 = vpop.f32.mrf.mxu0 }
 0xcda   : > { %v10881_v62 = vpop.eup %10880  ;;  %v7931_v16 = vadd.f32 1.0, %v10879_v10  ;;  %v9401_v50 = vmul.f32 -1.442695, %v7683_v35  ;;  %8252 = vperm.xlu1 %10435, %v10867_v36   ;;  %10904 = vpow2.f32 %v9394_v0 }
 0xcdb   : > { %v10883_v21 = vpop.eup %10882  ;;  %10906 = vrcp.f32 %v7924_v15  ;;  %v7614_v58 = vpop.xlane.xlu1 %7613  ;;  %v9402_v49 = vmul.f32 -1.442695, %v7684_v59 }
 0xcdc   : > { %v10885_v47 = vpop.eup %10884  ;;  %10908 = vrcp.f32 %v7931_v16  ;;  %8297 = vperm.xlu0 %10434, %v10881_v62   ;;  %v7685_v43 = vadd.f32 %v14972_v22, %v7614_v58  ;;  %v15082_v0 = vpop.f32.mrf.mxu0 }
 0xcdd   : > { %v10887_v32 = vpop.eup %10886  ;;  %10910 = vpow2.f32 %v9401_v50  ;;  %v7928_v22 = vadd.f32 1.0, %v10885_v47 }
 0xcde   : > { %v10889_v40 = vpop.eup %10888  ;;  %v7933_v39 = vadd.f32 1.0, %v10887_v32  ;;  %v9403_v28 = vmul.f32 -1.442695, %v7685_v43  ;;  %8262 = vperm.xlu1 %10435, %v10875_v61   ;;  %10912 = vpow2.f32 %v9396_v23  ;;  %v15084_v10 = vpop.f32.mrf.mxu0 }
 0xcdf   : > { %v10891_v19 = vpop.eup %10890  ;;  %10914 = vrcp.f32 %v7926_v57 }
 0xce0   : > { %v10893_v4 = vpop.eup %10892  ;;  %10916 = vrcp.f32 %v7933_v39  ;;  %8307 = vperm.xlu0 %10434, %v10889_v40  }
 0xce1   : > { %v10895_v52 = vpop.eup %10894  ;;  %10918 = vpow2.f32 %v9403_v28  ;;  %v7930_v1 = vadd.f32 1.0, %v10893_v4 }
 0xce2   : > { %v10897_v36 = vpop.eup %10896  ;;  %v7935_v7 = vadd.f32 1.0, %v10895_v52  ;;  %8272 = vperm.xlu1 %10435, %v10883_v21   ;;  %10920 = vpow2.f32 %v9398_v60  ;;  %v15086_v21 = vpop.f32.mrf.mxu0 }
 0xce3   : > { %v10899_v20 = vpop.eup %10898 }
 0xce4   : > { %10922 = vrcp.f32 %v7935_v7  ;;  %8317 = vperm.xlu0 %10434, %v10897_v36   ;;  %v15088_v60 = vpop.f32.mrf.mxu0 }
 0xce5   : > { %v10901_v46 = vpop.eup %10900  ;;  %10924 = vrcp.f32 %v7928_v22  ;;  %v15097_v22 = vld [vmem:[%s15761_s16] ss:$0 sm:$0xff] }
 0xce6   : > { %v10903_v63 = vpop.eup %10902  ;;  %8282 = vperm.xlu1 %10435, %v10891_v19   ;;  %10926 = vpow2.f32 %v9400_v17  ;;  %v15090_v56 = vpop.f32.mrf.mxu0  ;;  %v7039_v59 = vadd.f32 %v14995_v3, %v15097_v22 }
 0xce7   : > { %v10905_v45 = vpop.eup %10904  ;;  %v7937_v25 = vadd.f32 1.0, %v10903_v63  ;;  %10928 = vrcp.f32 %v7930_v1 }
 0xce8   : > { %v10907_v61 = vpop.eup %10906  ;;  %8327 = vperm.xlu0 %10434, %v10901_v46   ;;  %v7932_v9 = vadd.f32 1.0, %v10905_v45  ;;  %v15092_v52 = vpop.f32.mrf.mxu0 }
 0xce9   : > { %v10909_v15 = vpop.eup %10908  ;;  %10930 = vrcp.f32 %v7937_v25 }
 0xcea   : > { %v10911_v5 = vpop.eup %10910  ;;  %8292 = vperm.xlu1 %10435, %v10899_v20   ;;  %10932 = vpow2.f32 %v9402_v49  ;;  %v15099_v17 = vpop.f32.mrf.mxu0 }
 0xceb   : > { %v10913_v35 = vpop.eup %10912  ;;  %v7939_v6 = vadd.f32 1.0, %v10911_v5 }
 0xcec   : > { %v10915_v26 = vpop.eup %10914  ;;  %8337 = vperm.xlu0 %10434, %v10909_v15   ;;  %v7934_v50 = vadd.f32 1.0, %v10913_v35  ;;  %v15103_v63 = vpop.f32.mrf.mxu0 }
 0xced   : > { %v10917_v62 = vpop.eup %10916  ;;  %10934 = vrcp.f32 %v7939_v6 }
 0xcee   : > { %v10919_v16 = vpop.eup %10918  ;;  %10936 = vrcp.f32 %v7932_v9  ;;  %8302 = vperm.xlu1 %10435, %v10907_v61   ;;  %v15106_v25 = vpop.f32.mrf.mxu0  ;;  %v7049_v61 = vadd.f32 %v15003_v27, %v15097_v22  ;;  %v7059_v27 = vadd.f32 %v15011_v38, %v15097_v22 }
 0xcef   : > { %v10921_v23 = vpop.eup %10920  ;;  %v7941_v57 = vadd.f32 1.0, %v10919_v16 }
 0xcf0   : > { %8347 = vperm.xlu0 %10434, %v10917_v62   ;;  %v7936_v43 = vadd.f32 1.0, %v10921_v23  ;;  %v15110_v35 = vpop.f32.mrf.mxu0  ;;  %v7034_v62 = vadd.f32 %v15097_v22, %v14999_v53 }
 0xcf1   : > { %v10923_v58 = vpop.eup %10922  ;;  %10938 = vrcp.f32 %v7941_v57  ;;  %v7044_v57 = vadd.f32 %v15097_v22, %v15007_v41  ;;  %v7069_v41 = vadd.f32 %v15019_v42, %v15097_v22  ;;  %v7074_v42 = vadd.f32 %v15097_v22, %v15031_v24 }
 0xcf2   : > { %v10925_v47 = vpop.eup %10924  ;;  %10940 = vrcp.f32 %v7934_v50  ;;  %8312 = vperm.xlu1 %10435, %v10915_v26   ;;  %v15115_v16 = vpop.f32.mrf.mxu0 }
 0xcf3   : > { %v10927_v32 = vpop.eup %10926  ;;  %10942 = vrcp.f32 %v7936_v43 }
 0xcf4   : > { %8357 = vperm.xlu0 %10434, %v10923_v58   ;;  %v10929_v40 = vpop.eup %10928  ;;  %v7938_v28 = vadd.f32 1.0, %v10927_v32  ;;  %v8073_v15 = vpop.permute.xlu0 %8072 }
 0xcf5   : > { %v8390_v50 = vmul.f32 %v8073_v15, %v7034_v62  ;;  %v15122_v43 = vpop.f32.mrf.mxu0  ;;  %v7109_v62 = vadd.f32 %v15051_v14, %v15097_v22 }
 0xcf6   : > { %v10931_v39 = vpop.eup %10930  ;;  %8322 = vperm.xlu1 %10435, %v10925_v47   ;;  %10944 = vrcp.f32 %v7938_v28 }
 0xcf7   : > { %v10933_v44 = vpop.eup %10932  ;;  %v15128_v38 = vpop.f32.mrf.mxu0 }
 0xcf8   : > { %8367 = vperm.xlu0 %10434, %v10931_v39   ;;  %v7940_v30 = vadd.f32 1.0, %v10933_v44 }
 0xcfa   : > { %v10935_v19 = vpop.eup %10934  ;;  %8332 = vperm.xlu1 %10435, %v10929_v40   ;;  %10946 = vrcp.f32 %v7940_v30  ;;  %v7054_v40 = vadd.f32 %v15097_v22, %v15015_v54  ;;  %v7079_v54 = vadd.f32 %v15027_v12, %v15097_v22 }
 0xcfb   : > { %v10937_v4 = vpop.eup %10936 }
 0xcfc   : > { %8377 = vperm.xlu0 %10434, %v10935_v19   ;;  %v7064_v19 = vadd.f32 %v15097_v22, %v15023_v13 }
 0xcfe   : > { %v10939_v36 = vpop.eup %10938  ;;  %8342 = vperm.xlu1 %10435, %v10937_v4   ;;  %v15135_v4 = vpop.f32.mrf.mxu0 }
 0xcff   : > { %v10941_v7 = vpop.eup %10940 }
 0xd00   : > { %8387 = vperm.xlu0 %10434, %v10939_v36   ;;  %v10943_v46 = vpop.eup %10942  ;;  %v15143_v13 = vpop.f32.mrf.mxu0 }
 0xd01   : > { %v8078_v20 = vpop.permute.xlu1 %8077 }
 0xd02   : > { %v8391_v1 = vmul.f32 %v8078_v20, %v7039_v59  ;;  %8352 = vperm.xlu1 %10435, %v10941_v7   ;;  %v15151_v24 = vpop.f32.mrf.mxu0 }
 0xd03   : > { %v10945_v45 = vpop.eup %10944 }
 0xd04   : > { %8520 = vrot.lane.b32.xlu0 %v8391_v1, %s11027_s18 }
 0xd05   : > { %v8083_v49 = vpop.permute.xlu1 %8082 }
 0xd06   : > { %8362 = vperm.xlu1 %10435, %v10943_v46   ;;  %v8392_v32 = vmul.f32 %v8083_v49, %v7044_v57  ;;  %v7089_v46 = vadd.f32 %v15036_v33, %v15097_v22 }
 0xd07   : > { %v10947_v9 = vpop.eup %10946 }
 0xd09   : > { %v8088_v5 = vpop.permute.xlu1 %8087 }
 0xd0a   : > { %v8393_v3 = vmul.f32 %v8088_v5, %v7049_v61  ;;  %8372 = vperm.xlu1 %10435, %v10945_v45   ;;  %v7084_v45 = vadd.f32 %v15097_v22, %v15039_v11  ;;  %v7099_v5 = vadd.f32 %v15043_v34, %v15097_v22  ;;  %v15159_v11 = vpop.f32.mrf.mxu0 }
 0xd0c   : > { %8524 = vrot.lane.b32.xlu0 %v8393_v3, %s11027_s18 }
 0xd0d   : > { %v8118_v6 = vpop.permute.xlu0 %8117  ;;  %v8093_v26 = vpop.permute.xlu1 %8092 }
 0xd0e   : > { %8382 = vperm.xlu1 %10435, %v10947_v9   ;;  %v8394_v28 = vmul.f32 %v8093_v26, %v7054_v40  ;;  %v8399_v20 = vmul.f32 %v8118_v6, %v7079_v54  ;;  %v7094_v9 = vadd.f32 %v15097_v22, %v15047_v18  ;;  %v15167_v18 = vpop.f32.mrf.mxu0  ;;  %v7134_v54 = vadd.f32 %v15097_v22, %v15078_v8 }
 0xd11   : > { %v8098_v23 = vpop.permute.xlu1 %8097 }
 0xd12   : > { %v8128_v58 = vpop.permute.xlu0 %8127  ;;  %v8395_v47 = vmul.f32 %v8098_v23, %v7059_v27  ;;  %8518 = vrot.lane.b32.xlu1 %v8390_v50, %s11027_s18  ;;  %v7104_v50 = vadd.f32 %v15097_v22, %v15055_v51  ;;  %v15175_v51 = vpop.f32.mrf.mxu0 }
 0xd13   : > { %v8401_v61 = vmul.f32 %v8128_v58, %v7089_v46  ;;  %v7119_v58 = vadd.f32 %v15059_v55, %v15097_v22  ;;  %v7144_v46 = vadd.f32 %v15097_v22, %v15082_v0  ;;  %v7154_v0 = vadd.f32 %v15097_v22, %v15086_v21 }
 0xd14   : > { %8528 = vrot.lane.b32.xlu0 %v8395_v47, %s11027_s18 }
 0xd15   : > { %v8103_v53 = vpop.permute.xlu1 %8102 }
 0xd16   : > { %8522 = vrot.lane.b32.xlu1 %v8392_v32, %s11027_s18  ;;  %v8396_v7 = vmul.f32 %v8103_v53, %v7064_v19  ;;  %v7114_v32 = vadd.f32 %v15097_v22, %v15063_v48  ;;  %v15183_v48 = vpop.f32.mrf.mxu0 }
 0xd17   : > { %v8138_v39 = vpop.permute.xlu0 %8137 }
 0xd18   : > { %v8403_v6 = vmul.f32 %v8138_v39, %v7099_v5  ;;  %v7129_v39 = vadd.f32 %v15066_v37, %v15097_v22 }
 0xd19   : > { %v8108_v44 = vpop.permute.xlu1 %8107 }
 0xd1a   : > { %v8397_v30 = vmul.f32 %v8108_v44, %v7069_v41  ;;  %8526 = vrot.lane.b32.xlu1 %v8394_v28, %s11027_s18  ;;  %v7124_v28 = vadd.f32 %v15097_v22, %v15071_v2  ;;  %v15191_v2 = vpop.f32.mrf.mxu0 }
 0xd1b   : > { %v8148_v36 = vpop.permute.xlu0 %8147 }
 0xd1c   : > { %8532 = vrot.lane.b32.xlu0 %v8397_v30, %s11027_s18  ;;  %v8405_v23 = vmul.f32 %v8148_v36, %v7109_v62  ;;  %v7139_v30 = vadd.f32 %v15075_v31, %v15097_v22  ;;  %v15201_v8 = vpop.f32.mrf.mxu0 }
 0xd1d   : > { %v8113_v59 = vpop.permute.xlu1 %8112 }
 0xd1e   : > { %8530 = vrot.lane.b32.xlu1 %v8396_v7, %s11027_s18  ;;  %v8398_v49 = vmul.f32 %v8113_v59, %v7074_v42  ;;  %v15193_v42 = vpop.f32.mrf.mxu1 }
 0xd1f   : > { %v8158_v1 = vpop.permute.xlu0 %8157 }
 0xd20   : > { %8536 = vrot.lane.b32.xlu0 %v8399_v20, %s11027_s18  ;;  %v8407_v53 = vmul.f32 %v8158_v1, %v7119_v58  ;;  %v7149_v20 = vadd.f32 %v15080_v29, %v15097_v22 }
 0xd21   : > { %v8123_v12 = vpop.permute.xlu1 %8122 }
 0xd22   : > { %8534 = vrot.lane.b32.xlu1 %v8398_v49, %s11027_s18  ;;  %v8400_v3 = vmul.f32 %v8123_v12, %v7084_v45  ;;  %v15203_v45 = vpop.f32.mrf.mxu1 }
 0xd23   : > { %v8168_v15 = vpop.permute.xlu0 %8167 }
 0xd24   : > { %8540 = vrot.lane.b32.xlu0 %v8401_v61, %s11027_s18  ;;  %v8409_v44 = vmul.f32 %v8168_v15, %v7129_v39  ;;  %v7159_v61 = vadd.f32 %v15084_v10, %v15097_v22  ;;  %v15208_v5 = vpop.f32.mrf.mxu1 }
 0xd25   : > { %v8133_v33 = vpop.permute.xlu1 %8132 }
 0xd26   : > { %8538 = vrot.lane.b32.xlu1 %v8400_v3, %s11027_s18  ;;  %v8402_v27 = vmul.f32 %v8133_v33, %v7094_v9  ;;  %v15213_v33 = vpop.f32.mrf.mxu0  ;;  %v15218_v62 = vpop.f32.mrf.mxu1 }
 0xd27   : > { %v8178_v26 = vpop.permute.xlu0 %8177 }
 0xd28   : > { %8544 = vrot.lane.b32.xlu0 %v8403_v6, %s11027_s18  ;;  %v8411_v7 = vmul.f32 %v8178_v26, %v7139_v30  ;;  %v7169_v6 = vadd.f32 %v15088_v60, %v15097_v22  ;;  %v15223_v21 = vpop.f32.mrf.mxu0  ;;  %v7179_v60 = vadd.f32 %v15092_v52, %v15097_v22 }
 0xd29   : > { %v8143_v34 = vpop.permute.xlu1 %8142 }
 0xd2a   : > { %8542 = vrot.lane.b32.xlu1 %v8402_v27, %s11027_s18  ;;  %v8404_v47 = vmul.f32 %v8143_v34, %v7104_v50  ;;  %v7164_v27 = vadd.f32 %v15097_v22, %v15090_v56  ;;  %v15233_v56 = vpop.f32.mrf.mxu0 }
 0xd2b   : > { %v8188_v57 = vpop.permute.xlu0 %8187 }
 0xd2c   : > { %8548 = vrot.lane.b32.xlu0 %v8405_v23, %s11027_s18  ;;  %v8413_v49 = vmul.f32 %v8188_v57, %v7149_v20  ;;  %v15225_v23 = vpop.f32.mrf.mxu1 }
 0xd2d   : > { %v8153_v14 = vpop.permute.xlu1 %8152 }
 0xd2e   : > { %8546 = vrot.lane.b32.xlu1 %v8404_v47, %s11027_s18  ;;  %v8406_v41 = vmul.f32 %v8153_v14, %v7114_v32  ;;  %v7174_v47 = vadd.f32 %v15097_v22, %v15099_v17  ;;  %v7184_v17 = vadd.f32 %v15097_v22, %v15106_v25 }
 0xd2f   : > { %v8198_v40 = vpop.permute.xlu0 %8197 }
 0xd30   : > { %8552 = vrot.lane.b32.xlu0 %v8407_v53, %s11027_s18  ;;  %v8415_v3 = vmul.f32 %v8198_v40, %v7159_v61  ;;  %v15235_v53 = vpop.f32.mrf.mxu1  ;;  %v7189_v40 = vadd.f32 %v15103_v63, %v15097_v22  ;;  %v7219_v61 = vadd.f32 %v15135_v4, %v15097_v22 }
 0xd31   : > { %v8163_v55 = vpop.permute.xlu1 %8162 }
 0xd32   : > { %8550 = vrot.lane.b32.xlu1 %v8406_v41, %s11027_s18  ;;  %v8408_v36 = vmul.f32 %v8163_v55, %v7124_v28  ;;  %v15240_v41 = vpop.f32.mrf.mxu1  ;;  %v15245_v28 = vpop.f32.mrf.mxu0 }
 0xd33   : > { %v8208_v19 = vpop.permute.xlu0 %8207 }
 0xd34   : > { %8556 = vrot.lane.b32.xlu0 %v8409_v44, %s11027_s18  ;;  %v8417_v34 = vmul.f32 %v8208_v19, %v7169_v6  ;;  %v7199_v19 = vadd.f32 %v15110_v35, %v15097_v22  ;;  %v15255_v25 = vpop.f32.mrf.mxu0  ;;  %v7209_v35 = vadd.f32 %v15122_v43, %v15097_v22  ;;  %v7229_v6 = vadd.f32 %v15151_v24, %v15097_v22 }
 0xd35   : > { %v8173_v37 = vpop.permute.xlu1 %8172  ;;  %v7239_v24 = vadd.f32 %v15167_v18, %v15097_v22 }
 0xd36   : > { %8554 = vrot.lane.b32.xlu1 %v8408_v36, %s11027_s18  ;;  %v8410_v1 = vmul.f32 %v8173_v37, %v7134_v54  ;;  %v15250_v36 = vpop.f32.mrf.mxu1  ;;  %v7194_v37 = vadd.f32 %v15097_v22, %v15115_v16  ;;  %v15265_v16 = vpop.f32.mrf.mxu0 }
 0xd37   : > { %v8218_v59 = vpop.permute.xlu0 %8217 }
 0xd38   : > { %8560 = vrot.lane.b32.xlu0 %v8411_v7, %s11027_s18  ;;  %v8419_v14 = vmul.f32 %v8218_v59, %v7179_v60  ;;  %v15257_v59 = vpop.f32.mrf.mxu1 }
 0xd39   : > { %v8183_v31 = vpop.permute.xlu1 %8182 }
 0xd3a   : > { %8558 = vrot.lane.b32.xlu1 %v8410_v1, %s11027_s18  ;;  %v8412_v15 = vmul.f32 %v8183_v31, %v7144_v46  ;;  %v7204_v31 = vadd.f32 %v15097_v22, %v15128_v38  ;;  %v7214_v38 = vadd.f32 %v15097_v22, %v15143_v13 }
 0xd3b   : > { %v8228_v12 = vpop.permute.xlu0 %8227 }
 0xd3c   : > { %8564 = vrot.lane.b32.xlu0 %v8413_v49, %s11027_s18  ;;  %v8421_v55 = vmul.f32 %v8228_v12, %v7189_v40  ;;  %v15267_v12 = vpop.f32.mrf.mxu1 }
 0xd3d   : > { %v8193_v29 = vpop.permute.xlu1 %8192 }
 0xd3e   : > { %8562 = vrot.lane.b32.xlu1 %v8412_v15, %s11027_s18  ;;  %v8414_v26 = vmul.f32 %v8193_v29, %v7154_v0  ;;  %v15272_v29 = vpop.f32.mrf.mxu1 }
 0xd3f   : > { %v8238_v9 = vpop.permute.xlu0 %8237 }
 0xd40   : > { %8568 = vrot.lane.b32.xlu0 %v8415_v3, %s11027_s18  ;;  %v8423_v54 = vmul.f32 %v8238_v9, %v7199_v19  ;;  %v15277_v3 = vpop.f32.mrf.mxu0 }
 0xd41   : > { %v8203_v10 = vpop.permute.xlu1 %8202 }
 0xd42   : > { %8566 = vrot.lane.b32.xlu1 %v8414_v26, %s11027_s18  ;;  %v8416_v57 = vmul.f32 %v8203_v10, %v7164_v27  ;;  %v15282_v10 = vpop.f32.mrf.mxu1  ;;  %v7224_v27 = vadd.f32 %v15097_v22, %v15159_v11  ;;  %v15287_v13 = vpop.f32.mrf.mxu0 }
 0xd43   : > { %v8248_v50 = vpop.permute.xlu0 %8247 }
 0xd44   : > { %8572 = vrot.lane.b32.xlu0 %v8417_v34, %s11027_s18  ;;  %v8425_v46 = vmul.f32 %v8248_v50, %v7209_v35  ;;  %v15289_v60 = vpop.f32.mrf.mxu1  ;;  %v7293_v11 = vpop.f32.mrf.mxu0 }
 0xd45   : > { %v8213_v58 = vpop.permute.xlu1 %8212 }
 0xd46   : > { %8570 = vrot.lane.b32.xlu1 %v8416_v57, %s11027_s18  ;;  %v8418_v39 = vmul.f32 %v8213_v58, %v7174_v47  ;;  %v7234_v47 = vadd.f32 %v15097_v22, %v15175_v51  ;;  %v15297_v40 = vpop.f32.mrf.mxu1 }
 0xd47   : > { %v8258_v32 = vpop.permute.xlu0 %8257 }
 0xd48   : > { %8576 = vrot.lane.b32.xlu0 %v8419_v14, %s11027_s18  ;;  %v8427_v0 = vmul.f32 %v8258_v32, %v7219_v61 }
 0xd49   : > { %v8223_v52 = vpop.permute.xlu1 %8222 }
 0xd4a   : > { %8574 = vrot.lane.b32.xlu1 %v8418_v39, %s11027_s18  ;;  %v8420_v30 = vmul.f32 %v8223_v52, %v7184_v17  ;;  %v7249_v39 = vadd.f32 %v15183_v48, %v15097_v22  ;;  %v15302_v17 = vpop.f32.mrf.mxu1 }
 0xd4b   : > { %v8268_v44 = vpop.permute.xlu0 %8267 }
 0xd4c   : > { %8580 = vrot.lane.b32.xlu0 %v8421_v55, %s11027_s18  ;;  %v8429_v34 = vmul.f32 %v8268_v44, %v7229_v6  ;;  %v7244_v55 = vadd.f32 %v15097_v22, %v15191_v2  ;;  %v10410_v44 = vpop.f32.mrf.mxu0 }
 0xd4d   : > { %v8233_v63 = vpop.permute.xlu1 %8232 }
 0xd4e   : > { %8578 = vrot.lane.b32.xlu1 %v8420_v30, %s11027_s18  ;;  %v8422_v20 = vmul.f32 %v8233_v63, %v7194_v37  ;;  %v7259_v30 = vadd.f32 %v15201_v8, %v15097_v22  ;;  %v15310_v37 = vpop.f32.mrf.mxu1  ;;  %v7303_v2 = vpop.f32.mrf.mxu0 }
 0xd4f   : > { %v8278_v7 = vpop.permute.xlu0 %8277 }
 0xd50   : > { %8584 = vrot.lane.b32.xlu0 %v8423_v54, %s11027_s18  ;;  %v8431_v14 = vmul.f32 %v8278_v7, %v7239_v24  ;;  %v7254_v54 = vadd.f32 %v15097_v22, %v15213_v33  ;;  %v10413_v33 = vpop.f32.mrf.mxu0 }
 0xd51   : > { %v8243_v1 = vpop.permute.xlu1 %8242 }
 0xd52   : > { %8582 = vrot.lane.b32.xlu1 %v8422_v20, %s11027_s18  ;;  %v8424_v15 = vmul.f32 %v8243_v1, %v7204_v31  ;;  %v15315_v20 = vpop.f32.mrf.mxu1  ;;  %v7269_v1 = vadd.f32 %v15223_v21, %v15097_v22  ;;  %v7313_v6 = vpop.f32.mrf.mxu0 }
 0xd53   : > { %v8288_v49 = vpop.permute.xlu0 %8287 }
 0xd54   : > { %8588 = vrot.lane.b32.xlu0 %v8425_v46, %s11027_s18  ;;  %v8433_v51 = vmul.f32 %v8288_v49, %v7249_v39  ;;  %v7264_v46 = vadd.f32 %v15097_v22, %v15233_v56 }
 0xd55   : > { %v8253_v43 = vpop.permute.xlu1 %8252 }
 0xd56   : > { %8586 = vrot.lane.b32.xlu1 %v8424_v15, %s11027_s18  ;;  %v8426_v26 = vmul.f32 %v8253_v43, %v7214_v38  ;;  %v15323_v15 = vpop.f32.mrf.mxu1  ;;  %v7279_v43 = vadd.f32 %v15245_v28, %v15097_v22 }
 0xd57   : > { %v8298_v9 = vpop.permute.xlu0 %8297 }
 0xd58   : > { %8592 = vrot.lane.b32.xlu0 %v8427_v0, %s11027_s18  ;;  %v8435_v7 = vmul.f32 %v8298_v9, %v7259_v30  ;;  %v15328_v0 = vpop.f32.mrf.mxu1  ;;  %v7274_v9 = vadd.f32 %v15097_v22, %v15255_v25  ;;  %v10416_v25 = vpop.f32.mrf.mxu0  ;;  %v7304_v30 = vadd.f32 %v15097_v22, %v7303_v2 }
 0xd59   : > { %v8263_v4 = vpop.permute.xlu1 %8262 }
 0xd5a   : > { %8590 = vrot.lane.b32.xlu1 %v8426_v26, %s11027_s18  ;;  %v8428_v57 = vmul.f32 %v8263_v4, %v7224_v27  ;;  %v7289_v4 = vadd.f32 %v15265_v16, %v15097_v22 }
 0xd5b   : > { %v8308_v50 = vpop.permute.xlu0 %8307 }
 0xd5c   : > { %8596 = vrot.lane.b32.xlu0 %v8429_v34, %s11027_s18  ;;  %v8437_v49 = vmul.f32 %v8308_v50, %v7269_v1  ;;  %v15336_v34 = vpop.f32.mrf.mxu1  ;;  %v7284_v50 = vadd.f32 %v15097_v22, %v15277_v3  ;;  %v7323_v3 = vpop.f32.mrf.mxu0 }
 0xd5d   : > { %v8273_v58 = vpop.permute.xlu1 %8272 }
 0xd5e   : > { %8594 = vrot.lane.b32.xlu1 %v8428_v57, %s11027_s18  ;;  %v8430_v52 = vmul.f32 %v8273_v58, %v7234_v47  ;;  %v15341_v58 = vpop.f32.mrf.mxu1  ;;  %v7299_v47 = vadd.f32 %v15287_v13, %v15097_v22 }
 0xd5f   : > { %v8318_v32 = vpop.permute.xlu0 %8317 }
 0xd60   : > { %8600 = vrot.lane.b32.xlu0 %v8431_v14, %s11027_s18  ;;  %v8439_v56 = vmul.f32 %v8318_v32, %v7279_v43  ;;  %v7294_v32 = vadd.f32 %v15097_v22, %v7293_v11  ;;  %v15359_v11 = vld [vmem:[%s15759_s14] ss:$0 sm:$0xff] }
 0xd61   : > { %v8283_v18 = vpop.permute.xlu1 %8282  ;;  %v6323_v1 = vadd.f32 %v15193_v42, %v15359_v11  ;;  %v7329_v42 = vadd.f32 %v10416_v25, %v15097_v22 }
 0xd62   : > { %8598 = vrot.lane.b32.xlu1 %v8430_v52, %s11027_s18  ;;  %v8432_v63 = vmul.f32 %v8283_v18, %v7244_v55  ;;  %v15348_v18 = vpop.f32.mrf.mxu1  ;;  %v7309_v55 = vadd.f32 %v10410_v44, %v15097_v22  ;;  %v7319_v44 = vadd.f32 %v10413_v33, %v15097_v22 }
 0xd63   : > { %v8328_v19 = vpop.permute.xlu0 %8327 }
 0xd64   : > { %8604 = vrot.lane.b32.xlu0 %v8433_v51, %s11027_s18  ;;  %v8441_v24 = vmul.f32 %v8328_v19, %v7289_v4  ;;  %v15352_v13 = vpop.f32.mrf.mxu1 }
 0xd65   : > { %v8293_v48 = vpop.permute.xlu1 %8292 }
 0xd66   : > { %8602 = vrot.lane.b32.xlu1 %v8432_v63, %s11027_s18  ;;  %v8434_v8 = vmul.f32 %v8293_v48, %v7254_v54  ;;  %v10419_v48 = vpop.f32.mrf.mxu0  ;;  %v15365_v2 = vpop.f32.mrf.mxu1 }
 0xd67   : > { %v8338_v35 = vpop.permute.xlu0 %8337 }
 0xd68   : > { %8608 = vrot.lane.b32.xlu0 %v8435_v7, %s11027_s18  ;;  %v8443_v39 = vmul.f32 %v8338_v35, %v7299_v47  ;;  %v15375_v33 = vpop.f32.mrf.mxu1 }
 0xd69   : > { %v8303_v31 = vpop.permute.xlu1 %8302 }
 0xd6a   : > { %8606 = vrot.lane.b32.xlu1 %v8434_v8, %s11027_s18  ;;  %v8436_v38 = vmul.f32 %v8303_v31, %v7264_v46  ;;  %v7314_v8 = vadd.f32 %v15097_v22, %v7313_v6  ;;  %v7333_v46 = vpop.f32.mrf.mxu0  ;;  %v15386_v4 = vpop.f32.mrf.mxu1 }
 0xd6b   : > { %v8348_v61 = vpop.permute.xlu0 %8347 }
 0xd6c   : > { %8612 = vrot.lane.b32.xlu0 %v8437_v49, %s11027_s18  ;;  %v8445_v63 = vmul.f32 %v8348_v61, %v7309_v55  ;;  %v10422_v6 = vpop.f32.mrf.mxu0  ;;  %v15395_v25 = vpop.f32.mrf.mxu1 }
 0xd6d   : > { %v8313_v21 = vpop.permute.xlu1 %8312 }
 0xd6e   : > { %8610 = vrot.lane.b32.xlu1 %v8436_v38, %s11027_s18  ;;  %v8438_v27 = vmul.f32 %v8313_v21, %v7274_v9  ;;  %v6333_v21 = vadd.f32 %v15208_v5, %v15359_v11  ;;  %v7324_v9 = vadd.f32 %v15097_v22, %v7323_v3  ;;  %v15404_v55 = vpop.f32.mrf.mxu1 }
 0xd6f   : > { %v8358_v26 = vpop.permute.xlu0 %8357 }
 0xd70   : > { %8616 = vrot.lane.b32.xlu0 %v8439_v56, %s11027_s18  ;;  %v8447_v31 = vmul.f32 %v8358_v26, %v7319_v44 }
 0xd71   : > { %v8323_v28 = vpop.permute.xlu1 %8322 }
 0xd72   : > { %8614 = vrot.lane.b32.xlu1 %v8438_v27, %s11027_s18  ;;  %v8440_v16 = vmul.f32 %v8323_v28, %v7284_v50  ;;  %v7339_v27 = vadd.f32 %v10419_v48, %v15097_v22  ;;  %v6353_v48 = vadd.f32 %v15240_v41, %v15359_v11  ;;  %v6363_v41 = vadd.f32 %v15257_v59, %v15359_v11 }
 0xd73   : > { %v8368_v57 = vpop.permute.xlu0 %8367  ;;  %v6373_v59 = vadd.f32 %v15272_v29, %v15359_v11  ;;  %v6383_v29 = vadd.f32 %v15289_v60, %v15359_v11  ;;  %v6393_v60 = vadd.f32 %v15302_v17, %v15359_v11  ;;  %v6403_v17 = vadd.f32 %v15315_v20, %v15359_v11 }
 0xd74   : > { %8620 = vrot.lane.b32.xlu0 %v8441_v24, %s11027_s18  ;;  %v8449_v56 = vmul.f32 %v8368_v57, %v7329_v42  ;;  %v6343_v24 = vadd.f32 %v15225_v23, %v15359_v11  ;;  %v7334_v57 = vadd.f32 %v15097_v22, %v7333_v46  ;;  %v6413_v20 = vadd.f32 %v15328_v0, %v15359_v11 }
 0xd75   : > { %v8333_v14 = vpop.permute.xlu1 %8332  ;;  %v6423_v0 = vadd.f32 %v15341_v58, %v15359_v11  ;;  %v6433_v58 = vadd.f32 %v15352_v13, %v15359_v11  ;;  %v6443_v13 = vadd.f32 %v15375_v33, %v15359_v11  ;;  %v6453_v33 = vadd.f32 %v15395_v25, %v15359_v11 }
 0xd76   : > { %8618 = vrot.lane.b32.xlu1 %v8440_v16, %s11027_s18  ;;  %v8442_v51 = vmul.f32 %v8333_v14, %v7294_v32  ;;  %v7343_v16 = vpop.f32.mrf.mxu0  ;;  %v7349_v32 = vadd.f32 %v10422_v6, %v15097_v22 }
 0xd77   : > { %v8378_v52 = vpop.permute.xlu0 %8377 }
 0xd78   : > { %8624 = vrot.lane.b32.xlu0 %v8443_v39, %s11027_s18  ;;  %v8451_v47 = vmul.f32 %v8378_v52, %v7339_v27 }
 0xd79   : > { %v8343_v19 = vpop.permute.xlu1 %8342 }
 0xd7a   : > { %8622 = vrot.lane.b32.xlu1 %v8442_v51, %s11027_s18  ;;  %v8444_v7 = vmul.f32 %v8343_v19, %v7304_v30  ;;  %v7344_v51 = vadd.f32 %v15097_v22, %v7343_v16  ;;  %v6318_v19 = vadd.f32 %v15359_v11, %v15203_v45  ;;  %v15410_v30 = vpop.f32.mrf.mxu1 }
 0xd7b   : > { %v8388_v54 = vpop.permute.xlu0 %8387  ;;  %v6463_v25 = vadd.f32 %v15410_v30, %v15359_v11 }
 0xd7c   : > { %8628 = vrot.lane.b32.xlu0 %v8445_v63, %s11027_s18  ;;  %v8453_v52 = vmul.f32 %v8388_v54, %v7349_v32  ;;  %v6328_v54 = vadd.f32 %v15359_v11, %v15218_v62  ;;  %v6338_v62 = vadd.f32 %v15359_v11, %v15235_v53  ;;  %v6348_v53 = vadd.f32 %v15359_v11, %v15250_v36 }
 0xd7d   : > { %v8353_v35 = vpop.permute.xlu1 %8352  ;;  %v6358_v36 = vadd.f32 %v15359_v11, %v15267_v12  ;;  %v6368_v12 = vadd.f32 %v15359_v11, %v15282_v10  ;;  %v6378_v10 = vadd.f32 %v15359_v11, %v15297_v40  ;;  %v6388_v40 = vadd.f32 %v15359_v11, %v15310_v37 }
 0xd7e   : > { %8626 = vrot.lane.b32.xlu1 %v8444_v7, %s11027_s18  ;;  %v8446_v43 = vmul.f32 %v8353_v35, %v7314_v8  ;;  %v15422_v35 = vpop.f32.mrf.mxu1  ;;  %v6398_v37 = vadd.f32 %v15359_v11, %v15323_v15  ;;  %v6408_v15 = vadd.f32 %v15359_v11, %v15336_v34  ;;  %v6418_v34 = vadd.f32 %v15359_v11, %v15348_v18 }
 0xd7f   : > { %v8521_v49 = vpop.permute.xlu0 %8520  ;;  %v6428_v18 = vadd.f32 %v15359_v11, %v15365_v2  ;;  %v6438_v2 = vadd.f32 %v15359_v11, %v15386_v4  ;;  %v6448_v4 = vadd.f32 %v15359_v11, %v15404_v55  ;;  %v6458_v55 = vadd.f32 %v15359_v11, %v15422_v35 }
 0xd80   : > { %v8711_v61 = vsel %vm2033_vm3, %v6323_v1, %v8521_v49  ;;  %8632 = vrot.lane.b32.xlu0 %v8447_v31, %s11027_s18  ;;  %v15428_v8 = vpop.f32.mrf.mxu1 }
 0xd81   : > { %8776 = vst.msk [vmem:[%s15372_s27 + $0x8] sm:$0xff] %vm8774_vm4, %v8711_v61  ;;  %v8363_v38 = vpop.permute.xlu1 %8362  ;;  %v6473_v30 = vadd.f32 %v15428_v8, %v15359_v11 }
 0xd82   : > { %8630 = vrot.lane.b32.xlu1 %v8446_v43, %s11027_s18  ;;  %v8448_v50 = vmul.f32 %v8363_v38, %v7324_v9  ;;  %v15440_v61 = vpop.f32.mrf.mxu1 }
 0xd83   : > { %v8525_v26 = vpop.permute.xlu0 %8524  ;;  %v6468_v35 = vadd.f32 %v15359_v11, %v15440_v61 }
 0xd84   : > { %v8713_v28 = vsel %vm2033_vm3, %v6333_v21, %v8525_v26  ;;  %8636 = vrot.lane.b32.xlu0 %v8449_v56, %s11027_s18  ;;  %v15448_v9 = vpop.f32.mrf.mxu1 }
 0xd85   : > { %8778 = vst.msk [vmem:[%s15372_s27 + $0x18] sm:$0xff] %vm8774_vm4, %v8713_v28  ;;  %v8373_v5 = vpop.permute.xlu1 %8372  ;;  %v6483_v8 = vadd.f32 %v15448_v9, %v15359_v11 }
 0xd86   : > { %8634 = vrot.lane.b32.xlu1 %v8448_v50, %s11027_s18  ;;  %v8450_v39 = vmul.f32 %v8373_v5, %v7334_v57  ;;  %v15460_v28 = vpop.f32.mrf.mxu1 }
 0xd87   : > { %v8529_v14 = vpop.permute.xlu0 %8528 }
 0xd88   : > { %v8715_v3 = vsel %vm2033_vm3, %v6343_v24, %v8529_v14  ;;  %8640 = vrot.lane.b32.xlu0 %v8451_v47, %s11027_s18  ;;  %v15466_v5 = vpop.f32.mrf.mxu1 }
 0xd89   : > { %8780 = vst.msk [vmem:[%s15372_s27 + $0x28] sm:$0xff] %vm8774_vm4, %v8715_v3  ;;  %v8383_v23 = vpop.permute.xlu1 %8382 }
 0xd8a   : > { %8638 = vrot.lane.b32.xlu1 %v8450_v39, %s11027_s18  ;;  %v8452_v63 = vmul.f32 %v8383_v23, %v7344_v51  ;;  %v15478_v14 = vpop.f32.mrf.mxu1 }
 0xd8c   : > { %8644 = vrot.lane.b32.xlu0 %v8453_v52, %s11027_s18  ;;  %v15486_v23 = vpop.f32.mrf.mxu1 }
 0xd8d   : > { %v8519_v44 = vpop.permute.xlu1 %8518 }
 0xd8e   : > { %v8710_v7 = vsel %vm2033_vm3, %v6318_v19, %v8519_v44  ;;  %v8533_v22 = vpop.permute.xlu0 %8532  ;;  %8642 = vrot.lane.b32.xlu1 %v8452_v63, %s11027_s18 }
 0xd8f   : > { %8775 = vst.msk [vmem:[%s15372_s27] sm:$0xff] %vm8774_vm4, %v8710_v7  ;;  %v8717_v45 = vsel %vm2033_vm3, %v6353_v48, %v8533_v22  ;;  %v15498_v48 = vpop.f32.mrf.mxu1 }
 0xd90   : > { %8782 = vst.msk [vmem:[%s15372_s27 + $0x38] sm:$0xff] %vm8774_vm4, %v8717_v45 }
 0xd91   : > { %v8523_v1 = vpop.permute.xlu1 %8522  ;;  %v15504_v7 = vpop.f32.mrf.mxu1 }
 0xd92   : > { %v8712_v31 = vsel %vm2033_vm3, %v6328_v54, %v8523_v1  ;;  %v8537_v46 = vpop.permute.xlu0 %8536 }
 0xd93   : > { %8777 = vst.msk [vmem:[%s15372_s27 + $0x10] sm:$0xff] %vm8774_vm4, %v8712_v31  ;;  %v8719_v49 = vsel %vm2033_vm3, %v6363_v41, %v8537_v46  ;;  %v15516_v1 = vpop.f32.mrf.mxu1 }
 0xd94   : > { %8784 = vst.msk [vmem:[%s15372_s27 + $0x48] sm:$0xff] %vm8774_vm4, %v8719_v49 }
 0xd95   : > { %v8527_v42 = vpop.permute.xlu1 %8526 }
 0xd96   : > { %v8714_v43 = vsel %vm2033_vm3, %v6338_v62, %v8527_v42  ;;  %v8541_v38 = vpop.permute.xlu0 %8540  ;;  %v15524_v62 = vpop.f32.mrf.mxu1 }
 0xd97   : > { %8779 = vst.msk [vmem:[%s15372_s27 + $0x20] sm:$0xff] %vm8774_vm4, %v8714_v43  ;;  %v8721_v21 = vsel %vm2033_vm3, %v6373_v59, %v8541_v38 }
 0xd98   : > { %8786 = vst.msk [vmem:[%s15372_s27 + $0x58] sm:$0xff] %vm8774_vm4, %v8721_v21  ;;  %v15536_v21 = vpop.f32.mrf.mxu1 }
 0xd99   : > { %v8531_v56 = vpop.permute.xlu1 %8530 }
 0xd9a   : > { %v8716_v6 = vsel %vm2033_vm3, %v6348_v53, %v8531_v56  ;;  %v8545_v26 = vpop.permute.xlu0 %8544 }
 0xd9b   : > { %8781 = vst.msk [vmem:[%s15372_s27 + $0x30] sm:$0xff] %vm8774_vm4, %v8716_v6  ;;  %v8723_v27 = vsel %vm2033_vm3, %v6383_v29, %v8545_v26  ;;  %v15542_v29 = vpop.f32.mrf.mxu1 }
 0xd9c   : > { %8788 = vst.msk [vmem:[%s15372_s27 + $0x68] sm:$0xff] %vm8774_vm4, %v8723_v27 }
 0xd9d   : > { %v8535_v50 = vpop.permute.xlu1 %8534 }
 0xd9e   : > { %v8718_v24 = vsel %vm2033_vm3, %v6358_v36, %v8535_v50  ;;  %v8549_v57 = vpop.permute.xlu0 %8548  ;;  %v15554_v36 = vpop.f32.mrf.mxu1 }
 0xd9f   : > { %8783 = vst.msk [vmem:[%s15372_s27 + $0x40] sm:$0xff] %vm8774_vm4, %v8718_v24  ;;  %v8725_v47 = vsel %vm2033_vm3, %v6393_v60, %v8549_v57 }
 0xda0   : > { %8790 = vst.msk [vmem:[%s15372_s27 + $0x78] sm:$0xff] %vm8774_vm4, %v8725_v47  ;;  %v15562_v57 = vpop.f32.mrf.mxu1 }
 0xda1   : > { %v8539_v16 = vpop.permute.xlu1 %8538 }
 0xda2   : > { %v8720_v32 = vsel %vm2033_vm3, %v6368_v12, %v8539_v16  ;;  %v8553_v39 = vpop.permute.xlu0 %8552 }
 0xda3   : > { %8785 = vst.msk [vmem:[%s15372_s27 + $0x50] sm:$0xff] %vm8774_vm4, %v8720_v32  ;;  %v8727_v3 = vsel %vm2033_vm3, %v6403_v17, %v8553_v39  ;;  %v15574_v32 = vpop.f32.mrf.mxu1 }
 0xda4   : > { %8792 = vst.msk [vmem:[%s15372_s27 + $0x88] sm:$0xff] %vm8774_vm4, %v8727_v3 }
 0xda5   : > { %v8543_v51 = vpop.permute.xlu1 %8542  ;;  %v10294_v3 = vpop.f32.mrf.mxu1 }
 0xda6   : > { %v8722_v52 = vsel %vm2033_vm3, %v6378_v10, %v8543_v51  ;;  %v8557_v19 = vpop.permute.xlu0 %8556 }
 0xda7   : > { %8787 = vst.msk [vmem:[%s15372_s27 + $0x60] sm:$0xff] %vm8774_vm4, %v8722_v52  ;;  %v8729_v63 = vsel %vm2033_vm3, %v6413_v20, %v8557_v19  ;;  %v6493_v52 = vadd.f32 %v15466_v5, %v15359_v11  ;;  %v15590_v19 = vpop.f32.mrf.mxu1  ;;  %v6503_v5 = vadd.f32 %v15486_v23, %v15359_v11  ;;  %v6513_v23 = vadd.f32 %v15504_v7, %v15359_v11 }
 0xda8   : > { %8794 = vst.msk [vmem:[%s15372_s27 + $0x98] sm:$0xff] %vm8774_vm4, %v8729_v63 }
 0xda9   : > { %v8547_v44 = vpop.permute.xlu1 %8546 }
 0xdaa   : > { %v8724_v22 = vsel %vm2033_vm3, %v6388_v40, %v8547_v44  ;;  %v8561_v45 = vpop.permute.xlu0 %8560  ;;  %v10297_v44 = vpop.f32.mrf.mxu1 }
 0xdab   : > { %8789 = vst.msk [vmem:[%s15372_s27 + $0x70] sm:$0xff] %vm8774_vm4, %v8724_v22  ;;  %v8731_v54 = vsel %vm2033_vm3, %v6423_v0, %v8561_v45 }
 0xdac   : > { %8796 = vst.msk [vmem:[%s15372_s27 + $0xa8] sm:$0xff] %vm8774_vm4, %v8731_v54  ;;  %v15608_v61 = vpop.f32.mrf.mxu1 }
 0xdad   : > { %v8551_v41 = vpop.permute.xlu1 %8550 }
 0xdae   : > { %v8726_v31 = vsel %vm2033_vm3, %v6398_v37, %v8551_v41  ;;  %v8565_v46 = vpop.permute.xlu0 %8564 }
 0xdaf   : > { %8791 = vst.msk [vmem:[%s15372_s27 + $0x80] sm:$0xff] %vm8774_vm4, %v8726_v31  ;;  %v8733_v49 = vsel %vm2033_vm3, %v6433_v58, %v8565_v46  ;;  %v6478_v58 = vadd.f32 %v15359_v11, %v15460_v28  ;;  %v6488_v28 = vadd.f32 %v15359_v11, %v15478_v14 }
 0xdb0   : > { %8798 = vst.msk [vmem:[%s15372_s27 + $0xb8] sm:$0xff] %vm8774_vm4, %v8733_v49 }
 0xdb1   : > { %v8555_v59 = vpop.permute.xlu1 %8554 }
 0xdb2   : > { %v8728_v42 = vsel %vm2033_vm3, %v6408_v15, %v8555_v59  ;;  %v8569_v43 = vpop.permute.xlu0 %8568  ;;  %v10300_v15 = vpop.f32.mrf.mxu1 }
 0xdb3   : > { %8793 = vst.msk [vmem:[%s15372_s27 + $0x90] sm:$0xff] %vm8774_vm4, %v8728_v42  ;;  %v8735_v38 = vsel %vm2033_vm3, %v6443_v13, %v8569_v43  ;;  %v6523_v13 = vadd.f32 %v15524_v62, %v15359_v11  ;;  %v6533_v62 = vadd.f32 %v15542_v29, %v15359_v11 }
 0xdb4   : > { %8800 = vst.msk [vmem:[%s15372_s27 + $0xc8] sm:$0xff] %vm8774_vm4, %v8735_v38  ;;  %v6498_v38 = vadd.f32 %v15359_v11, %v15498_v48  ;;  %v15630_v14 = vpop.f32.mrf.mxu1  ;;  %v6508_v48 = vadd.f32 %v15359_v11, %v15516_v1 }
 0xdb5   : > { %v8559_v53 = vpop.permute.xlu1 %8558 }
 0xdb6   : > { %v8730_v56 = vsel %vm2033_vm3, %v6418_v34, %v8559_v53  ;;  %v8573_v6 = vpop.permute.xlu0 %8572 }
 0xdb7   : > { %8795 = vst.msk [vmem:[%s15372_s27 + $0xa0] sm:$0xff] %vm8774_vm4, %v8730_v56  ;;  %v8737_v26 = vsel %vm2033_vm3, %v6453_v33, %v8573_v6  ;;  %v10303_v6 = vpop.f32.mrf.mxu1 }
 0xdb8   : > { %8802 = vst.msk [vmem:[%s15372_s27 + $0xd8] sm:$0xff] %vm8774_vm4, %v8737_v26  ;;  %v6543_v26 = vadd.f32 %v15562_v57, %v15359_v11 }
 0xdb9   : > { %v8563_v27 = vpop.permute.xlu1 %8562  ;;  %v6577_v1 = vpop.f32.mrf.mxu1 }
 0xdba   : > { %v8732_v60 = vsel %vm2033_vm3, %v6428_v18, %v8563_v27  ;;  %v8577_v50 = vpop.permute.xlu0 %8576 }
 0xdbb   : > { %8797 = vst.msk [vmem:[%s15372_s27 + $0xb0] sm:$0xff] %vm8774_vm4, %v8732_v60  ;;  %v8739_v24 = vsel %vm2033_vm3, %v6463_v25, %v8577_v50  ;;  %v6518_v60 = vadd.f32 %v15359_v11, %v15536_v21  ;;  %v6553_v50 = vadd.f32 %v10294_v3, %v15359_v11  ;;  %v10306_v21 = vpop.f32.mrf.mxu1  ;;  %v6573_v3 = vadd.f32 %v10300_v15, %v15359_v11 }
 0xdbc   : > { %8804 = vst.msk [vmem:[%s15372_s27 + $0xe8] sm:$0xff] %vm8774_vm4, %v8739_v24  ;;  %v6578_v15 = vadd.f32 %v15359_v11, %v6577_v1 }
 0xdbd   : > { %v8567_v47 = vpop.permute.xlu1 %8566 }
 0xdbe   : > { %v8734_v12 = vsel %vm2033_vm3, %v6438_v2, %v8567_v47  ;;  %v8581_v17 = vpop.permute.xlu0 %8580  ;;  %v6528_v47 = vadd.f32 %v15359_v11, %v15554_v36  ;;  %v6587_v36 = vpop.f32.mrf.mxu1 }
 0xdbf   : > { %8799 = vst.msk [vmem:[%s15372_s27 + $0xc0] sm:$0xff] %vm8774_vm4, %v8734_v12  ;;  %v8741_v16 = vsel %vm2033_vm3, %v6473_v30, %v8581_v17  ;;  %v6563_v12 = vadd.f32 %v10297_v44, %v15359_v11  ;;  %v6558_v44 = vadd.f32 %v15359_v11, %v15608_v61 }
 0xdc0   : > { %8806 = vst.msk [vmem:[%s15372_s27 + $0xf8] sm:$0xff] %vm8774_vm4, %v8741_v16 }
 0xdc1   : > { %v8571_v39 = vpop.permute.xlu1 %8570 }
 0xdc2   : > { %v8736_v10 = vsel %vm2033_vm3, %v6448_v4, %v8571_v39  ;;  %v8585_v20 = vpop.permute.xlu0 %8584  ;;  %v6538_v39 = vadd.f32 %v15359_v11, %v15574_v32  ;;  %v6583_v32 = vadd.f32 %v10303_v6, %v15359_v11 }
 0xdc3   : > { %8801 = vst.msk [vmem:[%s15372_s27 + $0xd0] sm:$0xff] %vm8774_vm4, %v8736_v10  ;;  %v8743_v51 = vsel %vm2033_vm3, %v6483_v8, %v8585_v20 }
 0xdc4   : > { %8808 = vst.msk [vmem:[%s15372_s27 + $0x108] sm:$0xff] %vm8774_vm4, %v8743_v51 }
 0xdc5   : > { %v8575_v9 = vpop.permute.xlu1 %8574 }
 0xdc6   : > { %v8738_v63 = vsel %vm2033_vm3, %v6458_v55, %v8575_v9  ;;  %v8589_v40 = vpop.permute.xlu0 %8588  ;;  %v10309_v9 = vpop.f32.mrf.mxu1 }
 0xdc7   : > { %8803 = vst.msk [vmem:[%s15372_s27 + $0xe0] sm:$0xff] %vm8774_vm4, %v8738_v63  ;;  %v8745_v0 = vsel %vm2033_vm3, %v6493_v52, %v8589_v40  ;;  %v6548_v52 = vadd.f32 %v15359_v11, %v15590_v19  ;;  %v6593_v19 = vadd.f32 %v10306_v21, %v15359_v11  ;;  %v6603_v61 = vadd.f32 %v10309_v9, %v15359_v11 }
 0xdc8   : > { %8810 = vst.msk [vmem:[%s15372_s27 + $0x118] sm:$0xff] %vm8774_vm4, %v8745_v0 }
 0xdc9   : > { %v8579_v22 = vpop.permute.xlu1 %8578 }
 0xdca   : > { %v8740_v45 = vsel %vm2033_vm3, %v6468_v35, %v8579_v22  ;;  %v8593_v54 = vpop.permute.xlu0 %8592 }
 0xdcb   : > { %8805 = vst.msk [vmem:[%s15372_s27 + $0xf0] sm:$0xff] %vm8774_vm4, %v8740_v45  ;;  %v8747_v37 = vsel %vm2033_vm3, %v6503_v5, %v8593_v54  ;;  %v6597_v5 = vpop.f32.mrf.mxu1 }
 0xdcc   : > { %8812 = vst.msk [vmem:[%s15372_s27 + $0x128] sm:$0xff] %vm8774_vm4, %v8747_v37 }
 0xdcd   : > { %v8583_v41 = vpop.permute.xlu1 %8582  ;;  %v10312_v45 = vpop.f32.mrf.mxu1 }
 0xdce   : > { %v8742_v31 = vsel %vm2033_vm3, %v6478_v58, %v8583_v41  ;;  %v8597_v46 = vpop.permute.xlu0 %8596 }
 0xdcf   : > { %8807 = vst.msk [vmem:[%s15372_s27 + $0x100] sm:$0xff] %vm8774_vm4, %v8742_v31  ;;  %v8749_v49 = vsel %vm2033_vm3, %v6513_v23, %v8597_v46  ;;  %v6568_v23 = vadd.f32 %v15359_v11, %v15630_v14  ;;  %v6607_v31 = vpop.f32.mrf.mxu1  ;;  %v6588_v14 = vadd.f32 %v15359_v11, %v6587_v36 }
 0xdd0   : > { %8814 = vst.msk [vmem:[%s15372_s27 + $0x138] sm:$0xff] %vm8774_vm4, %v8749_v49  ;;  %v6608_v1 = vadd.f32 %v15359_v11, %v6607_v31 }
 0xdd1   : > { %v8587_v7 = vpop.permute.xlu1 %8586 }
 0xdd2   : > { %v8744_v59 = vsel %vm2033_vm3, %v6488_v28, %v8587_v7  ;;  %v8601_v42 = vpop.permute.xlu0 %8600  ;;  %v6613_v7 = vadd.f32 %v10312_v45, %v15359_v11 }
 0xdd3   : > { %8809 = vst.msk [vmem:[%s15372_s27 + $0x110] sm:$0xff] %vm8774_vm4, %v8744_v59  ;;  %v8751_v43 = vsel %vm2033_vm3, %v6523_v13, %v8601_v42  ;;  %v10315_v13 = vpop.f32.mrf.mxu1 }
 0xdd4   : > { %8816 = vst.msk [vmem:[%s15372_s27 + $0x148] sm:$0xff] %vm8774_vm4, %v8751_v43 }
 0xdd5   : > { %v8591_v34 = vpop.permute.xlu1 %8590 }
 0xdd6   : > { %v8746_v33 = vsel %vm2033_vm3, %v6498_v38, %v8591_v34  ;;  %v8605_v53 = vpop.permute.xlu0 %8604  ;;  %v6623_v34 = vadd.f32 %v10315_v13, %v15359_v11 }
 0xdd7   : > { %8811 = vst.msk [vmem:[%s15372_s27 + $0x120] sm:$0xff] %vm8774_vm4, %v8746_v33  ;;  %v8753_v56 = vsel %vm2033_vm3, %v6533_v62, %v8605_v53  ;;  %v6617_v62 = vpop.f32.mrf.mxu1 }
 0xdd8   : > { %8818 = vst.msk [vmem:[%s15372_s27 + $0x158] sm:$0xff] %vm8774_vm4, %v8753_v56 }
 0xdd9   : > { %v8595_v29 = vpop.permute.xlu1 %8594  ;;  %v10318_v53 = vpop.f32.mrf.mxu1 }
 0xdda   : > { %v8748_v18 = vsel %vm2033_vm3, %v6508_v48, %v8595_v29  ;;  %v8609_v25 = vpop.permute.xlu0 %8608  ;;  %v6633_v29 = vadd.f32 %v10318_v53, %v15359_v11 }
 0xddb   : > { %8813 = vst.msk [vmem:[%s15372_s27 + $0x130] sm:$0xff] %vm8774_vm4, %v8748_v18  ;;  %v8755_v27 = vsel %vm2033_vm3, %v6543_v26, %v8609_v25  ;;  %v6598_v26 = vadd.f32 %v15359_v11, %v6597_v5 }
 0xddc   : > { %8820 = vst.msk [vmem:[%s15372_s27 + $0x168] sm:$0xff] %vm8774_vm4, %v8755_v27 }
 0xddd   : > { %v8599_v24 = vpop.permute.xlu1 %8598 }
 0xdde   : > { %v8750_v2 = vsel %vm2033_vm3, %v6518_v60, %v8599_v24  ;;  %v8613_v57 = vpop.permute.xlu0 %8612 }
 0xddf   : > { %8815 = vst.msk [vmem:[%s15372_s27 + $0x140] sm:$0xff] %vm8774_vm4, %v8750_v2  ;;  %v8757_v30 = vsel %vm2033_vm3, %v6553_v50, %v8613_v57  ;;  %v6618_v2 = vadd.f32 %v15359_v11, %v6617_v62  ;;  %v6627_v57 = vpop.f32.mrf.mxu1 }
 0xde0   : > { %8822 = vst.msk [vmem:[%s15372_s27 + $0x178] sm:$0xff] %vm8774_vm4, %v8757_v30  ;;  %v6628_v21 = vadd.f32 %v15359_v11, %v6627_v57 }
 0xde1   : > { %v8603_v17 = vpop.permute.xlu1 %8602 }
 0xde2   : > { %v8752_v16 = vsel %vm2033_vm3, %v6528_v47, %v8603_v17  ;;  %v8617_v4 = vpop.permute.xlu0 %8616 }
 0xde3   : > { %8817 = vst.msk [vmem:[%s15372_s27 + $0x150] sm:$0xff] %vm8774_vm4, %v8752_v16  ;;  %v8759_v8 = vsel %vm2033_vm3, %v6563_v12, %v8617_v4 }
 0xde4   : > { %8824 = vst.msk [vmem:[%s15372_s27 + $0x188] sm:$0xff] %vm8774_vm4, %v8759_v8 }
 0xde5   : > { %v8607_v10 = vpop.permute.xlu1 %8606 }
 0xde6   : > { %v8754_v20 = vsel %vm2033_vm3, %v6538_v39, %v8607_v10  ;;  %v8621_v51 = vpop.permute.xlu0 %8620 }
 0xde7   : > { %8819 = vst.msk [vmem:[%s15372_s27 + $0x160] sm:$0xff] %vm8774_vm4, %v8754_v20  ;;  %v8761_v55 = vsel %vm2033_vm3, %v6573_v3, %v8621_v51 }
 0xde8   : > { %8826 = vst.msk [vmem:[%s15372_s27 + $0x198] sm:$0xff] %vm8774_vm4, %v8761_v55 }
 0xde9   : > { %v8611_v63 = vpop.permute.xlu1 %8610 }
 0xdea   : > { %v8756_v40 = vsel %vm2033_vm3, %v6548_v52, %v8611_v63  ;;  %v8625_v0 = vpop.permute.xlu0 %8624 }
 0xdeb   : > { %8821 = vst.msk [vmem:[%s15372_s27 + $0x170] sm:$0xff] %vm8774_vm4, %v8756_v40  ;;  %v8763_v35 = vsel %vm2033_vm3, %v6583_v32, %v8625_v0 }
 0xdec   : > { %8828 = vst.msk [vmem:[%s15372_s27 + $0x1a8] sm:$0xff] %vm8774_vm4, %v8763_v35 }
 0xded   : > { %v8615_v22 = vpop.permute.xlu1 %8614 }
 0xdee   : > { %v8758_v54 = vsel %vm2033_vm3, %v6558_v44, %v8615_v22  ;;  %v8629_v37 = vpop.permute.xlu0 %8628 }
 0xdef   : > { %8823 = vst.msk [vmem:[%s15372_s27 + $0x180] sm:$0xff] %vm8774_vm4, %v8758_v54  ;;  %v8765_v58 = vsel %vm2033_vm3, %v6593_v19, %v8629_v37 }
 0xdf0   : > { %8830 = vst.msk [vmem:[%s15372_s27 + $0x1b8] sm:$0xff] %vm8774_vm4, %v8765_v58 }
 0xdf1   : > { %v8619_v41 = vpop.permute.xlu1 %8618 }
 0xdf2   : > { %v8760_v46 = vsel %vm2033_vm3, %v6568_v23, %v8619_v41  ;;  %v8633_v49 = vpop.permute.xlu0 %8632 }
 0xdf3   : > { %8825 = vst.msk [vmem:[%s15372_s27 + $0x190] sm:$0xff] %vm8774_vm4, %v8760_v46  ;;  %v8767_v28 = vsel %vm2033_vm3, %v6603_v61, %v8633_v49 }
 0xdf4   : > { %8832 = vst.msk [vmem:[%s15372_s27 + $0x1c8] sm:$0xff] %vm8774_vm4, %v8767_v28 }
 0xdf5   : > { %v8623_v59 = vpop.permute.xlu1 %8622 }
 0xdf6   : > { %v8762_v42 = vsel %vm2033_vm3, %v6578_v15, %v8623_v59  ;;  %v8637_v43 = vpop.permute.xlu0 %8636 }
 0xdf7   : > { %8827 = vst.msk [vmem:[%s15372_s27 + $0x1a0] sm:$0xff] %vm8774_vm4, %v8762_v42  ;;  %v8769_v38 = vsel %vm2033_vm3, %v6613_v7, %v8637_v43 }
 0xdf8   : > { %8834 = vst.msk [vmem:[%s15372_s27 + $0x1d8] sm:$0xff] %vm8774_vm4, %v8769_v38 }
 0xdf9   : > { %v8627_v33 = vpop.permute.xlu1 %8626 }
 0xdfa   : > { %v8764_v56 = vsel %vm2033_vm3, %v6588_v14, %v8627_v33  ;;  %v8641_v48 = vpop.permute.xlu0 %8640 }
 0xdfb   : > { %8829 = vst.msk [vmem:[%s15372_s27 + $0x1b0] sm:$0xff] %vm8774_vm4, %v8764_v56  ;;  %v8771_v6 = vsel %vm2033_vm3, %v6623_v34, %v8641_v48 }
 0xdfc   : > { %8836 = vst.msk [vmem:[%s15372_s27 + $0x1e8] sm:$0xff] %vm8774_vm4, %v8771_v6 }
 0xdfd   : > { %v8631_v18 = vpop.permute.xlu1 %8630 }
 0xdfe   : > { %v8766_v25 = vsel %vm2033_vm3, %v6598_v26, %v8631_v18  ;;  %v8645_v27 = vpop.permute.xlu0 %8644 }
 0xdff   : > { %8831 = vst.msk [vmem:[%s15372_s27 + $0x1c0] sm:$0xff] %vm8774_vm4, %v8766_v25  ;;  %v8773_v60 = vsel %vm2033_vm3, %v6633_v29, %v8645_v27 }
 0xe00   : > { %8838 = vst.msk [vmem:[%s15372_s27 + $0x1f8] sm:$0xff] %vm8774_vm4, %v8773_v60 }
 0xe01   : > { %v8635_v50 = vpop.permute.xlu1 %8634 }
 0xe02   : > { %v8768_v24 = vsel %vm2033_vm3, %v6608_v1, %v8635_v50 }
 0xe03   : > { %8833 = vst.msk [vmem:[%s15372_s27 + $0x1d0] sm:$0xff] %vm8774_vm4, %v8768_v24 }
 0xe05   : > { %v8639_v30 = vpop.permute.xlu1 %8638 }
 0xe06   : > { %v8770_v47 = vsel %vm2033_vm3, %v6618_v2, %v8639_v30 }
 0xe07   : > { %8835 = vst.msk [vmem:[%s15372_s27 + $0x1e0] sm:$0xff] %vm8774_vm4, %v8770_v47 }
 0xe09   : > { %v8643_v12 = vpop.permute.xlu1 %8642 }
 0xe0a   : > { %v8772_v17 = vsel %vm2033_vm3, %v6628_v21, %v8643_v12 }
 0xe0b   : > { %8837 = vst.msk [vmem:[%s15372_s27 + $0x1f0] sm:$0xff] %vm8774_vm4, %v8772_v17 }
 0xe0c PF: > { %s31_s20 = sadd.s32 1, %s11024_s20  }
 0xe0d   : > { %p28_p4 = scmp.ge.s32.totalorder %s31_s20, 5  }
 0xe0f   :  { %30 = sbr.rel (!%p28_p4) target bundleno = 5 (0x5), region = 135 }

</bundles_post_ra>
